<compile_context>
chip_gen: v5e
topology: v5e:2x2
jax: 0.10.0
libtpu: 0.0.40
codegen_flags: <defaults>
</compile_context>

<pallas_src>
import numpy as np
import jax
import jax.numpy as jnp
from jax.experimental import pallas as pl
from jax.experimental.pallas import tpu as pltpu

# ----- architecture constants (mirror CustomNet defaults) -----------------
NUM_CONV_LAYERS = 2
KERNEL_SIZE = 3
NUM_INIT_FILTERS = 10
CONV_FILTER_STEP = 2
PADDING = 1
IMG = 28

C1 = NUM_INIT_FILTERS                       # 10 conv1 output channels
C2 = NUM_INIT_FILTERS * CONV_FILTER_STEP    # 20 conv2 output channels

H1 = IMG                                    # 28 conv1 output spatial
PW1 = IMG + 2 * PADDING                     # 30 padded row width (conv1 input grid)
M1 = H1 * PW1                               # 840 conv1-output lanes (flat r = i*30 + j)
X_LANES = 912                               # >= 30*30 + max tap shift (62), padded up
MIJ1_W = M1 - PW1 - 2                       # 808 width of the 2x2-window max map

HP1 = IMG // 2                              # 14 pooled1 spatial
PW2 = HP1 + 2 * PADDING                     # 16 padded row width (conv2 input grid)
M2 = HP1 * PW2                              # 224 conv2-output lanes (flat r = i*16 + j)
A1_W = 264                                  # >= 224 + 34 (max conv2 tap shift)
MIJ2_W = M2 - PW2 - 1                       # 207

HP2 = HP1 // 2                              # 7 pooled2 spatial
NPOS2 = HP2 * HP2                           # 49 pooled2 positions per channel
CHUNK = 128                                 # lane-aligned per-channel chunk in flat vector
FLAT_W = C2 * CHUNK                         # 2560 (980 real features + zero padding)
LINEAR_IN = NPOS2 * C2                      # 980 (PyTorch x.view(-1, .))
HIDDEN = LINEAR_IN // 6                     # 163
NCLS = 10


# ---------------------------------------------------------------------------
# The fused Pallas kernel (one batch sample per grid step)
# ---------------------------------------------------------------------------
def _custom_net_kernel(x_ref, w1_ref, b1_ref, w2_ref, b2_ref, s1_ref, s2_ref,
                       w1p_ref, b1f_ref, w2p_ref, b2f_ref, out_ref,
                       z1_ref, a1_ref, z2_ref, p_ref, f_ref):
    # ---- conv1 (1 -> 10 ch, 3x3, pad 1): 9 shift-FMAs, flat spatial on lanes ----
    acc1 = None
    for dy in range(KERNEL_SIZE):
        for dx in range(KERNEL_SIZE):
            t = dy * KERNEL_SIZE + dx
            o = dy * PW1 + dx
            term = w1_ref[:, t:t + 1] * x_ref[0, :, o:o + M1]   # (10,1)*(1,840) -> (10,840)
            acc1 = term if acc1 is None else acc1 + term
    z1_ref[...] = jnp.maximum(acc1 + b1_ref[...], 0.0)          # bias + ReLU, once

    # ---- 2x2 max-pool + re-layout onto zero-padded 16x16 grid (exact 0/1 matmul) ----
    m1 = jnp.maximum(
        jnp.maximum(z1_ref[:, 0:MIJ1_W], z1_ref[:, 1:MIJ1_W + 1]),
        jnp.maximum(z1_ref[:, PW1:PW1 + MIJ1_W],
                    z1_ref[:, PW1 + 1:PW1 + 1 + MIJ1_W]))
    a1_ref[...] = jnp.dot(m1, s1_ref[...],
                          preferred_element_type=jnp.float32)   # (10, 264)

    # ---- conv2 (10 -> 20 ch, 3x3, pad 1): 9 shift-matmuls on the MXU ----
    acc2 = None
    for dy in range(KERNEL_SIZE):
        for dx in range(KERNEL_SIZE):
            t = dy * KERNEL_SIZE + dx
            o = dy * PW2 + dx
            term = jnp.dot(w2_ref[t], a1_ref[:, o:o + M2],
                           preferred_element_type=jnp.float32)  # (20,10)@(10,224)
            acc2 = term if acc2 is None else acc2 + term
    # TODO(synk): Dropout2d after conv2 is identity in eval mode; not applied.
    z2_ref[...] = jnp.maximum(acc2 + b2_ref[...], 0.0)          # bias + ReLU, once

    # ---- 2x2 max-pool + downsample (exact 0/1 selection matmul) ----
    m2 = jnp.maximum(
        jnp.maximum(z2_ref[:, 0:MIJ2_W], z2_ref[:, 1:MIJ2_W + 1]),
        jnp.maximum(z2_ref[:, PW2:PW2 + MIJ2_W],
                    z2_ref[:, PW2 + 1:PW2 + 1 + MIJ2_W]))
    p_ref[...] = jnp.dot(m2, s2_ref[...],
                         preferred_element_type=jnp.float32)    # (20, 49)

    # ---- flatten (NCHW order, lane-aligned 128-wide channel chunks) ----
    f_ref[...] = jnp.zeros((1, FLAT_W), jnp.float32)
    for c in range(C2):
        f_ref[0:1, c * CHUNK:c * CHUNK + NPOS2] = p_ref[c:c + 1, :]

    # ---- MLP head: fc1 + ReLU (+ dropout = identity) + fc2 + log_softmax ----
    h = jnp.maximum(
        jnp.dot(f_ref[...], w1p_ref[...],
                preferred_element_type=jnp.float32) + b1f_ref[...], 0.0)
    # TODO(synk): F.dropout after fc1 is identity in eval mode; not applied.
    logits = jnp.dot(h, w2p_ref[...],
                     preferred_element_type=jnp.float32) + b2f_ref[...]
    zc = logits - jnp.max(logits, axis=-1, keepdims=True)
    out_ref[0] = zc - jnp.log(jnp.sum(jnp.exp(zc), axis=-1, keepdims=True))


def _build_pallas_call(n_batch):
    return pl.pallas_call(
        _custom_net_kernel,
        out_shape=jax.ShapeDtypeStruct((n_batch, 1, NCLS), jnp.float32),
        grid=(n_batch,),
        in_specs=[
            pl.BlockSpec((1, 1, X_LANES), lambda n: (n, 0, 0)),      # x (flat padded)
            pl.BlockSpec((C1, KERNEL_SIZE * KERNEL_SIZE), lambda n: (0, 0)),   # conv1 W
            pl.BlockSpec((C1, 1), lambda n: (0, 0)),                 # conv1 b
            pl.BlockSpec((KERNEL_SIZE * KERNEL_SIZE, C2, C1), lambda n: (0, 0, 0)),  # conv2 W
            pl.BlockSpec((C2, 1), lambda n: (0, 0)),                 # conv2 b
            pl.BlockSpec((MIJ1_W, A1_W), lambda n: (0, 0)),          # pool1 selection
            pl.BlockSpec((MIJ2_W, NPOS2), lambda n: (0, 0)),         # pool2 selection
            pl.BlockSpec((FLAT_W, HIDDEN), lambda n: (0, 0)),        # fc1 W (chunk-padded)
            pl.BlockSpec((1, HIDDEN), lambda n: (0, 0)),             # fc1 b
            pl.BlockSpec((HIDDEN, NCLS), lambda n: (0, 0)),          # fc2 W
            pl.BlockSpec((1, NCLS), lambda n: (0, 0)),               # fc2 b
        ],
        out_specs=pl.BlockSpec((1, 1, NCLS), lambda n: (n, 0, 0)),
        scratch_shapes=[
            pltpu.VMEM((C1, M1), jnp.float32),      # z1: relu(conv1)
            pltpu.VMEM((C1, A1_W), jnp.float32),    # a1: padded conv2 input grid
            pltpu.VMEM((C2, M2), jnp.float32),      # z2: relu(conv2)
            pltpu.VMEM((C2, NPOS2), jnp.float32),   # p : pooled2
            pltpu.VMEM((1, FLAT_W), jnp.float32),   # f : flat feature vector
        ],
        compiler_params=pltpu.CompilerParams(
            dimension_semantics=("parallel",)),
    )


# ---------------------------------------------------------------------------
# Forward pass (eval mode: all dropout layers are identity)
# ---------------------------------------------------------------------------
@jax.jit
def custom_net_forward(x_nchw, params):
    n = x_nchw.shape[0]
    # tiny XLA preprocessing on the raw input only: zero-pad spatially and
    # flatten the padded 30x30 grid row-major onto lanes.
    xp = jnp.pad(x_nchw[:, 0], ((0, 0), (PADDING, PADDING), (PADDING, PADDING)))
    xf = jnp.pad(xp.reshape(n, PW1 * PW1), ((0, 0), (0, X_LANES - PW1 * PW1)))
    xf = xf.reshape(n, 1, X_LANES)
    out = _build_pallas_call(n)(
        xf, params["w1"], params["b1"], params["w2"], params["b2"],
        params["s1"], params["s2"], params["w1p"], params["b1f"],
        params["w2p"], params["b2f"])
    return out.reshape(n, NCLS)


# ---------------------------------------------------------------------------
# Parameters (deterministic synthetic init, PyTorch layouts then converted)
# ---------------------------------------------------------------------------
def init_params(key):
    keys = jax.random.split(key, 8)
    # PyTorch layouts: Conv2d (Cout,Cin,kh,kw); Linear (out,in)
    w1_t = 0.1 * jax.random.normal(keys[0], (C1, 1, KERNEL_SIZE, KERNEL_SIZE), jnp.float32)
    b1_t = 0.1 * jax.random.normal(keys[1], (C1,), jnp.float32)
    w2_t = 0.1 * jax.random.normal(keys[2], (C2, C1, KERNEL_SIZE, KERNEL_SIZE), jnp.float32)
    b2_t = 0.1 * jax.random.normal(keys[3], (C2,), jnp.float32)
    fc1_w = 0.05 * jax.random.normal(keys[4], (HIDDEN, LINEAR_IN), jnp.float32)
    fc1_b = 0.05 * jax.random.normal(keys[5], (HIDDEN,), jnp.float32)
    fc2_w = 0.05 * jax.random.normal(keys[6], (NCLS, HIDDEN), jnp.float32)
    fc2_b = 0.05 * jax.random.normal(keys[7], (NCLS,), jnp.float32)

    # conv1: (10,1,3,3) -> (10, 9) tap-minor (t = dy*3+dx)
    w1 = w1_t.reshape(C1, KERNEL_SIZE * KERNEL_SIZE)
    # conv2: (20,10,3,3) -> (9, 20, 10) tap-major
    w2 = jnp.transpose(w2_t, (2, 3, 0, 1)).reshape(KERNEL_SIZE * KERNEL_SIZE, C2, C1)
    # fc1: (163,980) -> (980,163); scatter rows into lane-aligned 128-wide chunks
    # (feature order c*49 + ip*7 + jp == PyTorch NCHW flatten; no runtime transpose)
    w1p = fc1_w.T
    feat = np.arange(LINEAR_IN)
    rows = CHUNK * (feat // NPOS2) + (feat % NPOS2)
    w1p_pad = jnp.zeros((FLAT_W, HIDDEN), jnp.float32).at[rows].set(w1p)

    # exact 0/1 selection matrices: 2x2-pool anchor -> (re-padded) target position
    s1 = np.zeros((MIJ1_W, A1_W), np.float32)
    for ip in range(HP1):
        for jp in range(HP1):
            s1[2 * ip * PW1 + 2 * jp, (ip + 1) * PW2 + (jp + 1)] = 1.0
    s2 = np.zeros((MIJ2_W, NPOS2), np.float32)
    for ip in range(HP2):
        for jp in range(HP2):
            s2[2 * ip * PW2 + 2 * jp, ip * HP2 + jp] = 1.0

    params = dict(
        w1=w1, b1=b1_t.reshape(C1, 1), w2=w2, b2=b2_t.reshape(C2, 1),
        s1=jnp.asarray(s1), s2=jnp.asarray(s2),
        w1p=w1p_pad, b1f=fc1_b.reshape(1, HIDDEN),
        w2p=fc2_w.T, b2f=fc2_b.reshape(1, NCLS),
    )
    # raw PyTorch-layout weights, only for the pure-JAX reference check
    raw = dict(w1=w1_t, b1=b1_t, w2=w2_t, b2=b2_t,
               fc1_w=fc1_w, fc1_b=fc1_b, fc2_w=fc2_w, fc2_b=fc2_b)
    return params, raw


# ---------------------------------------------------------------------------
# Pure-JAX reference of the PyTorch forward (eval mode) for validation
# ---------------------------------------------------------------------------
def reference_forward(x_nchw, raw):
    hi = jax.lax.Precision.HIGHEST
    n = x_nchw.shape[0]
    y = jax.lax.conv_general_dilated(
        x_nchw, raw["w1"], (1, 1), [(PADDING, PADDING), (PADDING, PADDING)],
        dimension_numbers=("NCHW", "OIHW", "NCHW"), precision=hi)
    y = jnp.maximum(y + raw["b1"].reshape(1, C1, 1, 1), 0.0)
    y = y.reshape(n, C1, HP1, 2, HP1, 2).max(axis=(3, 5))
    y = jax.lax.conv_general_dilated(
        y, raw["w2"], (1, 1), [(PADDING, PADDING), (PADDING, PADDING)],
        dimension_numbers=("NCHW", "OIHW", "NCHW"), precision=hi)
    y = jnp.maximum(y + raw["b2"].reshape(1, C2, 1, 1), 0.0)
    y = y.reshape(n, C2, HP2, 2, HP2, 2).max(axis=(3, 5))
    flat = y.reshape(n, LINEAR_IN)
    h = jnp.maximum(jnp.dot(flat, raw["fc1_w"].T, precision=hi) + raw["fc1_b"], 0.0)
    logits = jnp.dot(h, raw["fc2_w"].T, precision=hi) + raw["fc2_b"]
    return jax.nn.log_softmax(logits, axis=-1)


if __name__ == "__main__":
    key = jax.random.PRNGKey(0)
    pkey, xkey = jax.random.split(key)
    params, raw = init_params(pkey)
    # Module hard-codes 28x28 (MNIST-like): input (batch=2, 1, 28, 28)
    x = jax.random.normal(xkey, (2, 1, IMG, IMG), jnp.float32)
    out = jax.block_until_ready(custom_net_forward(x, params))
    assert out.shape == (2, NCLS)
    # log_softmax rows must exponentiate-and-sum to ~1
    assert jnp.allclose(jnp.sum(jnp.exp(out), axis=-1), 1.0, atol=1e-4)
    # match the pure-JAX reference of the PyTorch forward
    ref = reference_forward(x, raw)
    assert jnp.allclose(out, ref, atol=2e-2, rtol=2e-2), float(jnp.max(jnp.abs(out - ref)))
    print("KERNEL_OK")
</pallas_src>

<mosaic_0001>
module attributes {stable_mosaic.version = 11 : i64} {
  func.func @_custom_net_kernel(%arg0: i32, %arg1: memref<1x1x912xf32, #tpu.memory_space<vmem>>, %arg2: memref<10x9xf32, #tpu.memory_space<vmem>>, %arg3: memref<10x1xf32, #tpu.memory_space<vmem>>, %arg4: memref<9x20x10xf32, #tpu.memory_space<vmem>>, %arg5: memref<20x1xf32, #tpu.memory_space<vmem>>, %arg6: memref<808x264xf32, #tpu.memory_space<vmem>>, %arg7: memref<207x49xf32, #tpu.memory_space<vmem>>, %arg8: memref<2560x163xf32, #tpu.memory_space<vmem>>, %arg9: memref<1x163xf32, #tpu.memory_space<vmem>>, %arg10: memref<163x10xf32, #tpu.memory_space<vmem>>, %arg11: memref<1x10xf32, #tpu.memory_space<vmem>>, %arg12: memref<1x1x10xf32, #tpu.memory_space<vmem>>, %arg13: memref<10x840xf32, #tpu.memory_space<vmem>>, %arg14: memref<10x264xf32, #tpu.memory_space<vmem>>, %arg15: memref<20x224xf32, #tpu.memory_space<vmem>>, %arg16: memref<20x49xf32, #tpu.memory_space<vmem>>, %arg17: memref<1x2560xf32, #tpu.memory_space<vmem>>) attributes {dimension_semantics = [#tpu.dimension_semantics<parallel>], iteration_bounds = array<i64: 2>, scalar_prefetch = 0 : i64, scratch_operands = 5 : i64, tpu.core_type = #tpu.core_type<tc>, window_params = [{transform_indices = @transform_0, window_bounds = array<i64: 1, 1, 912>}, {pipeline_mode = #tpu.pipeline_mode<synchronous>, transform_indices = @transform_1, window_bounds = array<i64: 10, 9>}, {pipeline_mode = #tpu.pipeline_mode<synchronous>, transform_indices = @transform_2, window_bounds = array<i64: 10, 1>}, {pipeline_mode = #tpu.pipeline_mode<synchronous>, transform_indices = @transform_3, window_bounds = array<i64: 9, 20, 10>}, {pipeline_mode = #tpu.pipeline_mode<synchronous>, transform_indices = @transform_4, window_bounds = array<i64: 20, 1>}, {pipeline_mode = #tpu.pipeline_mode<synchronous>, transform_indices = @transform_5, window_bounds = array<i64: 808, 264>}, {pipeline_mode = #tpu.pipeline_mode<synchronous>, transform_indices = @transform_6, window_bounds = array<i64: 207, 49>}, {pipeline_mode = #tpu.pipeline_mode<synchronous>, transform_indices = @transform_7, window_bounds = array<i64: 2560, 163>}, {pipeline_mode = #tpu.pipeline_mode<synchronous>, transform_indices = @transform_8, window_bounds = array<i64: 1, 163>}, {pipeline_mode = #tpu.pipeline_mode<synchronous>, transform_indices = @transform_9, window_bounds = array<i64: 163, 10>}, {pipeline_mode = #tpu.pipeline_mode<synchronous>, transform_indices = @transform_10, window_bounds = array<i64: 1, 10>}, {transform_indices = @transform_11, window_bounds = array<i64: 1, 1, 10>}]} {
    %c0 = arith.constant 0 : index
    %c0_0 = arith.constant 0 : index
    %0 = vector.load %arg2[%c0, %c0_0] : memref<10x9xf32, #tpu.memory_space<vmem>>, vector<10x1xf32>
    %c0_1 = arith.constant 0 : index
    %c0_2 = arith.constant 0 : index
    %c0_3 = arith.constant 0 : index
    %1 = vector.load %arg1[%c0_1, %c0_2, %c0_3] : memref<1x1x912xf32, #tpu.memory_space<vmem>>, vector<1x1x840xf32>
    %2 = vector.shape_cast %1 : vector<1x1x840xf32> to vector<1x840xf32>
    %3 = vector.broadcast %0 : vector<10x1xf32> to vector<10x840xf32>
    %4 = vector.broadcast %2 : vector<1x840xf32> to vector<10x840xf32>
    %5 = arith.mulf %3, %4 : vector<10x840xf32>
    %c0_4 = arith.constant 0 : index
    %c1 = arith.constant 1 : index
    %6 = vector.load %arg2[%c0_4, %c1] : memref<10x9xf32, #tpu.memory_space<vmem>>, vector<10x1xf32>
    %c0_5 = arith.constant 0 : index
    %c0_6 = arith.constant 0 : index
    %c1_7 = arith.constant 1 : index
    %7 = vector.load %arg1[%c0_5, %c0_6, %c1_7] : memref<1x1x912xf32, #tpu.memory_space<vmem>>, vector<1x1x840xf32>
    %8 = vector.shape_cast %7 : vector<1x1x840xf32> to vector<1x840xf32>
    %9 = vector.broadcast %6 : vector<10x1xf32> to vector<10x840xf32>
    %10 = vector.broadcast %8 : vector<1x840xf32> to vector<10x840xf32>
    %11 = arith.mulf %9, %10 : vector<10x840xf32>
    %12 = arith.addf %5, %11 : vector<10x840xf32>
    %c0_8 = arith.constant 0 : index
    %c2 = arith.constant 2 : index
    %13 = vector.load %arg2[%c0_8, %c2] : memref<10x9xf32, #tpu.memory_space<vmem>>, vector<10x1xf32>
    %c0_9 = arith.constant 0 : index
    %c0_10 = arith.constant 0 : index
    %c2_11 = arith.constant 2 : index
    %14 = vector.load %arg1[%c0_9, %c0_10, %c2_11] : memref<1x1x912xf32, #tpu.memory_space<vmem>>, vector<1x1x840xf32>
    %15 = vector.shape_cast %14 : vector<1x1x840xf32> to vector<1x840xf32>
    %16 = vector.broadcast %13 : vector<10x1xf32> to vector<10x840xf32>
    %17 = vector.broadcast %15 : vector<1x840xf32> to vector<10x840xf32>
    %18 = arith.mulf %16, %17 : vector<10x840xf32>
    %19 = arith.addf %12, %18 : vector<10x840xf32>
    %c0_12 = arith.constant 0 : index
    %c3 = arith.constant 3 : index
    %20 = vector.load %arg2[%c0_12, %c3] : memref<10x9xf32, #tpu.memory_space<vmem>>, vector<10x1xf32>
    %c0_13 = arith.constant 0 : index
    %c0_14 = arith.constant 0 : index
    %c30 = arith.constant 30 : index
    %21 = vector.load %arg1[%c0_13, %c0_14, %c30] : memref<1x1x912xf32, #tpu.memory_space<vmem>>, vector<1x1x840xf32>
    %22 = vector.shape_cast %21 : vector<1x1x840xf32> to vector<1x840xf32>
    %23 = vector.broadcast %20 : vector<10x1xf32> to vector<10x840xf32>
    %24 = vector.broadcast %22 : vector<1x840xf32> to vector<10x840xf32>
    %25 = arith.mulf %23, %24 : vector<10x840xf32>
    %26 = arith.addf %19, %25 : vector<10x840xf32>
    %c0_15 = arith.constant 0 : index
    %c4 = arith.constant 4 : index
    %27 = vector.load %arg2[%c0_15, %c4] : memref<10x9xf32, #tpu.memory_space<vmem>>, vector<10x1xf32>
    %c0_16 = arith.constant 0 : index
    %c0_17 = arith.constant 0 : index
    %c31 = arith.constant 31 : index
    %28 = vector.load %arg1[%c0_16, %c0_17, %c31] : memref<1x1x912xf32, #tpu.memory_space<vmem>>, vector<1x1x840xf32>
    %29 = vector.shape_cast %28 : vector<1x1x840xf32> to vector<1x840xf32>
    %30 = vector.broadcast %27 : vector<10x1xf32> to vector<10x840xf32>
    %31 = vector.broadcast %29 : vector<1x840xf32> to vector<10x840xf32>
    %32 = arith.mulf %30, %31 : vector<10x840xf32>
    %33 = arith.addf %26, %32 : vector<10x840xf32>
    %c0_18 = arith.constant 0 : index
    %c5 = arith.constant 5 : index
    %34 = vector.load %arg2[%c0_18, %c5] : memref<10x9xf32, #tpu.memory_space<vmem>>, vector<10x1xf32>
    %c0_19 = arith.constant 0 : index
    %c0_20 = arith.constant 0 : index
    %c32 = arith.constant 32 : index
    %35 = vector.load %arg1[%c0_19, %c0_20, %c32] : memref<1x1x912xf32, #tpu.memory_space<vmem>>, vector<1x1x840xf32>
    %36 = vector.shape_cast %35 : vector<1x1x840xf32> to vector<1x840xf32>
    %37 = vector.broadcast %34 : vector<10x1xf32> to vector<10x840xf32>
    %38 = vector.broadcast %36 : vector<1x840xf32> to vector<10x840xf32>
    %39 = arith.mulf %37, %38 : vector<10x840xf32>
    %40 = arith.addf %33, %39 : vector<10x840xf32>
    %c0_21 = arith.constant 0 : index
    %c6 = arith.constant 6 : index
    %41 = vector.load %arg2[%c0_21, %c6] : memref<10x9xf32, #tpu.memory_space<vmem>>, vector<10x1xf32>
    %c0_22 = arith.constant 0 : index
    %c0_23 = arith.constant 0 : index
    %c60 = arith.constant 60 : index
    %42 = vector.load %arg1[%c0_22, %c0_23, %c60] : memref<1x1x912xf32, #tpu.memory_space<vmem>>, vector<1x1x840xf32>
    %43 = vector.shape_cast %42 : vector<1x1x840xf32> to vector<1x840xf32>
    %44 = vector.broadcast %41 : vector<10x1xf32> to vector<10x840xf32>
    %45 = vector.broadcast %43 : vector<1x840xf32> to vector<10x840xf32>
    %46 = arith.mulf %44, %45 : vector<10x840xf32>
    %47 = arith.addf %40, %46 : vector<10x840xf32>
    %c0_24 = arith.constant 0 : index
    %c7 = arith.constant 7 : index
    %48 = vector.load %arg2[%c0_24, %c7] : memref<10x9xf32, #tpu.memory_space<vmem>>, vector<10x1xf32>
    %c0_25 = arith.constant 0 : index
    %c0_26 = arith.constant 0 : index
    %c61 = arith.constant 61 : index
    %49 = vector.load %arg1[%c0_25, %c0_26, %c61] : memref<1x1x912xf32, #tpu.memory_space<vmem>>, vector<1x1x840xf32>
    %50 = vector.shape_cast %49 : vector<1x1x840xf32> to vector<1x840xf32>
    %51 = vector.broadcast %48 : vector<10x1xf32> to vector<10x840xf32>
    %52 = vector.broadcast %50 : vector<1x840xf32> to vector<10x840xf32>
    %53 = arith.mulf %51, %52 : vector<10x840xf32>
    %54 = arith.addf %47, %53 : vector<10x840xf32>
    %c0_27 = arith.constant 0 : index
    %c8 = arith.constant 8 : index
    %55 = vector.load %arg2[%c0_27, %c8] : memref<10x9xf32, #tpu.memory_space<vmem>>, vector<10x1xf32>
    %c0_28 = arith.constant 0 : index
    %c0_29 = arith.constant 0 : index
    %c62 = arith.constant 62 : index
    %56 = vector.load %arg1[%c0_28, %c0_29, %c62] : memref<1x1x912xf32, #tpu.memory_space<vmem>>, vector<1x1x840xf32>
    %57 = vector.shape_cast %56 : vector<1x1x840xf32> to vector<1x840xf32>
    %58 = vector.broadcast %55 : vector<10x1xf32> to vector<10x840xf32>
    %59 = vector.broadcast %57 : vector<1x840xf32> to vector<10x840xf32>
    %60 = arith.mulf %58, %59 : vector<10x840xf32>
    %61 = arith.addf %54, %60 : vector<10x840xf32>
    %c0_30 = arith.constant 0 : index
    %c0_31 = arith.constant 0 : index
    %62 = vector.load %arg3[%c0_30, %c0_31] : memref<10x1xf32, #tpu.memory_space<vmem>>, vector<10x1xf32>
    %63 = vector.broadcast %62 : vector<10x1xf32> to vector<10x840xf32>
    %64 = arith.addf %61, %63 : vector<10x840xf32>
    %cst = arith.constant 0.000000e+00 : f32
    %65 = vector.broadcast %cst : f32 to vector<10x840xf32>
    %66 = arith.maximumf %64, %65 : vector<10x840xf32>
    %c0_32 = arith.constant 0 : index
    %c0_33 = arith.constant 0 : index
    %67 = vector.load %arg13[%c0_32, %c0_33] : memref<10x840xf32, #tpu.memory_space<vmem>>, vector<10x840xf32>
    tpu.vector_store %arg13[%c0_32, %c0_33], %66 {strides = array<i32>} : memref<10x840xf32, #tpu.memory_space<vmem>>, vector<10x840xf32>,
    %c0_34 = arith.constant 0 : index
    %c0_35 = arith.constant 0 : index
    %68 = vector.load %arg13[%c0_34, %c0_35] : memref<10x840xf32, #tpu.memory_space<vmem>>, vector<10x808xf32>
    %c0_36 = arith.constant 0 : index
    %c1_37 = arith.constant 1 : index
    %69 = vector.load %arg13[%c0_36, %c1_37] : memref<10x840xf32, #tpu.memory_space<vmem>>, vector<10x808xf32>
    %70 = arith.maximumf %68, %69 : vector<10x808xf32>
    %c0_38 = arith.constant 0 : index
    %c30_39 = arith.constant 30 : index
    %71 = vector.load %arg13[%c0_38, %c30_39] : memref<10x840xf32, #tpu.memory_space<vmem>>, vector<10x808xf32>
    %c0_40 = arith.constant 0 : index
    %c31_41 = arith.constant 31 : index
    %72 = vector.load %arg13[%c0_40, %c31_41] : memref<10x840xf32, #tpu.memory_space<vmem>>, vector<10x808xf32>
    %73 = arith.maximumf %71, %72 : vector<10x808xf32>
    %74 = arith.maximumf %70, %73 : vector<10x808xf32>
    %c0_42 = arith.constant 0 : index
    %c0_43 = arith.constant 0 : index
    %75 = vector.load %arg6[%c0_42, %c0_43] : memref<808x264xf32, #tpu.memory_space<vmem>>, vector<808x264xf32>
    %cst_44 = arith.constant dense<0.000000e+00> : vector<10x264xf32>
    %76 = tpu.matmul %74, %75, %cst_44 {dimension_numbers = #tpu.dot_dimension_numbers<[1], [0], [0], [1], [0, 0, 1, 1], [], []>} : vector<10x808xf32>, vector<808x264xf32>, vector<10x264xf32> -> vector<10x264xf32>
    %c0_45 = arith.constant 0 : index
    %c0_46 = arith.constant 0 : index
    %77 = vector.load %arg14[%c0_45, %c0_46] : memref<10x264xf32, #tpu.memory_space<vmem>>, vector<10x264xf32>
    tpu.vector_store %arg14[%c0_45, %c0_46], %76 {strides = array<i32>} : memref<10x264xf32, #tpu.memory_space<vmem>>, vector<10x264xf32>,
    %c0_47 = arith.constant 0 : index
    %c0_48 = arith.constant 0 : index
    %c0_49 = arith.constant 0 : index
    %78 = vector.load %arg4[%c0_47, %c0_48, %c0_49] : memref<9x20x10xf32, #tpu.memory_space<vmem>>, vector<1x20x10xf32>
    %79 = vector.shape_cast %78 : vector<1x20x10xf32> to vector<20x10xf32>
    %c0_50 = arith.constant 0 : index
    %c0_51 = arith.constant 0 : index
    %80 = vector.load %arg14[%c0_50, %c0_51] : memref<10x264xf32, #tpu.memory_space<vmem>>, vector<10x224xf32>
    %cst_52 = arith.constant dense<0.000000e+00> : vector<20x224xf32>
    %81 = tpu.matmul %79, %80, %cst_52 {dimension_numbers = #tpu.dot_dimension_numbers<[1], [0], [0], [1], [0, 0, 1, 1], [], []>} : vector<20x10xf32>, vector<10x224xf32>, vector<20x224xf32> -> vector<20x224xf32>
    %c1_53 = arith.constant 1 : index
    %c0_54 = arith.constant 0 : index
    %c0_55 = arith.constant 0 : index
    %82 = vector.load %arg4[%c1_53, %c0_54, %c0_55] : memref<9x20x10xf32, #tpu.memory_space<vmem>>, vector<1x20x10xf32>
    %83 = vector.shape_cast %82 : vector<1x20x10xf32> to vector<20x10xf32>
    %c0_56 = arith.constant 0 : index
    %c1_57 = arith.constant 1 : index
    %84 = vector.load %arg14[%c0_56, %c1_57] : memref<10x264xf32, #tpu.memory_space<vmem>>, vector<10x224xf32>
    %cst_58 = arith.constant dense<0.000000e+00> : vector<20x224xf32>
    %85 = tpu.matmul %83, %84, %cst_58 {dimension_numbers = #tpu.dot_dimension_numbers<[1], [0], [0], [1], [0, 0, 1, 1], [], []>} : vector<20x10xf32>, vector<10x224xf32>, vector<20x224xf32> -> vector<20x224xf32>
    %86 = arith.addf %81, %85 : vector<20x224xf32>
    %c2_59 = arith.constant 2 : index
    %c0_60 = arith.constant 0 : index
    %c0_61 = arith.constant 0 : index
    %87 = vector.load %arg4[%c2_59, %c0_60, %c0_61] : memref<9x20x10xf32, #tpu.memory_space<vmem>>, vector<1x20x10xf32>
    %88 = vector.shape_cast %87 : vector<1x20x10xf32> to vector<20x10xf32>
    %c0_62 = arith.constant 0 : index
    %c2_63 = arith.constant 2 : index
    %89 = vector.load %arg14[%c0_62, %c2_63] : memref<10x264xf32, #tpu.memory_space<vmem>>, vector<10x224xf32>
    %cst_64 = arith.constant dense<0.000000e+00> : vector<20x224xf32>
    %90 = tpu.matmul %88, %89, %cst_64 {dimension_numbers = #tpu.dot_dimension_numbers<[1], [0], [0], [1], [0, 0, 1, 1], [], []>} : vector<20x10xf32>, vector<10x224xf32>, vector<20x224xf32> -> vector<20x224xf32>
    %91 = arith.addf %86, %90 : vector<20x224xf32>
    %c3_65 = arith.constant 3 : index
    %c0_66 = arith.constant 0 : index
    %c0_67 = arith.constant 0 : index
    %92 = vector.load %arg4[%c3_65, %c0_66, %c0_67] : memref<9x20x10xf32, #tpu.memory_space<vmem>>, vector<1x20x10xf32>
    %93 = vector.shape_cast %92 : vector<1x20x10xf32> to vector<20x10xf32>
    %c0_68 = arith.constant 0 : index
    %c16 = arith.constant 16 : index
    %94 = vector.load %arg14[%c0_68, %c16] : memref<10x264xf32, #tpu.memory_space<vmem>>, vector<10x224xf32>
    %cst_69 = arith.constant dense<0.000000e+00> : vector<20x224xf32>
    %95 = tpu.matmul %93, %94, %cst_69 {dimension_numbers = #tpu.dot_dimension_numbers<[1], [0], [0], [1], [0, 0, 1, 1], [], []>} : vector<20x10xf32>, vector<10x224xf32>, vector<20x224xf32> -> vector<20x224xf32>
    %96 = arith.addf %91, %95 : vector<20x224xf32>
    %c4_70 = arith.constant 4 : index
    %c0_71 = arith.constant 0 : index
    %c0_72 = arith.constant 0 : index
    %97 = vector.load %arg4[%c4_70, %c0_71, %c0_72] : memref<9x20x10xf32, #tpu.memory_space<vmem>>, vector<1x20x10xf32>
    %98 = vector.shape_cast %97 : vector<1x20x10xf32> to vector<20x10xf32>
    %c0_73 = arith.constant 0 : index
    %c17 = arith.constant 17 : index
    %99 = vector.load %arg14[%c0_73, %c17] : memref<10x264xf32, #tpu.memory_space<vmem>>, vector<10x224xf32>
    %cst_74 = arith.constant dense<0.000000e+00> : vector<20x224xf32>
    %100 = tpu.matmul %98, %99, %cst_74 {dimension_numbers = #tpu.dot_dimension_numbers<[1], [0], [0], [1], [0, 0, 1, 1], [], []>} : vector<20x10xf32>, vector<10x224xf32>, vector<20x224xf32> -> vector<20x224xf32>
    %101 = arith.addf %96, %100 : vector<20x224xf32>
    %c5_75 = arith.constant 5 : index
    %c0_76 = arith.constant 0 : index
    %c0_77 = arith.constant 0 : index
    %102 = vector.load %arg4[%c5_75, %c0_76, %c0_77] : memref<9x20x10xf32, #tpu.memory_space<vmem>>, vector<1x20x10xf32>
    %103 = vector.shape_cast %102 : vector<1x20x10xf32> to vector<20x10xf32>
    %c0_78 = arith.constant 0 : index
    %c18 = arith.constant 18 : index
    %104 = vector.load %arg14[%c0_78, %c18] : memref<10x264xf32, #tpu.memory_space<vmem>>, vector<10x224xf32>
    %cst_79 = arith.constant dense<0.000000e+00> : vector<20x224xf32>
    %105 = tpu.matmul %103, %104, %cst_79 {dimension_numbers = #tpu.dot_dimension_numbers<[1], [0], [0], [1], [0, 0, 1, 1], [], []>} : vector<20x10xf32>, vector<10x224xf32>, vector<20x224xf32> -> vector<20x224xf32>
    %106 = arith.addf %101, %105 : vector<20x224xf32>
    %c6_80 = arith.constant 6 : index
    %c0_81 = arith.constant 0 : index
    %c0_82 = arith.constant 0 : index
    %107 = vector.load %arg4[%c6_80, %c0_81, %c0_82] : memref<9x20x10xf32, #tpu.memory_space<vmem>>, vector<1x20x10xf32>
    %108 = vector.shape_cast %107 : vector<1x20x10xf32> to vector<20x10xf32>
    %c0_83 = arith.constant 0 : index
    %c32_84 = arith.constant 32 : index
    %109 = vector.load %arg14[%c0_83, %c32_84] : memref<10x264xf32, #tpu.memory_space<vmem>>, vector<10x224xf32>
    %cst_85 = arith.constant dense<0.000000e+00> : vector<20x224xf32>
    %110 = tpu.matmul %108, %109, %cst_85 {dimension_numbers = #tpu.dot_dimension_numbers<[1], [0], [0], [1], [0, 0, 1, 1], [], []>} : vector<20x10xf32>, vector<10x224xf32>, vector<20x224xf32> -> vector<20x224xf32>
    %111 = arith.addf %106, %110 : vector<20x224xf32>
    %c7_86 = arith.constant 7 : index
    %c0_87 = arith.constant 0 : index
    %c0_88 = arith.constant 0 : index
    %112 = vector.load %arg4[%c7_86, %c0_87, %c0_88] : memref<9x20x10xf32, #tpu.memory_space<vmem>>, vector<1x20x10xf32>
    %113 = vector.shape_cast %112 : vector<1x20x10xf32> to vector<20x10xf32>
    %c0_89 = arith.constant 0 : index
    %c33 = arith.constant 33 : index
    %114 = vector.load %arg14[%c0_89, %c33] : memref<10x264xf32, #tpu.memory_space<vmem>>, vector<10x224xf32>
    %cst_90 = arith.constant dense<0.000000e+00> : vector<20x224xf32>
    %115 = tpu.matmul %113, %114, %cst_90 {dimension_numbers = #tpu.dot_dimension_numbers<[1], [0], [0], [1], [0, 0, 1, 1], [], []>} : vector<20x10xf32>, vector<10x224xf32>, vector<20x224xf32> -> vector<20x224xf32>
    %116 = arith.addf %111, %115 : vector<20x224xf32>
    %c8_91 = arith.constant 8 : index
    %c0_92 = arith.constant 0 : index
    %c0_93 = arith.constant 0 : index
    %117 = vector.load %arg4[%c8_91, %c0_92, %c0_93] : memref<9x20x10xf32, #tpu.memory_space<vmem>>, vector<1x20x10xf32>
    %118 = vector.shape_cast %117 : vector<1x20x10xf32> to vector<20x10xf32>
    %c0_94 = arith.constant 0 : index
    %c34 = arith.constant 34 : index
    %119 = vector.load %arg14[%c0_94, %c34] : memref<10x264xf32, #tpu.memory_space<vmem>>, vector<10x224xf32>
    %cst_95 = arith.constant dense<0.000000e+00> : vector<20x224xf32>
    %120 = tpu.matmul %118, %119, %cst_95 {dimension_numbers = #tpu.dot_dimension_numbers<[1], [0], [0], [1], [0, 0, 1, 1], [], []>} : vector<20x10xf32>, vector<10x224xf32>, vector<20x224xf32> -> vector<20x224xf32>
    %121 = arith.addf %116, %120 : vector<20x224xf32>
    %c0_96 = arith.constant 0 : index
    %c0_97 = arith.constant 0 : index
    %122 = vector.load %arg5[%c0_96, %c0_97] : memref<20x1xf32, #tpu.memory_space<vmem>>, vector<20x1xf32>
    %123 = vector.broadcast %122 : vector<20x1xf32> to vector<20x224xf32>
    %124 = arith.addf %121, %123 : vector<20x224xf32>
    %cst_98 = arith.constant 0.000000e+00 : f32
    %125 = vector.broadcast %cst_98 : f32 to vector<20x224xf32>
    %126 = arith.maximumf %124, %125 : vector<20x224xf32>
    %c0_99 = arith.constant 0 : index
    %c0_100 = arith.constant 0 : index
    %127 = vector.load %arg15[%c0_99, %c0_100] : memref<20x224xf32, #tpu.memory_space<vmem>>, vector<20x224xf32>
    tpu.vector_store %arg15[%c0_99, %c0_100], %126 {strides = array<i32>} : memref<20x224xf32, #tpu.memory_space<vmem>>, vector<20x224xf32>,
    %c0_101 = arith.constant 0 : index
    %c0_102 = arith.constant 0 : index
    %128 = vector.load %arg15[%c0_101, %c0_102] : memref<20x224xf32, #tpu.memory_space<vmem>>, vector<20x207xf32>
    %c0_103 = arith.constant 0 : index
    %c1_104 = arith.constant 1 : index
    %129 = vector.load %arg15[%c0_103, %c1_104] : memref<20x224xf32, #tpu.memory_space<vmem>>, vector<20x207xf32>
    %130 = arith.maximumf %128, %129 : vector<20x207xf32>
    %c0_105 = arith.constant 0 : index
    %c16_106 = arith.constant 16 : index
    %131 = vector.load %arg15[%c0_105, %c16_106] : memref<20x224xf32, #tpu.memory_space<vmem>>, vector<20x207xf32>
    %c0_107 = arith.constant 0 : index
    %c17_108 = arith.constant 17 : index
    %132 = vector.load %arg15[%c0_107, %c17_108] : memref<20x224xf32, #tpu.memory_space<vmem>>, vector<20x207xf32>
    %133 = arith.maximumf %131, %132 : vector<20x207xf32>
    %134 = arith.maximumf %130, %133 : vector<20x207xf32>
    %c0_109 = arith.constant 0 : index
    %c0_110 = arith.constant 0 : index
    %135 = vector.load %arg7[%c0_109, %c0_110] : memref<207x49xf32, #tpu.memory_space<vmem>>, vector<207x49xf32>
    %cst_111 = arith.constant dense<0.000000e+00> : vector<20x49xf32>
    %136 = tpu.matmul %134, %135, %cst_111 {dimension_numbers = #tpu.dot_dimension_numbers<[1], [0], [0], [1], [0, 0, 1, 1], [], []>} : vector<20x207xf32>, vector<207x49xf32>, vector<20x49xf32> -> vector<20x49xf32>
    %c0_112 = arith.constant 0 : index
    %c0_113 = arith.constant 0 : index
    %137 = vector.load %arg16[%c0_112, %c0_113] : memref<20x49xf32, #tpu.memory_space<vmem>>, vector<20x49xf32>
    tpu.vector_store %arg16[%c0_112, %c0_113], %136 {strides = array<i32>} : memref<20x49xf32, #tpu.memory_space<vmem>>, vector<20x49xf32>,
    %cst_114 = arith.constant 0.000000e+00 : f32
    %138 = vector.broadcast %cst_114 : f32 to vector<1x2560xf32>
    %c0_115 = arith.constant 0 : index
    %c0_116 = arith.constant 0 : index
    %139 = vector.load %arg17[%c0_115, %c0_116] : memref<1x2560xf32, #tpu.memory_space<vmem>>, vector<1x2560xf32>
    tpu.vector_store %arg17[%c0_115, %c0_116], %138 {strides = array<i32>} : memref<1x2560xf32, #tpu.memory_space<vmem>>, vector<1x2560xf32>,
    %c0_117 = arith.constant 0 : index
    %c0_118 = arith.constant 0 : index
    %140 = vector.load %arg16[%c0_117, %c0_118] : memref<20x49xf32, #tpu.memory_space<vmem>>, vector<1x49xf32>
    %c0_119 = arith.constant 0 : index
    %c0_120 = arith.constant 0 : index
    %141 = vector.load %arg17[%c0_119, %c0_120] : memref<1x2560xf32, #tpu.memory_space<vmem>>, vector<1x49xf32>
    tpu.vector_store %arg17[%c0_119, %c0_120], %140 {strides = array<i32>} : memref<1x2560xf32, #tpu.memory_space<vmem>>, vector<1x49xf32>,
    %c1_121 = arith.constant 1 : index
    %c0_122 = arith.constant 0 : index
    %142 = vector.load %arg16[%c1_121, %c0_122] : memref<20x49xf32, #tpu.memory_space<vmem>>, vector<1x49xf32>
    %c0_123 = arith.constant 0 : index
    %c128 = arith.constant 128 : index
    %143 = vector.load %arg17[%c0_123, %c128] : memref<1x2560xf32, #tpu.memory_space<vmem>>, vector<1x49xf32>
    tpu.vector_store %arg17[%c0_123, %c128], %142 {strides = array<i32>} : memref<1x2560xf32, #tpu.memory_space<vmem>>, vector<1x49xf32>,
    %c2_124 = arith.constant 2 : index
    %c0_125 = arith.constant 0 : index
    %144 = vector.load %arg16[%c2_124, %c0_125] : memref<20x49xf32, #tpu.memory_space<vmem>>, vector<1x49xf32>
    %c0_126 = arith.constant 0 : index
    %c256 = arith.constant 256 : index
    %145 = vector.load %arg17[%c0_126, %c256] : memref<1x2560xf32, #tpu.memory_space<vmem>>, vector<1x49xf32>
    tpu.vector_store %arg17[%c0_126, %c256], %144 {strides = array<i32>} : memref<1x2560xf32, #tpu.memory_space<vmem>>, vector<1x49xf32>,
    %c3_127 = arith.constant 3 : index
    %c0_128 = arith.constant 0 : index
    %146 = vector.load %arg16[%c3_127, %c0_128] : memref<20x49xf32, #tpu.memory_space<vmem>>, vector<1x49xf32>
    %c0_129 = arith.constant 0 : index
    %c384 = arith.constant 384 : index
    %147 = vector.load %arg17[%c0_129, %c384] : memref<1x2560xf32, #tpu.memory_space<vmem>>, vector<1x49xf32>
    tpu.vector_store %arg17[%c0_129, %c384], %146 {strides = array<i32>} : memref<1x2560xf32, #tpu.memory_space<vmem>>, vector<1x49xf32>,
    %c4_130 = arith.constant 4 : index
    %c0_131 = arith.constant 0 : index
    %148 = vector.load %arg16[%c4_130, %c0_131] : memref<20x49xf32, #tpu.memory_space<vmem>>, vector<1x49xf32>
    %c0_132 = arith.constant 0 : index
    %c512 = arith.constant 512 : index
    %149 = vector.load %arg17[%c0_132, %c512] : memref<1x2560xf32, #tpu.memory_space<vmem>>, vector<1x49xf32>
    tpu.vector_store %arg17[%c0_132, %c512], %148 {strides = array<i32>} : memref<1x2560xf32, #tpu.memory_space<vmem>>, vector<1x49xf32>,
    %c5_133 = arith.constant 5 : index
    %c0_134 = arith.constant 0 : index
    %150 = vector.load %arg16[%c5_133, %c0_134] : memref<20x49xf32, #tpu.memory_space<vmem>>, vector<1x49xf32>
    %c0_135 = arith.constant 0 : index
    %c640 = arith.constant 640 : index
    %151 = vector.load %arg17[%c0_135, %c640] : memref<1x2560xf32, #tpu.memory_space<vmem>>, vector<1x49xf32>
    tpu.vector_store %arg17[%c0_135, %c640], %150 {strides = array<i32>} : memref<1x2560xf32, #tpu.memory_space<vmem>>, vector<1x49xf32>,
    %c6_136 = arith.constant 6 : index
    %c0_137 = arith.constant 0 : index
    %152 = vector.load %arg16[%c6_136, %c0_137] : memref<20x49xf32, #tpu.memory_space<vmem>>, vector<1x49xf32>
    %c0_138 = arith.constant 0 : index
    %c768 = arith.constant 768 : index
    %153 = vector.load %arg17[%c0_138, %c768] : memref<1x2560xf32, #tpu.memory_space<vmem>>, vector<1x49xf32>
    tpu.vector_store %arg17[%c0_138, %c768], %152 {strides = array<i32>} : memref<1x2560xf32, #tpu.memory_space<vmem>>, vector<1x49xf32>,
    %c7_139 = arith.constant 7 : index
    %c0_140 = arith.constant 0 : index
    %154 = vector.load %arg16[%c7_139, %c0_140] : memref<20x49xf32, #tpu.memory_space<vmem>>, vector<1x49xf32>
    %c0_141 = arith.constant 0 : index
    %c896 = arith.constant 896 : index
    %155 = vector.load %arg17[%c0_141, %c896] : memref<1x2560xf32, #tpu.memory_space<vmem>>, vector<1x49xf32>
    tpu.vector_store %arg17[%c0_141, %c896], %154 {strides = array<i32>} : memref<1x2560xf32, #tpu.memory_space<vmem>>, vector<1x49xf32>,
    %c8_142 = arith.constant 8 : index
    %c0_143 = arith.constant 0 : index
    %156 = vector.load %arg16[%c8_142, %c0_143] : memref<20x49xf32, #tpu.memory_space<vmem>>, vector<1x49xf32>
    %c0_144 = arith.constant 0 : index
    %c1024 = arith.constant 1024 : index
    %157 = vector.load %arg17[%c0_144, %c1024] : memref<1x2560xf32, #tpu.memory_space<vmem>>, vector<1x49xf32>
    tpu.vector_store %arg17[%c0_144, %c1024], %156 {strides = array<i32>} : memref<1x2560xf32, #tpu.memory_space<vmem>>, vector<1x49xf32>,
    %c9 = arith.constant 9 : index
    %c0_145 = arith.constant 0 : index
    %158 = vector.load %arg16[%c9, %c0_145] : memref<20x49xf32, #tpu.memory_space<vmem>>, vector<1x49xf32>
    %c0_146 = arith.constant 0 : index
    %c1152 = arith.constant 1152 : index
    %159 = vector.load %arg17[%c0_146, %c1152] : memref<1x2560xf32, #tpu.memory_space<vmem>>, vector<1x49xf32>
    tpu.vector_store %arg17[%c0_146, %c1152], %158 {strides = array<i32>} : memref<1x2560xf32, #tpu.memory_space<vmem>>, vector<1x49xf32>,
    %c10 = arith.constant 10 : index
    %c0_147 = arith.constant 0 : index
    %160 = vector.load %arg16[%c10, %c0_147] : memref<20x49xf32, #tpu.memory_space<vmem>>, vector<1x49xf32>
    %c0_148 = arith.constant 0 : index
    %c1280 = arith.constant 1280 : index
    %161 = vector.load %arg17[%c0_148, %c1280] : memref<1x2560xf32, #tpu.memory_space<vmem>>, vector<1x49xf32>
    tpu.vector_store %arg17[%c0_148, %c1280], %160 {strides = array<i32>} : memref<1x2560xf32, #tpu.memory_space<vmem>>, vector<1x49xf32>,
    %c11 = arith.constant 11 : index
    %c0_149 = arith.constant 0 : index
    %162 = vector.load %arg16[%c11, %c0_149] : memref<20x49xf32, #tpu.memory_space<vmem>>, vector<1x49xf32>
    %c0_150 = arith.constant 0 : index
    %c1408 = arith.constant 1408 : index
    %163 = vector.load %arg17[%c0_150, %c1408] : memref<1x2560xf32, #tpu.memory_space<vmem>>, vector<1x49xf32>
    tpu.vector_store %arg17[%c0_150, %c1408], %162 {strides = array<i32>} : memref<1x2560xf32, #tpu.memory_space<vmem>>, vector<1x49xf32>,
    %c12 = arith.constant 12 : index
    %c0_151 = arith.constant 0 : index
    %164 = vector.load %arg16[%c12, %c0_151] : memref<20x49xf32, #tpu.memory_space<vmem>>, vector<1x49xf32>
    %c0_152 = arith.constant 0 : index
    %c1536 = arith.constant 1536 : index
    %165 = vector.load %arg17[%c0_152, %c1536] : memref<1x2560xf32, #tpu.memory_space<vmem>>, vector<1x49xf32>
    tpu.vector_store %arg17[%c0_152, %c1536], %164 {strides = array<i32>} : memref<1x2560xf32, #tpu.memory_space<vmem>>, vector<1x49xf32>,
    %c13 = arith.constant 13 : index
    %c0_153 = arith.constant 0 : index
    %166 = vector.load %arg16[%c13, %c0_153] : memref<20x49xf32, #tpu.memory_space<vmem>>, vector<1x49xf32>
    %c0_154 = arith.constant 0 : index
    %c1664 = arith.constant 1664 : index
    %167 = vector.load %arg17[%c0_154, %c1664] : memref<1x2560xf32, #tpu.memory_space<vmem>>, vector<1x49xf32>
    tpu.vector_store %arg17[%c0_154, %c1664], %166 {strides = array<i32>} : memref<1x2560xf32, #tpu.memory_space<vmem>>, vector<1x49xf32>,
    %c14 = arith.constant 14 : index
    %c0_155 = arith.constant 0 : index
    %168 = vector.load %arg16[%c14, %c0_155] : memref<20x49xf32, #tpu.memory_space<vmem>>, vector<1x49xf32>
    %c0_156 = arith.constant 0 : index
    %c1792 = arith.constant 1792 : index
    %169 = vector.load %arg17[%c0_156, %c1792] : memref<1x2560xf32, #tpu.memory_space<vmem>>, vector<1x49xf32>
    tpu.vector_store %arg17[%c0_156, %c1792], %168 {strides = array<i32>} : memref<1x2560xf32, #tpu.memory_space<vmem>>, vector<1x49xf32>,
    %c15 = arith.constant 15 : index
    %c0_157 = arith.constant 0 : index
    %170 = vector.load %arg16[%c15, %c0_157] : memref<20x49xf32, #tpu.memory_space<vmem>>, vector<1x49xf32>
    %c0_158 = arith.constant 0 : index
    %c1920 = arith.constant 1920 : index
    %171 = vector.load %arg17[%c0_158, %c1920] : memref<1x2560xf32, #tpu.memory_space<vmem>>, vector<1x49xf32>
    tpu.vector_store %arg17[%c0_158, %c1920], %170 {strides = array<i32>} : memref<1x2560xf32, #tpu.memory_space<vmem>>, vector<1x49xf32>,
    %c16_159 = arith.constant 16 : index
    %c0_160 = arith.constant 0 : index
    %172 = vector.load %arg16[%c16_159, %c0_160] : memref<20x49xf32, #tpu.memory_space<vmem>>, vector<1x49xf32>
    %c0_161 = arith.constant 0 : index
    %c2048 = arith.constant 2048 : index
    %173 = vector.load %arg17[%c0_161, %c2048] : memref<1x2560xf32, #tpu.memory_space<vmem>>, vector<1x49xf32>
    tpu.vector_store %arg17[%c0_161, %c2048], %172 {strides = array<i32>} : memref<1x2560xf32, #tpu.memory_space<vmem>>, vector<1x49xf32>,
    %c17_162 = arith.constant 17 : index
    %c0_163 = arith.constant 0 : index
    %174 = vector.load %arg16[%c17_162, %c0_163] : memref<20x49xf32, #tpu.memory_space<vmem>>, vector<1x49xf32>
    %c0_164 = arith.constant 0 : index
    %c2176 = arith.constant 2176 : index
    %175 = vector.load %arg17[%c0_164, %c2176] : memref<1x2560xf32, #tpu.memory_space<vmem>>, vector<1x49xf32>
    tpu.vector_store %arg17[%c0_164, %c2176], %174 {strides = array<i32>} : memref<1x2560xf32, #tpu.memory_space<vmem>>, vector<1x49xf32>,
    %c18_165 = arith.constant 18 : index
    %c0_166 = arith.constant 0 : index
    %176 = vector.load %arg16[%c18_165, %c0_166] : memref<20x49xf32, #tpu.memory_space<vmem>>, vector<1x49xf32>
    %c0_167 = arith.constant 0 : index
    %c2304 = arith.constant 2304 : index
    %177 = vector.load %arg17[%c0_167, %c2304] : memref<1x2560xf32, #tpu.memory_space<vmem>>, vector<1x49xf32>
    tpu.vector_store %arg17[%c0_167, %c2304], %176 {strides = array<i32>} : memref<1x2560xf32, #tpu.memory_space<vmem>>, vector<1x49xf32>,
    %c19 = arith.constant 19 : index
    %c0_168 = arith.constant 0 : index
    %178 = vector.load %arg16[%c19, %c0_168] : memref<20x49xf32, #tpu.memory_space<vmem>>, vector<1x49xf32>
    %c0_169 = arith.constant 0 : index
    %c2432 = arith.constant 2432 : index
    %179 = vector.load %arg17[%c0_169, %c2432] : memref<1x2560xf32, #tpu.memory_space<vmem>>, vector<1x49xf32>
    tpu.vector_store %arg17[%c0_169, %c2432], %178 {strides = array<i32>} : memref<1x2560xf32, #tpu.memory_space<vmem>>, vector<1x49xf32>,
    %c0_170 = arith.constant 0 : index
    %c0_171 = arith.constant 0 : index
    %180 = vector.load %arg17[%c0_170, %c0_171] : memref<1x2560xf32, #tpu.memory_space<vmem>>, vector<1x2560xf32>
    %c0_172 = arith.constant 0 : index
    %c0_173 = arith.constant 0 : index
    %181 = vector.load %arg8[%c0_172, %c0_173] : memref<2560x163xf32, #tpu.memory_space<vmem>>, vector<2560x163xf32>
    %cst_174 = arith.constant dense<0.000000e+00> : vector<1x163xf32>
    %182 = tpu.matmul %180, %181, %cst_174 {dimension_numbers = #tpu.dot_dimension_numbers<[1], [0], [0], [1], [0, 0, 1, 1], [], []>} : vector<1x2560xf32>, vector<2560x163xf32>, vector<1x163xf32> -> vector<1x163xf32>
    %c0_175 = arith.constant 0 : index
    %c0_176 = arith.constant 0 : index
    %183 = vector.load %arg9[%c0_175, %c0_176] : memref<1x163xf32, #tpu.memory_space<vmem>>, vector<1x163xf32>
    %184 = arith.addf %182, %183 : vector<1x163xf32>
    %cst_177 = arith.constant 0.000000e+00 : f32
    %185 = vector.broadcast %cst_177 : f32 to vector<1x163xf32>
    %186 = arith.maximumf %184, %185 : vector<1x163xf32>
    %c0_178 = arith.constant 0 : index
    %c0_179 = arith.constant 0 : index
    %187 = vector.load %arg10[%c0_178, %c0_179] : memref<163x10xf32, #tpu.memory_space<vmem>>, vector<163x10xf32>
    %cst_180 = arith.constant dense<0.000000e+00> : vector<1x10xf32>
    %188 = tpu.matmul %186, %187, %cst_180 {dimension_numbers = #tpu.dot_dimension_numbers<[1], [0], [0], [1], [0, 0, 1, 1], [], []>} : vector<1x163xf32>, vector<163x10xf32>, vector<1x10xf32> -> vector<1x10xf32>
    %c0_181 = arith.constant 0 : index
    %c0_182 = arith.constant 0 : index
    %189 = vector.load %arg11[%c0_181, %c0_182] : memref<1x10xf32, #tpu.memory_space<vmem>>, vector<1x10xf32>
    %190 = arith.addf %188, %189 : vector<1x10xf32>
    %cst_183 = arith.constant dense<0xFF800000> : vector<1xf32>
    %191 = vector.multi_reduction <maximumf>, %190, %cst_183 [1] : vector<1x10xf32> to vector<1xf32>
    %192 = vector.shape_cast %191 : vector<1xf32> to vector<1x1xf32>
    %193 = vector.broadcast %192 : vector<1x1xf32> to vector<1x10xf32>
    %194 = arith.subf %190, %193 : vector<1x10xf32>
    %195 = math.exp %194 : vector<1x10xf32>
    %cst_184 = arith.constant dense<0.000000e+00> : vector<1xf32>
    %196 = vector.multi_reduction <add>, %195, %cst_184 [1] : vector<1x10xf32> to vector<1xf32>
    %197 = vector.shape_cast %196 : vector<1xf32> to vector<1x1xf32>
    %198 = math.log %197 : vector<1x1xf32>
    %199 = vector.broadcast %198 : vector<1x1xf32> to vector<1x10xf32>
    %200 = arith.subf %194, %199 : vector<1x10xf32>
    %c0_185 = arith.constant 0 : index
    %c0_186 = arith.constant 0 : index
    %c0_187 = arith.constant 0 : index
    %201 = vector.load %arg12[%c0_185, %c0_186, %c0_187] : memref<1x1x10xf32, #tpu.memory_space<vmem>>, vector<1x1x10xf32>
    %202 = vector.shape_cast %201 : vector<1x1x10xf32> to vector<1x10xf32>
    %203 = vector.shape_cast %200 : vector<1x10xf32> to vector<1x1x10xf32>
    tpu.vector_store %arg12[%c0_185, %c0_186, %c0_187], %203 {strides = array<i32>} : memref<1x1x10xf32, #tpu.memory_space<vmem>>, vector<1x1x10xf32>,
    return
  }
  func.func @transform_0(%arg0: i32) -> (i32, i32, i32) {
    %c0_i32 = arith.constant 0 : i32
    %c0_i32_0 = arith.constant 0 : i32
    %c0_i32_1 = arith.constant 0 : i32
    return %arg0, %c0_i32, %c0_i32_0 : i32, i32, i32
  }
  func.func @transform_1(%arg0: i32) -> (i32, i32) {
    %c0_i32 = arith.constant 0 : i32
    %c0_i32_0 = arith.constant 0 : i32
    %c0_i32_1 = arith.constant 0 : i32
    return %c0_i32, %c0_i32_0 : i32, i32
  }
  func.func @transform_2(%arg0: i32) -> (i32, i32) {
    %c0_i32 = arith.constant 0 : i32
    %c0_i32_0 = arith.constant 0 : i32
    %c0_i32_1 = arith.constant 0 : i32
    return %c0_i32, %c0_i32_0 : i32, i32
  }
  func.func @transform_3(%arg0: i32) -> (i32, i32, i32) {
    %c0_i32 = arith.constant 0 : i32
    %c0_i32_0 = arith.constant 0 : i32
    %c0_i32_1 = arith.constant 0 : i32
    %c0_i32_2 = arith.constant 0 : i32
    return %c0_i32, %c0_i32_0, %c0_i32_1 : i32, i32, i32
  }
  func.func @transform_4(%arg0: i32) -> (i32, i32) {
    %c0_i32 = arith.constant 0 : i32
    %c0_i32_0 = arith.constant 0 : i32
    %c0_i32_1 = arith.constant 0 : i32
    return %c0_i32, %c0_i32_0 : i32, i32
  }
  func.func @transform_5(%arg0: i32) -> (i32, i32) {
    %c0_i32 = arith.constant 0 : i32
    %c0_i32_0 = arith.constant 0 : i32
    %c0_i32_1 = arith.constant 0 : i32
    return %c0_i32, %c0_i32_0 : i32, i32
  }
  func.func @transform_6(%arg0: i32) -> (i32, i32) {
    %c0_i32 = arith.constant 0 : i32
    %c0_i32_0 = arith.constant 0 : i32
    %c0_i32_1 = arith.constant 0 : i32
    return %c0_i32, %c0_i32_0 : i32, i32
  }
  func.func @transform_7(%arg0: i32) -> (i32, i32) {
    %c0_i32 = arith.constant 0 : i32
    %c0_i32_0 = arith.constant 0 : i32
    %c0_i32_1 = arith.constant 0 : i32
    return %c0_i32, %c0_i32_0 : i32, i32
  }
  func.func @transform_8(%arg0: i32) -> (i32, i32) {
    %c0_i32 = arith.constant 0 : i32
    %c0_i32_0 = arith.constant 0 : i32
    %c0_i32_1 = arith.constant 0 : i32
    return %c0_i32, %c0_i32_0 : i32, i32
  }
  func.func @transform_9(%arg0: i32) -> (i32, i32) {
    %c0_i32 = arith.constant 0 : i32
    %c0_i32_0 = arith.constant 0 : i32
    %c0_i32_1 = arith.constant 0 : i32
    return %c0_i32, %c0_i32_0 : i32, i32
  }
  func.func @transform_10(%arg0: i32) -> (i32, i32) {
    %c0_i32 = arith.constant 0 : i32
    %c0_i32_0 = arith.constant 0 : i32
    %c0_i32_1 = arith.constant 0 : i32
    return %c0_i32, %c0_i32_0 : i32, i32
  }
  func.func @transform_11(%arg0: i32) -> (i32, i32, i32) {
    %c0_i32 = arith.constant 0 : i32
    %c0_i32_0 = arith.constant 0 : i32
    %c0_i32_1 = arith.constant 0 : i32
    return %arg0, %c0_i32, %c0_i32_0 : i32, i32, i32
  }
}

</mosaic_0001>

<bundles_post_ra>
// kernel: custom_net_forward.1
= control target key start
LH: loop header
LB: loop body
LE: loop exit
PB: predicated region body
PF: predicated region fallthrough
CT: control target
= control target key end

     0   :  { %s10239_s0 = inlined_call_operand.vmem [shape: f32[2,1,912], index: 0, kind: input, shape index: {}]   ;;  %s10240_s1 = inlined_call_operand.vmem [shape: f32[10,9], index: 1, kind: input, shape index: {}]   ;;  %s10241_s2 = inlined_call_operand.vmem [shape: f32[10,1], index: 2, kind: input, shape index: {}]   ;;  %s10242_s3 = inlined_call_operand.vmem [shape: f32[9,20,10], index: 3, kind: input, shape index: {}]   ;;  %s10243_s4 = inlined_call_operand.vmem [shape: f32[20,1], index: 4, kind: input, shape index: {}]   ;;  %s10244_s5 = inlined_call_operand.vmem [shape: f32[808,264], index: 5, kind: input, shape index: {}]   ;;  %s10245_s6 = inlined_call_operand.vmem [shape: f32[207,49], index: 6, kind: input, shape index: {}]   ;;  %s10246_s7 = inlined_call_operand.vmem [shape: f32[2560,163], index: 7, kind: input, shape index: {}]   ;;  %s10247_s8 = inlined_call_operand.vmem [shape: f32[1,163], index: 8, kind: input, shape index: {}]   ;;  %s10248_s9 = inlined_call_operand.vmem [shape: f32[163,10], index: 9, kind: input, shape index: {}]   ;;  %s10249_s10 = inlined_call_operand.vmem [shape: f32[1,10], index: 10, kind: input, shape index: {}]   ;;  %s10250_s11 = inlined_call_operand.hbm [shape: f32[2,1,10], index: 11, kind: output, shape index: {}]  }
   0x1   :  { %10288 = sst [smem:[#allocation37_spill]] %s10239_s0 }
   0x2   :  { %16 = vsyncpa [#allocation8], 0 }
   0x3   :  { %18 = vsyncpa [#allocation8 + $0x1], 0  ;;  %s5483_s17 = smov 0   ;;  %s5485_s18 = smov 0  }
   0x4   :  { %s5487_s19 = smov 0   ;;  %s5489_s20 = smov 0  }
   0x5 LB: > { %s5504_s21 = sadd.s32 4294967295, %s5398_s20   ;;  %s5044_s22 = sadd.s32 4294967294, %s5398_s20   ;;  %s5398_s20 = sphi %s5489_s20, %s10355_s20   ;;  %s5394_s19 = sphi %s5487_s19, %s10354_s19   ;;  %s5390_s18 = sphi %s5485_s18, %s10353_s18   ;;  %s5386_s17 = sphi %s5483_s17, %s10352_s17  }
   0x6   : > { %s5508_s23 = sadd.s32 1, %s5398_s20   ;;  %s267_s24 = sadd.s32 1, %s5394_s19 }
   0x7   : > { %s264_s25 = ssub.s32 %s5398_s20, %s5508_s23  ;;  %p277_p0 = scmp.ne.s32.totalorder %s5394_s19, %s5390_s18 }
   0x8   : > { %p265_p1 = scmp.eq.s32.totalorder %s264_s25, 0  ;;  %p278_p2 = scmp.eq.s32.totalorder %s5504_s21, 1 }
   0x9   : > { %p283_p3 = scmp.ne.s32.totalorder %s5390_s18, %s5386_s17  ;;  %p284_p4 = scmp.eq.s32.totalorder %s5044_s22, 1 }
   0xa   : > { %s5519_s26 = scalar_select %p265_p1, %s5394_s19, %s267_s24  }
   0xb   : > { %p5521_p5 = por %p278_p2, %p277_p0  ;;  %p5525_p6 = por %p284_p4, %p283_p3 }
   0xc   : > { %p5047_p7 = scmp.ge.s32.totalorder %s5398_s20, 1  ;;  %p339_p8 = scmp.lt.s32.totalorder %s5398_s20, 3 }
   0xe   : > { %p340_p9 = pnand %p5047_p7, %p339_p8 }
  0x10   : > { %343 = sbr.rel (%p340_p9) target bundleno = 2555 (0x9fb), region = 64 }
  0x15   : > { %v381_v0 = vld [vmem:[%s10240_s1] sm:$0xff]  ;;  %v5400_v1 = vmov 1   ;;  %v5401_v2 = vmov 3   ;;  %v382_v3 = vld [vmem:[%s10240_s1 + $0x8] sm:$0x3]  ;;  %v5402_v4 = vmov 2  }
  0x16   : > { %5223 = vset.pattern.permute.xlu0 %v5400_v1  ;;  %5225 = vset.pattern.permute.xlu1 %v5401_v2  ;;  %v5403_v5 = vmov 4   ;;  %v5404_v6 = vmov 5   ;;  %v5405_v7 = vmov 6   ;;  %v5406_v8 = vmov 7   ;;  %p377_p10 = scmp.lt.s32.totalorder %s5504_s21, 1  ;;  %s10291_s0 = sld [smem:[#allocation37_spill]] }
  0x17   : > { %424 = vperm.xlu0 %5223, %v381_v0   ;;  %634 = vperm.xlu1 %5225, %v381_v0   ;;  %v5407_v9 = vmov 8   ;;  %v5408_v10 = vmov 0   ;;  %s10284_s25 = smov 127   ;;  %s10282_s29 = smov 126   ;;  %vm697_vm0 = vcmask 801792   ;;  %vm487_vm1 = vcmask 1039360  }
  0x18   : > { %5227 = vset.pattern.permute.xlu2 %v5400_v1  ;;  %s378_s14 = scalar_select %p377_p10, %s5504_s21, 1  ;;  %vm592_vm2 = vcmask 1031168   ;;  %vm802_vm3 = vcmask 793600   ;;  %vm907_vm4 = vcmask 785408   ;;  %vm1038_vm5 = vcmask 556032  }
  0x19   : > { %428 = vperm.xlu2 %5227, %v382_v3   ;;  %s5411_s30 = smov 98   ;;  %s5412_s12 = smov 97   ;;  %vm1153_vm6 = vcmask 547840   ;;  %vm1268_vm7 = vcmask 539648   ;;  %vm1357_vm8 = vcmask 588800   ;;  %vm1365_vm9 = vcmask 582656  }
  0x1a   : > { %s5048_s15 = sshll.u32 %s378_s14, 3  ;;  %s10280_s13 = smov 96   ;;  %vm1848_vm10 = vcmask 326656   ;;  %vm2383_vm11 = vcmask 1041408   ;;  %vm2340_vm12 = vcmask 64512   ;;  %vm2344_vm13 = vcmask 58368  }
  0x1b   : > { %s5414_s14 = smov 68   ;;  %s5416_s16 = smov 66   ;;  %vm2373_vm14 = vcmask 80896   ;;  %vm2604_vm15 = vcmask 916480  }
  0x1c   : > { %s5542_s24 = scalar_lea.vmem %s10291_s0, %s5048_s15  ;;  %s5415_s15 = smov 67  }
  0x1d   : > { %v5545_v11 = vld [vmem:[%s5542_s24] sm:$0x7f]  ;;  %s10347_s22 = smov 126   ;;  %s5421_s0 = smov 94  }
  0x1e   : > { %v5548_v12 = vperm.slane %v5545_v11, 4  ;;  %v5551_v13 = vperm.slane %v5545_v11, 3  ;;  %v5554_v14 = vperm.slane %v5545_v11, 2  ;;  %v5568_v19 = vperm.slane %v5545_v11, 5  ;;  %v5662_v54 = vld [vmem:[%s5542_s24] sm:$0xff]  ;;  %s5417_s24 = smov 111  }
  0x1f   : > { %5224 = vset.pattern.permute.xlu0 %v5402_v4  ;;  %5226 = vset.pattern.permute.xlu1 %v5403_v5  ;;  %v5615_v36 = vperm.slane %v5545_v11, 0  ;;  %v5629_v41 = vperm.slane %v5545_v11, 1  ;;  %v5668_v55 = vperm.slane %v5662_v54, 2  ;;  %v5684_v61 = vperm.slane %v5662_v54, 5 }
  0x20   : > { %529 = vperm.xlu0 %5224, %v381_v0   ;;  %739 = vperm.xlu1 %5226, %v381_v0   ;;  %10292 = vst [vmem:[#allocation10_spill] sm:$0xff] %v5554_v14 }
  0x21   : > { %5228 = vset.pattern.permute.xlu2 %v5404_v6 }
  0x22   : > { %844 = vperm.xlu2 %5228, %v381_v0  }
  0x28   : > { %5229 = vset.pattern.permute.xlu1 %v5402_v4  ;;  %5231 = vset.pattern.permute.xlu0 %v5401_v2 }
  0x29   : > { %533 = vperm.xlu1 %5229, %v382_v3   ;;  %638 = vperm.xlu0 %5231, %v382_v3  }
  0x2a   : > { %5230 = vset.pattern.permute.xlu2 %v5405_v7 }
  0x2b   : > { %950 = vperm.xlu2 %5230, %v381_v0  }
  0x31   : > { %5232 = vset.pattern.permute.xlu1 %v5406_v8  ;;  %5236 = vset.pattern.permute.xlu0 %v5405_v7 }
  0x32   : > { %1082 = vperm.xlu1 %5232, %v381_v0   ;;  %954 = vperm.xlu0 %5236, %v382_v3  }
  0x33   : > { %5233 = vset.pattern.permute.xlu2 %v5403_v5 }
  0x34   : > { %743 = vperm.xlu2 %5233, %v382_v3  }
  0x3a   : > { %5234 = vset.pattern.permute.xlu1 %v5407_v9  ;;  %5240 = vset.pattern.permute.xlu0 %v5408_v10 }
  0x3b   : > { %1197 = vperm.xlu1 %5234, %v381_v0   ;;  %391 = vperm.xlu0 %5240, %v382_v3  }
  0x3c   : > { %5235 = vset.pattern.permute.xlu2 %v5404_v6 }
  0x3d   : > { %848 = vperm.xlu2 %5235, %v382_v3  }
  0x43   : > { %5237 = vset.pattern.permute.xlu1 %v5406_v8 }
  0x44   : > { %1086 = vperm.xlu1 %5237, %v382_v3  }
  0x45   : > { %5238 = vset.pattern.permute.xlu2 %v5407_v9  ;;  %v5716_v9 = vperm.slane %v5662_v54, 4 }
  0x46   : > { %1201 = vperm.xlu2 %5238, %v382_v3   ;;  %v5700_v3 = vperm.slane %v5662_v54, 3 }
  0x4c   : > { %5239 = vset.pattern.permute.xlu1 %v5408_v10 }
  0x4d   : > { %386 = vperm.xlu1 %5239, %v381_v0  }
  0x4e   : > { %5331 = vset.pattern.permute.xlu2 %v5408_v10 }
  0x73   : > { %v5611_v35 = vpop.permute.xlu2 %428 }
  0x74   : > { %v442_v37 = vmul.f32 %v5611_v35, %v5548_v12  ;;  %v440_v42 = vmul.f32 %v5611_v35, %v5554_v14  ;;  %v441_v46 = vmul.f32 %v5611_v35, %v5551_v13  ;;  %v443_v47 = vmul.f32 %v5611_v35, %v5568_v19 }
  0x7c   : > { %v5626_v40 = vpop.permute.xlu2 %844 }
  0x7d   : > { %v854_v43 = vmul.f32 %v5626_v40, %v5551_v13  ;;  %v853_v50 = vmul.f32 %v5626_v40, %v5554_v14  ;;  %v855_v53 = vmul.f32 %v5626_v40, %v5548_v12  ;;  %v856_v57 = vmul.f32 %v5626_v40, %v5568_v19 }
  0x85   : > { %v5640_v45 = vpop.permute.xlu2 %950 }
  0x86   : > { %v976_v56 = vmul.f32 %v5668_v55, %v5640_v45  ;;  %v979_v0 = vmul.f32 %v5684_v61, %v5640_v45  ;;  %v977_v7 = vmul.f32 %v5700_v3, %v5640_v45 }
  0x89   : > { %v5556_v15 = vpop.permute.xlu0 %424  ;;  %v5581_v24 = vpop.permute.xlu1 %634 }
  0x8a   : > { %v435_v16 = vmul.f32 %v5556_v15, %v5548_v12  ;;  %v434_v17 = vmul.f32 %v5556_v15, %v5551_v13  ;;  %v433_v18 = vmul.f32 %v5556_v15, %v5554_v14  ;;  %v436_v21 = vmul.f32 %v5556_v15, %v5568_v19 }
  0x8b   : > { %v643_v25 = vmul.f32 %v5581_v24, %v5554_v14  ;;  %v644_v28 = vmul.f32 %v5581_v24, %v5551_v13  ;;  %v646_v29 = vmul.f32 %v5581_v24, %v5568_v19  ;;  %v645_v30 = vmul.f32 %v5581_v24, %v5548_v12 }
  0x8c   : > { %467 = vrot.lane.b32.xlu1 %v435_v16, %s10284_s25  ;;  %465 = vrot.lane.b32.xlu0 %v434_v17, %s10284_s25  ;;  %v431_v39 = vmul.f32 %v5556_v15, %v5615_v36  ;;  %v432_v44 = vmul.f32 %v5556_v15, %v5629_v41 }
  0x8d   : > { %463 = vrot.lane.b32.xlu2 %v433_v18, %s10284_s25  ;;  %v978_v18 = vmul.f32 %v5716_v9, %v5640_v45 }
  0x8e   : > { %v5655_v51 = vpop.permute.xlu2 %743 }
  0x92   : > { %v5570_v20 = vpop.permute.xlu0 %529  ;;  %v5601_v31 = vpop.permute.xlu1 %739 }
  0x93   : > { %v539_v22 = vmul.f32 %v5570_v20, %v5551_v13  ;;  %v538_v23 = vmul.f32 %v5570_v20, %v5554_v14  ;;  %v540_v26 = vmul.f32 %v5570_v20, %v5548_v12  ;;  %v541_v27 = vmul.f32 %v5570_v20, %v5568_v19 }
  0x94   : > { %v748_v32 = vmul.f32 %v5601_v31, %v5554_v14  ;;  %v750_v33 = vmul.f32 %v5601_v31, %v5548_v12  ;;  %v749_v34 = vmul.f32 %v5601_v31, %v5551_v13  ;;  %v751_v38 = vmul.f32 %v5601_v31, %v5568_v19 }
  0x95   : > { %469 = vrot.lane.b32.xlu2 %v436_v21, %s10284_s25  ;;  %570 = vrot.lane.b32.xlu1 %v539_v22, %s10282_s29  ;;  %v536_v48 = vmul.f32 %v5570_v20, %v5615_v36  ;;  %v537_v58 = vmul.f32 %v5570_v20, %v5629_v41  ;;  %v641_v21 = vmul.f32 %v5581_v24, %v5615_v36 }
  0x96   : > { %568 = vrot.lane.b32.xlu0 %v538_v23, %s10282_s29  ;;  %v642_v23 = vmul.f32 %v5581_v24, %v5629_v41 }
  0x97   : > { %v5676_v59 = vpop.permute.xlu2 %848 }
  0x9b   : > { %v5651_v49 = vpop.permute.xlu1 %533  ;;  %v5697_v2 = vpop.permute.xlu0 %638 }
  0x9c   : > { %v546_v52 = vmul.f32 %v5651_v49, %v5551_v13  ;;  %v545_v62 = vmul.f32 %v5651_v49, %v5554_v14  ;;  %v547_v63 = vmul.f32 %v5651_v49, %v5548_v12  ;;  %10294 = vst [vmem:[#allocation12_spill] sm:$0xff] %v5697_v2  ;;  %v650_v5 = vmul.f32 %v5697_v2, %v5554_v14 }
  0x9d   : > { %572 = vrot.lane.b32.xlu2 %v540_v26, %s10282_s29  ;;  %673 = vrot.lane.b32.xlu1 %v643_v25, %s5411_s30  ;;  %v548_v6 = vmul.f32 %v5651_v49, %v5568_v19  ;;  %v653_v10 = vmul.f32 %v5697_v2, %v5568_v19  ;;  %v651_v25 = vmul.f32 %v5697_v2, %v5551_v13 }
  0x9e   : > { %574 = vrot.lane.b32.xlu0 %v541_v27, %s10282_s29 }
  0xa0   : > { %v5694_v1 = vpop.permute.xlu2 %1201 }
  0xa4   : > { %v5681_v60 = vpop.permute.xlu1 %1082  ;;  %v5722_v17 = vpop.permute.xlu0 %954 }
  0xa5   : > { %675 = vrot.lane.b32.xlu2 %v644_v28, %s5411_s30  ;;  %679 = vrot.lane.b32.xlu1 %v646_v29, %s5411_s30  ;;  %10293 = vst [vmem:[#allocation11_spill] sm:$0xff] %v5681_v60  ;;  %v1093_v26 = vmul.f32 %v5681_v60, %v5716_v9 }
  0xa6   : > { %677 = vrot.lane.b32.xlu0 %v645_v30, %s5411_s30  ;;  %v652_v30 = vmul.f32 %v5697_v2, %v5548_v12 }
  0xad   : > { %778 = vrot.lane.b32.xlu2 %v748_v32, %s5412_s12  ;;  %782 = vrot.lane.b32.xlu1 %v750_v33, %s5412_s12  ;;  %v5702_v4 = vpop.permute.xlu1 %1197  ;;  %v5741_v28 = vpop.permute.xlu0 %391  ;;  %v1091_v32 = vmul.f32 %v5681_v60, %v5668_v55  ;;  %v746_v33 = vmul.f32 %v5601_v31, %v5615_v36 }
  0xae   : > { %780 = vrot.lane.b32.xlu0 %v749_v34, %s5412_s12 }
  0xb5   : > { %784 = vrot.lane.b32.xlu2 %v751_v38, %s5412_s12  ;;  %459 = vrot.lane.b32.xlu1 %v431_v39, %s10284_s25  ;;  %v1092_v39 = vmul.f32 %v5681_v60, %v5700_v3 }
  0xb6   : > { %481 = vrot.lane.b32.xlu0 %v442_v37, %s10284_s25  ;;  %v5720_v16 = vpop.permute.xlu1 %1086 }
  0xb7   : > { %10295 = vst [vmem:[#allocation13_spill] sm:$0xff] %v5720_v16 }
  0xbd   : > { %461 = vrot.lane.b32.xlu2 %v432_v44, %s10284_s25  ;;  %477 = vrot.lane.b32.xlu1 %v440_v42, %s10284_s25  ;;  %v1094_v42 = vmul.f32 %v5681_v60, %v5684_v61 }
  0xbe   : > { %885 = vrot.lane.b32.xlu0 %v854_v43, %s10280_s13  ;;  %v756_v43 = vmul.f32 %v5655_v51, %v5551_v13 }
  0xbf   : > { %v5739_v27 = vpop.permute.xlu1 %386 }
  0xc5   : > { %479 = vrot.lane.b32.xlu2 %v441_v46, %s10284_s25  ;;  %483 = vrot.lane.b32.xlu1 %v443_v47, %s10284_s25  ;;  %v5777_v47 = vperm.slane %v5545_v11, 6 }
  0xc6   : > { %564 = vrot.lane.b32.xlu0 %v536_v48, %s10282_s29 }
  0xcd   : > { %883 = vrot.lane.b32.xlu2 %v853_v50, %s10280_s13  ;;  %887 = vrot.lane.b32.xlu1 %v855_v53, %s10280_s13  ;;  %v437_v50 = vmul.f32 %v5556_v15, %v5777_v47  ;;  %v1206_v53 = vmul.f32 %v5702_v4, %v5668_v55  ;;  %v755_v15 = vmul.f32 %v5655_v51, %v5554_v14 }
  0xce   : > { %584 = vrot.lane.b32.xlu0 %v546_v52, %s10282_s29  ;;  %v747_v52 = vmul.f32 %v5601_v31, %v5629_v41 }
  0xd5   : > { %889 = vrot.lane.b32.xlu2 %v856_v57, %s10280_s13  ;;  %566 = vrot.lane.b32.xlu1 %v537_v58, %s10282_s29  ;;  %v757_v58 = vmul.f32 %v5655_v51, %v5548_v12 }
  0xd6   : > { %1010 = vrot.lane.b32.xlu0 %v976_v56, %s5414_s14 }
  0xdd   : > { %582 = vrot.lane.b32.xlu2 %v545_v62, %s10282_s29  ;;  %586 = vrot.lane.b32.xlu1 %v547_v63, %s10282_s29  ;;  %v1209_v62 = vmul.f32 %v5702_v4, %v5684_v61 }
  0xde   : > { %1016 = vrot.lane.b32.xlu0 %v979_v0, %s5414_s14 }
  0xe5   : > { %588 = vrot.lane.b32.xlu2 %v548_v6, %s10282_s29  ;;  %1012 = vrot.lane.b32.xlu1 %v977_v7, %s5414_s14  ;;  %v758_v6 = vmul.f32 %v5655_v51, %v5568_v19  ;;  %v1207_v7 = vmul.f32 %v5702_v4, %v5700_v3 }
  0xe6   : > { %687 = vrot.lane.b32.xlu0 %v650_v5, %s5411_s30 }
  0xe7   : > { %v5713_v8 = vpop.permute.xlu2 %463 }
  0xed   : > { %1014 = vrot.lane.b32.xlu2 %v978_v18, %s5414_s14  ;;  %669 = vrot.lane.b32.xlu1 %v641_v21, %s5411_s30 }
  0xee   : > { %693 = vrot.lane.b32.xlu0 %v653_v10, %s5411_s30  ;;  %v542_v10 = vmul.f32 %v5570_v20, %v5777_v47  ;;  %v860_v20 = vmul.f32 %v5676_v59, %v5554_v14 }
  0xef   : > { %v5731_v22 = vpop.permute.xlu2 %469 }
  0xf5   : > { %671 = vrot.lane.b32.xlu2 %v642_v23, %s5411_s30  ;;  %689 = vrot.lane.b32.xlu1 %v651_v25, %s5411_s30  ;;  %v1208_v25 = vmul.f32 %v5702_v4, %v5716_v9 }
  0xf6   : > { %1129 = vrot.lane.b32.xlu0 %v1093_v26, %s5415_s15  ;;  %v438_v26 = vmul.f32 %v5611_v35, %v5615_v36 }
  0xf7   : > { %v5746_v29 = vpop.permute.xlu2 %572 }
  0xf8   : > { %10296 = vst [vmem:[#allocation14_spill] sm:$0xff] %v5746_v29 }
  0xfd   : > { %691 = vrot.lane.b32.xlu2 %v652_v30, %s5411_s30  ;;  %1125 = vrot.lane.b32.xlu1 %v1091_v32, %s5415_s15 }
  0xfe   : > { %774 = vrot.lane.b32.xlu0 %v746_v33, %s5412_s12  ;;  %v5757_v34 = vpop.permute.xlu1 %467  ;;  %v5759_v37 = vpop.permute.xlu0 %465 }
  0xff   : > { %v5761_v38 = vpop.permute.xlu2 %675 }
 0x100   : > { %10297 = vst [vmem:[#allocation15_spill] sm:$0xff] %v5761_v38  ;;  %v1102_v38 = vmul.f32 %v5720_v16, %v5684_v61 }
 0x105   : > { %1127 = vrot.lane.b32.xlu2 %v1092_v39, %s5415_s15  ;;  %1131 = vrot.lane.b32.xlu1 %v1094_v42, %s5415_s15  ;;  %v439_v39 = vmul.f32 %v5611_v35, %v5629_v41  ;;  %v851_v42 = vmul.f32 %v5626_v40, %v5615_v36 }
 0x106   : > { %794 = vrot.lane.b32.xlu0 %v756_v43, %s5412_s12  ;;  %v863_v43 = vmul.f32 %v5676_v59, %v5568_v19 }
 0x107   : > { %v5772_v44 = vpop.permute.xlu2 %778  ;;  %v5774_v46 = vpop.permute.xlu1 %570 }
 0x108   : > { %10298 = vst [vmem:[#allocation16_spill] sm:$0xff] %v5774_v46  ;;  %v5779_v48 = vpop.permute.xlu0 %568 }
 0x10d   : > { %471 = vrot.lane.b32.xlu2 %v437_v50, %s10284_s25  ;;  %776 = vrot.lane.b32.xlu1 %v747_v52, %s5412_s12 }
 0x10e   : > { %1240 = vrot.lane.b32.xlu0 %v1206_v53, %s5416_s16 }
 0x10f   : > { %v5790_v11 = vpop.permute.xlu2 %784  ;;  %v5792_v56 = vpop.permute.xlu1 %673 }
 0x110   : > { %10299 = vst [vmem:[#allocation17_spill] sm:$0xff] %v5790_v11  ;;  %v5794_v57 = vpop.permute.xlu0 %574  ;;  %v752_v11 = vmul.f32 %v5601_v31, %v5777_v47 }
 0x115   : > { %792 = vrot.lane.b32.xlu2 %v755_v15, %s5412_s12  ;;  %796 = vrot.lane.b32.xlu1 %v757_v58, %s5412_s12  ;;  %v852_v15 = vmul.f32 %v5626_v40, %v5629_v41  ;;  %v861_v58 = vmul.f32 %v5676_v59, %v5551_v13 }
 0x116   : > { %1246 = vrot.lane.b32.xlu0 %v1209_v62, %s5416_s16  ;;  %v544_v62 = vmul.f32 %v5651_v49, %v5629_v41 }
 0x117   : > { %v5805_v63 = vpop.permute.xlu2 %461  ;;  %v5807_v0 = vpop.permute.xlu1 %679 }
 0x118   : > { %10300 = vst [vmem:[#allocation18_spill] sm:$0xff] %v5807_v0  ;;  %v5809_v5 = vpop.permute.xlu0 %677  ;;  %v1099_v0 = vmul.f32 %v5720_v16, %v5668_v55 }
 0x119   : > { %10301 = vst [vmem:[#allocation19_spill] sm:$0xff] %v5809_v5  ;;  %v1101_v5 = vmul.f32 %v5720_v16, %v5716_v9 }
 0x11d   : > { %798 = vrot.lane.b32.xlu2 %v758_v6, %s5412_s12  ;;  %1242 = vrot.lane.b32.xlu1 %v1207_v7, %s5416_s16 }
 0x11e   : > { %576 = vrot.lane.b32.xlu0 %v542_v10, %s10282_s29 }
 0x11f   : > { %v5820_v18 = vpop.permute.xlu2 %479  ;;  %v5822_v21 = vpop.permute.xlu1 %782 }
 0x120   : > { %10302 = vst [vmem:[#allocation20_spill] sm:$0xff] %v5822_v21  ;;  %v5824_v23 = vpop.permute.xlu0 %780 }
 0x121   : > { %10303 = vst [vmem:[#allocation21_spill] sm:$0xff] %v5824_v23  ;;  %v987_v23 = vmul.f32 %v5684_v61, %v5722_v17 }
 0x125   : > { %1244 = vrot.lane.b32.xlu2 %v1208_v25, %s5416_s16  ;;  %473 = vrot.lane.b32.xlu1 %v438_v26, %s10284_s25  ;;  %v5872_v25 = vperm.slane %v5662_v54, 1  ;;  %v1311_v26 = vld [vmem:[%s10241_s2] sm:$0xff] }
 0x126   : > { %897 = vrot.lane.b32.xlu0 %v860_v20, %s10280_s13  ;;  %v862_v20 = vmul.f32 %v5676_v59, %v5548_v12 }
 0x127   : > { %v5835_v30 = vpop.permute.xlu2 %883  ;;  %v5837_v32 = vpop.permute.xlu1 %459  ;;  %v1090_v21 = vmul.f32 %v5681_v60, %v5872_v25 }
 0x128   : > { %v5839_v33 = vpop.permute.xlu0 %481 }
 0x12d   : > { %475 = vrot.lane.b32.xlu2 %v439_v39, %s10284_s25  ;;  %879 = vrot.lane.b32.xlu1 %v851_v42, %s10280_s13  ;;  %v975_v39 = vmul.f32 %v5872_v25, %v5640_v45 }
 0x12e   : > { %903 = vrot.lane.b32.xlu0 %v863_v43, %s10280_s13 }
 0x12f   : > { %v5850_v50 = vpop.permute.xlu2 %889  ;;  %v5852_v52 = vpop.permute.xlu1 %477 }
 0x130   : > { %10304 = vst [vmem:[#allocation22_spill] sm:$0xff] %v5850_v50  ;;  %v5854_v53 = vpop.permute.xlu0 %885  ;;  %v984_v50 = vmul.f32 %v5668_v55, %v5722_v17  ;;  %v496_v29 = vsel %vm487_vm1, %v5852_v52, %v5820_v18 }
 0x131   : > { %10305 = vst [vmem:[#allocation23_spill] sm:$0xff] %v5852_v52 }
 0x132   : > { %10306 = vst [vmem:[#allocation24_spill] sm:$0xff] %v5854_v53  ;;  %v986_v53 = vmul.f32 %v5716_v9, %v5722_v17 }
 0x135   : > { %881 = vrot.lane.b32.xlu2 %v852_v15, %s10280_s13  ;;  %899 = vrot.lane.b32.xlu1 %v861_v58, %s10280_s13  ;;  %v543_v58 = vmul.f32 %v5651_v49, %v5615_v36 }
 0x136   : > { %580 = vrot.lane.b32.xlu0 %v544_v62, %s10282_s29  ;;  %v647_v62 = vmul.f32 %v5581_v24, %v5777_v47 }
 0x137   : > { %v5865_v6 = vpop.permute.xlu2 %582  ;;  %v5867_v7 = vpop.permute.xlu1 %483 }
 0x138   : > { %10307 = vst [vmem:[#allocation25_spill] sm:$0xff] %v5865_v6  ;;  %v5869_v10 = vpop.permute.xlu0 %564 }
 0x13d   : > { %901 = vrot.lane.b32.xlu2 %v862_v20, %s10280_s13  ;;  %1315 = vperm.xlu1 %5239, %v1311_v26  }
 0x13e   : > { %1008 = vrot.lane.b32.xlu0 %v975_v39, %s5414_s14  ;;  %v5903_v39 = vperm.slane %v5662_v54, 0 }
 0x13f   : > { %v5883_v42 = vpop.permute.xlu2 %588  ;;  %v5885_v43 = vpop.permute.xlu1 %887 }
 0x140   : > { %10308 = vst [vmem:[#allocation26_spill] sm:$0xff] %v5885_v43  ;;  %v5887_v15 = vpop.permute.xlu0 %584  ;;  %v974_v24 = vmul.f32 %v5903_v39, %v5640_v45  ;;  %v1089_v31 = vmul.f32 %v5681_v60, %v5903_v39  ;;  %v1100_v60 = vmul.f32 %v5720_v16, %v5700_v3  ;;  %v418_v16 = vmul.f32 %v5554_v14, %v5741_v28 }
 0x145   : > { %578 = vrot.lane.b32.xlu2 %v543_v58, %s10282_s29  ;;  %681 = vrot.lane.b32.xlu1 %v647_v62, %s5411_s30  ;;  %v649_v58 = vmul.f32 %v5697_v2, %v5629_v41 }
 0x146   : > { %1030 = vrot.lane.b32.xlu0 %v986_v53, %s5414_s14 }
 0x147   : > { %v5898_v26 = vpop.permute.xlu2 %1014  ;;  %v5900_v20 = vpop.permute.xlu1 %566 }
 0x148   : > { %10309 = vst [vmem:[#allocation27_spill] sm:$0xff] %v5898_v26  ;;  %v5905_v43 = vpop.permute.xlu0 %1010  ;;  %v985_v26 = vmul.f32 %v5700_v3, %v5722_v17 }
 0x149   : > { %10310 = vst [vmem:[#allocation28_spill] sm:$0xff] %v5905_v43 }
 0x14d   : > { %1006 = vrot.lane.b32.xlu2 %v974_v24, %s5414_s14  ;;  %1026 = vrot.lane.b32.xlu1 %v984_v50, %s5414_s14 }
 0x14e   : > { %685 = vrot.lane.b32.xlu0 %v649_v58, %s5411_s30 }
 0x14f   : > { %v5916_v53 = vpop.permute.xlu2 %671  ;;  %v5918_v62 = vpop.permute.xlu1 %586 }
 0x150   : > { %v5920_v43 = vpop.permute.xlu0 %1016 }
 0x151   : > { %10311 = vst [vmem:[#allocation29_spill] sm:$0xff] %v5920_v43  ;;  %v648_v43 = vmul.f32 %v5697_v2, %v5615_v36  ;;  %v1215_v2 = vmul.f32 %v5694_v1, %v5700_v3  ;;  %v488_v3 = vsel %vm487_vm1, %v5837_v32, %v5805_v63 }
 0x155   : > { %1028 = vrot.lane.b32.xlu2 %v985_v26, %s5414_s14  ;;  %1032 = vrot.lane.b32.xlu1 %v987_v23, %s5414_s14 }
 0x156   : > { %1123 = vrot.lane.b32.xlu0 %v1090_v21, %s5415_s15 }
 0x157   : > { %v5931_v50 = vpop.permute.xlu2 %691  ;;  %v5933_v24 = vpop.permute.xlu1 %1012 }
 0x158   : > { %10312 = vst [vmem:[#allocation30_spill] sm:$0xff] %v5933_v24  ;;  %v5935_v58 = vpop.permute.xlu0 %687 }
 0x159   : > { %10313 = vst [vmem:[#allocation31_spill] sm:$0xff] %v5935_v58 }
 0x15d   : > { %683 = vrot.lane.b32.xlu2 %v648_v43, %s5411_s30  ;;  %786 = vrot.lane.b32.xlu1 %v752_v11, %s5412_s12  ;;  %v753_v11 = vmul.f32 %v5655_v51, %v5615_v36 }
 0x15e   : > { %1145 = vrot.lane.b32.xlu0 %v1101_v5, %s5415_s15 }
 0x15f   : > { %v5946_v21 = vpop.permute.xlu2 %1127  ;;  %v670_v23 = vpop.permute.xlu1 %669 }
 0x160   : > { %10314 = vst [vmem:[#allocation32_spill] sm:$0xff] %v5946_v21  ;;  %v5948_v26 = vpop.permute.xlu0 %693  ;;  %v698_v24 = vsel %vm697_vm0, %v670_v23, %v5916_v53 }
 0x165   : > { %1121 = vrot.lane.b32.xlu2 %v1089_v31, %s5415_s15  ;;  %1141 = vrot.lane.b32.xlu1 %v1099_v0, %s5415_s15  ;;  %v1204_v0 = vmul.f32 %v5702_v4, %v5903_v39 }
 0x166   : > { %788 = vrot.lane.b32.xlu0 %v753_v11, %s5412_s12 }
 0x167   : > { %v5961_v5 = vpop.permute.xlu2 %471  ;;  %v690_v43 = vpop.permute.xlu1 %689 }
 0x168   : > { %v5963_v21 = vpop.permute.xlu0 %1129  ;;  %v5967_v23 = vsel %vm697_vm0, %v690_v43, %v5931_v50  ;;  %v706_v52 = vsel %vm697_vm0, %v5935_v58, %v690_v43  ;;  %v1205_v58 = vmul.f32 %v5702_v4, %v5872_v25 }
 0x169   : > { %10315 = vst [vmem:[#allocation33_spill] sm:$0xff] %v5963_v21 }
 0x16d   : > { %1143 = vrot.lane.b32.xlu2 %v1100_v60, %s5415_s15  ;;  %1147 = vrot.lane.b32.xlu1 %v1102_v38, %s5415_s15  ;;  %v601_v60 = vsel %vm592_vm2, %v5865_v6, %v5887_v15  ;;  %v444_v38 = vmul.f32 %v5611_v35, %v5777_v47 }
 0x16e   : > { %1236 = vrot.lane.b32.xlu0 %v1204_v0, %s5416_s16  ;;  %v754_v0 = vmul.f32 %v5655_v51, %v5629_v41 }
 0x16f   : > { %v5978_v31 = vpop.permute.xlu2 %792  ;;  %v5980_v11 = vpop.permute.xlu1 %1125 }
 0x170   : > { %10316 = vst [vmem:[#allocation34_spill] sm:$0xff] %v5978_v31  ;;  %v775_v21 = vpop.permute.xlu0 %774 }
 0x171   : > { %10317 = vst [vmem:[#allocation35_spill] sm:$0xff] %v5980_v11  ;;  %v523_v11 = vadd.f32 %v496_v29, %v418_v16  ;;  %v489_v16 = vsel %vm487_vm1, %v5805_v63, %v5713_v8 }
 0x173   : > { %v628_v46 = vadd.f32 %v601_v60, %v523_v11  ;;  %v410_v11 = vmul.f32 %v5629_v41, %v5739_v27 }
 0x175   : > { %485 = vrot.lane.b32.xlu2 %v444_v38, %s10284_s25  ;;  %790 = vrot.lane.b32.xlu1 %v754_v0, %s5412_s12  ;;  %v733_v29 = vadd.f32 %v706_v52, %v628_v46  ;;  %v593_v38 = vsel %vm592_vm2, %v5869_v10, %v5900_v20  ;;  %v594_v0 = vsel %vm592_vm2, %v5900_v20, %v5779_v48 }
 0x176   : > { %1258 = vrot.lane.b32.xlu0 %v1215_v2, %s5416_s16  ;;  %v409_v2 = vmul.f32 %v5615_v36, %v5739_v27  ;;  %v515_v46 = vadd.f32 %v489_v16, %v410_v11  ;;  %v857_v52 = vmul.f32 %v5626_v40, %v5777_v47  ;;  %v549_v10 = vmul.f32 %v5651_v49, %v5777_v47 }
 0x177   : > { %v6001_v6 = vpop.permute.xlu2 %798  ;;  %v6003_v35 = vpop.permute.xlu1 %1131  ;;  %v497_v49 = vsel %vm487_vm1, %v5820_v18, %v5839_v33 }
 0x178   : > { %10318 = vst [vmem:[#allocation36_spill] sm:$0xff] %v6003_v35  ;;  %v795_v43 = vpop.permute.xlu0 %794  ;;  %v514_v32 = vadd.f32 %v488_v3, %v409_v2  ;;  %v620_v14 = vadd.f32 %v594_v0, %v515_v46  ;;  %v1216_v0 = vmul.f32 %v5694_v1, %v5716_v9  ;;  %v708_v46 = vsel %vm697_vm0, %v5931_v50, %v5948_v26 }
 0x179   : > { %v811_v60 = vsel %vm802_vm3, %v5978_v31, %v795_v43  ;;  %v699_v31 = vsel %vm697_vm0, %v5916_v53, %v5792_v56  ;;  %v498_v53 = vsel %vm487_vm1, %v5839_v33, %v5867_v7  ;;  %v602_v33 = vsel %vm592_vm2, %v5887_v15, %v5918_v62 }
 0x17a   : > { %v6023_v63 = vadd.f32 %v811_v60, %v733_v29  ;;  %v619_v35 = vadd.f32 %v593_v38, %v514_v32  ;;  %v725_v20 = vadd.f32 %v699_v31, %v620_v14  ;;  %v6040_v29 = vperm.slane %v5662_v54, 6 }
 0x17b   : > { %v420_v31 = vmul.f32 %v5548_v12, %v5741_v28  ;;  %v1214_v38 = vmul.f32 %v5694_v1, %v5668_v55 }
 0x17c   : > { %v724_v40 = vadd.f32 %v698_v24, %v619_v35  ;;  %v419_v24 = vmul.f32 %v5551_v13, %v5741_v28  ;;  %v980_v32 = vmul.f32 %v6040_v29, %v5640_v45 }
 0x17d   : > { %891 = vrot.lane.b32.xlu2 %v857_v52, %s10280_s13  ;;  %1238 = vrot.lane.b32.xlu1 %v1205_v58, %s5416_s16  ;;  %v525_v60 = vadd.f32 %v498_v53, %v420_v31  ;;  %v1217_v53 = vmul.f32 %v5694_v1, %v5684_v61  ;;  %v414_v61 = vmul.f32 %v5568_v19, %v5739_v27 }
 0x17e   : > { %590 = vrot.lane.b32.xlu0 %v549_v10, %s10282_s29  ;;  %v524_v2 = vadd.f32 %v497_v49, %v419_v24  ;;  %s5419_s29 = smov 110  }
 0x17f   : > { %v6037_v16 = vpop.permute.xlu2 %1244  ;;  %v777_v3 = vpop.permute.xlu1 %776 }
 0x180   : > { %v6048_v11 = vpop.permute.xlu0 %1240  ;;  %v803_v58 = vsel %vm802_vm3, %v775_v21, %v777_v3  ;;  %v804_v14 = vsel %vm802_vm3, %v777_v3, %v5772_v44  ;;  %v603_v21 = vsel %vm592_vm2, %v5918_v62, %v5883_v42  ;;  %v629_v15 = vadd.f32 %v602_v33, %v524_v2 }
 0x181   : > { %v6057_v35 = vadd.f32 %v803_v58, %v724_v40  ;;  %v830_v18 = vadd.f32 %v804_v14, %v725_v20  ;;  %v630_v52 = vadd.f32 %v603_v21, %v525_v60  ;;  %v982_v58 = vmul.f32 %v5903_v39, %v5722_v17 }
 0x182   : > { %v734_v55 = vadd.f32 %v5967_v23, %v629_v15  ;;  %v858_v23 = vmul.f32 %v5676_v59, %v5615_v36  ;;  %v415_v14 = vmul.f32 %v5777_v47, %v5739_v27  ;;  %v859_v15 = vmul.f32 %v5676_v59, %v5629_v41 }
 0x183   : > { %v735_v62 = vadd.f32 %v708_v46, %v630_v52  ;;  %v759_v52 = vmul.f32 %v5655_v51, %v5777_v47  ;;  %v492_v51 = vsel %vm487_vm1, %v5757_v34, %v5731_v22 }
 0x184   : > { %v520_v24 = vadd.f32 %v5961_v5, %v415_v14  ;;  %v10320_v14 = vld [vmem:[#allocation16_spill] sm:$0xff] }
 0x185   : > { %1256 = vrot.lane.b32.xlu2 %v1214_v38, %s5416_s16  ;;  %1260 = vrot.lane.b32.xlu1 %v1216_v0, %s5416_s16 }
 0x186   : > { %1018 = vrot.lane.b32.xlu0 %v980_v32, %s5414_s14 }
 0x187   : > { %v6078_v10 = vpop.permute.xlu2 %475  ;;  %v797_v9 = vpop.permute.xlu1 %796 }
 0x188   : > { %v6080_v20 = vpop.permute.xlu0 %1246  ;;  %v812_v50 = vsel %vm802_vm3, %v795_v43, %v797_v9  ;;  %v813_v40 = vsel %vm802_vm3, %v797_v9, %v6001_v6  ;;  %v493_v43 = vsel %vm487_vm1, %v5731_v22, %v5961_v5  ;;  %v1312_v5 = vld [vmem:[%s10241_s2 + $0x8] sm:$0x3] }
 0x189   : > { %v6085_v3 = vadd.f32 %v812_v50, %v734_v55  ;;  %v6087_v49 = vadd.f32 %v813_v40, %v735_v62  ;;  %v519_v21 = vadd.f32 %v493_v43, %v414_v61  ;;  %v490_v55 = vsel %vm487_vm1, %v5713_v8, %v5759_v37  ;;  %v10319_v40 = vld [vmem:[#allocation10_spill] sm:$0xff]  ;;  %v10321_v61 = vld [vmem:[#allocation12_spill] sm:$0xff] }
 0x18a   : > { %v491_v8 = vsel %vm487_vm1, %v5759_v37, %v5757_v34  ;;  %v595_v43 = vsel %vm592_vm2, %v5779_v48, %v10320_v14  ;;  %v654_v22 = vmul.f32 %v10321_v61, %v5777_v47  ;;  %v10323_v37 = vld [vmem:[#allocation15_spill] sm:$0xff] }
 0x18b   : > { %v700_v48 = vsel %vm697_vm0, %v5792_v56, %v10323_v37 }
 0x18d   : > { %1262 = vrot.lane.b32.xlu2 %v1217_v53, %s5416_s16  ;;  %893 = vrot.lane.b32.xlu1 %v858_v23, %s10280_s13  ;;  %v411_v53 = vmul.f32 %v10319_v40, %v5739_v27  ;;  %v6144_v23 = vperm.slane %v5662_v54, 7  ;;  %v10322_v54 = vld [vmem:[#allocation14_spill] sm:$0xff] }
 0x18e   : > { %1022 = vrot.lane.b32.xlu0 %v982_v58, %s5414_s14  ;;  %v413_v58 = vmul.f32 %v5548_v12, %v5739_v27  ;;  %v983_v12 = vmul.f32 %v5872_v25, %v5722_v17  ;;  %v596_v34 = vsel %vm592_vm2, %v10320_v14, %v10322_v54  ;;  %v10328_v14 = vld [vmem:[#allocation17_spill] sm:$0xff] }
 0x18f   : > { %v882_v31 = vpop.permute.xlu2 %881  ;;  %v6106_v33 = vpop.permute.xlu1 %1242  ;;  %v981_v40 = vmul.f32 %v6144_v23, %v5640_v45 }
 0x190   : > { %v909_v2 = vsel %vm907_vm4, %v882_v31, %v5835_v30  ;;  %v577_v60 = vpop.permute.xlu0 %576 }
 0x191   : > { %v6110_v38 = vadd.f32 %v909_v2, %v830_v18  ;;  %v598_v0 = vsel %vm592_vm2, %v5794_v57, %v577_v60  ;;  %v6114_v46 = vadd.f32 %v577_v60, %v520_v24  ;;  %v412_v24 = vmul.f32 %v5551_v13, %v5739_v27 }
 0x192   : > { %v6116_v32 = vadd.f32 %v598_v0, %v519_v21  ;;  %v516_v21 = vadd.f32 %v490_v55, %v411_v53  ;;  %v597_v2 = vsel %vm592_vm2, %v10322_v54, %v5794_v57  ;;  %v518_v60 = vadd.f32 %v492_v51, %v413_v58  ;;  %v10324_v0 = vld [vmem:[#allocation13_spill] sm:$0xff]  ;;  %v10327_v55 = vld [vmem:[#allocation11_spill] sm:$0xff] }
 0x193   : > { %v1098_v13 = vmul.f32 %v10324_v0, %v5872_v25  ;;  %v517_v27 = vadd.f32 %v491_v8, %v412_v24  ;;  %v1095_v51 = vmul.f32 %v10327_v55, %v6040_v29  ;;  %v1096_v56 = vmul.f32 %v10327_v55, %v6144_v23  ;;  %v10330_v54 = vld [vmem:[#allocation21_spill] sm:$0xff] }
 0x195   : > { %895 = vrot.lane.b32.xlu2 %v859_v15, %s10280_s13  ;;  %1320 = vperm.xlu1 %5239, %v1312_v5   ;;  %v621_v5 = vadd.f32 %v595_v43, %v516_v21  ;;  %v10325_v15 = vld [vmem:[#allocation18_spill] sm:$0xff]  ;;  %v622_v53 = vadd.f32 %v596_v34, %v517_v27  ;;  %v10329_v43 = vld [vmem:[#allocation20_spill] sm:$0xff] }
 0x196   : > { %800 = vrot.lane.b32.xlu0 %v759_v52, %s5412_s12  ;;  %v10326_v52 = vld [vmem:[#allocation19_spill] sm:$0xff]  ;;  %v807_v61 = vsel %vm802_vm3, %v10329_v43, %v10328_v14  ;;  %v10331_v34 = vld [vmem:[#allocation22_spill] sm:$0xff]  ;;  %s10286_s12 = smov 112  }
 0x197   : > { %v6127_v18 = vpop.permute.xlu2 %901  ;;  %v474_v62 = vpop.permute.xlu1 %473  ;;  %v702_v57 = vsel %vm697_vm0, %v10326_v52, %v10325_v15  ;;  %v726_v58 = vadd.f32 %v700_v48, %v621_v5  ;;  %v701_v8 = vsel %vm697_vm0, %v10323_v37, %v10326_v52  ;;  %v10332_v37 = vld [vmem:[#allocation26_spill] sm:$0xff]  ;;  %v10333_v52 = vld [vmem:[#allocation24_spill] sm:$0xff] }
 0x198   : > { %v6132_v9 = vpop.permute.xlu0 %897  ;;  %v6136_v50 = vsel %vm487_vm1, %v474_v62, %v6078_v10  ;;  %v623_v62 = vadd.f32 %v597_v2, %v518_v60  ;;  %v805_v2 = vsel %vm802_vm3, %v5772_v44, %v10330_v54  ;;  %v806_v60 = vsel %vm802_vm3, %v10330_v54, %v10329_v43  ;;  %v10334_v43 = vld [vmem:[#allocation29_spill] sm:$0xff] }
 0x199   : > { %v912_v48 = vsel %vm907_vm4, %v10332_v37, %v10331_v34  ;;  %v727_v44 = vadd.f32 %v701_v8, %v622_v53  ;;  %v911_v55 = vsel %vm907_vm4, %v10333_v52, %v10332_v37  ;;  %v10338_v37 = vld [vmem:[#allocation28_spill] sm:$0xff] }
 0x19a   : > { %v728_v21 = vadd.f32 %v702_v57, %v623_v62  ;;  %v831_v62 = vadd.f32 %v805_v2, %v726_v58 }
 0x19b   : > { %v832_v53 = vadd.f32 %v806_v60, %v727_v44  ;;  %v10337_v60 = vld [vmem:[#allocation30_spill] sm:$0xff]  ;;  %v10342_v44 = vld [vmem:[#allocation36_spill] sm:$0xff] }
 0x19c   : > { %v833_v5 = vadd.f32 %v807_v61, %v728_v21  ;;  %v10336_v61 = vld [vmem:[#allocation23_spill] sm:$0xff]  ;;  %v416_v21 = vmul.f32 %v5615_v36, %v5741_v28 }
 0x19d   : > { %695 = vrot.lane.b32.xlu2 %v654_v22, %s5411_s30  ;;  %1024 = vrot.lane.b32.xlu1 %v983_v12, %s5414_s14  ;;  %v495_v58 = vsel %vm487_vm1, %v6078_v10, %v10336_v61  ;;  %v937_v2 = vadd.f32 %v911_v55, %v832_v53  ;;  %v10339_v10 = vld [vmem:[#allocation33_spill] sm:$0xff] }
 0x19e   : > { %1139 = vrot.lane.b32.xlu0 %v1098_v13, %s5415_s15  ;;  %v938_v8 = vadd.f32 %v912_v48, %v833_v5  ;;  %v1041_v48 = vsel %vm1038_vm5, %v10338_v37, %v10337_v60  ;;  %v1158_v5 = vsel %vm1153_vm6, %v10339_v10, %v10342_v44  ;;  %v521_v55 = vadd.f32 %v6136_v50, %v416_v21 }
 0x19f   : > { %v579_v22 = vpop.permute.xlu2 %578  ;;  %v880_v24 = vpop.permute.xlu1 %879  ;;  %v1273_v21 = vsel %vm1268_vm7, %v6037_v16, %v6080_v20 }
 0x1a0   : > { %v6192_v12 = vpop.permute.xlu0 %903  ;;  %v908_v45 = vsel %vm907_vm4, %v880_v24, %v882_v31  ;;  %v910_v31 = vsel %vm907_vm4, %v5835_v30, %v10333_v52  ;;  %v10335_v24 = vld [vmem:[#allocation27_spill] sm:$0xff]  ;;  %v417_v30 = vmul.f32 %v5629_v41, %v5741_v28 }
 0x1a1   : > { %v918_v13 = vsel %vm907_vm4, %v6127_v18, %v6192_v12  ;;  %v6205_v27 = vadd.f32 %v908_v45, %v6057_v35  ;;  %v1043_v54 = vsel %vm1038_vm5, %v10335_v24, %v10334_v43  ;;  %v1210_v35 = vmul.f32 %v5702_v4, %v6040_v29 }
 0x1a2   : > { %v6211_v57 = vadd.f32 %v918_v13, %v6087_v49  ;;  %v936_v49 = vadd.f32 %v910_v31, %v831_v62  ;;  %v1071_v45 = vadd.f32 %v1043_v54, %v938_v8  ;;  %v1042_v41 = vsel %vm1038_vm5, %v10337_v60, %v10335_v24  ;;  %v10340_v13 = vld [vmem:[#allocation32_spill] sm:$0xff]  ;;  %v10343_v8 = vld [vmem:[#allocation25_spill] sm:$0xff] }
 0x1a3   : > { %v1157_v36 = vsel %vm1153_vm6, %v10340_v13, %v10339_v10  ;;  %v522_v62 = vadd.f32 %v495_v58, %v417_v30  ;;  %v1070_v30 = vadd.f32 %v1042_v41, %v937_v2 }
 0x1a4   : > { %v1186_v2 = vadd.f32 %v1158_v5, %v1071_v45 }
 0x1a5   : > { %1133 = vrot.lane.b32.xlu2 %v1095_v51, %s5415_s15  ;;  %1020 = vrot.lane.b32.xlu1 %v981_v40, %s5414_s14  ;;  %v10341_v51 = vld [vmem:[#allocation35_spill] sm:$0xff] }
 0x1a6   : > { %1135 = vrot.lane.b32.xlu0 %v1096_v56, %s5415_s15  ;;  %v1156_v40 = vsel %vm1153_vm6, %v10341_v51, %v10340_v13  ;;  %v1069_v13 = vadd.f32 %v1041_v48, %v936_v49  ;;  %v988_v48 = vmul.f32 %v6040_v29, %v5722_v17  ;;  %v1301_v41 = vadd.f32 %v1273_v21, %v1186_v2 }
 0x1a7   : > { %v1007_v52 = vpop.permute.xlu2 %1006  ;;  %v900_v31 = vpop.permute.xlu1 %899 }
 0x1a8   : > { %v581_v24 = vpop.permute.xlu0 %580  ;;  %v916_v56 = vsel %vm907_vm4, %v6132_v9, %v900_v31  ;;  %v917_v54 = vsel %vm907_vm4, %v900_v31, %v6127_v18  ;;  %v1271_v18 = vsel %vm1268_vm7, %v6048_v11, %v6106_v33  ;;  %v1184_v49 = vadd.f32 %v1156_v40, %v1069_v13 }
 0x1a9   : > { %v599_v53 = vsel %vm592_vm2, %v579_v22, %v581_v24  ;;  %v600_v61 = vsel %vm592_vm2, %v581_v24, %v10343_v8  ;;  %v943_v60 = vadd.f32 %v916_v56, %v6023_v63  ;;  %v944_v10 = vadd.f32 %v917_v54, %v6085_v3 }
 0x1aa   : > { %v626_v58 = vadd.f32 %v599_v53, %v521_v55  ;;  %v627_v50 = vadd.f32 %v600_v61, %v522_v62  ;;  %v1272_v22 = vsel %vm1268_vm7, %v6106_v33, %v6037_v16  ;;  %v1097_v63 = vmul.f32 %v10324_v0, %v5903_v39 }
 0x1ab   : > { %v1185_v3 = vadd.f32 %v1157_v36, %v1070_v30  ;;  %v1299_v31 = vadd.f32 %v1271_v18, %v1184_v49  ;;  %v864_v53 = vmul.f32 %v5676_v59, %v5777_v47  ;;  %v1212_v8 = vmul.f32 %v5694_v1, %v5903_v39 }
 0x1ac   : > { %v989_v61 = vmul.f32 %v6144_v23, %v5722_v17  ;;  %v1213_v17 = vmul.f32 %v5694_v1, %v5872_v25 }
 0x1ad   : > { %1137 = vrot.lane.b32.xlu2 %v1097_v63, %s5415_s15  ;;  %1248 = vrot.lane.b32.xlu1 %v1210_v35, %s5416_s16  ;;  %v1300_v62 = vadd.f32 %v1272_v22, %v1185_v3  ;;  %v1211_v22 = vmul.f32 %v5702_v4, %v6144_v23  ;;  %v1219_v63 = vmul.f32 %v5694_v1, %v6144_v23  ;;  %v10344_v3 = vld [vmem:[#allocation31_spill] sm:$0xff] }
 0x1ae   : > { %1034 = vrot.lane.b32.xlu0 %v988_v48, %s5414_s14 }
 0x1af   : > { %v1029_v55 = vpop.permute.xlu2 %1028  ;;  %v6272_v16 = vpop.permute.xlu1 %1315 }
 0x1b0   : > { %v6274_v33 = vpop.permute.xlu0 %1008  ;;  %v6277_v36 = vadd.f32 %v6272_v16, %v1299_v31  ;;  %v6280_v45 = vadd.f32 %v6272_v16, %v1300_v62  ;;  %v6283_v40 = vadd.f32 %v6272_v16, %v1301_v41  ;;  %v1103_v41 = vmul.f32 %v10324_v0, %v6040_v29 }
 0x1b1   : > { %v1039_v35 = vsel %vm1038_vm5, %v1007_v52, %v6274_v33  ;;  %v1218_v31 = vmul.f32 %v5694_v1, %v6040_v29 }
 0x1b2   : > { %v6288_v5 = vadd.f32 %v1039_v35, %v6205_v27  ;;  %v1339_v24 = vmax.f32 %v6277_v36, 0.0  ;;  %v1340_v56 = vmax.f32 %v6280_v45, 0.0  ;;  %v1341_v54 = vmax.f32 %v6283_v40, 0.0  ;;  %v1674_v40 = vld [vmem:[%s10244_s5 + $0x408] sm:$0xff] }
 0x1b4   : > { %v5241_v1 = vpack.i.bf16 %v1340_v56, %v1339_v24 }
 0x1b5   : > { %905 = vrot.lane.b32.xlu2 %v864_v53, %s10280_s13  ;;  %1252 = vrot.lane.b32.xlu1 %v1212_v8, %s5416_s16  ;;  %s5420_s13 = smov 95  }
 0x1b6   : > { %1036 = vrot.lane.b32.xlu0 %v989_v61, %s5414_s14  ;;  %s10348_s14 = smov 96  }
 0x1b7   : > { %v684_v27 = vpop.permute.xlu2 %683  ;;  %v682_v52 = vpop.permute.xlu1 %681 }
 0x1b8   : > { %v1031_v13 = vpop.permute.xlu0 %1030  ;;  %v703_v30 = vsel %vm697_vm0, %v10325_v15, %v682_v52  ;;  %v730_v59 = vadd.f32 %v682_v52, %v6114_v46 }
 0x1b9   : > { %v1049_v21 = vsel %vm1038_vm5, %v1029_v55, %v1031_v13  ;;  %v729_v39 = vadd.f32 %v703_v30, %v6116_v32 }
 0x1ba   : > { %v6307_v18 = vadd.f32 %v1049_v21, %v944_v10 }
 0x1bd   : > { %1254 = vrot.lane.b32.xlu2 %v1213_v17, %s5416_s16  ;;  %1250 = vrot.lane.b32.xlu1 %v1211_v22, %s5416_s16 }
 0x1be   : > { %1266 = vrot.lane.b32.xlu0 %v1219_v63, %s5416_s16 }
 0x1bf   : > { %v1122_v46 = vpop.permute.xlu2 %1121  ;;  %v6318_v15 = vpop.permute.xlu1 %1026 }
 0x1c0   : > { %v686_v32 = vpop.permute.xlu0 %685  ;;  %v1048_v10 = vsel %vm1038_vm5, %v6318_v15, %v1029_v55 }
 0x1c1   : > { %v704_v25 = vsel %vm697_vm0, %v684_v27, %v686_v32  ;;  %v705_v4 = vsel %vm697_vm0, %v686_v32, %v10344_v3  ;;  %v6325_v49 = vadd.f32 %v1048_v10, %v943_v60 }
 0x1c2   : > { %v731_v2 = vadd.f32 %v704_v25, %v626_v58  ;;  %v6327_v48 = vadd.f32 %v705_v4, %v627_v50  ;;  %v1104_v50 = vmul.f32 %v10324_v0, %v6144_v23 }
 0x1c5   : > { %1149 = vrot.lane.b32.xlu2 %v1103_v41, %s5415_s15  ;;  %1264 = vrot.lane.b32.xlu1 %v1218_v31, %s5416_s16 }
 0x1c7   : > { %v1144_v62 = vpop.permute.xlu2 %1143  ;;  %v6335_v55 = vpop.permute.xlu1 %1032 }
 0x1c8   : > { %v1124_v35 = vpop.permute.xlu0 %1123  ;;  %v1050_v60 = vsel %vm1038_vm5, %v1031_v13, %v6335_v55 }
 0x1c9   : > { %v1078_v58 = vadd.f32 %v1050_v60, %v6211_v57  ;;  %v1154_v25 = vsel %vm1153_vm6, %v1122_v46, %v1124_v35  ;;  %v1155_v3 = vsel %vm1153_vm6, %v1124_v35, %v10341_v51 }
 0x1ca   : > { %v1182_v41 = vadd.f32 %v1154_v25, %v6288_v5 }
 0x1cd   : > { %1151 = vrot.lane.b32.xlu2 %v1104_v50, %s5415_s15  ;;  %5242 = vrot.lane.b32.xlu1 %v5241_v1, %s10284_s25 }
 0x1cf   : > { %v6348_v29 = vpop.permute.xlu2 %485  ;;  %v787_v53 = vpop.permute.xlu1 %786 }
 0x1d0   : > { %v1146_v8 = vpop.permute.xlu0 %1145  ;;  %v808_v61 = vsel %vm802_vm3, %v10328_v14, %v787_v53  ;;  %v835_v57 = vadd.f32 %v787_v53, %v730_v59 }
 0x1d1   : > { %v834_v27 = vadd.f32 %v808_v61, %v729_v39 }
 0x1d7   : > { %v892_v52 = vpop.permute.xlu2 %891  ;;  %v6352_v23 = vpop.permute.xlu1 %1141 }
 0x1d8   : > { %v913_v0 = vsel %vm907_vm4, %v10331_v34, %v892_v52  ;;  %v6356_v13 = vadd.f32 %v892_v52, %v835_v57  ;;  %v789_v30 = vpop.permute.xlu0 %788  ;;  %v1040_v34 = vsel %vm1038_vm5, %v6274_v33, %v10338_v37 }
 0x1d9   : > { %v6358_v21 = vadd.f32 %v913_v0, %v834_v27  ;;  %v1068_v4 = vadd.f32 %v1040_v34, %v6110_v38 }
 0x1db   : > { %v1183_v50 = vadd.f32 %v1155_v3, %v1068_v4 }
 0x1df   : > { %v6360_v17 = vpop.permute.xlu2 %1256  ;;  %v6362_v22 = vpop.permute.xlu1 %1147 }
 0x1e0   : > { %v1237_v63 = vpop.permute.xlu0 %1236 }
 0x1e7   : > { %v6364_v32 = vpop.permute.xlu2 %1262  ;;  %v791_v14 = vpop.permute.xlu1 %790 }
 0x1e8   : > { %v1259_v59 = vpop.permute.xlu0 %1258  ;;  %v809_v39 = vsel %vm802_vm3, %v789_v30, %v791_v14  ;;  %v1164_v30 = vsel %vm1153_vm6, %v1144_v62, %v1146_v8 }
 0x1e9   : > { %v6367_v10 = vadd.f32 %v809_v39, %v731_v2  ;;  %v1165_v39 = vsel %vm1153_vm6, %v1146_v8, %v6362_v22  ;;  %v1278_v34 = vsel %vm1268_vm7, %v6360_v17, %v1259_v59  ;;  %v1192_v4 = vadd.f32 %v1164_v30, %v6307_v18 }
 0x1ef   : > { %v6377_v31 = vpop.permute.xlu2 %895  ;;  %v1239_v60 = vpop.permute.xlu1 %1238 }
 0x1f0   : > { %v6379_v1 = vpop.permute.xlu0 %590  ;;  %v1269_v2 = vsel %vm1268_vm7, %v1237_v63, %v1239_v60  ;;  %v1270_v37 = vsel %vm1268_vm7, %v1239_v60, %v6048_v11  ;;  %v1163_v63 = vsel %vm1153_vm6, %v6352_v23, %v1144_v62  ;;  %v1193_v60 = vadd.f32 %v1165_v39, %v1078_v58 }
 0x1f1   : > { %v1297_v33 = vadd.f32 %v1269_v2, %v1182_v41  ;;  %v1298_v46 = vadd.f32 %v1270_v37, %v1183_v50  ;;  %v1191_v41 = vadd.f32 %v1163_v63, %v6325_v49  ;;  %v10345_v49 = vld [vmem:[#allocation34_spill] sm:$0xff]  ;;  %v915_v63 = vsel %vm907_vm4, %v6377_v31, %v6132_v9 }
 0x1f2   : > { %v810_v58 = vsel %vm802_vm3, %v791_v14, %v10345_v49 }
 0x1f3   : > { %v6385_v53 = vadd.f32 %v6272_v16, %v1297_v33  ;;  %v6388_v38 = vadd.f32 %v6272_v16, %v1298_v46  ;;  %v1306_v50 = vadd.f32 %v1278_v34, %v1191_v41  ;;  %v837_v39 = vadd.f32 %v810_v58, %v6327_v48 }
 0x1f4   : > { %v499_v48 = vsel %vm487_vm1, %v5867_v7, %v6348_v29 }
 0x1f5   : > { %v1337_v51 = vmax.f32 %v6385_v53, 0.0  ;;  %v1338_v5 = vmax.f32 %v6388_v38, 0.0  ;;  %v942_v41 = vadd.f32 %v915_v63, %v837_v39 }
 0x1f7   : > { %v6392_v35 = vpop.permute.xlu2 %695  ;;  %v1261_v61 = vpop.permute.xlu1 %1260  ;;  %v5246_v11 = vpack.i.bf16 %v1337_v51, %v1341_v54 }
 0x1f8   : > { %v6398_v57 = vpop.permute.xlu0 %1018  ;;  %v1279_v25 = vsel %vm1268_vm7, %v1259_v59, %v1261_v61  ;;  %v1280_v3 = vsel %vm1268_vm7, %v1261_v61, %v6364_v32 }
 0x1f9   : > { %5247 = vrot.lane.b32.xlu2 %v5246_v11, %s10284_s25  ;;  %v1307_v2 = vadd.f32 %v1279_v25, %v1192_v4  ;;  %v1308_v37 = vadd.f32 %v1280_v3, %v1193_v60 }
 0x1ff   : > { %v6401_v27 = vpop.permute.xlu2 %1133  ;;  %v6403_v52 = vpop.permute.xlu1 %893 }
 0x200   : > { %v6405_v0 = vpop.permute.xlu0 %1022 }
 0x207   : > { %v6419_v62 = vpop.permute.xlu2 %1137  ;;  %v6421_v33 = vpop.permute.xlu1 %1320 }
 0x208   : > { %v6423_v8 = vpop.permute.xlu0 %800  ;;  %v1332_v46 = vadd.f32 %v6421_v33, %v1306_v50  ;;  %v1333_v59 = vadd.f32 %v6421_v33, %v1307_v2  ;;  %v1334_v61 = vadd.f32 %v6421_v33, %v1308_v37  ;;  %v421_v37 = vmul.f32 %v5568_v19, %v5741_v28 }
 0x209   : > { %v814_v63 = vsel %vm802_vm3, %v6001_v6, %v6423_v8  ;;  %vm3065_vm3 = vcmask 769024  }
 0x20a   : > { %v1346_v11 = vmax.f32 %v1332_v46, 0.0  ;;  %v1347_v18 = vmax.f32 %v1333_v59, 0.0  ;;  %v1348_v30 = vmax.f32 %v1334_v61, 0.0  ;;  %v604_v59 = vsel %vm592_vm2, %v5883_v42, %v6379_v1 }
 0x20b   : > { %v1044_v42 = vsel %vm1038_vm5, %v10334_v43, %v6398_v57  ;;  %v914_v43 = vsel %vm907_vm4, %v6403_v52, %v6377_v31 }
 0x20c   : > { %1361 = vst [vmem:[#allocation2 + $0x48] sm:$0x3] %v1346_v11 }
 0x20d   : > { %1362 = vst [vmem:[#allocation2 + $0x50] sm:$0x3] %v1347_v18  ;;  %v526_v18 = vadd.f32 %v499_v48, %v421_v37 }
 0x20e   : > { %1363 = vst [vmem:[#allocation2 + $0x58] sm:$0x3] %v1348_v30 }
 0x20f   : > { %v6434_v34 = vpop.permute.xlu2 %905  ;;  %v1025_v25 = vpop.permute.xlu1 %1024  ;;  %v631_v58 = vadd.f32 %v604_v59, %v526_v18 }
 0x210   : > { %v1140_v3 = vpop.permute.xlu0 %1139  ;;  %v1047_v4 = vsel %vm1038_vm5, %v1025_v25, %v6318_v15 }
 0x211   : > { %v1075_v60 = vadd.f32 %v1047_v4, %v942_v41  ;;  %v1162_v15 = vsel %vm1153_vm6, %v1140_v3, %v6352_v23  ;;  %v709_v23 = vsel %vm697_vm0, %v5948_v26, %v6392_v35  ;;  %v1159_v4 = vsel %vm1153_vm6, %v10342_v44, %v6401_v27 }
 0x212   : > { %v1072_v41 = vadd.f32 %v1044_v42, %v6358_v21  ;;  %v919_v26 = vsel %vm907_vm4, %v6192_v12, %v6434_v34  ;;  %v941_v12 = vadd.f32 %v914_v43, %v6367_v10 }
 0x213   : > { %v6438_v50 = vld [vmem:[#allocation2 + $0x48] sm:$0x3]  ;;  %v1190_v11 = vadd.f32 %v1162_v15, %v1075_v60  ;;  %v1046_v15 = vsel %vm1038_vm5, %v6405_v0, %v1025_v25 }
 0x214   : > { %v6440_v14 = vld [vmem:[#allocation2 + $0x50] sm:$0x3]  ;;  %v5251_v9 = vpack.i.bf16 %v6438_v50, %v1338_v5  ;;  %v1187_v6 = vadd.f32 %v1159_v4, %v1072_v41  ;;  %v1074_v52 = vadd.f32 %v1046_v15, %v941_v12 }
 0x215   : > { %v6448_v2 = vld [vmem:[#allocation2 + $0x58] sm:$0x3] }
 0x216   : > { %v5256_v46 = vpack.i.bf16 %v6448_v2, %v6440_v14  ;;  %5252 = vrot.lane.b32.xlu0 %v5251_v9, %s10284_s25 }
 0x217   : > { %v1255_v61 = vpop.permute.xlu2 %1254  ;;  %v1021_v7 = vpop.permute.xlu1 %1020 }
 0x218   : > { %v1277_v30 = vsel %vm1268_vm7, %v1255_v61, %v6360_v17  ;;  %5257 = vrot.lane.b32.xlu1 %v5256_v46, %s10284_s25  ;;  %v1136_v19 = vpop.permute.xlu0 %1135  ;;  %v736_v17 = vadd.f32 %v709_v23, %v631_v58 }
 0x219   : > { %v1305_v49 = vadd.f32 %v1277_v30, %v1190_v11  ;;  %v1160_v4 = vsel %vm1153_vm6, %v6401_v27, %v1136_v19 }
 0x21a   : > { %v841_v9 = vadd.f32 %v814_v63, %v736_v17 }
 0x21b   : > { %v1331_v39 = vadd.f32 %v6421_v33, %v1305_v49 }
 0x21c   : > { %v946_v37 = vadd.f32 %v919_v26, %v841_v9 }
 0x21d   : > { %v1345_v60 = vmax.f32 %v1331_v39, 0.0 }
 0x21f   : > { %1360 = vst [vmem:[#allocation2 + $0x40] sm:$0x3] %v1345_v60  ;;  %v1249_v48 = vpop.permute.xlu1 %1248  ;;  %v1150_v44 = vpop.permute.xlu2 %1149 }
 0x220   : > { %v1035_v46 = vpop.permute.xlu0 %1034  ;;  %v1274_v21 = vsel %vm1268_vm7, %v6080_v20, %v1249_v48  ;;  %v1166_v18 = vsel %vm1153_vm6, %v6362_v22, %v1150_v44  ;;  %v1161_v20 = vsel %vm1153_vm6, %v6419_v62, %v1140_v3  ;;  %v1045_v22 = vsel %vm1038_vm5, %v6398_v57, %v1021_v7 }
 0x221   : > { %v1051_v59 = vsel %vm1038_vm5, %v6335_v55, %v1035_v46  ;;  %v1302_v11 = vadd.f32 %v1274_v21, %v1187_v6  ;;  %v422_v55 = vmul.f32 %v5777_v47, %v5741_v28  ;;  %v1189_v49 = vadd.f32 %v1161_v20, %v1074_v52 }
 0x222   : > { %v1079_v31 = vadd.f32 %v1051_v59, %v946_v37  ;;  %v1073_v3 = vadd.f32 %v1045_v22, %v6356_v13 }
 0x223   : > { %v6493_v30 = vadd.f32 %v6272_v16, %v1302_v11  ;;  %v527_v42 = vadd.f32 %v6348_v29, %v422_v55 }
 0x224   : > { %v1194_v0 = vadd.f32 %v1166_v18, %v1079_v31 }
 0x225   : > { %v1342_v25 = vmax.f32 %v6493_v30, 0.0  ;;  %v632_v62 = vadd.f32 %v6379_v1, %v527_v42 }
 0x226   : > { %v6498_v23 = vld [vmem:[#allocation2 + $0x40] sm:$0x3] }
 0x227   : > { %1411 = vrot.lane.b32.xlu0 %v6498_v23, %s10284_s25  ;;  %v1253_v10 = vpop.permute.xlu1 %1252  ;;  %v737_v28 = vadd.f32 %v6392_v35, %v632_v62  ;;  %v1152_v26 = vpop.permute.xlu2 %1151 }
 0x228   : > { %v1276_v58 = vsel %vm1268_vm7, %v1253_v10, %v1255_v61  ;;  %v1037_v47 = vpop.permute.xlu0 %1036  ;;  %v1188_v61 = vadd.f32 %v1160_v4, %v1073_v3  ;;  %v1167_v27 = vsel %vm1153_vm6, %v1150_v44, %v1152_v26  ;;  %vm3178_vm6 = vcmask 781312  }
 0x229   : > { %v1304_v63 = vadd.f32 %v1276_v58, %v1189_v49  ;;  %v842_v57 = vadd.f32 %v6423_v8, %v737_v28  ;;  %v1052_v29 = vsel %vm1038_vm5, %v1035_v46, %v1037_v47  ;;  %vm2971_vm5 = vcmask 777216  }
 0x22b   : > { %v1330_v39 = vadd.f32 %v6421_v33, %v1304_v63  ;;  %v947_v13 = vadd.f32 %v6434_v34, %v842_v57 }
 0x22d   : > { %v1344_v17 = vmax.f32 %v1330_v39, 0.0  ;;  %v1080_v60 = vadd.f32 %v1052_v29, %v947_v13 }
 0x22f   : > { %1359 = vst [vmem:[#allocation2 + $0x38] sm:$0x3] %v1344_v17  ;;  %v1251_v7 = vpop.permute.xlu1 %1250  ;;  %v1195_v9 = vadd.f32 %v1167_v27, %v1080_v60 }
 0x230   : > { %v1275_v1 = vsel %vm1268_vm7, %v1249_v48, %v1251_v7  ;;  %v1267_v8 = vpop.permute.xlu0 %1266  ;;  %v1683_v7 = vld [vmem:[%s10244_s5 + $0x450] sm:$0xff] }
 0x231   : > { %v1303_v41 = vadd.f32 %v1275_v1, %v1188_v61 }
 0x233   : > { %v1329_v35 = vadd.f32 %v6272_v16, %v1303_v41  ;;  %v1680_v41 = vld [vmem:[%s10244_s5 + $0x438] sm:$0xff] }
 0x235   : > { %v1343_v43 = vmax.f32 %v1329_v35, 0.0 }
 0x236   : > { %v6520_v19 = vld [vmem:[#allocation2 + $0x38] sm:$0x3] }
 0x237   : > { %1358 = vst.msk [vmem:[#allocation2 + $0x30] sm:$0xff] %vm1357_vm8, %v1343_v43  ;;  %v1265_v6 = vpop.permute.xlu1 %1264  ;;  %v5261_v48 = vpack.i.bf16 %v6520_v19, %v1342_v25  ;;  %v1677_v43 = vld [vmem:[%s10244_s5 + $0x420] sm:$0xff] }
 0x238   : > { %v1281_v34 = vsel %vm1268_vm7, %v6364_v32, %v1265_v6  ;;  %v1282_v37 = vsel %vm1268_vm7, %v1265_v6, %v1267_v8  ;;  %v1638_v8 = vld [vmem:[%s10244_s5 + $0x2e8] sm:$0xff]  ;;  %v1635_v6 = vld [vmem:[%s10244_s5 + $0x2d0] sm:$0xff]  ;;  %vm3278_vm7 = vcmask 646144  }
 0x239   : > { %v1309_v16 = vadd.f32 %v1281_v34, %v1194_v0  ;;  %v1310_v15 = vadd.f32 %v1282_v37, %v1195_v9  ;;  %5262 = vrot.lane.b32.xlu2 %v5261_v48, %s10284_s25  ;;  %v1587_v9 = vld [vmem:[%s10244_s5 + $0x150] sm:$0xff]  ;;  %v1665_v48 = vld [vmem:[%s10244_s5 + $0x3c0] sm:$0xff]  ;;  %1878 = vmatpush.msra.mxu1 %v1638_v8  ;;  %v1584_v34 = vld [vmem:[%s10244_s5 + $0x138] sm:$0xff] }
 0x23a   : > { %v1632_v37 = vld [vmem:[%s10244_s5 + $0x2b8] sm:$0xff]  ;;  %v1551_v8 = vld [vmem:[%s10244_s5 + $0x30] sm:$0xff] }
 0x23b   : > { %v1335_v44 = vadd.f32 %v6421_v33, %v1309_v16  ;;  %v1336_v46 = vadd.f32 %v6421_v33, %v1310_v15  ;;  %v1662_v16 = vld [vmem:[%s10244_s5 + $0x3a8] sm:$0xff]  ;;  %1879 = vmatpush.msra.mxu1 %v1635_v6  ;;  %v1659_v15 = vld [vmem:[%s10244_s5 + $0x390] sm:$0xff] }
 0x23c   : > { %v1707_v6 = vld [vmem:[%s10244_s5 + $0x510] sm:$0xff] }
 0x23d   : > { %v1349_v21 = vmax.f32 %v1335_v44, 0.0  ;;  %v1350_v12 = vmax.f32 %v1336_v46, 0.0  ;;  %1880 = vmatpush.msra.mxu1 %v1632_v37  ;;  %v1656_v44 = vld [vmem:[%s10244_s5 + $0x378] sm:$0xff]  ;;  %v1653_v46 = vld [vmem:[%s10244_s5 + $0x360] sm:$0xff] }
 0x23e   : > { %v6531_v59 = vld [vmem:[#allocation2 + $0x30] sm:$0xff]  ;;  %v1704_v37 = vld [vmem:[%s10244_s5 + $0x4f8] sm:$0xff] }
 0x23f   : > { %1364 = vst [vmem:[#allocation2 + $0x60] sm:$0x3] %v1349_v21  ;;  %1407 = vrot.lane.b32.xlu1 %v6531_v59, %s10284_s25  ;;  %v5243_v33 = vpop.permute.xlu1 %5242  ;;  %v1650_v21 = vld [vmem:[%s10244_s5 + $0x348] sm:$0xff] }
 0x240   : > { %1366 = vst.msk [vmem:[#allocation2 + $0x68] sm:$0x3] %vm1365_vm9, %v1350_v12  ;;  %v5245_v31 = vunpack.i.h.bf16 %v5243_v33  ;;  %v5244_v52 = vunpack.i.l.bf16 %v5243_v33  ;;  %v1647_v33 = vld [vmem:[%s10244_s5 + $0x330] sm:$0xff] }
 0x242   : > { %v1425_v0 = vsel %vm487_vm1, %v5244_v52, %v5245_v31 }
 0x243   : > { %v6547_v10 = vmax.f32 %v1339_v24, %v1425_v0  ;;  %v1626_v0 = vld [vmem:[%s10244_s5 + $0x288] sm:$0xff] }
 0x246   : > { %v6535_v32 = vld [vmem:[#allocation2 + $0x60] sm:$0x3] }
 0x247   : > { %v6537_v11 = vld [vmem:[#allocation2 + $0x68] sm:$0x3]  ;;  %1419 = vrot.lane.b32.xlu2 %v6535_v32, %s10284_s25 }
 0x248   : > { %1421 = vrot.lane.b32.xlu0 %v6537_v11, %s10284_s25 }
 0x253   : > { %v5248_v18 = vpop.permute.xlu2 %5247 }
 0x254   : > { %v5249_v20 = vunpack.i.l.bf16 %v5248_v18  ;;  %v5250_v42 = vunpack.i.h.bf16 %v5248_v18  ;;  %v1578_v18 = vld [vmem:[%s10244_s5 + $0x108] sm:$0xff] }
 0x256   : > { %v1426_v55 = vsel %vm487_vm1, %v5245_v31, %v5249_v20  ;;  %v1581_v31 = vld [vmem:[%s10244_s5 + $0x120] sm:$0xff] }
 0x257   : > { %v6551_v49 = vmax.f32 %v1340_v56, %v1426_v55  ;;  %v1644_v55 = vld [vmem:[%s10244_s5 + $0x318] sm:$0xff] }
 0x259   : > { %v5266_v22 = vpack.i.bf16 %v6551_v49, %v6547_v10 }
 0x25b   : > { %5267 = vrot.lane.b32.xlu1 %v5266_v22, %s5411_s30  ;;  %v1734_v22 = vld [vmem:[%s10244_s5 + $0x5e8] sm:$0xff] }
 0x25c   : > { %1924 = vmatpush.msra.mxu3 %v1734_v22  ;;  %v1821_v22 = vld [vmem:[%s10244_s5 + $0x8a0] sm:$0xff] }
 0x288   : > { %v5253_v58 = vpop.permute.xlu0 %5252 }
 0x289   : > { %v5255_v63 = vunpack.i.h.bf16 %v5253_v58  ;;  %v5254_v62 = vunpack.i.l.bf16 %v5253_v58  ;;  %v1575_v58 = vld [vmem:[%s10244_s5 + $0xf0] sm:$0xff] }
 0x28a   : > { %v6556_v3 = vpop.permute.xlu1 %5257 }
 0x28b   : > { %v1423_v39 = vsel %vm487_vm1, %v5250_v42, %v5254_v62  ;;  %v1424_v36 = vsel %vm487_vm1, %v5254_v62, %v5244_v52  ;;  %v5260_v24 = vunpack.i.h.bf16 %v6556_v3  ;;  %v5259_v45 = vunpack.i.l.bf16 %v6556_v3  ;;  %v1629_v52 = vld [vmem:[%s10244_s5 + $0x2a0] sm:$0xff] }
 0x28c   : > { %v6564_v56 = vmax.f32 %v1337_v51, %v1423_v39  ;;  %v6568_v28 = vmax.f32 %v1338_v5, %v1424_v36  ;;  %1881 = vmatpush.msra.mxu1 %v1629_v52  ;;  %v1641_v39 = vld [vmem:[%s10244_s5 + $0x300] sm:$0xff]  ;;  %v1698_v52 = vld [vmem:[%s10244_s5 + $0x4c8] sm:$0xff] }
 0x28d   : > { %v1431_v47 = vsel %vm487_vm1, %v5255_v63, %v5259_v45  ;;  %v1432_v17 = vsel %vm487_vm1, %v5259_v45, %v5260_v24  ;;  %v1572_v45 = vld [vmem:[%s10244_s5 + $0xd8] sm:$0xff] }
 0x28e   : > { %v6575_v4 = vmax.f32 %v6438_v50, %v1431_v47  ;;  %v6578_v57 = vmax.f32 %v6440_v14, %v1432_v17  ;;  %v5271_v53 = vpack.i.bf16 %v6568_v28, %v6564_v56  ;;  %v1686_v50 = vld [vmem:[%s10244_s5 + $0x468] sm:$0xff]  ;;  %1882 = vmatpush.msra.mxu1 %v1626_v0  ;;  %v1620_v47 = vld [vmem:[%s10244_s5 + $0x258] sm:$0xff]  ;;  %v1617_v17 = vld [vmem:[%s10244_s5 + $0x240] sm:$0xff] }
 0x28f   : > { %1901 = vmatpush.msra.mxu2 %v1686_v50  ;;  %v1563_v50 = vld [vmem:[%s10244_s5 + $0x90] sm:$0xff] }
 0x290   : > { %v5276_v38 = vpack.i.bf16 %v6578_v57, %v6575_v4  ;;  %5272 = vrot.lane.b32.xlu2 %v5271_v53, %s5411_s30  ;;  %v1725_v53 = vld [vmem:[%s10244_s5 + $0x5a0] sm:$0xff]  ;;  %v1827_v0 = vld [vmem:[%s10244_s5 + $0x8d0] sm:$0xff] }
 0x291   : > { %1902 = vmatpush.msra.mxu2 %v1683_v7  ;;  %v1719_v7 = vld [vmem:[%s10244_s5 + $0x570] sm:$0xff] }
 0x292   : > { %5277 = vrot.lane.b32.xlu0 %v5276_v38, %s5411_s30  ;;  %v1566_v38 = vld [vmem:[%s10244_s5 + $0xa8] sm:$0xff] }
 0x293   : > { %v6586_v51 = vpop.permute.xlu2 %5262  ;;  %1903 = vmatpush.msra.mxu2 %v1680_v41 }
 0x294   : > { %v5264_v5 = vunpack.i.l.bf16 %v6586_v51  ;;  %v5265_v14 = vunpack.i.h.bf16 %v6586_v51  ;;  %v1614_v51 = vld [vmem:[%s10244_s5 + $0x228] sm:$0xff] }
 0x295   : > { %1904 = vmatpush.msra.mxu2 %v1677_v43  ;;  %v1608_v43 = vld [vmem:[%s10244_s5 + $0x1f8] sm:$0xff] }
 0x296   : > { %v1427_v61 = vsel %vm487_vm1, %v5249_v20, %v5264_v5 }
 0x297   : > { %v6606_v26 = vmax.f32 %v1341_v54, %v1427_v61  ;;  %v1671_v54 = vld [vmem:[%s10244_s5 + $0x3f0] sm:$0xff]  ;;  %1905 = vmatpush.msra.mxu2 %v1674_v40  ;;  %v1713_v40 = vld [vmem:[%s10244_s5 + $0x540] sm:$0xff] }
 0x299   : > { %v1412_v29 = vpop.permute.xlu0 %1411  ;;  %1906 = vmatpush.msra.mxu2 %v1671_v54  ;;  %v1554_v54 = vld [vmem:[%s10244_s5 + $0x48] sm:$0xff] }
 0x29a   : > { %v1429_v1 = vsel %vm487_vm1, %v5265_v14, %v1412_v29  ;;  %v1430_v13 = vsel %vm487_vm1, %v1412_v29, %v5255_v63  ;;  %v1623_v63 = vld [vmem:[%s10244_s5 + $0x270] sm:$0xff] }
 0x29b   : > { %v6609_v60 = vmax.f32 %v6520_v19, %v1429_v1  ;;  %v6612_v35 = vmax.f32 %v6498_v23, %v1430_v13  ;;  %v1668_v23 = vld [vmem:[%s10244_s5 + $0x3d8] sm:$0xff]  ;;  %v1590_v19 = vld [vmem:[%s10244_s5 + $0x168] sm:$0xff]  ;;  %1883 = vmatpush.msra.mxu1 %v1623_v63  ;;  %v1611_v14 = vld [vmem:[%s10244_s5 + $0x210] sm:$0xff] }
 0x29c   : > { %1855 = vmatpush.msra.mxu0 %v1590_v19  ;;  %1907 = vmatpush.msra.mxu2 %v1668_v23  ;;  %v1560_v13 = vld [vmem:[%s10244_s5 + $0x78] sm:$0xff]  ;;  %v1602_v23 = vld [vmem:[%s10244_s5 + $0x1c8] sm:$0xff] }
 0x29d   : > { %v5281_v27 = vpack.i.bf16 %v6609_v60, %v6606_v26  ;;  %1493 = vrot.lane.b32.xlu2 %v6612_v35, %s5411_s30  ;;  %1884 = vmatpush.msra.mxu1 %v1620_v47  ;;  %v1710_v19 = vld [vmem:[%s10244_s5 + $0x528] sm:$0xff]  ;;  %v1776_v47 = vld [vmem:[%s10244_s5 + $0x738] sm:$0xff] }
 0x29e   : > { %1856 = vmatpush.msra.mxu0 %v1587_v9  ;;  %1908 = vmatpush.msra.mxu2 %v1665_v48  ;;  %v1599_v9 = vld [vmem:[%s10244_s5 + $0x1b0] sm:$0xff]  ;;  %v1548_v48 = vld [vmem:[%s10244_s5 + $0x18] sm:$0xff]  ;;  %v1818_v63 = vld [vmem:[%s10244_s5 + $0x888] sm:$0xff] }
 0x29f   : > { %5282 = vrot.lane.b32.xlu1 %v5281_v27, %s5411_s30  ;;  %1885 = vmatpush.msra.mxu1 %v1617_v17  ;;  %v1716_v27 = vld [vmem:[%s10244_s5 + $0x558] sm:$0xff]  ;;  %v1845_v17 = vld [vmem:[%s10244_s5 + $0x960] sm:$0xff] }
 0x2a0   : > { %1857 = vmatpush.msra.mxu0 %v1584_v34  ;;  %1909 = vmatpush.msra.mxu2 %v1662_v16  ;;  %v1596_v34 = vld [vmem:[%s10244_s5 + $0x198] sm:$0xff] }
 0x2a1   : > { %v1420_v12 = vpop.permute.xlu2 %1419  ;;  %1886 = vmatpush.msra.mxu1 %v1614_v51  ;;  %v1770_v51 = vld [vmem:[%s10244_s5 + $0x708] sm:$0xff] }
 0x2a2   : > { %1910 = vmatpush.msra.mxu2 %v1659_v15  ;;  %1858 = vmatpush.msra.mxu0 %v1581_v31  ;;  %v1433_v20 = vsel %vm487_vm1, %v5260_v24, %v1420_v12  ;;  %v1545_v15 = vld [vmem:[%s10244_s5] sm:$0xff]  ;;  %v1830_v31 = vld [vmem:[%s10244_s5 + $0x8e8] sm:$0xff] }
 0x2a3   : > { %v6707_v36 = vmax.f32 %v6448_v2, %v1433_v20  ;;  %v1728_v2 = vld [vmem:[%s10244_s5 + $0x5b8] sm:$0xff]  ;;  %1887 = vmatpush.msra.mxu1 %v1611_v14  ;;  %v1695_v20 = vld [vmem:[%s10244_s5 + $0x4b0] sm:$0xff] }
 0x2a4   : > { %1911 = vmatpush.msra.mxu2 %v1656_v44  ;;  %1859 = vmatpush.msra.mxu0 %v1578_v18  ;;  %v1593_v44 = vld [vmem:[%s10244_s5 + $0x180] sm:$0xff]  ;;  %v1767_v14 = vld [vmem:[%s10244_s5 + $0x6f0] sm:$0xff] }
 0x2a5   : > { %1888 = vmatpush.msra.mxu1 %v1608_v43  ;;  %v1800_v43 = vld [vmem:[%s10244_s5 + $0x7f8] sm:$0xff] }
 0x2a6   : > { %1912 = vmatpush.msra.mxu2 %v1653_v46  ;;  %1860 = vmatpush.msra.mxu0 %v1575_v58  ;;  %v1689_v58 = vld [vmem:[%s10244_s5 + $0x480] sm:$0xff] }
 0x2a8   : > { %1913 = vmatpush.msra.mxu2 %v1650_v21  ;;  %1861 = vmatpush.msra.mxu0 %v1572_v45  ;;  %v1588_v45 = vld [vmem:[%s10244_s5 + $0x158] sm:$0xff] }
 0x2aa   : > { %1914 = vmatpush.msra.mxu2 %v1647_v33  ;;  %v1701_v33 = vld [vmem:[%s10244_s5 + $0x4e0] sm:$0xff] }
 0x2ac   : > { %1915 = vmatpush.msra.mxu2 %v1644_v55  ;;  %v1824_v55 = vld [vmem:[%s10244_s5 + $0x8b8] sm:$0xff] }
 0x2ae   : > { %1916 = vmatpush.msra.mxu2 %v1641_v39  ;;  %v1779_v39 = vld [vmem:[%s10244_s5 + $0x750] sm:$0xff] }
 0x2b0   : > { %2004 = vmatpush.msrb.mxu2 %v1845_v17  ;;  %v1729_v17 = vld [vmem:[%s10244_s5 + $0x5c0] sm:$0xff] }
 0x2b1   : > { %v1408_v42 = vpop.permute.xlu1 %1407 }
 0x2b2   : > { %v1428_v62 = vsel %vm487_vm1, %v5264_v5, %v1408_v42  ;;  %v6701_v3 = vmax.f32 %v6531_v59, %v1408_v42  ;;  %v1731_v59 = vld [vmem:[%s10244_s5 + $0x5d0] sm:$0xff]  ;;  %v1722_v5 = vld [vmem:[%s10244_s5 + $0x588] sm:$0xff] }
 0x2b3   : > { %v6711_v24 = vmax.f32 %v1342_v25, %v1428_v62  ;;  %1925 = vmatpush.msra.mxu3 %v1731_v59  ;;  %v1569_v25 = vld [vmem:[%s10244_s5 + $0xc0] sm:$0xff]  ;;  %v1782_v42 = vld [vmem:[%s10244_s5 + $0x768] sm:$0xff]  ;;  %v1591_v62 = vld [vmem:[%s10244_s5 + $0x170] sm:$0xff] }
 0x2b4   : > { %1489 = vrot.lane.b32.xlu0 %v6701_v3, %s5411_s30  ;;  %1862 = vmatpush.msra.mxu0 %v1569_v25  ;;  %v1815_v59 = vld [vmem:[%s10244_s5 + $0x870] sm:$0xff]  ;;  %v1773_v25 = vld [vmem:[%s10244_s5 + $0x720] sm:$0xff] }
 0x2b5   : > { %v5286_v30 = vpack.i.bf16 %v6711_v24, %v6707_v36  ;;  %1926 = vmatpush.msra.mxu3 %v1728_v2  ;;  %v1812_v2 = vld [vmem:[%s10244_s5 + $0x858] sm:$0xff] }
 0x2b6   : > { %1863 = vmatpush.msra.mxu0 %v1566_v38  ;;  %v1582_v38 = vld [vmem:[%s10244_s5 + $0x128] sm:$0xff] }
 0x2b7   : > { %5287 = vrot.lane.b32.xlu1 %v5286_v30, %s5411_s30  ;;  %1927 = vmatpush.msra.mxu3 %v1725_v53  ;;  %v1585_v30 = vld [vmem:[%s10244_s5 + $0x140] sm:$0xff] }
 0x2b8   : > { %1864 = vmatpush.msra.mxu0 %v1563_v50  ;;  %v1809_v53 = vld [vmem:[%s10244_s5 + $0x840] sm:$0xff]  ;;  %v1579_v50 = vld [vmem:[%s10244_s5 + $0x110] sm:$0xff] }
 0x2b9   : > { %1928 = vmatpush.msra.mxu3 %v1722_v5  ;;  %v1806_v5 = vld [vmem:[%s10244_s5 + $0x828] sm:$0xff] }
 0x2ba   : > { %v1422_v61 = vpop.permute.xlu0 %1421  ;;  %1865 = vmatpush.msra.mxu0 %v1560_v13  ;;  %v1764_v13 = vld [vmem:[%s10244_s5 + $0x6d8] sm:$0xff] }
 0x2bb   : > { %v1434_v29 = vsel %vm487_vm1, %v1420_v12, %v1422_v61  ;;  %v6759_v1 = vmax.f32 %v6537_v11, %v1422_v61  ;;  %1929 = vmatpush.msra.mxu3 %v1719_v7  ;;  %v1557_v11 = vld [vmem:[%s10244_s5 + $0x60] sm:$0xff]  ;;  %v1803_v61 = vld [vmem:[%s10244_s5 + $0x810] sm:$0xff]  ;;  %v1842_v7 = vld [vmem:[%s10244_s5 + $0x948] sm:$0xff] }
 0x2bc   : > { %v6765_v41 = vmax.f32 %v6535_v32, %v1434_v29  ;;  %v1605_v32 = vld [vmem:[%s10244_s5 + $0x1e0] sm:$0xff]  ;;  %1866 = vmatpush.msra.mxu0 %v1557_v11  ;;  %v1576_v29 = vld [vmem:[%s10244_s5 + $0xf8] sm:$0xff]  ;;  %2005 = vmatpush.msrb.mxu2 %v1842_v7  ;;  %v1687_v7 = vld [vmem:[%s10244_s5 + $0x470] sm:$0xff] }
 0x2bd   : > { %1503 = vrot.lane.b32.xlu2 %v6759_v1, %s5411_s30  ;;  %1930 = vmatpush.msra.mxu3 %v1716_v27  ;;  %v1839_v27 = vld [vmem:[%s10244_s5 + $0x930] sm:$0xff]  ;;  %v1573_v11 = vld [vmem:[%s10244_s5 + $0xe0] sm:$0xff] }
 0x2be   : > { %1501 = vrot.lane.b32.xlu0 %v6765_v41, %s5411_s30  ;;  %1889 = vmatpush.msra.mxu1 %v1605_v32  ;;  %v1761_v32 = vld [vmem:[%s10244_s5 + $0x6c0] sm:$0xff]  ;;  %s10346_s30 = smov 127  }
 0x2bf   : > { %1931 = vmatpush.msra.mxu3 %v1713_v40  ;;  %1867 = vmatpush.msra.mxu0 %v1554_v54  ;;  %v1797_v40 = vld [vmem:[%s10244_s5 + $0x7e0] sm:$0xff]  ;;  %v1836_v54 = vld [vmem:[%s10244_s5 + $0x918] sm:$0xff] }
 0x2c0   : > { %1890 = vmatpush.msra.mxu1 %v1602_v23  ;;  %v1570_v23 = vld [vmem:[%s10244_s5 + $0xc8] sm:$0xff]  ;;  %2006 = vmatpush.msrb.mxu2 %v1839_v27  ;;  %v1720_v27 = vld [vmem:[%s10244_s5 + $0x578] sm:$0xff] }
 0x2c1   : > { %1932 = vmatpush.msra.mxu3 %v1710_v19  ;;  %1868 = vmatpush.msra.mxu0 %v1551_v8  ;;  %v1758_v8 = vld [vmem:[%s10244_s5 + $0x6a8] sm:$0xff] }
 0x2c2   : > { %1891 = vmatpush.msra.mxu1 %v1599_v9  ;;  %v1794_v9 = vld [vmem:[%s10244_s5 + $0x7c8] sm:$0xff]  ;;  %2007 = vmatpush.msrb.mxu2 %v1836_v54  ;;  %v1609_v54 = vld [vmem:[%s10244_s5 + $0x200] sm:$0xff] }
 0x2c3   : > { %1933 = vmatpush.msra.mxu3 %v1707_v6  ;;  %1869 = vmatpush.msra.mxu0 %v1548_v48  ;;  %v1833_v6 = vld [vmem:[%s10244_s5 + $0x900] sm:$0xff] }
 0x2c4   : > { %1892 = vmatpush.msra.mxu1 %v1596_v34  ;;  %2008 = vmatpush.msrb.mxu2 %v1833_v6  ;;  %v1711_v6 = vld [vmem:[%s10244_s5 + $0x530] sm:$0xff] }
 0x2c5   : > { %1934 = vmatpush.msra.mxu3 %v1704_v37  ;;  %1870 = vmatpush.msra.mxu0 %v1545_v15  ;;  %v1567_v37 = vld [vmem:[%s10244_s5 + $0xb0] sm:$0xff] }
 0x2c6   : > { %1893 = vmatpush.msra.mxu1 %v1593_v44  ;;  %v1639_v15 = vld [vmem:[%s10244_s5 + $0x2f0] sm:$0xff] }
 0x2c7   : > { %1935 = vmatpush.msra.mxu3 %v1701_v33  ;;  %1947 = vmatpush.msrb.mxu0 %v1782_v42  ;;  %v1755_v44 = vld [vmem:[%s10244_s5 + $0x690] sm:$0xff]  ;;  %v1564_v33 = vld [vmem:[%s10244_s5 + $0x98] sm:$0xff]  ;;  %v1558_v42 = vld [vmem:[%s10244_s5 + $0x68] sm:$0xff] }
 0x2c8   : > { %1970 = vmatpush.msrb.mxu1 %v1830_v31 }
 0x2c9   : > { %1936 = vmatpush.msra.mxu3 %v1698_v52  ;;  %1948 = vmatpush.msrb.mxu0 %v1779_v39  ;;  %v1746_v39 = vld [vmem:[%s10244_s5 + $0x648] sm:$0xff] }
 0x2ca   : > { %1971 = vmatpush.msrb.mxu1 %v1827_v0 }
 0x2cb   : > { %1937 = vmatpush.msra.mxu3 %v1695_v20  ;;  %1949 = vmatpush.msrb.mxu0 %v1776_v47  ;;  %v1732_v47 = vld [vmem:[%s10244_s5 + $0x5d8] sm:$0xff] }
 0x2cc   : > { %1972 = vmatpush.msrb.mxu1 %v1824_v55  ;;  %v1636_v55 = vld [vmem:[%s10244_s5 + $0x2d8] sm:$0xff] }
 0x2cd   : > { %v6813_v16 = vpop.permute.xlu1 %5267  ;;  %1950 = vmatpush.msrb.mxu0 %v1773_v25  ;;  %v1624_v25 = vld [vmem:[%s10244_s5 + $0x278] sm:$0xff] }
 0x2ce   : > { %v5270_v46 = vunpack.i.h.bf16 %v6813_v16  ;;  %v5269_v21 = vunpack.i.l.bf16 %v6813_v16  ;;  %1973 = vmatpush.msrb.mxu1 %v1821_v22  ;;  %v1749_v22 = vld [vmem:[%s10244_s5 + $0x660] sm:$0xff] }
 0x2cf   : > { %1951 = vmatpush.msrb.mxu0 %v1770_v51  ;;  %v1621_v51 = vld [vmem:[%s10244_s5 + $0x260] sm:$0xff] }
 0x2d0   : > { %v1507_v12 = vsel %vm697_vm0, %v5269_v21, %v5270_v46  ;;  %1974 = vmatpush.msrb.mxu1 %v1818_v63  ;;  %v1630_v63 = vld [vmem:[%s10244_s5 + $0x2a8] sm:$0xff]  ;;  %v1777_v16 = vld [vmem:[%s10244_s5 + $0x740] sm:$0xff] }
 0x2d1   : > { %v6838_v18 = vmax.f32 %v6547_v10, %v1507_v12  ;;  %v1692_v10 = vld [vmem:[%s10244_s5 + $0x498] sm:$0xff]  ;;  %1952 = vmatpush.msrb.mxu0 %v1767_v14  ;;  %v1791_v12 = vld [vmem:[%s10244_s5 + $0x7b0] sm:$0xff]  ;;  %v1546_v14 = vld [vmem:[%s10244_s5 + $0x8] sm:$0xff] }
 0x2d2   : > { %1938 = vmatpush.msra.mxu3 %v1692_v10  ;;  %1975 = vmatpush.msrb.mxu1 %v1815_v59  ;;  %v1752_v10 = vld [vmem:[%s10244_s5 + $0x678] sm:$0xff]  ;;  %v1555_v59 = vld [vmem:[%s10244_s5 + $0x50] sm:$0xff] }
 0x2d3   : > { %1917 = vmatmul.f32.vlgmr.msra.gmra.mxu2 %v6838_v18  ;;  %1953 = vmatpush.msrb.mxu0 %v1764_v13  ;;  %v1615_v13 = vld [vmem:[%s10244_s5 + $0x230] sm:$0xff] }
 0x2d4   : > { %1939 = vmatpush.msra.mxu3 %v1689_v58  ;;  %1976 = vmatpush.msrb.mxu1 %v1812_v2  ;;  %v1785_v58 = vld [vmem:[%s10244_s5 + $0x780] sm:$0xff]  ;;  %v1743_v2 = vld [vmem:[%s10244_s5 + $0x630] sm:$0xff] }
 0x2d5   : > { %1954 = vmatpush.msrb.mxu0 %v1761_v32  ;;  %2039 = vmatpush.msra.mxu2 %v1639_v15  ;;  %v1681_v32 = vld [vmem:[%s10244_s5 + $0x440] sm:$0xff] }
 0x2d6   : > { %2016 = vmatpush.msrb.mxu3 %v1591_v62  ;;  %1977 = vmatpush.msrb.mxu1 %v1809_v53  ;;  %v1735_v62 = vld [vmem:[%s10244_s5 + $0x5f0] sm:$0xff]  ;;  %v1740_v53 = vld [vmem:[%s10244_s5 + $0x618] sm:$0xff] }
 0x2d7   : > { %1955 = vmatpush.msrb.mxu0 %v1758_v8  ;;  %2040 = vmatpush.msra.mxu2 %v1636_v55  ;;  %v1606_v8 = vld [vmem:[%s10244_s5 + $0x1e8] sm:$0xff] }
 0x2d8   : > { %2017 = vmatpush.msrb.mxu3 %v1588_v45  ;;  %1978 = vmatpush.msrb.mxu1 %v1806_v5  ;;  %v1627_v45 = vld [vmem:[%s10244_s5 + $0x290] sm:$0xff]  ;;  %v1726_v5 = vld [vmem:[%s10244_s5 + $0x5a8] sm:$0xff] }
 0x2d9   : > { %1956 = vmatpush.msrb.mxu0 %v1755_v44 }
 0x2da   : > { %2018 = vmatpush.msrb.mxu3 %v1585_v30  ;;  %1979 = vmatpush.msrb.mxu1 %v1803_v61  ;;  %v1552_v30 = vld [vmem:[%s10244_s5 + $0x38] sm:$0xff]  ;;  %v1618_v61 = vld [vmem:[%s10244_s5 + $0x248] sm:$0xff] }
 0x2db   : > { %1957 = vmatpush.msrb.mxu0 %v1752_v10 }
 0x2dc   : > { %2019 = vmatpush.msrb.mxu3 %v1582_v38  ;;  %1980 = vmatpush.msrb.mxu1 %v1800_v43  ;;  %v1549_v38 = vld [vmem:[%s10244_s5 + $0x20] sm:$0xff]  ;;  %v1684_v43 = vld [vmem:[%s10244_s5 + $0x458] sm:$0xff] }
 0x2dd   : > { %1958 = vmatpush.msrb.mxu0 %v1749_v22  ;;  %v1597_v22 = vld [vmem:[%s10244_s5 + $0x1a0] sm:$0xff] }
 0x2de   : > { %2020 = vmatpush.msrb.mxu3 %v1579_v50  ;;  %1981 = vmatpush.msrb.mxu1 %v1797_v40  ;;  %v1737_v50 = vld [vmem:[%s10244_s5 + $0x600] sm:$0xff] }
 0x2df   : > { %1959 = vmatpush.msrb.mxu0 %v1746_v39  ;;  %v1717_v40 = vld [vmem:[%s10244_s5 + $0x560] sm:$0xff]  ;;  %v1696_v39 = vld [vmem:[%s10244_s5 + $0x4b8] sm:$0xff] }
 0x2e0   : > { %2021 = vmatpush.msrb.mxu3 %v1576_v29  ;;  %1982 = vmatpush.msrb.mxu1 %v1794_v9  ;;  %v1723_v29 = vld [vmem:[%s10244_s5 + $0x590] sm:$0xff] }
 0x2e1   : > { %1960 = vmatpush.msrb.mxu0 %v1743_v2  ;;  %v1675_v9 = vld [vmem:[%s10244_s5 + $0x410] sm:$0xff]  ;;  %v1654_v2 = vld [vmem:[%s10244_s5 + $0x368] sm:$0xff] }
 0x2e2   : > { %2022 = vmatpush.msrb.mxu3 %v1573_v11  ;;  %1983 = vmatpush.msrb.mxu1 %v1791_v12  ;;  %v1612_v11 = vld [vmem:[%s10244_s5 + $0x218] sm:$0xff] }
 0x2e3   : > { %1961 = vmatpush.msrb.mxu0 %v1740_v53  ;;  %v1708_v12 = vld [vmem:[%s10244_s5 + $0x518] sm:$0xff]  ;;  %v1651_v53 = vld [vmem:[%s10244_s5 + $0x350] sm:$0xff] }
 0x2e4   : > { %2023 = vmatpush.msrb.mxu3 %v1570_v23  ;;  %v1678_v23 = vld [vmem:[%s10244_s5 + $0x428] sm:$0xff] }
 0x2e5   : > { %1962 = vmatpush.msrb.mxu0 %v1737_v50 }
 0x2e6   : > { %2024 = vmatpush.msrb.mxu3 %v1567_v37  ;;  %v1672_v37 = vld [vmem:[%s10244_s5 + $0x3f8] sm:$0xff] }
 0x2e8   : > { %2025 = vmatpush.msrb.mxu3 %v1564_v33 }
 0x2ea   : > { %v5273_v19 = vpop.permute.xlu2 %5272 }
 0x2eb   : > { %v5275_v48 = vunpack.i.h.bf16 %v5273_v19  ;;  %v5274_v34 = vunpack.i.l.bf16 %v5273_v19  ;;  %v1714_v19 = vld [vmem:[%s10244_s5 + $0x548] sm:$0xff] }
 0x2ed   : > { %v1505_v31 = vsel %vm697_vm0, %v5274_v34, %v5275_v48  ;;  %v1506_v52 = vsel %vm697_vm0, %v5275_v48, %v5269_v21  ;;  %v1633_v21 = vld [vmem:[%s10244_s5 + $0x2c0] sm:$0xff]  ;;  %v1603_v34 = vld [vmem:[%s10244_s5 + $0x1d0] sm:$0xff] }
 0x2ee   : > { %v6972_v0 = vmax.f32 %v6564_v56, %v1505_v31  ;;  %v6975_v20 = vmax.f32 %v6568_v28, %v1506_v52  ;;  %v1788_v56 = vld [vmem:[%s10244_s5 + $0x798] sm:$0xff]  ;;  %v1561_v28 = vld [vmem:[%s10244_s5 + $0x80] sm:$0xff]  ;;  %2041 = vmatpush.msra.mxu2 %v1633_v21 }
 0x2ef   : > { %1984 = vmatpush.msrb.mxu1 %v1788_v56  ;;  %2026 = vmatpush.msrb.mxu3 %v1561_v28  ;;  %v1600_v31 = vld [vmem:[%s10244_s5 + $0x1b8] sm:$0xff]  ;;  %v1669_v52 = vld [vmem:[%s10244_s5 + $0x3e0] sm:$0xff] }
 0x2f0   : > { %1871 = vmatmul.f32.vlgmr.msra.gmra.mxu0 %v6972_v0  ;;  %1894 = vmatmul.f32.vlgmr.msra.gmra.mxu1 %v6975_v20  ;;  %v1705_v21 = vld [vmem:[%s10244_s5 + $0x500] sm:$0xff] }
 0x2f1   : > { %1985 = vmatpush.msrb.mxu1 %v1785_v58  ;;  %2027 = vmatpush.msrb.mxu3 %v1558_v42  ;;  %v1666_v58 = vld [vmem:[%s10244_s5 + $0x3c8] sm:$0xff]  ;;  %v1663_v42 = vld [vmem:[%s10244_s5 + $0x3b0] sm:$0xff] }
 0x2f2   : > { %2042 = vmatpush.msra.mxu2 %v1630_v63  ;;  %2062 = vmatpush.msra.mxu0 %v1687_v7  ;;  %v1699_v63 = vld [vmem:[%s10244_s5 + $0x4d0] sm:$0xff]  ;;  %v1774_v7 = vld [vmem:[%s10244_s5 + $0x728] sm:$0xff] }
 0x2f3   : > { %2085 = vmatpush.msra.mxu1 %v1735_v62  ;;  %2028 = vmatpush.msrb.mxu3 %v1555_v59  ;;  %v1660_v62 = vld [vmem:[%s10244_s5 + $0x398] sm:$0xff]  ;;  %v1657_v59 = vld [vmem:[%s10244_s5 + $0x380] sm:$0xff] }
 0x2f4   : > { %2043 = vmatpush.msra.mxu2 %v1627_v45  ;;  %2063 = vmatpush.msra.mxu0 %v1684_v43  ;;  %v1693_v45 = vld [vmem:[%s10244_s5 + $0x4a0] sm:$0xff] }
 0x2f5   : > { %2086 = vmatpush.msra.mxu1 %v1732_v47  ;;  %2029 = vmatpush.msrb.mxu3 %v1552_v30  ;;  %v1765_v43 = vld [vmem:[%s10244_s5 + $0x6e0] sm:$0xff] }
 0x2f6   : > { %2044 = vmatpush.msra.mxu2 %v1624_v25  ;;  %2064 = vmatpush.msra.mxu0 %v1681_v32 }
 0x2f7   : > { %2087 = vmatpush.msra.mxu1 %v1729_v17  ;;  %2030 = vmatpush.msrb.mxu3 %v1549_v38  ;;  %v1494_v33 = vpop.permute.xlu2 %1493  ;;  %v1690_v17 = vld [vmem:[%s10244_s5 + $0x488] sm:$0xff] }
 0x2f8   : > { %2045 = vmatpush.msra.mxu2 %v1621_v51  ;;  %2065 = vmatpush.msra.mxu0 %v1678_v23  ;;  %v1756_v23 = vld [vmem:[%s10244_s5 + $0x698] sm:$0xff] }
 0x2f9   : > { %2088 = vmatpush.msra.mxu1 %v1726_v5  ;;  %2031 = vmatpush.msrb.mxu3 %v1546_v14  ;;  %v1783_v14 = vld [vmem:[%s10244_s5 + $0x770] sm:$0xff] }
 0x2fa   : > { %2046 = vmatpush.msra.mxu2 %v1618_v61  ;;  %2066 = vmatpush.msra.mxu0 %v1675_v9  ;;  %v1648_v61 = vld [vmem:[%s10244_s5 + $0x338] sm:$0xff] }
 0x2fb   : > { %2089 = vmatpush.msra.mxu1 %v1723_v29  ;;  %v1771_v29 = vld [vmem:[%s10244_s5 + $0x710] sm:$0xff] }
 0x2fc   : > { %2047 = vmatpush.msra.mxu2 %v1615_v13  ;;  %2067 = vmatpush.msra.mxu0 %v1672_v37  ;;  %v1768_v13 = vld [vmem:[%s10244_s5 + $0x6f8] sm:$0xff]  ;;  %v1750_v37 = vld [vmem:[%s10244_s5 + $0x668] sm:$0xff] }
 0x2fd   : > { %2090 = vmatpush.msra.mxu1 %v1720_v27  ;;  %v1762_v27 = vld [vmem:[%s10244_s5 + $0x6c8] sm:$0xff] }
 0x2fe   : > { %2048 = vmatpush.msra.mxu2 %v1612_v11  ;;  %2068 = vmatpush.msra.mxu0 %v1669_v52  ;;  %v1759_v11 = vld [vmem:[%s10244_s5 + $0x6b0] sm:$0xff] }
 0x2ff   : > { %2091 = vmatpush.msra.mxu1 %v1717_v40 }
 0x300   : > { %2049 = vmatpush.msra.mxu2 %v1609_v54  ;;  %2069 = vmatpush.msra.mxu0 %v1666_v58  ;;  %v1831_v54 = vld [vmem:[%s10244_s5 + $0x8f0] sm:$0xff]  ;;  %v1589_v58 = vld [vmem:[%s10244_s5 + $0x160] sm:$0xff] }
 0x301   : > { %2092 = vmatpush.msra.mxu1 %v1714_v19 }
 0x302   : > { %2050 = vmatpush.msra.mxu2 %v1606_v8  ;;  %2070 = vmatpush.msra.mxu0 %v1663_v42  ;;  %v1828_v8 = vld [vmem:[%s10244_s5 + $0x8d8] sm:$0xff]  ;;  %v1586_v42 = vld [vmem:[%s10244_s5 + $0x148] sm:$0xff] }
 0x303   : > { %2093 = vmatpush.msra.mxu1 %v1711_v6 }
 0x304   : > { %v7096_v48 = vpop.permute.xlu0 %5277  ;;  %2051 = vmatpush.msra.mxu2 %v1603_v34  ;;  %2071 = vmatpush.msra.mxu0 %v1660_v62  ;;  %v1825_v34 = vld [vmem:[%s10244_s5 + $0x8c0] sm:$0xff] }
 0x305   : > { %v5280_v15 = vunpack.i.h.bf16 %v7096_v48  ;;  %v5279_v44 = vunpack.i.l.bf16 %v7096_v48  ;;  %2094 = vmatpush.msra.mxu1 %v1708_v12  ;;  %v1822_v48 = vld [vmem:[%s10244_s5 + $0x8a8] sm:$0xff]  ;;  %v1741_v62 = vld [vmem:[%s10244_s5 + $0x620] sm:$0xff] }
 0x306   : > { %2052 = vmatpush.msra.mxu2 %v1600_v31  ;;  %2072 = vmatpush.msra.mxu0 %v1657_v59 }
 0x307   : > { %v1512_v55 = vsel %vm697_vm0, %v1494_v33, %v5279_v44  ;;  %v1513_v10 = vsel %vm697_vm0, %v5279_v44, %v5280_v15  ;;  %2095 = vmatpush.msra.mxu1 %v1705_v21 }
 0x308   : > { %v7120_v56 = vmax.f32 %v6612_v35, %v1512_v55  ;;  %v7123_v28 = vmax.f32 %v6575_v4, %v1513_v10  ;;  %v1702_v4 = vld [vmem:[%s10244_s5 + $0x4e8] sm:$0xff]  ;;  %2053 = vmatpush.msra.mxu2 %v1597_v22  ;;  %2073 = vmatpush.msra.mxu0 %v1654_v2  ;;  %v1819_v22 = vld [vmem:[%s10244_s5 + $0x890] sm:$0xff] }
 0x309   : > { %v1594_v35 = vld [vmem:[%s10244_s5 + $0x188] sm:$0xff]  ;;  %2096 = vmatpush.msra.mxu1 %v1702_v4  ;;  %v1744_v4 = vld [vmem:[%s10244_s5 + $0x638] sm:$0xff] }
 0x30a   : > { %1897 = vmatmul.f32.gmra.mxu1 %v7120_v56  ;;  %1920 = vmatmul.f32.gmra.mxu2 %v7123_v28  ;;  %v1738_v2 = vld [vmem:[%s10244_s5 + $0x608] sm:$0xff] }
 0x30b   : > { %2054 = vmatpush.msra.mxu2 %v1594_v35  ;;  %2097 = vmatpush.msra.mxu1 %v1699_v63  ;;  %v1816_v35 = vld [vmem:[%s10244_s5 + $0x878] sm:$0xff] }
 0x30c   : > { %2074 = vmatpush.msra.mxu0 %v1651_v53  ;;  %v1580_v53 = vld [vmem:[%s10244_s5 + $0x118] sm:$0xff] }
 0x30d   : > { %2098 = vmatpush.msra.mxu1 %v1696_v39  ;;  %v1840_v39 = vld [vmem:[%s10244_s5 + $0x938] sm:$0xff] }
 0x30e   : > { %2075 = vmatpush.msra.mxu0 %v1648_v61  ;;  %v1804_v61 = vld [vmem:[%s10244_s5 + $0x818] sm:$0xff] }
 0x30f   : > { %2099 = vmatpush.msra.mxu1 %v1693_v45  ;;  %v1813_v45 = vld [vmem:[%s10244_s5 + $0x860] sm:$0xff] }
 0x311   : > { %v5283_v47 = vpop.permute.xlu1 %5282  ;;  %2100 = vmatpush.msra.mxu1 %v1690_v17  ;;  %v1810_v17 = vld [vmem:[%s10244_s5 + $0x848] sm:$0xff] }
 0x312   : > { %v5285_v30 = vunpack.i.h.bf16 %v5283_v47  ;;  %v5284_v25 = vunpack.i.l.bf16 %v5283_v47  ;;  %v1583_v47 = vld [vmem:[%s10244_s5 + $0x130] sm:$0xff] }
 0x314   : > { %v1511_v38 = vsel %vm697_vm0, %v5285_v30, %v1494_v33  ;;  %v1508_v51 = vsel %vm697_vm0, %v5270_v46, %v5284_v25  ;;  %v1642_v46 = vld [vmem:[%s10244_s5 + $0x308] sm:$0xff] }
 0x315   : > { %v7174_v5 = vmax.f32 %v6609_v60, %v1511_v38  ;;  %v7177_v50 = vmax.f32 %v6551_v49, %v1508_v51  ;;  %v1780_v60 = vld [vmem:[%s10244_s5 + $0x758] sm:$0xff]  ;;  %v1645_v49 = vld [vmem:[%s10244_s5 + $0x320] sm:$0xff] }
 0x316   : > { %2076 = vmatpush.msra.mxu0 %v1645_v49  ;;  %v1577_v38 = vld [vmem:[%s10244_s5 + $0x100] sm:$0xff]  ;;  %v1634_v49 = vld [vmem:[%s10244_s5 + $0x2c8] sm:$0xff] }
 0x317   : > { %1874 = vmatmul.f32.gmra.mxu0 %v7174_v5  ;;  %1940 = vmatmul.f32.vlgmr.msra.gmra.mxu3 %v7177_v50  ;;  %v1504_v31 = vpop.permute.xlu2 %1503  ;;  %v1637_v51 = vld [vmem:[%s10244_s5 + $0x2e0] sm:$0xff] }
 0x318   : > { %2108 = vmatpush.msra.mxu3 %v1783_v14  ;;  %2077 = vmatpush.msra.mxu0 %v1642_v46  ;;  %v1837_v14 = vld [vmem:[%s10244_s5 + $0x920] sm:$0xff] }
 0x319   : > { %v1801_v46 = vld [vmem:[%s10244_s5 + $0x800] sm:$0xff] }
 0x31a   : > { %2109 = vmatpush.msra.mxu3 %v1780_v60  ;;  %v1574_v60 = vld [vmem:[%s10244_s5 + $0xe8] sm:$0xff] }
 0x31c   : > { %2110 = vmatpush.msra.mxu3 %v1777_v16  ;;  %v1834_v16 = vld [vmem:[%s10244_s5 + $0x908] sm:$0xff] }
 0x31e   : > { %2111 = vmatpush.msra.mxu3 %v1774_v7  ;;  %v1571_v7 = vld [vmem:[%s10244_s5 + $0xd0] sm:$0xff] }
 0x320   : > { %2112 = vmatpush.msra.mxu3 %v1771_v29  ;;  %v1631_v29 = vld [vmem:[%s10244_s5 + $0x2b0] sm:$0xff] }
 0x322   : > { %2113 = vmatpush.msra.mxu3 %v1768_v13  ;;  %v1798_v13 = vld [vmem:[%s10244_s5 + $0x7e8] sm:$0xff] }
 0x324   : > { %2114 = vmatpush.msra.mxu3 %v1765_v43  ;;  %v1568_v43 = vld [vmem:[%s10244_s5 + $0xb8] sm:$0xff] }
 0x326   : > { %v1490_v32 = vpop.permute.xlu0 %1489  ;;  %2115 = vmatpush.msra.mxu3 %v1762_v27  ;;  %v1628_v27 = vld [vmem:[%s10244_s5 + $0x298] sm:$0xff] }
 0x327   : > { %v7218_v40 = vmax.f32 %v6701_v3, %v1490_v32  ;;  %v1753_v3 = vld [vmem:[%s10244_s5 + $0x680] sm:$0xff] }
 0x328   : > { %2116 = vmatpush.msra.mxu3 %v1759_v11  ;;  %v1688_v11 = vld [vmem:[%s10244_s5 + $0x478] sm:$0xff] }
 0x329   : > { %v5288_v19 = vpop.permute.xlu1 %5287  ;;  %5049 = vmatmul.msk.f32.vlgmr.msrb.gmra.mxu2 %vm1848_vm10, %v7218_v40 }
 0x32a   : > { %v5290_v9 = vunpack.i.h.bf16 %v5288_v19  ;;  %v5289_v6 = vunpack.i.l.bf16 %v5288_v19  ;;  %2131 = vmatpush.msrb.mxu2 %v1831_v54  ;;  %2117 = vmatpush.msra.mxu3 %v1756_v23  ;;  %v1795_v54 = vld [vmem:[%s10244_s5 + $0x7d0] sm:$0xff]  ;;  %v1625_v23 = vld [vmem:[%s10244_s5 + $0x280] sm:$0xff] }
 0x32b   : > { %v1685_v19 = vld [vmem:[%s10244_s5 + $0x460] sm:$0xff] }
 0x32c   : > { %2132 = vmatpush.msrb.mxu2 %v1828_v8  ;;  %2118 = vmatpush.msra.mxu3 %v1753_v3  ;;  %v1514_v44 = vsel %vm697_vm0, %v5280_v15, %v5289_v6  ;;  %v1509_v12 = vsel %vm697_vm0, %v5284_v25, %v5290_v9  ;;  %v1510_v33 = vsel %vm697_vm0, %v5290_v9, %v1490_v32  ;;  %v1592_v15 = vld [vmem:[%s10244_s5 + $0x178] sm:$0xff]  ;;  %v1565_v32 = vld [vmem:[%s10244_s5 + $0xa0] sm:$0xff]  ;;  %v1562_v8 = vld [vmem:[%s10244_s5 + $0x88] sm:$0xff] }
 0x32d   : > { %v7246_v52 = vmax.f32 %v6578_v57, %v1514_v44  ;;  %v7249_v55 = vmax.f32 %v6606_v26, %v1509_v12  ;;  %v7252_v10 = vmax.f32 %v6711_v24, %v1510_v33  ;;  %v1747_v57 = vld [vmem:[%s10244_s5 + $0x650] sm:$0xff]  ;;  %v1846_v26 = vld [vmem:[%s10244_s5 + $0x968] sm:$0xff]  ;;  %v7269_v24 = vmax.f32 %v6759_v1, %v1504_v31  ;;  %v1792_v3 = vld [vmem:[%s10244_s5 + $0x7b8] sm:$0xff] }
 0x32e   : > { %2133 = vmatpush.msrb.mxu2 %v1825_v34  ;;  %2119 = vmatpush.msra.mxu3 %v1750_v37  ;;  %v1843_v1 = vld [vmem:[%s10244_s5 + $0x950] sm:$0xff]  ;;  %v1622_v9 = vld [vmem:[%s10244_s5 + $0x268] sm:$0xff]  ;;  %v1789_v37 = vld [vmem:[%s10244_s5 + $0x7a0] sm:$0xff] }
 0x32f   : > { %1943 = vmatmul.f32.gmra.mxu3 %v7246_v52  ;;  %1963 = vmatmul.f32.vlgmr.msrb.gmra.mxu0 %v7249_v55  ;;  %v1559_v34 = vld [vmem:[%s10244_s5 + $0x70] sm:$0xff]  ;;  %v1786_v33 = vld [vmem:[%s10244_s5 + $0x788] sm:$0xff] }
 0x330   : > { %v1502_v21 = vpop.permute.xlu0 %1501  ;;  %1986 = vmatmul.f32.vlgmr.msrb.gmra.mxu1 %v7252_v10  ;;  %2134 = vmatpush.msrb.mxu2 %v1822_v48  ;;  %v1619_v44 = vld [vmem:[%s10244_s5 + $0x250] sm:$0xff]  ;;  %v1616_v48 = vld [vmem:[%s10244_s5 + $0x238] sm:$0xff] }
 0x331   : > { %2177 = vmatpush.msrb.mxu1 %v1592_v15  ;;  %2120 = vmatpush.msra.mxu3 %v1747_v57  ;;  %v1515_v63 = vsel %vm697_vm0, %v5289_v6, %v1502_v21  ;;  %v1516_v59 = vsel %vm697_vm0, %v1502_v21, %v1504_v31  ;;  %v1682_v6 = vld [vmem:[%s10244_s5 + $0x448] sm:$0xff]  ;;  %v1679_v12 = vld [vmem:[%s10244_s5 + $0x430] sm:$0xff]  ;;  %v1556_v31 = vld [vmem:[%s10244_s5 + $0x58] sm:$0xff]  ;;  %vm2692_vm0 = vcmask 908288  }
 0x332   : > { %5050 = vmatmul.msk.f32.gmra.mxu2 %vm1848_vm10, %v7269_v24  ;;  %2165 = vmatpush.msrb.mxu0 %v1846_v26  ;;  %v7310_v30 = vmax.f32 %v6707_v36, %v1515_v63  ;;  %v7313_v25 = vmax.f32 %v6765_v41, %v1516_v59  ;;  %v1640_v36 = vld [vmem:[%s10244_s5 + $0x2f8] sm:$0xff]  ;;  %v1807_v41 = vld [vmem:[%s10244_s5 + $0x830] sm:$0xff]  ;;  %v1553_v26 = vld [vmem:[%s10244_s5 + $0x40] sm:$0xff] }
 0x333   : > { %2135 = vmatpush.msrb.mxu2 %v1819_v22  ;;  %2178 = vmatpush.msrb.mxu1 %v1589_v58  ;;  %v1676_v15 = vld [vmem:[%s10244_s5 + $0x418] sm:$0xff]  ;;  %v1613_v21 = vld [vmem:[%s10244_s5 + $0x220] sm:$0xff]  ;;  %v1547_v63 = vld [vmem:[%s10244_s5 + $0x10] sm:$0xff] }
 0x334   : > { %2121 = vmatpush.msra.mxu3 %v1744_v4  ;;  %2166 = vmatpush.msrb.mxu0 %v1843_v1  ;;  %v1736_v57 = vld [vmem:[%s10244_s5 + $0x5f8] sm:$0xff]  ;;  %v1673_v22 = vld [vmem:[%s10244_s5 + $0x400] sm:$0xff]  ;;  %v1550_v4 = vld [vmem:[%s10244_s5 + $0x28] sm:$0xff] }
 0x335   : > { %2136 = vmatpush.msrb.mxu2 %v1816_v35  ;;  %2179 = vmatpush.msrb.mxu1 %v1586_v42  ;;  %v1733_v58 = vld [vmem:[%s10244_s5 + $0x5e0] sm:$0xff]  ;;  %v1610_v1 = vld [vmem:[%s10244_s5 + $0x208] sm:$0xff]  ;;  %v1727_v59 = vld [vmem:[%s10244_s5 + $0x5b0] sm:$0xff] }
 0x336   : > { %2122 = vmatpush.msra.mxu3 %v1741_v62  ;;  %2167 = vmatpush.msrb.mxu0 %v1840_v39  ;;  %v1670_v35 = vld [vmem:[%s10244_s5 + $0x3e8] sm:$0xff]  ;;  %v1607_v62 = vld [vmem:[%s10244_s5 + $0x1f0] sm:$0xff] }
 0x337   : > { %2137 = vmatpush.msrb.mxu2 %v1813_v45  ;;  %2180 = vmatpush.msrb.mxu1 %v1583_v47  ;;  %v1730_v42 = vld [vmem:[%s10244_s5 + $0x5c8] sm:$0xff]  ;;  %v1667_v39 = vld [vmem:[%s10244_s5 + $0x3d0] sm:$0xff]  ;;  %v1784_v45 = vld [vmem:[%s10244_s5 + $0x778] sm:$0xff] }
 0x338   : > { %2123 = vmatpush.msra.mxu3 %v1738_v2  ;;  %1966 = vmatmul.f32.gmra.mxu0 %v7310_v30  ;;  %v1604_v47 = vld [vmem:[%s10244_s5 + $0x1d8] sm:$0xff] }
 0x339   : > { %1989 = vmatmul.f32.gmra.mxu1 %v7313_v25  ;;  %2032 = vmatmul.f32.vlgmr.msrb.gmra.mxu3 %v6972_v0  ;;  %v1664_v2 = vld [vmem:[%s10244_s5 + $0x3b8] sm:$0xff] }
 0x33a   : > { %2138 = vmatpush.msrb.mxu2 %v1810_v17  ;;  %2181 = vmatpush.msrb.mxu1 %v1580_v53  ;;  %v1724_v17 = vld [vmem:[%s10244_s5 + $0x598] sm:$0xff]  ;;  %v1781_v53 = vld [vmem:[%s10244_s5 + $0x760] sm:$0xff] }
 0x33b   : > { %2200 = vmatpush.msrb.mxu3 %v1640_v36  ;;  %2055 = vmatmul.f32.vlgmr.msra.gmra.mxu2 %v6975_v20  ;;  %v1601_v36 = vld [vmem:[%s10244_s5 + $0x1c0] sm:$0xff] }
 0x33c   : > { %2139 = vmatpush.msrb.mxu2 %v1807_v41  ;;  %2182 = vmatpush.msrb.mxu1 %v1577_v38  ;;  %v1661_v41 = vld [vmem:[%s10244_s5 + $0x3a0] sm:$0xff] }
 0x33d   : > { %2201 = vmatpush.msrb.mxu3 %v1637_v51  ;;  %2168 = vmatpush.msrb.mxu0 %v1837_v14  ;;  %v1721_v38 = vld [vmem:[%s10244_s5 + $0x580] sm:$0xff]  ;;  %v1598_v51 = vld [vmem:[%s10244_s5 + $0x1a8] sm:$0xff] }
 0x33e   : > { %2140 = vmatpush.msrb.mxu2 %v1804_v61  ;;  %2183 = vmatpush.msrb.mxu1 %v1574_v60  ;;  %v1658_v14 = vld [vmem:[%s10244_s5 + $0x388] sm:$0xff]  ;;  %v1775_v60 = vld [vmem:[%s10244_s5 + $0x730] sm:$0xff] }
 0x33f   : > { %2202 = vmatpush.msrb.mxu3 %v1634_v49  ;;  %2169 = vmatpush.msrb.mxu0 %v1834_v16  ;;  %v1718_v61 = vld [vmem:[%s10244_s5 + $0x568] sm:$0xff]  ;;  %v1595_v49 = vld [vmem:[%s10244_s5 + $0x190] sm:$0xff] }
 0x340   : > { %2141 = vmatpush.msrb.mxu2 %v1801_v46  ;;  %2184 = vmatpush.msrb.mxu1 %v1571_v7  ;;  %v1655_v16 = vld [vmem:[%s10244_s5 + $0x370] sm:$0xff]  ;;  %v1772_v7 = vld [vmem:[%s10244_s5 + $0x718] sm:$0xff] }
 0x341   : > { %2203 = vmatpush.msrb.mxu3 %v1631_v29  ;;  %2078 = vmatmul.f32.vlgmr.msra.gmra.mxu0 %v6838_v18  ;;  %v1715_v46 = vld [vmem:[%s10244_s5 + $0x550] sm:$0xff]  ;;  %v1832_v29 = vld [vmem:[%s10244_s5 + $0x8f8] sm:$0xff] }
 0x342   : > { %2035 = vmatmul.f32.gmra.mxu3 %v7174_v5  ;;  %2101 = vmatmul.f32.vlgmr.msra.gmra.mxu1 %v7177_v50 }
 0x343   : > { %2142 = vmatpush.msrb.mxu2 %v1798_v13  ;;  %2185 = vmatpush.msrb.mxu1 %v1568_v43  ;;  %v1652_v13 = vld [vmem:[%s10244_s5 + $0x358] sm:$0xff] }
 0x344   : > { %2204 = vmatpush.msrb.mxu3 %v1628_v27  ;;  %2223 = vmatpush.msra.mxu0 %v1688_v11  ;;  %v1712_v43 = vld [vmem:[%s10244_s5 + $0x538] sm:$0xff]  ;;  %v1769_v27 = vld [vmem:[%s10244_s5 + $0x700] sm:$0xff] }
 0x345   : > { %2058 = vmatmul.f32.gmra.mxu2 %v7120_v56  ;;  %2186 = vmatpush.msrb.mxu1 %v1565_v32  ;;  %v1829_v11 = vld [vmem:[%s10244_s5 + $0x8e0] sm:$0xff] }
 0x346   : > { %2143 = vmatpush.msrb.mxu2 %v1795_v54  ;;  %2205 = vmatpush.msrb.mxu3 %v1625_v23  ;;  %v1649_v32 = vld [vmem:[%s10244_s5 + $0x340] sm:$0xff]  ;;  %v1766_v23 = vld [vmem:[%s10244_s5 + $0x6e8] sm:$0xff] }
 0x347   : > { %2224 = vmatpush.msra.mxu0 %v1685_v19  ;;  %2187 = vmatpush.msrb.mxu1 %v1562_v8  ;;  %v1709_v54 = vld [vmem:[%s10244_s5 + $0x520] sm:$0xff]  ;;  %v1646_v19 = vld [vmem:[%s10244_s5 + $0x328] sm:$0xff]  ;;  %v1763_v8 = vld [vmem:[%s10244_s5 + $0x6d0] sm:$0xff] }
 0x348   : > { %2144 = vmatpush.msrb.mxu2 %v1792_v3  ;;  %2206 = vmatpush.msrb.mxu3 %v1622_v9  ;;  %v1823_v3 = vld [vmem:[%s10244_s5 + $0x8b0] sm:$0xff] }
 0x349   : > { %2225 = vmatpush.msra.mxu0 %v1682_v6  ;;  %2188 = vmatpush.msrb.mxu1 %v1559_v34  ;;  %v1643_v9 = vld [vmem:[%s10244_s5 + $0x310] sm:$0xff]  ;;  %v1760_v34 = vld [vmem:[%s10244_s5 + $0x6b8] sm:$0xff] }
 0x34a   : > { %2145 = vmatpush.msrb.mxu2 %v1789_v37  ;;  %2207 = vmatpush.msrb.mxu3 %v1619_v44  ;;  %v1703_v6 = vld [vmem:[%s10244_s5 + $0x4f0] sm:$0xff]  ;;  %v1820_v37 = vld [vmem:[%s10244_s5 + $0x898] sm:$0xff] }
 0x34b   : > { %2226 = vmatpush.msra.mxu0 %v1679_v12  ;;  %2104 = vmatmul.f32.gmra.mxu1 %v7246_v52  ;;  %v1700_v44 = vld [vmem:[%s10244_s5 + $0x4d8] sm:$0xff]  ;;  %v1757_v12 = vld [vmem:[%s10244_s5 + $0x6a0] sm:$0xff] }
 0x34c   : > { %2081 = vmatmul.f32.gmra.mxu0 %v7123_v28  ;;  %2124 = vmatmul.f32.vlgmr.msra.gmra.mxu3 %v7249_v55 }
 0x34d   : > { %2146 = vmatpush.msrb.mxu2 %v1786_v33  ;;  %2189 = vmatpush.msrb.mxu1 %v1556_v31  ;;  %v1817_v33 = vld [vmem:[%s10244_s5 + $0x880] sm:$0xff] }
 0x34e   : > { %2208 = vmatpush.msrb.mxu3 %v1616_v48  ;;  %2227 = vmatpush.msra.mxu0 %v1676_v15  ;;  %v1697_v31 = vld [vmem:[%s10244_s5 + $0x4c0] sm:$0xff]  ;;  %v1847_v48 = vld [vmem:[%s10244_s5 + $0x970] sm:$0xff]  ;;  %v1754_v15 = vld [vmem:[%s10244_s5 + $0x688] sm:$0xff] }
 0x34f   : > { %2246 = vmatpush.msra.mxu2 %v1736_v57  ;;  %2190 = vmatpush.msrb.mxu1 %v1553_v26  ;;  %v1814_v57 = vld [vmem:[%s10244_s5 + $0x868] sm:$0xff]  ;;  %v1844_v26 = vld [vmem:[%s10244_s5 + $0x958] sm:$0xff] }
 0x350   : > { %2147 = vmatmul.f32.vlgmr.msrb.gmra.mxu2 %v7252_v10  ;;  %2209 = vmatpush.msrb.mxu3 %v1613_v21  ;;  %v1811_v21 = vld [vmem:[%s10244_s5 + $0x850] sm:$0xff] }
 0x351   : > { %2228 = vmatpush.msra.mxu0 %v1673_v22  ;;  %2247 = vmatpush.msra.mxu2 %v1733_v58  ;;  %v1691_v22 = vld [vmem:[%s10244_s5 + $0x490] sm:$0xff]  ;;  %v1841_v58 = vld [vmem:[%s10244_s5 + $0x940] sm:$0xff] }
 0x352   : > { %2191 = vmatpush.msrb.mxu1 %v1550_v4  ;;  %2210 = vmatpush.msrb.mxu3 %v1610_v1  ;;  %v1748_v4 = vld [vmem:[%s10244_s5 + $0x658] sm:$0xff] }
 0x353   : > { %2229 = vmatpush.msra.mxu0 %v1670_v35  ;;  %2248 = vmatpush.msra.mxu2 %v1730_v42  ;;  %v1808_v1 = vld [vmem:[%s10244_s5 + $0x838] sm:$0xff]  ;;  %v1745_v35 = vld [vmem:[%s10244_s5 + $0x640] sm:$0xff] }
 0x354   : > { %2192 = vmatpush.msrb.mxu1 %v1547_v63  ;;  %2211 = vmatpush.msrb.mxu3 %v1607_v62  ;;  %v1805_v42 = vld [vmem:[%s10244_s5 + $0x820] sm:$0xff]  ;;  %v1838_v63 = vld [vmem:[%s10244_s5 + $0x928] sm:$0xff] }
 0x355   : > { %2230 = vmatpush.msra.mxu0 %v1667_v39  ;;  %2249 = vmatpush.msra.mxu2 %v1727_v59  ;;  %v1742_v62 = vld [vmem:[%s10244_s5 + $0x628] sm:$0xff]  ;;  %v1835_v59 = vld [vmem:[%s10244_s5 + $0x910] sm:$0xff] }
 0x356   : > { %2269 = vmatpush.msra.mxu1 %v1784_v45  ;;  %2127 = vmatmul.f32.gmra.mxu3 %v7310_v30  ;;  %v1802_v39 = vld [vmem:[%s10244_s5 + $0x808] sm:$0xff]  ;;  %v1796_v45 = vld [vmem:[%s10244_s5 + $0x7d8] sm:$0xff] }
 0x357   : > { %5051 = vmatmul.msk.f32.vlgmr.msrb.gmra.mxu0 %vm1848_vm10, %v7218_v40  ;;  %2193 = vmatmul.f32.vlgmr.msrb.gmra.mxu1 %v6972_v0  ;;  %v1778_v0 = vld [vmem:[%s10244_s5 + $0x748] sm:$0xff] }
 0x358   : > { %2212 = vmatpush.msrb.mxu3 %v1604_v47  ;;  %2231 = vmatpush.msra.mxu0 %v1664_v2  ;;  %v1793_v47 = vld [vmem:[%s10244_s5 + $0x7c0] sm:$0xff]  ;;  %v1790_v2 = vld [vmem:[%s10244_s5 + $0x7a8] sm:$0xff] }
 0x359   : > { %2250 = vmatpush.msra.mxu2 %v1724_v17  ;;  %2270 = vmatpush.msra.mxu1 %v1781_v53  ;;  %v1787_v17 = vld [vmem:[%s10244_s5 + $0x790] sm:$0xff] }
 0x35a   : > { %2150 = vmatmul.f32.gmra.mxu2 %v7313_v25  ;;  %2213 = vmatpush.msrb.mxu3 %v1601_v36 }
 0x35b   : > { %2232 = vmatpush.msra.mxu0 %v1661_v41  ;;  %2251 = vmatpush.msra.mxu2 %v1721_v38 }
 0x35c   : > { %2271 = vmatpush.msra.mxu1 %v1778_v0  ;;  %2214 = vmatpush.msrb.mxu3 %v1598_v51 }
 0x35d   : > { %2233 = vmatpush.msra.mxu0 %v1658_v14  ;;  %2252 = vmatpush.msra.mxu2 %v1718_v61 }
 0x35e   : > { %2272 = vmatpush.msra.mxu1 %v1775_v60  ;;  %2215 = vmatpush.msrb.mxu3 %v1595_v49 }
 0x35f   : > { %2234 = vmatpush.msra.mxu0 %v1655_v16  ;;  %2253 = vmatpush.msra.mxu2 %v1715_v46 }
 0x360   : > { %2273 = vmatpush.msra.mxu1 %v1772_v7  ;;  %2292 = vmatpush.msra.mxu3 %v1832_v29 }
 0x361   : > { %5052 = vmatmul.msk.f32.gmra.mxu0 %vm1848_vm10, %v7269_v24  ;;  %2196 = vmatmul.f32.gmra.mxu1 %v7174_v5  ;;  %v1826_v5 = vld [vmem:[%s10244_s5 + $0x8c8] sm:$0xff] }
 0x362   : > { %2216 = vmatmul.f32.vlgmr.msrb.gmra.mxu3 %v6975_v20  ;;  %2235 = vmatpush.msra.mxu0 %v1652_v13  ;;  %v1706_v20 = vld [vmem:[%s10244_s5 + $0x508] sm:$0xff] }
 0x363   : > { %2254 = vmatpush.msra.mxu2 %v1712_v43  ;;  %2274 = vmatpush.msra.mxu1 %v1769_v27 }
 0x364   : > { %2293 = vmatpush.msra.mxu3 %v1829_v11  ;;  %2236 = vmatpush.msra.mxu0 %v1649_v32 }
 0x365   : > { %2255 = vmatpush.msra.mxu2 %v1709_v54  ;;  %2275 = vmatpush.msra.mxu1 %v1766_v23 }
 0x366   : > { %2294 = vmatpush.msra.mxu3 %v1826_v5  ;;  %2237 = vmatpush.msra.mxu0 %v1646_v19 }
 0x367   : > { %2256 = vmatpush.msra.mxu2 %v1706_v20  ;;  %2276 = vmatpush.msra.mxu1 %v1763_v8 }
 0x368   : > { %2295 = vmatpush.msra.mxu3 %v1823_v3  ;;  %2238 = vmatpush.msra.mxu0 %v1643_v9 }
 0x369   : > { %2257 = vmatpush.msra.mxu2 %v1703_v6  ;;  %2277 = vmatpush.msra.mxu1 %v1760_v34 }
 0x36a   : > { %2296 = vmatpush.msra.mxu3 %v1820_v37  ;;  %2239 = vmatmul.f32.vlgmr.msra.gmra.mxu0 %v6838_v18  ;;  %v1694_v18 = vld [vmem:[%s10244_s5 + $0x4a8] sm:$0xff] }
 0x36b   : > { %2219 = vmatmul.f32.gmra.mxu3 %v7120_v56  ;;  %2258 = vmatpush.msra.mxu2 %v1700_v44  ;;  %v1751_v56 = vld [vmem:[%s10244_s5 + $0x670] sm:$0xff] }
 0x36c   : > { %2278 = vmatpush.msra.mxu1 %v1757_v12  ;;  %2297 = vmatpush.msra.mxu3 %v1817_v33 }
 0x36d   : > { %2259 = vmatpush.msra.mxu2 %v1697_v31  ;;  %2326 = vmatpush.msrb.mxu0 %v1847_v48 }
 0x36e   : > { %2279 = vmatpush.msra.mxu1 %v1754_v15  ;;  %2298 = vmatpush.msra.mxu3 %v1814_v57 }
 0x36f   : > { %2260 = vmatpush.msra.mxu2 %v1694_v18  ;;  %2327 = vmatpush.msrb.mxu0 %v1844_v26 }
 0x370   : > { %2280 = vmatpush.msra.mxu1 %v1751_v56  ;;  %2299 = vmatpush.msra.mxu3 %v1811_v21 }
 0x371   : > { %2261 = vmatpush.msra.mxu2 %v1691_v22  ;;  %2328 = vmatpush.msrb.mxu0 %v1841_v58 }
 0x372   : > { %2281 = vmatpush.msra.mxu1 %v1748_v4  ;;  %2300 = vmatpush.msra.mxu3 %v1808_v1 }
 0x373   : > { %2242 = vmatmul.f32.gmra.mxu0 %v7123_v28  ;;  %2262 = vmatmul.f32.vlgmr.msra.gmra.mxu2 %v7177_v50  ;;  %v1739_v28 = vld [vmem:[%s10244_s5 + $0x610] sm:$0xff] }
 0x374   : > { %2282 = vmatpush.msra.mxu1 %v1745_v35  ;;  %2301 = vmatpush.msra.mxu3 %v1805_v42  ;;  %v1799_v50 = vld [vmem:[%s10244_s5 + $0x7f0] sm:$0xff] }
 0x375   : > { %2329 = vmatpush.msrb.mxu0 %v1838_v63 }
 0x376   : > { %2283 = vmatpush.msra.mxu1 %v1742_v62  ;;  %2302 = vmatpush.msra.mxu3 %v1802_v39 }
 0x377   : > { %2330 = vmatpush.msrb.mxu0 %v1835_v59 }
 0x378   : > { %2284 = vmatpush.msra.mxu1 %v1739_v28  ;;  %2303 = vmatpush.msra.mxu3 %v1799_v50 }
 0x379   : > { %2285 = vmatmul.f32.vlgmr.msra.gmra.mxu1 %v7249_v55  ;;  %v1895_v55 = vpop.f32.mrf.mxu1 }
 0x37a   : > { %2304 = vmatpush.msra.mxu3 %v1796_v45 }
 0x37b   : > { %2265 = vmatmul.f32.gmra.mxu2 %v7246_v52  ;;  %5053 = vmatmul.msk.f32.vlgmr.msrb.gmra.mxu0 %vm1848_vm10, %v7218_v40  ;;  %v1918_v40 = vpop.f32.mrf.mxu2  ;;  %v1872_v52 = vpop.f32.mrf.mxu0 }
 0x37c   : > { %2305 = vmatpush.msra.mxu3 %v1793_v47  ;;  %v1896_v41 = vadd.f32 %v1895_v55, %v1872_v52 }
 0x37e   : > { %2306 = vmatpush.msra.mxu3 %v1790_v2  ;;  %v1919_v51 = vadd.f32 %v1918_v40, %v1896_v41 }
 0x380   : > { %2307 = vmatpush.msra.mxu3 %v1787_v17 }
 0x381   : > { %2288 = vmatmul.f32.gmra.mxu1 %v7310_v30  ;;  %2308 = vmatmul.f32.vlgmr.msra.gmra.mxu3 %v7252_v10 }
 0x383   : > { %5054 = vmatmul.msk.f32.gmra.mxu0 %vm1848_vm10, %v7269_v24  ;;  %vm3347_vm10 = vcmask 396288  }
 0x387   : > { %v1898_v38 = vpop.f32.mrf.mxu1 }
 0x389   : > { %2311 = vmatmul.f32.gmra.mxu3 %v7313_v25 }
 0x38d   : > { %v1921_v53 = vpop.f32.mrf.mxu2 }
 0x394   : > { %v1875_v36 = vpop.f32.mrf.mxu0 }
 0x395   : > { %v1899_v30 = vadd.f32 %v1898_v38, %v1875_v36 }
 0x397   : > { %v1922_v24 = vadd.f32 %v1921_v53, %v1899_v30 }
 0x39a   : > { %v1941_v0 = vpop.f32.mrf.mxu3 }
 0x39b   : > { %v1942_v14 = vadd.f32 %v1941_v0, %v1919_v51 }
 0x3ac   : > { %v1964_v61 = vpop.f32.mrf.mxu0  ;;  %v2010_v60 = vpop.f32.mrf.mxu2 }
 0x3ad   : > { %v1965_v49 = vadd.f32 %v1964_v61, %v1942_v14  ;;  %v1987_v10 = vpop.f32.mrf.mxu1 }
 0x3af   : > { %v1988_v16 = vadd.f32 %v1987_v10, %v1965_v49 }
 0x3b1   : > { %v7673_v46 = vadd.f32 %v2010_v60, %v1988_v16 }
 0x3b2   : > { %v1944_v25 = vpop.f32.mrf.mxu3 }
 0x3b3   : > { %v1945_v7 = vadd.f32 %v1944_v25, %v1922_v24 }
 0x3b5   : > { %v1967_v29 = vpop.f32.mrf.mxu0  ;;  %v2013_v13 = vpop.f32.mrf.mxu2 }
 0x3b6   : > { %v1968_v43 = vadd.f32 %v1967_v29, %v1945_v7  ;;  %v1990_v27 = vpop.f32.mrf.mxu1 }
 0x3b8   : > { %v1991_v11 = vadd.f32 %v1990_v27, %v1968_v43 }
 0x3ba   : > { %v2014_v32 = vadd.f32 %v2013_v13, %v1991_v11  ;;  %v3144_v11 = vld [vmem:[%s10243_s4 + $0x8] sm:$0xff] }
 0x3bc   : > { %2342 = vst [vmem:[#allocation3 + $0x18] sm:$0x3] %v2014_v32  ;;  %v2033_v54 = vpop.f32.mrf.mxu3  ;;  %v3145_v32 = vld [vmem:[%s10243_s4 + $0x10] sm:$0xf] }
 0x3be   : > { %v2056_v23 = vpop.f32.mrf.mxu2  ;;  %v2079_v5 = vpop.f32.mrf.mxu0 }
 0x3bf   : > { %v2057_v8 = vadd.f32 %v2056_v23, %v2033_v54  ;;  %v2102_v34 = vpop.f32.mrf.mxu1  ;;  %v2346_v54 = vld [vmem:[%s10242_s3] sm:$0xff]  ;;  %v2347_v23 = vld [vmem:[%s10242_s3 + $0x8] sm:$0xff] }
 0x3c1   : > { %v2080_v9 = vadd.f32 %v2079_v5, %v2057_v8 }
 0x3c3   : > { %v2351_v19 = vld [vmem:[#allocation3 + $0x18] sm:$0x3]  ;;  %v2103_v37 = vadd.f32 %v2102_v34, %v2080_v9 }
 0x3c4   : > { %2365 = vrot.lane.b32.xlu0 %v2351_v19, %s10346_s30  ;;  %5066 = vmatpush.msk.msrb.mxu1 %vm2383_vm11, %v2351_v19  ;;  %v2950_v43 = vld [vmem:[#allocation3 + $0x18] sm:$0x3] }
 0x3c5   : > { %v2036_v20 = vpop.f32.mrf.mxu3 }
 0x3c6   : > { %2468 = vmatpush.msrb.mxu1 %v7673_v46 }
 0x3c7   : > { %5067 = vmatmul.msk.f32.vlgmr.msrb.gmra.mxu1 %vm2373_vm14, %v2346_v54 }
 0x3c8   : > { %v2059_v3 = vpop.f32.mrf.mxu2  ;;  %v2105_v26 = vpop.f32.mrf.mxu1 }
 0x3c9   : > { %v2082_v6 = vpop.f32.mrf.mxu0  ;;  %v2060_v12 = vadd.f32 %v2059_v3, %v2036_v20 }
 0x3cb   : > { %v2083_v48 = vadd.f32 %v2082_v6, %v2060_v12  ;;  %v5055_v12 = vld [vmem:[%s10242_s3 + $0x18] sm:$0xff] }
 0x3cd   : > { %v2106_v56 = vadd.f32 %v2105_v26, %v2083_v48 }
 0x3cf   : > { %v2125_v44 = vpop.f32.mrf.mxu3  ;;  %5068 = vmatmul.msk.f32.gmra.mxu1 %vm2373_vm14, %v2347_v23 }
 0x3d0   : > { %v2126_v33 = vadd.f32 %v2125_v44, %v2103_v37 }
 0x3d3   : > { %v2148_v31 = vpop.f32.mrf.mxu2 }
 0x3d4   : > { %v2149_v15 = vadd.f32 %v2148_v31, %v2126_v33  ;;  %v2171_v57 = vpop.f32.mrf.mxu0  ;;  %v2194_v39 = vpop.f32.mrf.mxu1  ;;  %v5057_v31 = vld [vmem:[%s10242_s3 + $0x28] sm:$0xf] }
 0x3d6   : > { %v7678_v18 = vadd.f32 %v2171_v57, %v2149_v15 }
 0x3d8   : > { %v7682_v21 = vpack.i.bf16 %v7678_v18, %v7673_v46  ;;  %v5291_v22 = vpack.i.bf16 %v7673_v46, %v7678_v18 }
 0x3d9   : > { %v2128_v58 = vpop.f32.mrf.mxu3 }
 0x3da   : > { %v2129_v4 = vadd.f32 %v2128_v58, %v2106_v56  ;;  %5297 = vrot.lane.b32.xlu0 %v7682_v21, %s10347_s22  ;;  %5292 = vrot.lane.b32.xlu2 %v5291_v22, %s10346_s30 }
 0x3dd   : > { %v2151_v1 = vpop.f32.mrf.mxu2 }
 0x3de   : > { %v2152_v35 = vadd.f32 %v2151_v1, %v2129_v4  ;;  %v2174_v42 = vpop.f32.mrf.mxu0  ;;  %v2197_v50 = vpop.f32.mrf.mxu1 }
 0x3e0   : > { %v2175_v63 = vadd.f32 %v2174_v42, %v2152_v35 }
 0x3e2   : > { %2343 = vst [vmem:[#allocation3 + $0x20] sm:$0x3] %v2175_v63  ;;  %2688 = vrot.lane.b32.xlu0 %v2351_v19, %s5417_s24  ;;  %v5074_v63 = vld [vmem:[%s10242_s3 + $0x30] sm:$0xff] }
 0x3e5   : > { %v2217_v28 = vpop.f32.mrf.mxu3 }
 0x3e6   : > { %v2218_v45 = vadd.f32 %v2217_v28, %v2194_v39  ;;  %v5085_v39 = vld [vmem:[%s10242_s3 + $0x48] sm:$0xff] }
 0x3e7   : > { %v2240_v59 = vpop.f32.mrf.mxu0 }
 0x3e8   : > { %v2241_v40 = vadd.f32 %v2240_v59, %v2218_v45 }
 0x3e9   : > { %v7689_v62 = vld [vmem:[#allocation3 + $0x20] sm:$0x3] }
 0x3ea   : > { %2367 = vrot.lane.b32.xlu1 %v7689_v62, %s10346_s30  ;;  %2515 = vrot.lane.b32.xlu2 %v7689_v62, %s10347_s22  ;;  %v2951_v27 = vld [vmem:[#allocation3 + $0x20] sm:$0x3] }
 0x3eb   : > { %2600 = vrot.lane.b32.xlu0 %v2351_v19, %s10286_s12 }
 0x3ee   : > { %v2220_v17 = vpop.f32.mrf.mxu3 }
 0x3ef   : > { %v2221_v53 = vadd.f32 %v2220_v17, %v2197_v50 }
 0x3f0   : > { %v2243_v47 = vpop.f32.mrf.mxu0 }
 0x3f1   : > { %v2244_v51 = vadd.f32 %v2243_v47, %v2221_v53 }
 0x3f2   : > { %2513 = vrot.lane.b32.xlu1 %v2351_v19, %s10347_s22  ;;  %5302 = vrot.lane.b32.xlu2 %v5291_v22, %s10286_s12  ;;  %s375_s22 = sand.u32 1, %s5390_s18  }
 0x3f3   : > { %2864 = vrot.lane.b32.xlu0 %v2351_v19, %s10348_s14  ;;  %s4977_s15 = scalar_lea.sflag [#allocation8], %s375_s22 }
 0x3f6   : > { %v2263_v2 = vpop.f32.mrf.mxu2  ;;  %v2286_v55 = vpop.f32.mrf.mxu1 }
 0x3f7   : > { %v2264_v52 = vadd.f32 %v2263_v2, %v2241_v40  ;;  %v5075_v2 = vld [vmem:[%s10242_s3 + $0x38] sm:$0xff]  ;;  %v5086_v40 = vld [vmem:[%s10242_s3 + $0x50] sm:$0xff] }
 0x3f8   : > { %v2332_v41 = vpop.f32.mrf.mxu0 }
 0x3f9   : > { %v2287_v36 = vadd.f32 %v2286_v55, %v2264_v52 }
 0x3fa   : > { %2602 = vrot.lane.b32.xlu1 %v7689_v62, %s10286_s12  ;;  %5307 = vrot.lane.b32.xlu2 %v7682_v21, %s5417_s24  ;;  %s10349_s12 = smov 112  }
 0x3fb   : > { %2776 = vrot.lane.b32.xlu0 %v2351_v19, %s5419_s29 }
 0x3fe   : > { %v2266_v38 = vpop.f32.mrf.mxu2  ;;  %v2289_v30 = vpop.f32.mrf.mxu1 }
 0x3ff   : > { %v2267_v61 = vadd.f32 %v2266_v38, %v2244_v51 }
 0x400   : > { %v2335_v24 = vpop.f32.mrf.mxu0 }
 0x401   : > { %v2290_v49 = vadd.f32 %v2289_v30, %v2267_v61 }
 0x402   : > { %2690 = vrot.lane.b32.xlu1 %v7689_v62, %s5417_s24  ;;  %5312 = vrot.lane.b32.xlu2 %v5291_v22, %s5419_s29 }
 0x404   : > { %v2309_v0 = vpop.f32.mrf.mxu3 }
 0x405   : > { %v2310_v14 = vadd.f32 %v2309_v0, %v2287_v36  ;;  %v5076_v0 = vld [vmem:[%s10242_s3 + $0x40] sm:$0xf] }
 0x407   : > { %v2333_v60 = vadd.f32 %v2332_v41, %v2310_v14  ;;  %v5087_v14 = vld [vmem:[%s10242_s3 + $0x58] sm:$0xf] }
 0x409   : > { %2341 = vst.msk [vmem:[#allocation3 + $0x10] sm:$0xff] %vm2340_vm12, %v2333_v60  ;;  %vm4914_vm12 = vcmask 285696  }
 0x40a   : > { %2778 = vrot.lane.b32.xlu1 %v7689_v62, %s5419_s29  ;;  %5317 = vrot.lane.b32.xlu2 %v7682_v21, %s10348_s14  ;;  %s376_s29 = scalar_lea.vmem [#allocation7], %s375_s22 }
 0x40b   : > { %s4987_s25 = sshll.u32 %s376_s29, 4  ;;  %s4988_s25 = int_to_ptr.vmem [resolvable:$true] %s4987_s25 }
 0x40c   : > { %v2312_v10 = vpop.f32.mrf.mxu3 }
 0x40d   : > { %v2313_v16 = vadd.f32 %v2312_v10, %v2290_v49 }
 0x40f   : > { %v2336_v25 = vadd.f32 %v2335_v24, %v2313_v16  ;;  %v5096_v24 = vld [vmem:[%s10242_s3 + $0x60] sm:$0xff] }
 0x410   : > { %v2949_v7 = vld [vmem:[#allocation3 + $0x10] sm:$0xff] }
 0x411   : > { %2345 = vst.msk [vmem:[#allocation3 + $0x28] sm:$0x3] %vm2344_vm13, %v2336_v25  ;;  %v5321_v29 = vpack.i.bf16 %v2949_v7, %v7678_v18  ;;  %vm4962_vm13 = vcmask 73728  }
 0x412   : > { %2866 = vrot.lane.b32.xlu1 %v7689_v62, %s10348_s14  ;;  %s4985_s14 = scalar_lea.hbm %s10250_s11, %s5504_s21 }
 0x413   : > { %5322 = vrot.lane.b32.xlu0 %v5321_v29, %s5420_s13 }
 0x418   : > { %v2952_v13 = vld [vmem:[#allocation3 + $0x28] sm:$0x3] }
 0x419   : > { %2969 = vrot.lane.b32.xlu2 %v2952_v13, %s5420_s13 }
 0x41a   : > { %3059 = vrot.lane.b32.xlu1 %v2950_v43, %s5421_s0 }
 0x41b   : > { %5327 = vrot.lane.b32.xlu0 %v7682_v21, %s5421_s0  ;;  %v5056_v21 = vld [vmem:[%s10242_s3 + $0x20] sm:$0xff] }
 0x421   : > { %3061 = vrot.lane.b32.xlu2 %v2951_v27, %s5421_s0 }
 0x422   : > { %2967 = vrot.lane.b32.xlu1 %v2951_v27, %s5420_s13 }
 0x423   : > { %3057 = vrot.lane.b32.xlu0 %v2949_v7, %s5421_s0  ;;  %v5107_v7 = vld [vmem:[%s10242_s3 + $0x78] sm:$0xff] }
 0x429   : > { %2965 = vrot.lane.b32.xlu2 %v2950_v43, %s5420_s13 }
 0x42a   : > { %3063 = vrot.lane.b32.xlu1 %v2952_v13, %s5421_s0  ;;  %s4989_s0 = sshll.u32 %s4985_s14, 4  ;;  %s4990_s0 = int_to_ptr.hbm [resolvable:$true] %s4989_s0 }
 0x42b   : > { %3153 = vperm.xlu0 %5240, %v3144_v11  }
 0x432   : > { %2959 = vrot.lane.b32.xlu1 %v7673_v46, %s5420_s13  ;;  %v7728_v46 = vld [vmem:[%s10242_s3 + $0x10] sm:$0xf] }
 0x433   : > { %3158 = vperm.xlu0 %5240, %v3145_v32   ;;  %5069 = vmatmul.msk.f32.gmra.mxu1 %vm2373_vm14, %v7728_v46 }
 0x434   : > { %v5293_v5 = vpop.permute.xlu2 %5292 }
 0x435   : > { %v5295_v9 = vunpack.i.h.bf16 %v5293_v5  ;;  %v5294_v6 = vunpack.i.l.bf16 %v5293_v5  ;;  %v5108_v5 = vld [vmem:[%s10242_s3 + $0x80] sm:$0xff] }
 0x436   : > { %v2366_v19 = vpop.permute.xlu0 %2365 }
 0x437   : > { %v2369_v33 = vsel %vm487_vm1, %v5295_v9, %v5294_v6 }
 0x444   : > { %v2516_v20 = vpop.permute.xlu2 %2515 }
 0x44c   : > { %v5298_v8 = vpop.permute.xlu0 %5297  ;;  %v5303_v3 = vpop.permute.xlu2 %5302 }
 0x44d   : > { %v5300_v48 = vunpack.i.h.bf16 %v5298_v8  ;;  %v5299_v15 = vunpack.i.l.bf16 %v5298_v8  ;;  %v5305_v4 = vunpack.i.h.bf16 %v5303_v3 }
 0x44f   : > { %v2517_v22 = vsel %vm592_vm2, %v5299_v15, %v5300_v48 }
 0x454   : > { %v2689_v44 = vpop.permute.xlu0 %2688  ;;  %v5308_v57 = vpop.permute.xlu2 %5307 }
 0x455   : > { %v5310_v28 = vunpack.i.h.bf16 %v5308_v57  ;;  %v5309_v50 = vunpack.i.l.bf16 %v5308_v57  ;;  %v5129_v57 = vld [vmem:[%s10242_s3 + $0xa8] sm:$0xff] }
 0x457   : > { %v2693_v17 = vsel %vm2692_vm0, %v5309_v50, %v5310_v28 }
 0x45c   : > { %v2368_v34 = vpop.permute.xlu1 %2367  ;;  %v5313_v42 = vpop.permute.xlu2 %5312 }
 0x45d   : > { %v2370_v37 = vsel %vm487_vm1, %v2366_v19, %v2368_v34  ;;  %5062 = vmatpush.msk.msra.mxu0 %vm2383_vm11, %v2368_v34  ;;  %v2601_v58 = vpop.permute.xlu0 %2600  ;;  %v5315_v55 = vunpack.i.h.bf16 %v5313_v42  ;;  %v5314_v53 = vunpack.i.l.bf16 %v5313_v42  ;;  %v5098_v34 = vld [vmem:[%s10242_s3 + $0x70] sm:$0xf]  ;;  %v2470_v42 = vpop.f32.mrf.mxu1 }
 0x45e   : > { %5058 = vmatpush.msk.msrb.mxu2 %vm2383_vm11, %v2370_v37  ;;  %5159 = vmatpush.msk.msrb.mxu3 %vm2383_vm11, %v2370_v37  ;;  %v5109_v37 = vld [vmem:[%s10242_s3 + $0x88] sm:$0xf] }
 0x45f   : > { %2429 = vmatpush.msra.mxu0 %v5294_v6 }
 0x460   : > { %2403 = vmatpush.msrb.mxu2 %v2369_v33  ;;  %5160 = vmatpush.msrb.mxu3 %v2369_v33 }
 0x461   : > { %5063 = vmatmul.msk.f32.vlgmr.msra.gmra.mxu0 %vm2373_vm14, %v5055_v12  ;;  %5059 = vmatmul.msk.f32.vlgmr.msrb.gmra.mxu2 %vm2373_vm14, %v5055_v12 }
 0x462   : > { %5081 = vmatpush.msk.msrb.mxu0 %vm2383_vm11, %v2516_v20  ;;  %5061 = vmatmul.msk.f32.vlgmr.msrb.gmra.mxu3 %vm2373_vm14, %v5057_v31 }
 0x463   : > { %5070 = vmatpush.msk.msra.mxu3 %vm2383_vm11, %v7689_v62 }
 0x464   : > { %2575 = vmatpush.msrb.mxu0 %v5300_v48  ;;  %v2514_v26 = vpop.permute.xlu1 %2513  ;;  %v5318_v52 = vpop.permute.xlu2 %5317  ;;  %v5118_v48 = vld [vmem:[%s10242_s3 + $0x90] sm:$0xff] }
 0x465   : > { %2494 = vmatpush.msra.mxu3 %v7678_v18  ;;  %v2518_v56 = vsel %vm592_vm2, %v2514_v26, %v2516_v20  ;;  %v5304_v18 = vunpack.i.l.bf16 %v5303_v3  ;;  %v2865_v59 = vpop.permute.xlu0 %2864  ;;  %vm2780_vm2 = vcmask 900096   ;;  %v5320_v60 = vunpack.i.h.bf16 %v5318_v52 }
 0x466   : > { %5077 = vmatpush.msk.msra.mxu2 %vm2383_vm11, %v2518_v56  ;;  %v2781_v51 = vsel %vm2780_vm2, %v5315_v55, %v5314_v53  ;;  %v5319_v30 = vunpack.i.l.bf16 %v5318_v52  ;;  %v5119_v56 = vld [vmem:[%s10242_s3 + $0x98] sm:$0xff] }
 0x467   : > { %v2605_v62 = vsel %vm2604_vm15, %v5305_v4, %v5304_v18  ;;  %v5140_v4 = vld [vmem:[%s10242_s3 + $0xc0] sm:$0xff] }
 0x468   : > { %2549 = vmatpush.msra.mxu2 %v2517_v22  ;;  %v2868_v25 = vsel %vm907_vm4, %v5319_v30, %v5320_v60  ;;  %v5120_v22 = vld [vmem:[%s10242_s3 + $0xa0] sm:$0xf] }
 0x469   : > { %5064 = vmatmul.msk.f32.gmra.mxu0 %vm2373_vm14, %v5056_v21  ;;  %5060 = vmatmul.msk.f32.gmra.mxu2 %vm2373_vm14, %v5056_v21  ;;  %v5130_v21 = vld [vmem:[%s10242_s3 + $0xb0] sm:$0xff] }
 0x46a   : > { %5071 = vmatmul.msk.f32.vlgmr.msra.gmra.mxu3 %vm2373_vm14, %v2346_v54  ;;  %v5097_v54 = vld [vmem:[%s10242_s3 + $0x68] sm:$0xff] }
 0x46c   : > { %v2603_v1 = vpop.permute.xlu1 %2602 }
 0x46d   : > { %v2606_v35 = vsel %vm2604_vm15, %v2601_v58, %v2603_v1  ;;  %5092 = vmatpush.msk.msrb.mxu3 %vm2383_vm11, %v2603_v1  ;;  %v2777_v36 = vpop.permute.xlu0 %2776  ;;  %v5131_v58 = vld [vmem:[%s10242_s3 + $0xb8] sm:$0xf]  ;;  %v5141_v1 = vld [vmem:[%s10242_s3 + $0xc8] sm:$0xff] }
 0x46e   : > { %5088 = vmatpush.msk.msra.mxu1 %vm2383_vm11, %v2606_v35  ;;  %v5142_v35 = vld [vmem:[%s10242_s3 + $0xd0] sm:$0xf] }
 0x46f   : > { %2663 = vmatpush.msrb.mxu3 %v5304_v18  ;;  %v3143_v18 = vld [vmem:[%s10243_s4] sm:$0xff] }
 0x470   : > { %2637 = vmatpush.msra.mxu1 %v2605_v62  ;;  %3148 = vperm.xlu2 %5331, %v3143_v18  }
 0x471   : > { %5065 = vmatmul.msk.f32.gmra.mxu0 %vm2373_vm14, %v5057_v31  ;;  %5078 = vmatmul.msk.f32.vlgmr.msra.gmra.mxu2 %vm2373_vm14, %v5074_v63 }
 0x472   : > { %5072 = vmatmul.msk.f32.gmra.mxu3 %vm2373_vm14, %v2347_v23  ;;  %5089 = vmatmul.msk.f32.vlgmr.msra.gmra.mxu1 %vm2373_vm14, %v5085_v39 }
 0x473   : > { %v2970_v61 = vpop.permute.xlu2 %2969 }
 0x474   : > { %v2691_v45 = vpop.permute.xlu1 %2690 }
 0x475   : > { %v2694_v47 = vsel %vm2692_vm0, %v2689_v44, %v2691_v45  ;;  %5103 = vmatpush.msk.msra.mxu0 %vm2383_vm11, %v2691_v45 }
 0x476   : > { %5099 = vmatpush.msk.msrb.mxu2 %vm2383_vm11, %v2694_v47 }
 0x477   : > { %2751 = vmatpush.msra.mxu0 %v5310_v28  ;;  %v2473_v28 = vpop.f32.mrf.mxu1 }
 0x478   : > { %2725 = vmatpush.msrb.mxu2 %v2693_v17 }
 0x479   : > { %5082 = vmatmul.msk.f32.vlgmr.msrb.gmra.mxu0 %vm2373_vm14, %v5074_v63  ;;  %5079 = vmatmul.msk.f32.gmra.mxu2 %vm2373_vm14, %v5075_v2 }
 0x47a   : > { %5073 = vmatmul.msk.f32.gmra.mxu3 %vm2373_vm14, %v7728_v46  ;;  %5090 = vmatmul.msk.f32.gmra.mxu1 %vm2373_vm14, %v5086_v40 }
 0x47b   : > { %v3062_v29 = vpop.permute.xlu2 %3061 }
 0x47c   : > { %v2779_v41 = vpop.permute.xlu1 %2778 }
 0x47d   : > { %v2782_v38 = vsel %vm2780_vm2, %v2777_v36, %v2779_v41  ;;  %5114 = vmatpush.msk.msra.mxu3 %vm2383_vm11, %v2779_v41 }
 0x47e   : > { %5110 = vmatpush.msk.msrb.mxu1 %vm2383_vm11, %v2782_v38 }
 0x47f   : > { %2839 = vmatpush.msra.mxu3 %v5314_v53 }
 0x480   : > { %2813 = vmatpush.msrb.mxu1 %v2781_v51 }
 0x481   : > { %5083 = vmatmul.msk.f32.gmra.mxu0 %vm2373_vm14, %v5075_v2  ;;  %5080 = vmatmul.msk.f32.gmra.mxu2 %vm2373_vm14, %v5076_v0 }
 0x482   : > { %5093 = vmatmul.msk.f32.vlgmr.msrb.gmra.mxu3 %vm2373_vm14, %v5085_v39  ;;  %5091 = vmatmul.msk.f32.gmra.mxu1 %vm2373_vm14, %v5087_v14 }
 0x483   : > { %v2966_v20 = vpop.permute.xlu2 %2965 }
 0x484   : > { %v2867_v49 = vpop.permute.xlu1 %2866 }
 0x485   : > { %v5323_v10 = vpop.permute.xlu0 %5322  ;;  %v2869_v16 = vsel %vm907_vm4, %v2865_v59, %v2867_v49  ;;  %5125 = vmatpush.msk.msrb.mxu0 %vm2383_vm11, %v2867_v49 }
 0x486   : > { %5121 = vmatpush.msk.msra.mxu2 %vm2383_vm11, %v2869_v16  ;;  %v5325_v19 = vunpack.i.h.bf16 %v5323_v10  ;;  %v5324_v46 = vunpack.i.l.bf16 %v5323_v10 }
 0x487   : > { %2926 = vmatpush.msrb.mxu0 %v5320_v60 }
 0x488   : > { %2900 = vmatpush.msra.mxu2 %v2868_v25  ;;  %v2973_v6 = vsel %vm2971_vm5, %v5324_v46, %v5325_v19 }
 0x489   : > { %5084 = vmatmul.msk.f32.gmra.mxu0 %vm2373_vm14, %v5076_v0  ;;  %5100 = vmatmul.msk.f32.vlgmr.msrb.gmra.mxu2 %vm2373_vm14, %v5096_v24 }
 0x48a   : > { %5094 = vmatmul.msk.f32.gmra.mxu3 %vm2373_vm14, %v5086_v40  ;;  %5111 = vmatmul.msk.f32.vlgmr.msrb.gmra.mxu1 %vm2373_vm14, %v5107_v7 }
 0x48c   : > { %v3060_v13 = vpop.permute.xlu1 %3059 }
 0x48d   : > { %v5328_v43 = vpop.permute.xlu0 %5327  ;;  %v3068_v27 = vsel %vm3065_vm3, %v3060_v13, %v3062_v29 }
 0x48e   : > { %v5330_v11 = vunpack.i.h.bf16 %v5328_v43  ;;  %v5329_v32 = vunpack.i.l.bf16 %v5328_v43  ;;  %5143 = vmatpush.msk.msrb.mxu2 %vm2383_vm11, %v3068_v27 }
 0x490   : > { %v3066_v23 = vsel %vm3065_vm3, %v5329_v32, %v5330_v11 }
 0x491   : > { %5104 = vmatmul.msk.f32.vlgmr.msra.gmra.mxu0 %vm2373_vm14, %v5096_v24  ;;  %3100 = vmatpush.msrb.mxu2 %v3066_v23 }
 0x492   : > { %5095 = vmatmul.msk.f32.gmra.mxu3 %vm2373_vm14, %v5087_v14  ;;  %5101 = vmatmul.msk.f32.gmra.mxu2 %vm2373_vm14, %v5097_v54 }
 0x493   : > { %5112 = vmatmul.msk.f32.gmra.mxu1 %vm2373_vm14, %v5108_v5 }
 0x494   : > { %v2968_v8 = vpop.permute.xlu1 %2967 }
 0x495   : > { %v2974_v3 = vsel %vm2971_vm5, %v2966_v20, %v2968_v8  ;;  %v2975_v9 = vsel %vm2971_vm5, %v2968_v8, %v2970_v61  ;;  %v3058_v44 = vpop.permute.xlu0 %3057 }
 0x496   : > { %5132 = vmatpush.msk.msra.mxu1 %vm2383_vm11, %v2974_v3  ;;  %5136 = vmatpush.msk.msrb.mxu3 %vm2383_vm11, %v2975_v9  ;;  %v3067_v31 = vsel %vm3065_vm3, %v5330_v11, %v3058_v44 }
 0x498   : > { %3032 = vmatpush.msrb.mxu3 %v2973_v6 }
 0x499   : > { %5105 = vmatmul.msk.f32.gmra.mxu0 %vm2373_vm14, %v5097_v54 }
 0x49a   : > { %5102 = vmatmul.msk.f32.gmra.mxu2 %vm2373_vm14, %v5098_v34  ;;  %5115 = vmatmul.msk.f32.vlgmr.msra.gmra.mxu3 %vm2373_vm14, %v5107_v7 }
 0x49b   : > { %5113 = vmatmul.msk.f32.gmra.mxu1 %vm2373_vm14, %v5109_v37 }
 0x49c   : > { %v3064_v12 = vpop.permute.xlu1 %3063 }
 0x49d   : > { %v3069_v33 = vsel %vm3065_vm3, %v3062_v29, %v3064_v12 }
 0x49e   : > { %5147 = vmatpush.msk.msra.mxu0 %vm2383_vm11, %v3069_v33  ;;  %vm4918_vm11 = vcmask 1042432  }
 0x4a0   : > { %3126 = vmatpush.msra.mxu0 %v3067_v31 }
 0x4a1   : > { %5106 = vmatmul.msk.f32.gmra.mxu0 %vm2373_vm14, %v5098_v34 }
 0x4a2   : > { %5116 = vmatmul.msk.f32.gmra.mxu3 %vm2373_vm14, %v5108_v5  ;;  %5122 = vmatmul.msk.f32.vlgmr.msra.gmra.mxu2 %vm2373_vm14, %v5118_v48 }
 0x4a4   : > { %v2960_v15 = vpop.permute.xlu1 %2959 }
 0x4a5   : > { %v2972_v26 = vsel %vm2971_vm5, %v2960_v15, %v5324_v46 }
 0x4a6   : > { %3006 = vmatpush.msra.mxu1 %v2972_v26 }
 0x4a7   : > { %5133 = vmatmul.msk.f32.vlgmr.msra.gmra.mxu1 %vm2373_vm14, %v5129_v57 }
 0x4a9   : > { %5126 = vmatmul.msk.f32.vlgmr.msrb.gmra.mxu0 %vm2373_vm14, %v5118_v48 }
 0x4aa   : > { %5117 = vmatmul.msk.f32.gmra.mxu3 %vm2373_vm14, %v5109_v37  ;;  %5123 = vmatmul.msk.f32.gmra.mxu2 %vm2373_vm14, %v5119_v56 }
 0x4af   : > { %5134 = vmatmul.msk.f32.gmra.mxu1 %vm2373_vm14, %v5130_v21 }
 0x4b0   : > { %v2476_v2 = vpop.f32.mrf.mxu1 }
 0x4b1   : > { %5127 = vmatmul.msk.f32.gmra.mxu0 %vm2373_vm14, %v5119_v56 }
 0x4b2   : > { %5124 = vmatmul.msk.f32.gmra.mxu2 %vm2373_vm14, %v5120_v22  ;;  %5137 = vmatmul.msk.f32.vlgmr.msrb.gmra.mxu3 %vm2373_vm14, %v5129_v57 }
 0x4b7   : > { %5135 = vmatmul.msk.f32.gmra.mxu1 %vm2373_vm14, %v5131_v58 }
 0x4b9   : > { %5128 = vmatmul.msk.f32.gmra.mxu0 %vm2373_vm14, %v5120_v22 }
 0x4ba   : > { %5138 = vmatmul.msk.f32.gmra.mxu3 %vm2373_vm14, %v5130_v21  ;;  %5144 = vmatmul.msk.f32.vlgmr.msrb.gmra.mxu2 %vm2373_vm14, %v5140_v4 }
 0x4c1   : > { %5148 = vmatmul.msk.f32.vlgmr.msra.gmra.mxu0 %vm2373_vm14, %v5140_v4 }
 0x4c2   : > { %5139 = vmatmul.msk.f32.gmra.mxu3 %vm2373_vm14, %v5131_v58  ;;  %5145 = vmatmul.msk.f32.gmra.mxu2 %vm2373_vm14, %v5141_v1 }
 0x4c9   : > { %5149 = vmatmul.msk.f32.gmra.mxu0 %vm2373_vm14, %v5141_v1 }
 0x4ca   : > { %5146 = vmatmul.msk.f32.gmra.mxu2 %vm2373_vm14, %v5142_v35 }
 0x4d1   : > { %5150 = vmatmul.msk.f32.gmra.mxu0 %vm2373_vm14, %v5142_v35 }
 0x4de   : > { %v2431_v63 = vpop.f32.mrf.mxu0 }
 0x4e4   : > { %v2405_v62 = vpop.f32.mrf.mxu2 }
 0x4e5   : > { %v2411_v39 = vpop.f32.mrf.mxu3  ;;  %v2471_v32 = vadd.f32 %v2470_v42, %v2405_v62 }
 0x4e6   : > { %v2434_v59 = vpop.f32.mrf.mxu0  ;;  %v2477_v58 = vadd.f32 %v2476_v2, %v2411_v39 }
 0x4ec   : > { %v2408_v50 = vpop.f32.mrf.mxu2 }
 0x4ed   : > { %v2496_v45 = vpop.f32.mrf.mxu3  ;;  %v2474_v20 = vadd.f32 %v2473_v28, %v2408_v50  ;;  %v3149_v50 = vpop.permute.xlu2 %3148 }
 0x4ee   : > { %v7895_v47 = vpop.f32.mrf.mxu0  ;;  %v2497_v9 = vadd.f32 %v2496_v45, %v2431_v63 }
 0x4ef   : > { %v2639_v55 = vpop.f32.mrf.mxu1 }
 0x4f4   : > { %v2551_v17 = vpop.f32.mrf.mxu2 }
 0x4f5   : > { %v2499_v40 = vpop.f32.mrf.mxu3  ;;  %v2586_v23 = vadd.f32 %v2551_v17, %v2471_v32 }
 0x4f6   : > { %v2577_v52 = vpop.f32.mrf.mxu0  ;;  %v2500_v21 = vadd.f32 %v2499_v40, %v2434_v59 }
 0x4f7   : > { %v2642_v38 = vpop.f32.mrf.mxu1  ;;  %v2674_v8 = vadd.f32 %v2639_v55, %v2586_v23  ;;  %v2587_v37 = vadd.f32 %v2577_v52, %v2497_v9 }
 0x4fc   : > { %v2554_v53 = vpop.f32.mrf.mxu2 }
 0x4fd   : > { %v7897_v36 = vpop.f32.mrf.mxu3  ;;  %v2588_v6 = vadd.f32 %v2554_v53, %v2474_v20 }
 0x4fe   : > { %v2580_v41 = vpop.f32.mrf.mxu0  ;;  %v2503_v39 = vadd.f32 %v7897_v36, %v7895_v47 }
 0x4ff   : > { %v2645_v60 = vpop.f32.mrf.mxu1  ;;  %v2676_v31 = vadd.f32 %v2642_v38, %v2588_v6  ;;  %v2589_v18 = vadd.f32 %v2580_v41, %v2500_v21  ;;  %v3266_v21 = vld [vmem:[%s10245_s6 + $0x70] sm:$0xff] }
 0x504   : > { %v2557_v0 = vpop.f32.mrf.mxu2 }
 0x505   : > { %v2665_v51 = vpop.f32.mrf.mxu3  ;;  %v2590_v35 = vadd.f32 %v2557_v0, %v2477_v58  ;;  %v3277_v58 = vld [vmem:[%s10245_s6 + $0xc8] sm:$0x7f] }
 0x506   : > { %v7899_v14 = vpop.f32.mrf.mxu0  ;;  %v2675_v44 = vadd.f32 %v2665_v51, %v2587_v37 }
 0x507   : > { %v2815_v25 = vpop.f32.mrf.mxu1  ;;  %v2678_v51 = vadd.f32 %v2645_v60, %v2590_v35  ;;  %v3154_v60 = vpop.permute.xlu0 %3153 }
 0x50c   : > { %v2727_v61 = vpop.f32.mrf.mxu2 }
 0x50d   : > { %v2668_v30 = vpop.f32.mrf.mxu3  ;;  %v2762_v34 = vadd.f32 %v2727_v61, %v2674_v8 }
 0x50e   : > { %v2753_v49 = vpop.f32.mrf.mxu0  ;;  %v2677_v63 = vadd.f32 %v2668_v30, %v2589_v18  ;;  %v3263_v18 = vld [vmem:[%s10245_s6 + $0x58] sm:$0xff] }
 0x50f   : > { %v2850_v48 = vadd.f32 %v2815_v25, %v2762_v34  ;;  %v2763_v26 = vadd.f32 %v2753_v49, %v2675_v44  ;;  %v2591_v49 = vadd.f32 %v7899_v14, %v2503_v39  ;;  %v3275_v39 = vld [vmem:[%s10245_s6 + $0xb8] sm:$0xff] }
 0x510   : > { %v2818_v43 = vpop.f32.mrf.mxu1 }
 0x515   : > { %v7901_v10 = vpop.f32.mrf.mxu3  ;;  %v2730_v16 = vpop.f32.mrf.mxu2 }
 0x516   : > { %v2756_v24 = vpop.f32.mrf.mxu0  ;;  %v2764_v4 = vadd.f32 %v2730_v16, %v2676_v31 }
 0x517   : > { %v2765_v55 = vadd.f32 %v2756_v24, %v2677_v63 }
 0x518   : > { %v2821_v5 = vpop.f32.mrf.mxu1  ;;  %v2852_v45 = vadd.f32 %v2818_v43, %v2764_v4  ;;  %v3264_v4 = vld [vmem:[%s10245_s6 + $0x60] sm:$0xff] }
 0x51d   : > { %v2733_v7 = vpop.f32.mrf.mxu2  ;;  %v2841_v29 = vpop.f32.mrf.mxu3 }
 0x51e   : > { %v7903_v13 = vpop.f32.mrf.mxu0  ;;  %v2851_v22 = vadd.f32 %v2841_v29, %v2763_v26  ;;  %v2766_v0 = vadd.f32 %v2733_v7, %v2678_v51  ;;  %v2679_v29 = vadd.f32 %v7901_v10, %v2591_v49  ;;  %v3257_v49 = vld [vmem:[%s10245_s6 + $0x28] sm:$0xff] }
 0x520   : > { %v2854_v36 = vadd.f32 %v2821_v5, %v2766_v0  ;;  %v3258_v0 = vld [vmem:[%s10245_s6 + $0x30] sm:$0xff] }
 0x524   : > { %v3008_v12 = vpop.f32.mrf.mxu1 }
 0x525   : > { %v2844_v27 = vpop.f32.mrf.mxu3  ;;  %v2902_v11 = vpop.f32.mrf.mxu2 }
 0x526   : > { %v2928_v54 = vpop.f32.mrf.mxu0  ;;  %v2937_v56 = vadd.f32 %v2902_v11, %v2850_v48  ;;  %v2853_v2 = vadd.f32 %v2844_v27, %v2765_v55  ;;  %v2767_v11 = vadd.f32 %v7903_v13, %v2679_v29  ;;  %v3270_v29 = vld [vmem:[%s10245_s6 + $0x90] sm:$0xff] }
 0x527   : > { %v2938_v1 = vadd.f32 %v2928_v54, %v2851_v22  ;;  %v3265_v22 = vld [vmem:[%s10245_s6 + $0x68] sm:$0xff] }
 0x528   : > { %v3043_v42 = vadd.f32 %v3008_v12, %v2937_v56  ;;  %v3159_v12 = vpop.permute.xlu0 %3158  ;;  %v3267_v56 = vld [vmem:[%s10245_s6 + $0x78] sm:$0xff] }
 0x529   : > { %3292 = vmatpush.msrb.mxu1 %v3267_v56  ;;  %v3451_v56 = vld [vmem:[%s10246_s7 + $0x190] sm:$0xff] }
 0x52b   : > { %3293 = vmatpush.msrb.mxu1 %v3266_v21  ;;  %v3483_v21 = vld [vmem:[%s10246_s7 + $0x290] sm:$0xff] }
 0x52c   : > { %v3011_v53 = vpop.f32.mrf.mxu1 }
 0x52d   : > { %v2847_v19 = vpop.f32.mrf.mxu3  ;;  %v2905_v46 = vpop.f32.mrf.mxu2  ;;  %3294 = vmatpush.msrb.mxu1 %v3265_v22  ;;  %v3515_v22 = vld [vmem:[%s10246_s7 + $0x390] sm:$0xff] }
 0x52e   : > { %v2931_v3 = vpop.f32.mrf.mxu0  ;;  %v2939_v61 = vadd.f32 %v2905_v46, %v2852_v45  ;;  %v2855_v23 = vadd.f32 %v2847_v19, %v2767_v11  ;;  %v3431_v11 = vld [vmem:[%s10246_s7 + $0xf0] sm:$0xff] }
 0x52f   : > { %v2940_v16 = vadd.f32 %v2931_v3, %v2853_v2  ;;  %3295 = vmatpush.msrb.mxu1 %v3264_v4  ;;  %v3259_v2 = vld [vmem:[%s10245_s6 + $0x38] sm:$0xff]  ;;  %4090 = vmatpush.msra.mxu2 %v3431_v11  ;;  %v3417_v4 = vld [vmem:[%s10246_s7 + $0x80] sm:$0xff]  ;;  %v3471_v11 = vld [vmem:[%s10246_s7 + $0x230] sm:$0xff] }
 0x530   : > { %v3045_v24 = vadd.f32 %v3011_v53, %v2939_v61  ;;  %v3261_v61 = vld [vmem:[%s10245_s6 + $0x48] sm:$0xff] }
 0x531   : > { %3296 = vmatpush.msrb.mxu1 %v3263_v18 }
 0x534   : > { %v3014_v46 = vpop.f32.mrf.mxu1 }
 0x535   : > { %v2908_v33 = vpop.f32.mrf.mxu2  ;;  %v3034_v15 = vpop.f32.mrf.mxu3 }
 0x536   : > { %v2934_v57 = vpop.f32.mrf.mxu0  ;;  %v3044_v62 = vadd.f32 %v3034_v15, %v2938_v1  ;;  %v2941_v32 = vadd.f32 %v2908_v33, %v2854_v36  ;;  %v3262_v1 = vld [vmem:[%s10245_s6 + $0x50] sm:$0xff]  ;;  %v3253_v36 = vld [vmem:[%s10245_s6 + $0x8] sm:$0xff] }
 0x537   : > { %v2942_v9 = vadd.f32 %v2934_v57, %v2855_v23  ;;  %3297 = vmatpush.msrb.mxu1 %v3262_v1  ;;  %v3429_v23 = vld [vmem:[%s10246_s7 + $0xe0] sm:$0xff] }
 0x538   : > { %v3047_v10 = vadd.f32 %v3014_v46, %v2941_v32  ;;  %v3495_v32 = vld [vmem:[%s10246_s7 + $0x2f0] sm:$0xff]  ;;  %v3461_v46 = vld [vmem:[%s10246_s7 + $0x1e0] sm:$0xff]  ;;  %4091 = vmatpush.msra.mxu2 %v3429_v23 }
 0x539   : > { %3298 = vmatpush.msrb.mxu1 %v3261_v61  ;;  %v3479_v61 = vld [vmem:[%s10246_s7 + $0x270] sm:$0xff]  ;;  %v3469_v23 = vld [vmem:[%s10246_s7 + $0x220] sm:$0xff] }
 0x53d   : > { %v3102_v28 = vpop.f32.mrf.mxu2  ;;  %v3037_v59 = vpop.f32.mrf.mxu3 }
 0x53e   : > { %v3137_v17 = vadd.f32 %v3102_v28, %v3043_v42  ;;  %v3128_v52 = vpop.f32.mrf.mxu0  ;;  %v3046_v43 = vadd.f32 %v3037_v59, %v2940_v16  ;;  %v3276_v59 = vld [vmem:[%s10245_s6 + $0xc0] sm:$0xff] }
 0x53f   : > { %v3138_v38 = vadd.f32 %v3128_v52, %v3044_v62  ;;  %v3272_v16 = vld [vmem:[%s10245_s6 + $0xa0] sm:$0xff] }
 0x540   : > { %v7905_v40 = vadd.f32 %v3149_v50, %v3137_v17 }
 0x541   : > { %v3162_v41 = vadd.f32 %v3149_v50, %v3138_v38 }
 0x542   : > { %v3167_v30 = vmax.f32 %v7905_v40, 0.0  ;;  %v3260_v40 = vld [vmem:[%s10245_s6 + $0x40] sm:$0xff] }
 0x543   : > { %v3168_v25 = vmax.f32 %v3162_v41, 0.0  ;;  %v3274_v41 = vld [vmem:[%s10245_s6 + $0xb0] sm:$0xff]  ;;  %3299 = vmatpush.msrb.mxu1 %v3260_v40  ;;  %v3445_v40 = vld [vmem:[%s10246_s7 + $0x160] sm:$0xff] }
 0x544   : > { %3192 = vrot.lane.b32.xlu2 %v3167_v30, %s10346_s30 }
 0x545   : > { %3174 = vst.msk [vmem:[#allocation4 + $0x8] sm:$0xff] %vm907_vm4, %v3168_v25  ;;  %v3105_v47 = vpop.f32.mrf.mxu2  ;;  %v3040_v8 = vpop.f32.mrf.mxu3  ;;  %3300 = vmatpush.msrb.mxu1 %v3259_v2  ;;  %v3256_v25 = vld [vmem:[%s10245_s6 + $0x20] sm:$0xff]  ;;  %v3411_v2 = vld [vmem:[%s10246_s7 + $0x50] sm:$0xff] }
 0x546   : > { %v3139_v7 = vadd.f32 %v3105_v47, %v3045_v24  ;;  %v3131_v27 = vpop.f32.mrf.mxu0  ;;  %v3048_v37 = vadd.f32 %v3040_v8, %v2942_v9  ;;  %v3271_v24 = vld [vmem:[%s10245_s6 + $0x98] sm:$0xff]  ;;  %v3254_v47 = vld [vmem:[%s10245_s6 + $0x10] sm:$0xff]  ;;  %v3525_v8 = vld [vmem:[%s10246_s7 + $0x3e0] sm:$0xff] }
 0x547   : > { %v3140_v14 = vadd.f32 %v3131_v27, %v3046_v43  ;;  %3301 = vmatpush.msrb.mxu1 %v3258_v0  ;;  %v3269_v43 = vld [vmem:[%s10245_s6 + $0x88] sm:$0xff]  ;;  %v3252_v27 = vld [vmem:[%s10245_s6] sm:$0xff]  ;;  %v3459_v9 = vld [vmem:[%s10246_s7 + $0x1d0] sm:$0xff] }
 0x548   : > { %v3163_v54 = vadd.f32 %v3154_v60, %v3139_v7  ;;  %v3268_v7 = vld [vmem:[%s10245_s6 + $0x80] sm:$0xff]  ;;  %v3443_v0 = vld [vmem:[%s10246_s7 + $0x150] sm:$0xff] }
 0x549   : > { %v3164_v20 = vadd.f32 %v3154_v60, %v3140_v14  ;;  %3302 = vmatpush.msrb.mxu1 %v3257_v49  ;;  %v3255_v60 = vld [vmem:[%s10245_s6 + $0x18] sm:$0xff]  ;;  %v3463_v14 = vld [vmem:[%s10246_s7 + $0x1f0] sm:$0xff] }
 0x54a   : > { %v3169_v3 = vmax.f32 %v3163_v54, 0.0  ;;  %4110 = vmatpush.msrb.mxu0 %v3463_v14  ;;  %v3527_v54 = vld [vmem:[%s10246_s7 + $0x3f0] sm:$0xff]  ;;  %v3405_v14 = vld [vmem:[%s10246_s7 + $0x20] sm:$0xff] }
 0x54b   : > { %v3170_v6 = vmax.f32 %v3164_v20, 0.0  ;;  %3303 = vmatpush.msrb.mxu1 %v3256_v25  ;;  %v3493_v20 = vld [vmem:[%s10246_s7 + $0x2e0] sm:$0xff]  ;;  %v3475_v49 = vld [vmem:[%s10246_s7 + $0x250] sm:$0xff] }
 0x54c   : > { %v3181_v34 = vld [vmem:[#allocation4 + $0x8] sm:$0xff]  ;;  %3196 = vrot.lane.b32.xlu2 %v3169_v3, %s10346_s30  ;;  %4111 = vmatpush.msrb.mxu0 %v3461_v46 }
 0x54d   : > { %3176 = vst.msk [vmem:[#allocation4 + $0x18] sm:$0xff] %vm907_vm4, %v3170_v6  ;;  %3194 = vrot.lane.b32.xlu1 %v3181_v34, %s10346_s30  ;;  %v3108_v13 = vpop.f32.mrf.mxu2  ;;  %vm3288_vm4 = vcmask 1046528   ;;  %3304 = vmatpush.msrb.mxu1 %v3255_v60  ;;  %v3491_v6 = vld [vmem:[%s10246_s7 + $0x2d0] sm:$0xff] }
 0x54e   : > { %v3141_v5 = vadd.f32 %v3108_v13, %v3047_v10  ;;  %v3134_v44 = vpop.f32.mrf.mxu0  ;;  %5151 = vmatpush.msk.msra.mxu3 %vm3288_vm4, %v3277_v58  ;;  %v3523_v10 = vld [vmem:[%s10246_s7 + $0x3d0] sm:$0xff]  ;;  %4112 = vmatpush.msrb.mxu0 %v3459_v9  ;;  %v3489_v13 = vld [vmem:[%s10246_s7 + $0x2c0] sm:$0xff] }
 0x54f   : > { %v3142_v19 = vadd.f32 %v3134_v44, %v3048_v37  ;;  %3305 = vmatpush.msrb.mxu1 %v3254_v47  ;;  %v3457_v37 = vld [vmem:[%s10246_s7 + $0x1c0] sm:$0xff]  ;;  %v3423_v44 = vld [vmem:[%s10246_s7 + $0xb0] sm:$0xff] }
 0x550   : > { %v3165_v33 = vadd.f32 %v3159_v12, %v3141_v5  ;;  %3325 = vmatpush.msra.mxu3 %v3276_v59  ;;  %v3521_v5 = vld [vmem:[%s10246_s7 + $0x3c0] sm:$0xff]  ;;  %4113 = vmatpush.msrb.mxu0 %v3457_v37  ;;  %v3511_v59 = vld [vmem:[%s10246_s7 + $0x370] sm:$0xff] }
 0x551   : > { %v3166_v31 = vadd.f32 %v3159_v12, %v3142_v19  ;;  %3306 = vmatpush.msrb.mxu1 %v3253_v36  ;;  %v3455_v12 = vld [vmem:[%s10246_s7 + $0x1b0] sm:$0xff]  ;;  %v3441_v36 = vld [vmem:[%s10246_s7 + $0x140] sm:$0xff] }
 0x552   : > { %v3171_v48 = vmax.f32 %v3165_v33, 0.0  ;;  %3326 = vmatpush.msra.mxu3 %v3275_v39  ;;  %v3487_v19 = vld [vmem:[%s10246_s7 + $0x2b0] sm:$0xff]  ;;  %4114 = vmatpush.msrb.mxu0 %v3455_v12  ;;  %v3477_v39 = vld [vmem:[%s10246_s7 + $0x260] sm:$0xff] }
 0x553   : > { %v3172_v15 = vmax.f32 %v3166_v31, 0.0  ;;  %3307 = vmatpush.msrb.mxu1 %v3252_v27  ;;  %v3519_v33 = vld [vmem:[%s10246_s7 + $0x3b0] sm:$0xff]  ;;  %v3421_v31 = vld [vmem:[%s10246_s7 + $0xa0] sm:$0xff] }
 0x554   : > { %3177 = vst [vmem:[#allocation4 + $0x20] sm:$0xf] %v3171_v48  ;;  %v3183_v57 = vld [vmem:[#allocation4 + $0x18] sm:$0xff]  ;;  %3327 = vmatpush.msra.mxu3 %v3274_v41  ;;  %v3453_v48 = vld [vmem:[%s10246_s7 + $0x1a0] sm:$0xff]  ;;  %v3623_v12 = vld [vmem:[%s10246_s7 + $0x6f0] sm:$0xff] }
 0x555   : > { %3179 = vst.msk [vmem:[#allocation4 + $0x28] sm:$0xf] %vm3178_vm6, %v3172_v15  ;;  %3198 = vrot.lane.b32.xlu1 %v3183_v57, %s10346_s30  ;;  %4150 = vmatpush.msra.mxu1 %v3527_v54  ;;  %v3485_v15 = vld [vmem:[%s10246_s7 + $0x2a0] sm:$0xff]  ;;  %v3503_v54 = vld [vmem:[%s10246_s7 + $0x330] sm:$0xff] }
 0x556   : > { %4115 = vmatpush.msrb.mxu0 %v3453_v48  ;;  %v3509_v41 = vld [vmem:[%s10246_s7 + $0x360] sm:$0xff] }
 0x557   : > { %4151 = vmatpush.msra.mxu1 %v3525_v8  ;;  %v3505_v27 = vld [vmem:[%s10246_s7 + $0x340] sm:$0xff]  ;;  %v3435_v8 = vld [vmem:[%s10246_s7 + $0x110] sm:$0xff] }
 0x558   : > { %4116 = vmatpush.msrb.mxu0 %v3451_v56  ;;  %v3501_v9 = vld [vmem:[%s10246_s7 + $0x320] sm:$0xff]  ;;  %v3619_v56 = vld [vmem:[%s10246_s7 + $0x6d0] sm:$0xff] }
 0x559   : > { %4152 = vmatpush.msra.mxu1 %v3523_v10  ;;  %v3401_v10 = vld [vmem:[%s10246_s7] sm:$0xff] }
 0x55a   : > { %v3465_v37 = vld [vmem:[%s10246_s7 + $0x200] sm:$0xff] }
 0x55b   : > { %v7959_v53 = vld [vmem:[#allocation4 + $0x20] sm:$0xf]  ;;  %4153 = vmatpush.msra.mxu1 %v3521_v5 }
 0x55c   : > { %v3185_v26 = vld [vmem:[#allocation4 + $0x28] sm:$0xf]  ;;  %v3497_v5 = vld [vmem:[%s10246_s7 + $0x300] sm:$0xff] }
 0x55d   : > { %3202 = vrot.lane.b32.xlu2 %v3185_v26, %s10346_s30  ;;  %4154 = vmatpush.msra.mxu1 %v3519_v33  ;;  %v3557_v33 = vld [vmem:[%s10246_s7 + $0x4e0] sm:$0xff] }
 0x55e   : > { %v3621_v48 = vld [vmem:[%s10246_s7 + $0x6e0] sm:$0xff] }
 0x59e   : > { %v3193_v35 = vpop.permute.xlu2 %3192 }
 0x5a6   : > { %v3197_v50 = vpop.permute.xlu2 %3196 }
 0x5b7   : > { %v7967_v38 = vpop.permute.xlu2 %3202 }
 0x5b8   : > { %v7970_v51 = vmax.f32 %v3185_v26, %v7967_v38  ;;  %v3419_v26 = vld [vmem:[%s10246_s7 + $0x90] sm:$0xff] }
 0x5bf   : > { %v3195_v42 = vpop.permute.xlu1 %3194 }
 0x5c0   : > { %v3204_v63 = vsel %vm487_vm1, %v3193_v35, %v3195_v42  ;;  %v7944_v62 = vmax.f32 %v3181_v34, %v3195_v42  ;;  %v3425_v34 = vld [vmem:[%s10246_s7 + $0xc0] sm:$0xff] }
 0x5c1   : > { %v7948_v28 = vmax.f32 %v3167_v30, %v3204_v63  ;;  %v3273_v30 = vld [vmem:[%s10245_s6 + $0xa8] sm:$0xff]  ;;  %v3449_v35 = vld [vmem:[%s10246_s7 + $0x180] sm:$0xff] }
 0x5c2   : > { %3227 = vrot.lane.b32.xlu0 %v7944_v62, %s10349_s12  ;;  %3328 = vmatpush.msra.mxu3 %v3273_v30  ;;  %v3481_v42 = vld [vmem:[%s10246_s7 + $0x280] sm:$0xff] }
 0x5c3   : > { %3225 = vrot.lane.b32.xlu1 %v7948_v28, %s10349_s12  ;;  %4117 = vmatpush.msrb.mxu0 %v3449_v35  ;;  %v3583_v35 = vld [vmem:[%s10246_s7 + $0x5b0] sm:$0xff] }
 0x5c4   : > { %3329 = vmatpush.msra.mxu3 %v3272_v16  ;;  %v3409_v16 = vld [vmem:[%s10246_s7 + $0x40] sm:$0xff] }
 0x5c6   : > { %3330 = vmatpush.msra.mxu3 %v3271_v24 }
 0x5c7   : > { %v3199_v45 = vpop.permute.xlu1 %3198 }
 0x5c8   : > { %v3205_v17 = vsel %vm487_vm1, %v3197_v50, %v3199_v45  ;;  %v7955_v52 = vmax.f32 %v3183_v57, %v3199_v45  ;;  %3331 = vmatpush.msra.mxu3 %v3270_v29  ;;  %v3517_v57 = vld [vmem:[%s10246_s7 + $0x3a0] sm:$0xff]  ;;  %v3415_v50 = vld [vmem:[%s10246_s7 + $0x70] sm:$0xff] }
 0x5c9   : > { %v7957_v55 = vmax.f32 %v3169_v3, %v3205_v17  ;;  %v3427_v3 = vld [vmem:[%s10246_s7 + $0xd0] sm:$0xff]  ;;  %4155 = vmatpush.msra.mxu1 %v3517_v57  ;;  %v3513_v45 = vld [vmem:[%s10246_s7 + $0x380] sm:$0xff] }
 0x5ca   : > { %3200 = vrot.lane.b32.xlu0 %v7959_v53, %s10346_s30  ;;  %3332 = vmatpush.msra.mxu3 %v3269_v43  ;;  %v3447_v17 = vld [vmem:[%s10246_s7 + $0x170] sm:$0xff]  ;;  %s5356_s30 = scalar_lea.hbm %s10250_s11, 2 }
 0x5cb   : > { %3231 = vrot.lane.b32.xlu1 %v7955_v52, %s10349_s12  ;;  %3229 = vrot.lane.b32.xlu2 %v7957_v55, %s10349_s12  ;;  %v3555_v57 = vld [vmem:[%s10246_s7 + $0x4d0] sm:$0xff] }
 0x5cc   : > { %3333 = vmatpush.msra.mxu3 %v3268_v7  ;;  %4092 = vmatpush.msra.mxu2 %v3427_v3 }
 0x5cd   : > { %4156 = vmatpush.msra.mxu1 %v3515_v22  ;;  %4118 = vmatpush.msrb.mxu0 %v3447_v17  ;;  %v3553_v22 = vld [vmem:[%s10246_s7 + $0x4c0] sm:$0xff] }
 0x5ce   : > { %4130 = vmatpush.msrb.mxu3 %v3495_v32  ;;  %4093 = vmatpush.msra.mxu2 %v3425_v34  ;;  %v3437_v32 = vld [vmem:[%s10246_s7 + $0x120] sm:$0xff] }
 0x5cf   : > { %4157 = vmatpush.msra.mxu1 %v3513_v45  ;;  %4119 = vmatpush.msrb.mxu0 %v3445_v40  ;;  %v3433_v34 = vld [vmem:[%s10246_s7 + $0x100] sm:$0xff]  ;;  %v3611_v40 = vld [vmem:[%s10246_s7 + $0x690] sm:$0xff] }
 0x5d0   : > { %4131 = vmatpush.msrb.mxu3 %v3493_v20  ;;  %4094 = vmatpush.msra.mxu2 %v3423_v44  ;;  %v3403_v20 = vld [vmem:[%s10246_s7 + $0x10] sm:$0xff]  ;;  %v3581_v45 = vld [vmem:[%s10246_s7 + $0x5a0] sm:$0xff] }
 0x5d1   : > { %4158 = vmatpush.msra.mxu1 %v3511_v59  ;;  %4120 = vmatpush.msrb.mxu0 %v3443_v0  ;;  %v3591_v44 = vld [vmem:[%s10246_s7 + $0x5f0] sm:$0xff]  ;;  %v3613_v17 = vld [vmem:[%s10246_s7 + $0x6a0] sm:$0xff] }
 0x5d2   : > { %3235 = vrot.lane.b32.xlu0 %v7970_v51, %s10349_s12  ;;  %4132 = vmatpush.msrb.mxu3 %v3491_v6  ;;  %v3467_v6 = vld [vmem:[%s10246_s7 + $0x210] sm:$0xff]  ;;  %v3609_v0 = vld [vmem:[%s10246_s7 + $0x680] sm:$0xff] }
 0x5d3   : > { %4095 = vmatpush.msra.mxu2 %v3421_v31  ;;  %4159 = vmatpush.msra.mxu1 %v3509_v41  ;;  %v3589_v31 = vld [vmem:[%s10246_s7 + $0x5e0] sm:$0xff]  ;;  %v3579_v59 = vld [vmem:[%s10246_s7 + $0x590] sm:$0xff] }
 0x5d4   : > { %4133 = vmatpush.msrb.mxu3 %v3489_v13  ;;  %4121 = vmatpush.msrb.mxu0 %v3441_v36  ;;  %v3559_v13 = vld [vmem:[%s10246_s7 + $0x4f0] sm:$0xff]  ;;  %v3577_v41 = vld [vmem:[%s10246_s7 + $0x580] sm:$0xff] }
 0x5d5   : > { %4096 = vmatpush.msra.mxu2 %v3419_v26  ;;  %v3587_v26 = vld [vmem:[%s10246_s7 + $0x5d0] sm:$0xff]  ;;  %v3637_v36 = vld [vmem:[%s10246_s7 + $0x760] sm:$0xff] }
 0x5d6   : > { %4134 = vmatpush.msrb.mxu3 %v3487_v19  ;;  %v3655_v19 = vld [vmem:[%s10246_s7 + $0x7f0] sm:$0xff] }
 0x5d7   : > { %4097 = vmatpush.msra.mxu2 %v3417_v4  ;;  %v3617_v4 = vld [vmem:[%s10246_s7 + $0x6c0] sm:$0xff] }
 0x5d8   : > { %4135 = vmatpush.msrb.mxu3 %v3485_v15  ;;  %v3653_v15 = vld [vmem:[%s10246_s7 + $0x7e0] sm:$0xff] }
 0x5d9   : > { %4098 = vmatpush.msra.mxu2 %v3415_v50  ;;  %v5422_v50 = vmov 0.0  }
 0x5da   : > { %4136 = vmatpush.msrb.mxu3 %v3483_v21  ;;  %v3651_v21 = vld [vmem:[%s10246_s7 + $0x7d0] sm:$0xff]  ;;  %3349 = vst [vmem:[#allocation6] sm:$0xff] %v5422_v50 }
 0x5db   : > { %3350 = vst [vmem:[#allocation6 + $0x8] sm:$0xff] %v5422_v50 }
 0x5dc   : > { %4137 = vmatpush.msrb.mxu3 %v3481_v42  ;;  %v3615_v42 = vld [vmem:[%s10246_s7 + $0x6b0] sm:$0xff] }
 0x5de   : > { %4138 = vmatpush.msrb.mxu3 %v3479_v61  ;;  %v3645_v61 = vld [vmem:[%s10246_s7 + $0x7a0] sm:$0xff] }
 0x5e0   : > { %4139 = vmatpush.msrb.mxu3 %v3477_v39  ;;  %v3643_v39 = vld [vmem:[%s10246_s7 + $0x790] sm:$0xff] }
 0x5e2   : > { %4140 = vmatpush.msrb.mxu3 %v3475_v49  ;;  %v3543_v49 = vld [vmem:[%s10246_s7 + $0x470] sm:$0xff] }
 0x625   : > { %v3230_v25 = vpop.permute.xlu2 %3229 }
 0x634   : > { %v3228_v58 = vpop.permute.xlu0 %3227 }
 0x635   : > { %v3247_v18 = vmax.f32 %v7944_v62, %v3228_v58  ;;  %v3226_v1 = vpop.permute.xlu1 %3225 }
 0x636   : > { %v3237_v63 = vsel %vm2604_vm15, %v3226_v1, %v3228_v58  ;;  %v3585_v58 = vld [vmem:[%s10246_s7 + $0x5c0] sm:$0xff]  ;;  %v3551_v1 = vld [vmem:[%s10246_s7 + $0x4b0] sm:$0xff] }
 0x637   : > { %v3246_v62 = vmax.f32 %v7948_v28, %v3237_v63  ;;  %5152 = vmatmul.msk.f32.vlgmr.msra.gmra.mxu3 %vm3278_vm7, %v3247_v18  ;;  %v3413_v28 = vld [vmem:[%s10246_s7 + $0x60] sm:$0xff]  ;;  %v3647_v63 = vld [vmem:[%s10246_s7 + $0x7b0] sm:$0xff] }
 0x638   : > { %4099 = vmatpush.msra.mxu2 %v3413_v28  ;;  %v3649_v18 = vld [vmem:[%s10246_s7 + $0x7c0] sm:$0xff]  ;;  %v3547_v28 = vld [vmem:[%s10246_s7 + $0x490] sm:$0xff] }
 0x639   : > { %3308 = vmatmul.f32.vlgmr.msrb.gmra.mxu1 %v3246_v62  ;;  %v3549_v62 = vld [vmem:[%s10246_s7 + $0x4a0] sm:$0xff] }
 0x63a   : > { %4100 = vmatpush.msra.mxu2 %v3411_v2  ;;  %v3545_v2 = vld [vmem:[%s10246_s7 + $0x480] sm:$0xff] }
 0x63c   : > { %v3201_v30 = vpop.permute.xlu0 %3200  ;;  %4101 = vmatpush.msra.mxu2 %v3409_v16  ;;  %v3575_v16 = vld [vmem:[%s10246_s7 + $0x570] sm:$0xff] }
 0x63d   : > { %v3206_v24 = vsel %vm487_vm1, %v3201_v30, %v7967_v38  ;;  %v3232_v60 = vpop.permute.xlu1 %3231  ;;  %v3507_v38 = vld [vmem:[%s10246_s7 + $0x350] sm:$0xff]  ;;  %v3641_v30 = vld [vmem:[%s10246_s7 + $0x780] sm:$0xff]  ;;  %vm3344_vm1 = vcmask 400384  }
 0x63e   : > { %v8170_v29 = vmax.f32 %v7959_v53, %v3206_v24  ;;  %v3238_v43 = vsel %vm2604_vm15, %v3230_v25, %v3232_v60  ;;  %v3249_v47 = vmax.f32 %v7955_v52, %v3232_v60  ;;  %v3473_v53 = vld [vmem:[%s10246_s7 + $0x240] sm:$0xff]  ;;  %v3407_v52 = vld [vmem:[%s10246_s7 + $0x30] sm:$0xff]  ;;  %4160 = vmatpush.msra.mxu1 %v3507_v38 }
 0x63f   : > { %v3248_v7 = vmax.f32 %v7957_v55, %v3238_v43  ;;  %v3439_v55 = vld [vmem:[%s10246_s7 + $0x130] sm:$0xff]  ;;  %4141 = vmatpush.msrb.mxu3 %v3473_v53  ;;  %4102 = vmatpush.msra.mxu2 %v3407_v52  ;;  %v3541_v60 = vld [vmem:[%s10246_s7 + $0x460] sm:$0xff] }
 0x640   : > { %5153 = vmatmul.msk.f32.gmra.mxu3 %vm3278_vm7, %v3249_v47  ;;  %3233 = vrot.lane.b32.xlu1 %v8170_v29, %s10349_s12  ;;  %v3607_v25 = vld [vmem:[%s10246_s7 + $0x670] sm:$0xff]  ;;  %v3573_v43 = vld [vmem:[%s10246_s7 + $0x560] sm:$0xff]  ;;  %s5350_s12 = sshra.s32 %s4990_s0, 4  ;;  %s5351_s12 = int_to_ptr.hbm [resolvable:$true] %s5350_s12 }
 0x641   : > { %3311 = vmatmul.f32.gmra.mxu1 %v3248_v7  ;;  %4122 = vmatpush.msrb.mxu0 %v3439_v55  ;;  %v3639_v24 = vld [vmem:[%s10246_s7 + $0x770] sm:$0xff]  ;;  %v3605_v47 = vld [vmem:[%s10246_s7 + $0x660] sm:$0xff]  ;;  %s5352_s13 = scalar_lea.hbm %s5351_s12, 1  ;;  %p5357_p0 = scmp.lt.s32.totalorder %s5351_s12, %s10250_s11 }
 0x642   : > { %4161 = vmatpush.msra.mxu1 %v3505_v27  ;;  %4142 = vmatpush.msrb.mxu3 %v3471_v11  ;;  %v3539_v7 = vld [vmem:[%s10246_s7 + $0x450] sm:$0xff]  ;;  %v3537_v11 = vld [vmem:[%s10246_s7 + $0x440] sm:$0xff]  ;;  %p5353_p11 = scmp.ne.s32.totalorder %s5351_s12, %s5352_s13  ;;  %p5358_p1 = scmp.lt.s32.totalorder %s5356_s30, %s5352_s13 }
 0x643   : > { %4103 = vmatpush.msra.mxu2 %v3405_v14  ;;  %4123 = vmatpush.msrb.mxu0 %v3437_v32  ;;  %v3571_v38 = vld [vmem:[%s10246_s7 + $0x550] sm:$0xff]  ;;  %v3569_v14 = vld [vmem:[%s10246_s7 + $0x540] sm:$0xff] }
 0x644   : > { %v8211_v46 = vpop.permute.xlu0 %3235  ;;  %4162 = vmatpush.msra.mxu1 %v3503_v54  ;;  %4143 = vmatpush.msrb.mxu3 %v3469_v23  ;;  %v3603_v53 = vld [vmem:[%s10246_s7 + $0x650] sm:$0xff]  ;;  %v3601_v32 = vld [vmem:[%s10246_s7 + $0x640] sm:$0xff]  ;;  %p5354_p12 = pnand %p5353_p11, %p5521_p5  ;;  %p5359_p2 = por %p5358_p1, %p5357_p0 }
 0x645   : > { %v3251_v3 = vmax.f32 %v7970_v51, %v8211_v46  ;;  %4104 = vmatpush.msra.mxu2 %v3403_v20  ;;  %4124 = vmatpush.msrb.mxu0 %v3435_v8  ;;  %v3499_v51 = vld [vmem:[%s10246_s7 + $0x310] sm:$0xff]  ;;  %v3633_v23 = vld [vmem:[%s10246_s7 + $0x740] sm:$0xff] }
 0x646   : > { %4163 = vmatpush.msra.mxu1 %v3501_v9  ;;  %4144 = vmatpush.msrb.mxu3 %v3467_v6  ;;  %v3635_v55 = vld [vmem:[%s10246_s7 + $0x750] sm:$0xff]  ;;  %v3565_v9 = vld [vmem:[%s10246_s7 + $0x520] sm:$0xff]  ;;  %p5355_p13 = pneg %p5354_p12 }
 0x647   : > { %4105 = vmatpush.msra.mxu2 %v3401_v10  ;;  %4125 = vmatpush.msrb.mxu0 %v3433_v34  ;;  %v3567_v20 = vld [vmem:[%s10246_s7 + $0x530] sm:$0xff]  ;;  %v3597_v6 = vld [vmem:[%s10246_s7 + $0x620] sm:$0xff] }
 0x648   : > { %5154 = vmatmul.msk.f32.gmra.mxu3 %vm3278_vm7, %v3251_v3  ;;  %4164 = vmatpush.msra.mxu1 %v3499_v51  ;;  %v3631_v8 = vld [vmem:[%s10246_s7 + $0x730] sm:$0xff]  ;;  %v3533_v3 = vld [vmem:[%s10246_s7 + $0x420] sm:$0xff]  ;;  %p5360_p3 = pnand %p5359_p2, %p5355_p13 }
 0x649   : > { %4145 = vmatpush.msrb.mxu3 %v3465_v37  ;;  %4170 = vmatpush.msrb.mxu2 %v3559_v13  ;;  %v3629_v10 = vld [vmem:[%s10246_s7 + $0x720] sm:$0xff]  ;;  %v3531_v51 = vld [vmem:[%s10246_s7 + $0x410] sm:$0xff] }
 0x64a   : > { %4165 = vmatpush.msra.mxu1 %v3497_v5  ;;  %4190 = vmatpush.msra.mxu0 %v3591_v44  ;;  %v3563_v34 = vld [vmem:[%s10246_s7 + $0x510] sm:$0xff] }
 0x64b   : > { %4210 = vmatpush.msra.mxu3 %v3623_v12  ;;  %4171 = vmatpush.msrb.mxu2 %v3557_v33  ;;  %v3595_v37 = vld [vmem:[%s10246_s7 + $0x610] sm:$0xff]  ;;  %v3561_v33 = vld [vmem:[%s10246_s7 + $0x500] sm:$0xff] }
 0x64c   : > { %4230 = vmatpush.msrb.mxu1 %v3655_v19  ;;  %4191 = vmatpush.msra.mxu0 %v3589_v31  ;;  %v3627_v44 = vld [vmem:[%s10246_s7 + $0x710] sm:$0xff]  ;;  %v3529_v19 = vld [vmem:[%s10246_s7 + $0x400] sm:$0xff] }
 0x64d   : > { %4211 = vmatpush.msra.mxu3 %v3621_v48  ;;  %4172 = vmatpush.msrb.mxu2 %v3555_v57  ;;  %v3593_v31 = vld [vmem:[%s10246_s7 + $0x600] sm:$0xff]  ;;  %v3524_v57 = vld [vmem:[%s10246_s7 + $0x3d8] sm:$0xff] }
 0x64e   : > { %4231 = vmatpush.msrb.mxu1 %v3653_v15  ;;  %4192 = vmatpush.msra.mxu0 %v3587_v26  ;;  %v3625_v48 = vld [vmem:[%s10246_s7 + $0x700] sm:$0xff]  ;;  %v3351_v15 = vlaneseq }
 0x64f   : > { %4212 = vmatpush.msra.mxu3 %v3619_v56  ;;  %4173 = vmatpush.msrb.mxu2 %v3553_v22 }
 0x650   : > { %4232 = vmatpush.msrb.mxu1 %v3651_v21  ;;  %4193 = vmatpush.msra.mxu0 %v3585_v58  ;;  %vm8442_vm8 = vcmp.lt.s32.totalorder %v3351_v15, 49  ;;  %vm3353_vm9 = vcmp.lt.s32.totalorder %v3351_v15, 512  ;;  %v3963_v15 = vld [vmem:[%s10246_s7 + $0x1190] sm:$0xff] }
 0x651   : > { %4213 = vmatpush.msra.mxu3 %v3617_v4  ;;  %4174 = vmatpush.msrb.mxu2 %v3551_v1  ;;  %3355 = vst.msk [vmem:[#allocation6 + $0x10] sm:$0xf] %vm3353_vm9, %v5422_v50  ;;  %v4027_v50 = vld [vmem:[%s10246_s7 + $0x1390] sm:$0xff] }
 0x652   : > { %4233 = vmatpush.msrb.mxu1 %v3649_v18  ;;  %4194 = vmatpush.msra.mxu0 %v3583_v35 }
 0x653   : > { %4214 = vmatpush.msra.mxu3 %v3615_v42  ;;  %4175 = vmatpush.msrb.mxu2 %v3549_v62 }
 0x654   : > { %4234 = vmatpush.msrb.mxu1 %v3647_v63  ;;  %4195 = vmatpush.msra.mxu0 %v3581_v45 }
 0x655   : > { %4215 = vmatpush.msra.mxu3 %v3613_v17  ;;  %4176 = vmatpush.msrb.mxu2 %v3547_v28 }
 0x656   : > { %4235 = vmatpush.msrb.mxu1 %v3645_v61  ;;  %4196 = vmatpush.msra.mxu0 %v3579_v59 }
 0x657   : > { %4216 = vmatpush.msra.mxu3 %v3611_v40  ;;  %4177 = vmatpush.msrb.mxu2 %v3545_v2  ;;  %v3687_v40 = vld [vmem:[%s10246_s7 + $0x8f0] sm:$0xff] }
 0x658   : > { %4236 = vmatpush.msrb.mxu1 %v3643_v39  ;;  %4197 = vmatpush.msra.mxu0 %v3577_v41  ;;  %v3719_v39 = vld [vmem:[%s10246_s7 + $0x9f0] sm:$0xff] }
 0x659   : > { %4217 = vmatpush.msra.mxu3 %v3609_v0  ;;  %4178 = vmatpush.msrb.mxu2 %v3543_v49 }
 0x65a   : > { %4237 = vmatpush.msrb.mxu1 %v3641_v30  ;;  %4198 = vmatpush.msra.mxu0 %v3575_v16 }
 0x65b   : > { %4218 = vmatpush.msra.mxu3 %v3607_v25  ;;  %4179 = vmatpush.msrb.mxu2 %v3541_v60  ;;  %v3783_v60 = vld [vmem:[%s10246_s7 + $0xbf0] sm:$0xff] }
 0x65c   : > { %4238 = vmatpush.msrb.mxu1 %v3639_v24  ;;  %4199 = vmatpush.msra.mxu0 %v3573_v43  ;;  %v3751_v24 = vld [vmem:[%s10246_s7 + $0xaf0] sm:$0xff]  ;;  %v3685_v43 = vld [vmem:[%s10246_s7 + $0x8e0] sm:$0xff] }
 0x65d   : > { %4219 = vmatpush.msra.mxu3 %v3605_v47  ;;  %4180 = vmatpush.msrb.mxu2 %v3539_v7  ;;  %v3717_v47 = vld [vmem:[%s10246_s7 + $0x9e0] sm:$0xff] }
 0x65e   : > { %4239 = vmatpush.msrb.mxu1 %v3637_v36  ;;  %4200 = vmatpush.msra.mxu0 %v3571_v38  ;;  %v3749_v36 = vld [vmem:[%s10246_s7 + $0xae0] sm:$0xff]  ;;  %v3683_v38 = vld [vmem:[%s10246_s7 + $0x8d0] sm:$0xff] }
 0x65f   : > { %4220 = vmatpush.msra.mxu3 %v3603_v53  ;;  %4181 = vmatpush.msrb.mxu2 %v3537_v11  ;;  %v3781_v7 = vld [vmem:[%s10246_s7 + $0xbe0] sm:$0xff]  ;;  %v3715_v53 = vld [vmem:[%s10246_s7 + $0x9d0] sm:$0xff] }
 0x660   : > { %4240 = vmatpush.msrb.mxu1 %v3635_v55  ;;  %4201 = vmatpush.msra.mxu0 %v3569_v14  ;;  %v3779_v55 = vld [vmem:[%s10246_s7 + $0xbd0] sm:$0xff]  ;;  %v3713_v11 = vld [vmem:[%s10246_s7 + $0x9c0] sm:$0xff] }
 0x661   : > { %4221 = vmatpush.msra.mxu3 %v3601_v32  ;;  %v3745_v14 = vld [vmem:[%s10246_s7 + $0xac0] sm:$0xff] }
 0x662   : > { %4241 = vmatpush.msrb.mxu1 %v3633_v23  ;;  %4202 = vmatpush.msra.mxu0 %v3567_v20  ;;  %v3777_v32 = vld [vmem:[%s10246_s7 + $0xbc0] sm:$0xff] }
 0x664   : > { %4242 = vmatpush.msrb.mxu1 %v3631_v8  ;;  %4203 = vmatpush.msra.mxu0 %v3565_v9  ;;  %v3711_v8 = vld [vmem:[%s10246_s7 + $0x9b0] sm:$0xff] }
 0x665   : > { %v3775_v9 = vld [vmem:[%s10246_s7 + $0xbb0] sm:$0xff] }
 0x666   : > { %4243 = vmatpush.msrb.mxu1 %v3629_v10  ;;  %4204 = vmatpush.msra.mxu0 %v3563_v34  ;;  %v3709_v10 = vld [vmem:[%s10246_s7 + $0x9a0] sm:$0xff] }
 0x667   : > { %v3773_v34 = vld [vmem:[%s10246_s7 + $0xba0] sm:$0xff] }
 0x668   : > { %4244 = vmatpush.msrb.mxu1 %v3627_v44  ;;  %4205 = vmatpush.msra.mxu0 %v3561_v33  ;;  %v3771_v44 = vld [vmem:[%s10246_s7 + $0xb90] sm:$0xff]  ;;  %v3737_v33 = vld [vmem:[%s10246_s7 + $0xa80] sm:$0xff] }
 0x66a   : > { %4245 = vmatpush.msrb.mxu1 %v3625_v48  ;;  %v3671_v48 = vld [vmem:[%s10246_s7 + $0x870] sm:$0xff] }
 0x6b2   : > { %v3234_v52 = vpop.permute.xlu1 %3233 }
 0x6b3   : > { %v3239_v27 = vsel %vm2604_vm15, %v3234_v52, %v8211_v46  ;;  %v3535_v46 = vld [vmem:[%s10246_s7 + $0x430] sm:$0xff] }
 0x6b4   : > { %v3250_v54 = vmax.f32 %v8170_v29, %v3239_v27  ;;  %v3599_v29 = vld [vmem:[%s10246_s7 + $0x630] sm:$0xff]  ;;  %4182 = vmatpush.msrb.mxu2 %v3535_v46  ;;  %v3681_v27 = vld [vmem:[%s10246_s7 + $0x8c0] sm:$0xff] }
 0x6b5   : > { %4222 = vmatpush.msra.mxu3 %v3599_v29  ;;  %v3747_v52 = vld [vmem:[%s10246_s7 + $0xad0] sm:$0xff] }
 0x6b6   : > { %3314 = vmatmul.f32.gmra.mxu1 %v3250_v54  ;;  %4183 = vmatpush.msrb.mxu2 %v3533_v3  ;;  %v3309_v13 = vpop.f32.mrf.mxu1  ;;  %v3679_v29 = vld [vmem:[%s10246_s7 + $0x8b0] sm:$0xff] }
 0x6b7   : > { %4223 = vmatpush.msra.mxu3 %v3597_v6  ;;  %v3743_v3 = vld [vmem:[%s10246_s7 + $0xab0] sm:$0xff]  ;;  %v3677_v6 = vld [vmem:[%s10246_s7 + $0x8a0] sm:$0xff] }
 0x6b8   : > { %4184 = vmatpush.msrb.mxu2 %v3531_v51  ;;  %v3741_v51 = vld [vmem:[%s10246_s7 + $0xaa0] sm:$0xff] }
 0x6b9   : > { %4224 = vmatpush.msra.mxu3 %v3595_v37  ;;  %v3675_v37 = vld [vmem:[%s10246_s7 + $0x890] sm:$0xff] }
 0x6ba   : > { %v3335_v5 = vpop.f32.mrf.mxu3  ;;  %4185 = vmatpush.msrb.mxu2 %v3529_v19  ;;  %v3705_v19 = vld [vmem:[%s10246_s7 + $0x980] sm:$0xff] }
 0x6bb   : > { %v3336_v12 = vadd.f32 %v3335_v5, %v3309_v13  ;;  %4225 = vmatpush.msra.mxu3 %v3593_v31  ;;  %v3707_v13 = vld [vmem:[%s10246_s7 + $0x990] sm:$0xff]  ;;  %v3769_v31 = vld [vmem:[%s10246_s7 + $0xb80] sm:$0xff] }
 0x6bc   : > { %v3739_v5 = vld [vmem:[%s10246_s7 + $0xa90] sm:$0xff] }
 0x6bd   : > { %3345 = vst.msk [vmem:[#allocation5] sm:$0xff] %vm3344_vm1, %v3336_v12  ;;  %v3673_v12 = vld [vmem:[%s10246_s7 + $0x880] sm:$0xff] }
 0x6be   : > { %v3312_v35 = vpop.f32.mrf.mxu1 }
 0x6c3   : > { %v3338_v4 = vpop.f32.mrf.mxu3 }
 0x6c4   : > { %v3356_v26 = vld [vmem:[#allocation5] sm:$0x1]  ;;  %v3360_v56 = vld [vmem:[#allocation5 + $0x1] sm:$0x1]  ;;  %v3362_v21 = vld [vmem:[#allocation5 + $0x2] sm:$0x1]  ;;  %v3339_v63 = vadd.f32 %v3338_v4, %v3312_v35 }
 0x6c5   : > { %3359 = vst.msk [vmem:[#allocation6] sm:$0x1] %vm8442_vm8, %v3356_v26  ;;  %v3364_v22 = vld [vmem:[#allocation5 + $0x3] sm:$0x1]  ;;  %v3366_v58 = vld [vmem:[#allocation5 + $0x4] sm:$0x1] }
 0x6c6   : > { %3361 = vst.msk [vmem:[#allocation6 + $0x1] sm:$0x1] %vm8442_vm8, %v3360_v56  ;;  %v3368_v18 = vld [vmem:[#allocation5 + $0x5] sm:$0x1]  ;;  %v3370_v1 = vld [vmem:[#allocation5 + $0x6] sm:$0x1] }
 0x6c7   : > { %3363 = vst.msk [vmem:[#allocation6 + $0x2] sm:$0x1] %vm8442_vm8, %v3362_v21  ;;  %v3372_v42 = vld [vmem:[#allocation5 + $0x7] sm:$0x1]  ;;  %v3733_v4 = vld [vmem:[%s10246_s7 + $0xa60] sm:$0xff] }
 0x6c8   : > { %3365 = vst.msk [vmem:[#allocation6 + $0x3] sm:$0x1] %vm8442_vm8, %v3364_v22  ;;  %v3703_v26 = vld [vmem:[%s10246_s7 + $0x970] sm:$0xff]  ;;  %v3669_v22 = vld [vmem:[%s10246_s7 + $0x860] sm:$0xff] }
 0x6c9   : > { %3367 = vst.msk [vmem:[#allocation6 + $0x4] sm:$0x1] %vm8442_vm8, %v3366_v58  ;;  %v3735_v56 = vld [vmem:[%s10246_s7 + $0xa70] sm:$0xff]  ;;  %v3701_v58 = vld [vmem:[%s10246_s7 + $0x960] sm:$0xff] }
 0x6ca   : > { %3369 = vst.msk [vmem:[#allocation6 + $0x5] sm:$0x1] %vm8442_vm8, %v3368_v18  ;;  %v3767_v21 = vld [vmem:[%s10246_s7 + $0xb70] sm:$0xff]  ;;  %v3765_v18 = vld [vmem:[%s10246_s7 + $0xb60] sm:$0xff] }
 0x6cb   : > { %3371 = vst.msk [vmem:[#allocation6 + $0x6] sm:$0x1] %vm8442_vm8, %v3370_v1  ;;  %v3667_v1 = vld [vmem:[%s10246_s7 + $0x850] sm:$0xff] }
 0x6cc   : > { %3373 = vst.msk [vmem:[#allocation6 + $0x7] sm:$0x1] %vm8442_vm8, %v3372_v42  ;;  %v3699_v35 = vld [vmem:[%s10246_s7 + $0x950] sm:$0xff] }
 0x6cd   : > { %3346 = vst.msk [vmem:[#allocation5 + $0x8] sm:$0xff] %vm3344_vm1, %v3339_v63  ;;  %v3731_v42 = vld [vmem:[%s10246_s7 + $0xa50] sm:$0xff] }
 0x6ce   : > { %v3763_v63 = vld [vmem:[%s10246_s7 + $0xb50] sm:$0xff] }
 0x6d3   : > { %v8463_v62 = vld [vmem:[#allocation6] sm:$0xff] }
 0x6d4   : > { %v3374_v45 = vld [vmem:[#allocation5 + $0x8] sm:$0x1]  ;;  %v3376_v17 = vld [vmem:[#allocation5 + $0x9] sm:$0x1]  ;;  %v3378_v61 = vld [vmem:[#allocation5 + $0xa] sm:$0x1] }
 0x6d5   : > { %3375 = vst.msk [vmem:[#allocation6 + $0x8] sm:$0x1] %vm8442_vm8, %v3374_v45  ;;  %v3380_v28 = vld [vmem:[#allocation5 + $0xb] sm:$0x1]  ;;  %v3382_v59 = vld [vmem:[#allocation5 + $0xc] sm:$0x1] }
 0x6d6   : > { %3377 = vst.msk [vmem:[#allocation6 + $0x9] sm:$0x1] %vm8442_vm8, %v3376_v17  ;;  %v3384_v2 = vld [vmem:[#allocation5 + $0xd] sm:$0x1]  ;;  %v4045_v41 = vperm.slane %v8463_v62, 0  ;;  %v4046_v0 = vperm.slane %v8463_v62, 1 }
 0x6d7   : > { %3379 = vst.msk [vmem:[#allocation6 + $0xa] sm:$0x1] %vm8442_vm8, %v3378_v61  ;;  %v3386_v30 = vld [vmem:[#allocation5 + $0xe] sm:$0x1]  ;;  %v4047_v49 = vperm.slane %v8463_v62, 2  ;;  %v4048_v16 = vperm.slane %v8463_v62, 3 }
 0x6d8   : > { %3381 = vst.msk [vmem:[#allocation6 + $0xb] sm:$0x1] %vm8442_vm8, %v3380_v28  ;;  %v3388_v25 = vld [vmem:[#allocation5 + $0xf] sm:$0x1]  ;;  %4106 = vmatmul.f32.vlgmr.msra.gmra.mxu2 %v4045_v41  ;;  %4126 = vmatmul.f32.vlgmr.msrb.gmra.mxu0 %v4046_v0  ;;  %v4049_v54 = vperm.slane %v8463_v62, 4  ;;  %v4050_v23 = vperm.slane %v8463_v62, 5 }
 0x6d9   : > { %3383 = vst.msk [vmem:[#allocation6 + $0xc] sm:$0x1] %vm8442_vm8, %v3382_v59  ;;  %4146 = vmatmul.f32.vlgmr.msrb.gmra.mxu3 %v4047_v49  ;;  %4166 = vmatmul.f32.vlgmr.msra.gmra.mxu1 %v4048_v16  ;;  %v4051_v46 = vperm.slane %v8463_v62, 6  ;;  %v4052_v20 = vperm.slane %v8463_v62, 7  ;;  %v3665_v45 = vld [vmem:[%s10246_s7 + $0x840] sm:$0xff]  ;;  %v3663_v59 = vld [vmem:[%s10246_s7 + $0x830] sm:$0xff] }
 0x6da   : > { %3385 = vst.msk [vmem:[#allocation6 + $0xd] sm:$0x1] %vm8442_vm8, %v3384_v2  ;;  %4250 = vmatpush.msra.mxu2 %v3687_v40  ;;  %4270 = vmatpush.msrb.mxu0 %v3719_v39  ;;  %v3697_v17 = vld [vmem:[%s10246_s7 + $0x940] sm:$0xff]  ;;  %v3695_v40 = vld [vmem:[%s10246_s7 + $0x930] sm:$0xff]  ;;  %v3684_v62 = vld [vmem:[%s10246_s7 + $0x8d8] sm:$0xff] }
 0x6db   : > { %3387 = vst.msk [vmem:[#allocation6 + $0xe] sm:$0x1] %vm8442_vm8, %v3386_v30  ;;  %4290 = vmatpush.msrb.mxu3 %v3751_v24  ;;  %4310 = vmatpush.msra.mxu1 %v3783_v60  ;;  %v3729_v61 = vld [vmem:[%s10246_s7 + $0xa40] sm:$0xff]  ;;  %v3727_v39 = vld [vmem:[%s10246_s7 + $0xa30] sm:$0xff] }
 0x6dc   : > { %3389 = vst.msk [vmem:[#allocation6 + $0xf] sm:$0x1] %vm8442_vm8, %v3388_v25  ;;  %4251 = vmatpush.msra.mxu2 %v3685_v43  ;;  %4271 = vmatpush.msrb.mxu0 %v3717_v47  ;;  %v3761_v28 = vld [vmem:[%s10246_s7 + $0xb40] sm:$0xff]  ;;  %v3759_v2 = vld [vmem:[%s10246_s7 + $0xb30] sm:$0xff] }
 0x6dd   : > { %4291 = vmatpush.msrb.mxu3 %v3749_v36  ;;  %4311 = vmatpush.msra.mxu1 %v3781_v7  ;;  %v3661_v30 = vld [vmem:[%s10246_s7 + $0x820] sm:$0xff]  ;;  %v3659_v43 = vld [vmem:[%s10246_s7 + $0x810] sm:$0xff] }
 0x6de   : > { %4252 = vmatpush.msra.mxu2 %v3683_v38  ;;  %4272 = vmatpush.msrb.mxu0 %v3715_v53  ;;  %v3693_v25 = vld [vmem:[%s10246_s7 + $0x920] sm:$0xff]  ;;  %v3691_v47 = vld [vmem:[%s10246_s7 + $0x910] sm:$0xff] }
 0x6df   : > { %4292 = vmatpush.msrb.mxu3 %v3747_v52  ;;  %4312 = vmatpush.msra.mxu1 %v3779_v55  ;;  %v3725_v24 = vld [vmem:[%s10246_s7 + $0xa20] sm:$0xff]  ;;  %v3723_v36 = vld [vmem:[%s10246_s7 + $0xa10] sm:$0xff] }
 0x6e0   : > { %4253 = vmatpush.msra.mxu2 %v3681_v27  ;;  %4273 = vmatpush.msrb.mxu0 %v3713_v11  ;;  %v3757_v60 = vld [vmem:[%s10246_s7 + $0xb20] sm:$0xff]  ;;  %v3755_v7 = vld [vmem:[%s10246_s7 + $0xb10] sm:$0xff] }
 0x6e1   : > { %4293 = vmatpush.msrb.mxu3 %v3745_v14  ;;  %4313 = vmatpush.msra.mxu1 %v3777_v32  ;;  %v3657_v38 = vld [vmem:[%s10246_s7 + $0x800] sm:$0xff] }
 0x6e2   : > { %4186 = vmatmul.f32.vlgmr.msrb.gmra.mxu2 %v4049_v54  ;;  %4206 = vmatmul.f32.vlgmr.msra.gmra.mxu0 %v4050_v23  ;;  %v3689_v53 = vld [vmem:[%s10246_s7 + $0x900] sm:$0xff] }
 0x6e3   : > { %4226 = vmatmul.f32.vlgmr.msra.gmra.mxu3 %v4051_v46  ;;  %4246 = vmatmul.f32.vlgmr.msrb.gmra.mxu1 %v4052_v20  ;;  %v8691_v52 = vld [vmem:[#allocation6 + $0x8] sm:$0xff]  ;;  %v3721_v55 = vld [vmem:[%s10246_s7 + $0xa00] sm:$0xff] }
 0x6e4   : > { %4254 = vmatpush.msra.mxu2 %v3679_v29  ;;  %4274 = vmatpush.msrb.mxu0 %v3711_v8  ;;  %v3753_v27 = vld [vmem:[%s10246_s7 + $0xb00] sm:$0xff]  ;;  %v4053_v11 = vperm.slane %v8691_v52, 0  ;;  %v4054_v14 = vperm.slane %v8691_v52, 1  ;;  %v4055_v32 = vperm.slane %v8691_v52, 2  ;;  %v4056_v29 = vperm.slane %v8691_v52, 3  ;;  %v3815_v8 = vld [vmem:[%s10246_s7 + $0xcf0] sm:$0xff] }
 0x6e5   : > { %4294 = vmatpush.msrb.mxu3 %v3743_v3  ;;  %4314 = vmatpush.msra.mxu1 %v3775_v9  ;;  %v3847_v3 = vld [vmem:[%s10246_s7 + $0xdf0] sm:$0xff] }
 0x6e6   : > { %4255 = vmatpush.msra.mxu2 %v3677_v6  ;;  %4275 = vmatpush.msrb.mxu0 %v3709_v10  ;;  %v3879_v9 = vld [vmem:[%s10246_s7 + $0xef0] sm:$0xff]  ;;  %v3813_v10 = vld [vmem:[%s10246_s7 + $0xce0] sm:$0xff] }
 0x6e7   : > { %4295 = vmatpush.msrb.mxu3 %v3741_v51  ;;  %4315 = vmatpush.msra.mxu1 %v3773_v34  ;;  %v3911_v6 = vld [vmem:[%s10246_s7 + $0xff0] sm:$0xff]  ;;  %v3845_v51 = vld [vmem:[%s10246_s7 + $0xde0] sm:$0xff] }
 0x6e8   : > { %4256 = vmatpush.msra.mxu2 %v3675_v37  ;;  %4276 = vmatpush.msrb.mxu0 %v3707_v13  ;;  %v3877_v34 = vld [vmem:[%s10246_s7 + $0xee0] sm:$0xff]  ;;  %v3811_v13 = vld [vmem:[%s10246_s7 + $0xcd0] sm:$0xff] }
 0x6e9   : > { %4296 = vmatpush.msrb.mxu3 %v3739_v5  ;;  %4316 = vmatpush.msra.mxu1 %v3771_v44  ;;  %v3909_v37 = vld [vmem:[%s10246_s7 + $0xfe0] sm:$0xff]  ;;  %v3843_v5 = vld [vmem:[%s10246_s7 + $0xdd0] sm:$0xff] }
 0x6ea   : > { %4257 = vmatpush.msra.mxu2 %v3673_v12  ;;  %4277 = vmatpush.msrb.mxu0 %v3705_v19  ;;  %v3875_v44 = vld [vmem:[%s10246_s7 + $0xed0] sm:$0xff]  ;;  %v3809_v19 = vld [vmem:[%s10246_s7 + $0xcc0] sm:$0xff] }
 0x6eb   : > { %4297 = vmatpush.msrb.mxu3 %v3737_v33  ;;  %4317 = vmatpush.msra.mxu1 %v3769_v31  ;;  %v3907_v12 = vld [vmem:[%s10246_s7 + $0xfd0] sm:$0xff]  ;;  %v3841_v33 = vld [vmem:[%s10246_s7 + $0xdc0] sm:$0xff] }
 0x6ec   : > { %4258 = vmatpush.msra.mxu2 %v3671_v48  ;;  %4278 = vmatpush.msrb.mxu0 %v3703_v26  ;;  %v3873_v31 = vld [vmem:[%s10246_s7 + $0xec0] sm:$0xff]  ;;  %v3807_v26 = vld [vmem:[%s10246_s7 + $0xcb0] sm:$0xff] }
 0x6ed   : > { %4298 = vmatpush.msrb.mxu3 %v3735_v56  ;;  %4318 = vmatpush.msra.mxu1 %v3767_v21  ;;  %v3905_v48 = vld [vmem:[%s10246_s7 + $0xfc0] sm:$0xff]  ;;  %v3839_v56 = vld [vmem:[%s10246_s7 + $0xdb0] sm:$0xff] }
 0x6ee   : > { %4259 = vmatpush.msra.mxu2 %v3669_v22  ;;  %4279 = vmatpush.msrb.mxu0 %v3701_v58  ;;  %v3871_v21 = vld [vmem:[%s10246_s7 + $0xeb0] sm:$0xff]  ;;  %v3805_v58 = vld [vmem:[%s10246_s7 + $0xca0] sm:$0xff] }
 0x6ef   : > { %4299 = vmatpush.msrb.mxu3 %v3733_v4  ;;  %4319 = vmatpush.msra.mxu1 %v3765_v18  ;;  %v3903_v22 = vld [vmem:[%s10246_s7 + $0xfb0] sm:$0xff]  ;;  %v3837_v4 = vld [vmem:[%s10246_s7 + $0xda0] sm:$0xff] }
 0x6f0   : > { %4260 = vmatpush.msra.mxu2 %v3667_v1  ;;  %4280 = vmatpush.msrb.mxu0 %v3699_v35  ;;  %v3869_v18 = vld [vmem:[%s10246_s7 + $0xea0] sm:$0xff]  ;;  %v3803_v35 = vld [vmem:[%s10246_s7 + $0xc90] sm:$0xff] }
 0x6f1   : > { %4300 = vmatpush.msrb.mxu3 %v3731_v42  ;;  %4320 = vmatpush.msra.mxu1 %v3763_v63  ;;  %v3901_v1 = vld [vmem:[%s10246_s7 + $0xfa0] sm:$0xff]  ;;  %v3835_v42 = vld [vmem:[%s10246_s7 + $0xd90] sm:$0xff] }
 0x6f2   : > { %4261 = vmatpush.msra.mxu2 %v3665_v45  ;;  %4281 = vmatpush.msrb.mxu0 %v3697_v17  ;;  %v3867_v63 = vld [vmem:[%s10246_s7 + $0xe90] sm:$0xff]  ;;  %v3801_v17 = vld [vmem:[%s10246_s7 + $0xc80] sm:$0xff] }
 0x6f3   : > { %4301 = vmatpush.msrb.mxu3 %v3729_v61  ;;  %4321 = vmatpush.msra.mxu1 %v3761_v28  ;;  %v3899_v45 = vld [vmem:[%s10246_s7 + $0xf90] sm:$0xff]  ;;  %v3833_v61 = vld [vmem:[%s10246_s7 + $0xd80] sm:$0xff] }
 0x6f4   : > { %4262 = vmatpush.msra.mxu2 %v3663_v59  ;;  %4282 = vmatpush.msrb.mxu0 %v3695_v40  ;;  %v3865_v28 = vld [vmem:[%s10246_s7 + $0xe80] sm:$0xff]  ;;  %v3799_v40 = vld [vmem:[%s10246_s7 + $0xc70] sm:$0xff] }
 0x6f5   : > { %4302 = vmatpush.msrb.mxu3 %v3727_v39  ;;  %4322 = vmatpush.msra.mxu1 %v3759_v2  ;;  %v3897_v59 = vld [vmem:[%s10246_s7 + $0xf80] sm:$0xff]  ;;  %v3831_v39 = vld [vmem:[%s10246_s7 + $0xd70] sm:$0xff] }
 0x6f6   : > { %4263 = vmatpush.msra.mxu2 %v3661_v30  ;;  %4283 = vmatpush.msrb.mxu0 %v3693_v25  ;;  %v3863_v2 = vld [vmem:[%s10246_s7 + $0xe70] sm:$0xff]  ;;  %v3797_v25 = vld [vmem:[%s10246_s7 + $0xc60] sm:$0xff] }
 0x6f7   : > { %4303 = vmatpush.msrb.mxu3 %v3725_v24  ;;  %4323 = vmatpush.msra.mxu1 %v3757_v60  ;;  %v3895_v30 = vld [vmem:[%s10246_s7 + $0xf70] sm:$0xff]  ;;  %v3829_v24 = vld [vmem:[%s10246_s7 + $0xd60] sm:$0xff] }
 0x6f8   : > { %4264 = vmatpush.msra.mxu2 %v3659_v43  ;;  %4284 = vmatpush.msrb.mxu0 %v3691_v47  ;;  %v3861_v60 = vld [vmem:[%s10246_s7 + $0xe60] sm:$0xff]  ;;  %v3795_v47 = vld [vmem:[%s10246_s7 + $0xc50] sm:$0xff] }
 0x6f9   : > { %4304 = vmatpush.msrb.mxu3 %v3723_v36  ;;  %4324 = vmatpush.msra.mxu1 %v3755_v7  ;;  %v3893_v43 = vld [vmem:[%s10246_s7 + $0xf60] sm:$0xff]  ;;  %v3827_v36 = vld [vmem:[%s10246_s7 + $0xd50] sm:$0xff] }
 0x6fa   : > { %4265 = vmatpush.msra.mxu2 %v3657_v38  ;;  %4285 = vmatpush.msrb.mxu0 %v3689_v53  ;;  %v3859_v7 = vld [vmem:[%s10246_s7 + $0xe50] sm:$0xff]  ;;  %v3793_v53 = vld [vmem:[%s10246_s7 + $0xc40] sm:$0xff] }
 0x6fb   : > { %4305 = vmatpush.msrb.mxu3 %v3721_v55  ;;  %4325 = vmatpush.msra.mxu1 %v3753_v27  ;;  %v3891_v38 = vld [vmem:[%s10246_s7 + $0xf50] sm:$0xff]  ;;  %v3825_v55 = vld [vmem:[%s10246_s7 + $0xd40] sm:$0xff] }
 0x6fc   : > { %4266 = vmatmul.f32.vlgmr.msra.gmra.mxu2 %v4053_v11  ;;  %4286 = vmatmul.f32.vlgmr.msrb.gmra.mxu0 %v4054_v14  ;;  %v3857_v27 = vld [vmem:[%s10246_s7 + $0xe40] sm:$0xff] }
 0x6fd   : > { %4306 = vmatmul.f32.vlgmr.msrb.gmra.mxu3 %v4055_v32  ;;  %4326 = vmatmul.f32.vlgmr.msra.gmra.mxu1 %v4056_v29 }
 0x6fe   : > { %4330 = vmatpush.msrb.mxu2 %v3815_v8  ;;  %4350 = vmatpush.msra.mxu0 %v3847_v3  ;;  %v3889_v8 = vld [vmem:[%s10246_s7 + $0xf40] sm:$0xff]  ;;  %v3791_v3 = vld [vmem:[%s10246_s7 + $0xc30] sm:$0xff] }
 0x6ff   : > { %4370 = vmatpush.msra.mxu3 %v3879_v9  ;;  %4390 = vmatpush.msrb.mxu1 %v3911_v6  ;;  %v3823_v9 = vld [vmem:[%s10246_s7 + $0xd30] sm:$0xff] }
 0x700   : > { %4331 = vmatpush.msrb.mxu2 %v3813_v10  ;;  %4351 = vmatpush.msra.mxu0 %v3845_v51  ;;  %v3855_v6 = vld [vmem:[%s10246_s7 + $0xe30] sm:$0xff]  ;;  %v3789_v51 = vld [vmem:[%s10246_s7 + $0xc20] sm:$0xff] }
 0x701   : > { %4371 = vmatpush.msra.mxu3 %v3877_v34  ;;  %4391 = vmatpush.msrb.mxu1 %v3909_v37  ;;  %v3887_v10 = vld [vmem:[%s10246_s7 + $0xf30] sm:$0xff]  ;;  %v3821_v34 = vld [vmem:[%s10246_s7 + $0xd20] sm:$0xff] }
 0x702   : > { %4332 = vmatpush.msrb.mxu2 %v3811_v13  ;;  %4352 = vmatpush.msra.mxu0 %v3843_v5  ;;  %v3853_v37 = vld [vmem:[%s10246_s7 + $0xe20] sm:$0xff]  ;;  %v3787_v5 = vld [vmem:[%s10246_s7 + $0xc10] sm:$0xff] }
 0x703   : > { %4372 = vmatpush.msra.mxu3 %v3875_v44  ;;  %4392 = vmatpush.msrb.mxu1 %v3907_v12  ;;  %v3885_v13 = vld [vmem:[%s10246_s7 + $0xf20] sm:$0xff]  ;;  %v3819_v44 = vld [vmem:[%s10246_s7 + $0xd10] sm:$0xff] }
 0x704   : > { %4333 = vmatpush.msrb.mxu2 %v3809_v19  ;;  %4353 = vmatpush.msra.mxu0 %v3841_v33  ;;  %v3851_v12 = vld [vmem:[%s10246_s7 + $0xe10] sm:$0xff]  ;;  %v3785_v33 = vld [vmem:[%s10246_s7 + $0xc00] sm:$0xff] }
 0x705   : > { %4373 = vmatpush.msra.mxu3 %v3873_v31  ;;  %4393 = vmatpush.msrb.mxu1 %v3905_v48  ;;  %v3883_v19 = vld [vmem:[%s10246_s7 + $0xf10] sm:$0xff]  ;;  %v3817_v31 = vld [vmem:[%s10246_s7 + $0xd00] sm:$0xff] }
 0x706   : > { %4334 = vmatpush.msrb.mxu2 %v3807_v26  ;;  %4354 = vmatpush.msra.mxu0 %v3839_v56  ;;  %v3849_v48 = vld [vmem:[%s10246_s7 + $0xe00] sm:$0xff]  ;;  %v4057_v56 = vperm.slane %v8691_v52, 4 }
 0x707   : > { %4374 = vmatpush.msra.mxu3 %v3871_v21  ;;  %4394 = vmatpush.msrb.mxu1 %v3903_v22  ;;  %v3881_v26 = vld [vmem:[%s10246_s7 + $0xf00] sm:$0xff]  ;;  %v4058_v21 = vperm.slane %v8691_v52, 5  ;;  %v4059_v22 = vperm.slane %v8691_v52, 6 }
 0x708   : > { %4335 = vmatpush.msrb.mxu2 %v3805_v58  ;;  %4355 = vmatpush.msra.mxu0 %v3837_v4  ;;  %v4060_v58 = vperm.slane %v8691_v52, 7  ;;  %v3943_v4 = vld [vmem:[%s10246_s7 + $0x10f0] sm:$0xff]  ;;  %v4038_v52 = vld [vmem:[%s10246_s7 + $0x13e8] sm:$0xff] }
 0x709   : > { %4375 = vmatpush.msra.mxu3 %v3869_v18  ;;  %4395 = vmatpush.msrb.mxu1 %v3901_v1  ;;  %v3975_v18 = vld [vmem:[%s10246_s7 + $0x11f0] sm:$0xff] }
 0x70a   : > { %4336 = vmatpush.msrb.mxu2 %v3803_v35  ;;  %4356 = vmatpush.msra.mxu0 %v3835_v42  ;;  %v4007_v1 = vld [vmem:[%s10246_s7 + $0x12f0] sm:$0xff]  ;;  %v3941_v42 = vld [vmem:[%s10246_s7 + $0x10e0] sm:$0xff] }
 0x70b   : > { %4376 = vmatpush.msra.mxu3 %v3867_v63  ;;  %4396 = vmatpush.msrb.mxu1 %v3899_v45  ;;  %v4039_v35 = vld [vmem:[%s10246_s7 + $0x13f0] sm:$0xff]  ;;  %v3973_v63 = vld [vmem:[%s10246_s7 + $0x11e0] sm:$0xff] }
 0x70c   : > { %4337 = vmatpush.msrb.mxu2 %v3801_v17  ;;  %4357 = vmatpush.msra.mxu0 %v3833_v61  ;;  %v4005_v45 = vld [vmem:[%s10246_s7 + $0x12e0] sm:$0xff]  ;;  %v3939_v61 = vld [vmem:[%s10246_s7 + $0x10d0] sm:$0xff] }
 0x70d   : > { %4377 = vmatpush.msra.mxu3 %v3865_v28  ;;  %4397 = vmatpush.msrb.mxu1 %v3897_v59  ;;  %v4037_v17 = vld [vmem:[%s10246_s7 + $0x13e0] sm:$0xff]  ;;  %v3971_v28 = vld [vmem:[%s10246_s7 + $0x11d0] sm:$0xff] }
 0x70e   : > { %4338 = vmatpush.msrb.mxu2 %v3799_v40  ;;  %4358 = vmatpush.msra.mxu0 %v3831_v39  ;;  %v4003_v59 = vld [vmem:[%s10246_s7 + $0x12d0] sm:$0xff]  ;;  %v3937_v39 = vld [vmem:[%s10246_s7 + $0x10c0] sm:$0xff] }
 0x70f   : > { %4378 = vmatpush.msra.mxu3 %v3863_v2  ;;  %4398 = vmatpush.msrb.mxu1 %v3895_v30  ;;  %v4035_v40 = vld [vmem:[%s10246_s7 + $0x13d0] sm:$0xff]  ;;  %v3969_v2 = vld [vmem:[%s10246_s7 + $0x11c0] sm:$0xff] }
 0x710   : > { %4339 = vmatpush.msrb.mxu2 %v3797_v25  ;;  %4359 = vmatpush.msra.mxu0 %v3829_v24  ;;  %v4001_v30 = vld [vmem:[%s10246_s7 + $0x12c0] sm:$0xff]  ;;  %v3935_v24 = vld [vmem:[%s10246_s7 + $0x10b0] sm:$0xff] }
 0x711   : > { %4379 = vmatpush.msra.mxu3 %v3861_v60  ;;  %4399 = vmatpush.msrb.mxu1 %v3893_v43  ;;  %v4033_v25 = vld [vmem:[%s10246_s7 + $0x13c0] sm:$0xff]  ;;  %v3967_v60 = vld [vmem:[%s10246_s7 + $0x11b0] sm:$0xff] }
 0x712   : > { %4340 = vmatpush.msrb.mxu2 %v3795_v47  ;;  %4360 = vmatpush.msra.mxu0 %v3827_v36  ;;  %v3999_v43 = vld [vmem:[%s10246_s7 + $0x12b0] sm:$0xff]  ;;  %v3933_v36 = vld [vmem:[%s10246_s7 + $0x10a0] sm:$0xff] }
 0x713   : > { %4380 = vmatpush.msra.mxu3 %v3859_v7  ;;  %4400 = vmatpush.msrb.mxu1 %v3891_v38  ;;  %v4031_v47 = vld [vmem:[%s10246_s7 + $0x13b0] sm:$0xff]  ;;  %v3965_v7 = vld [vmem:[%s10246_s7 + $0x11a0] sm:$0xff] }
 0x714   : > { %4341 = vmatpush.msrb.mxu2 %v3793_v53  ;;  %4361 = vmatpush.msra.mxu0 %v3825_v55  ;;  %v3997_v38 = vld [vmem:[%s10246_s7 + $0x12a0] sm:$0xff]  ;;  %v3931_v55 = vld [vmem:[%s10246_s7 + $0x1090] sm:$0xff] }
 0x715   : > { %4381 = vmatpush.msra.mxu3 %v3857_v27  ;;  %4401 = vmatpush.msrb.mxu1 %v3889_v8  ;;  %v4029_v53 = vld [vmem:[%s10246_s7 + $0x13a0] sm:$0xff]  ;;  %v3995_v27 = vld [vmem:[%s10246_s7 + $0x1290] sm:$0xff] }
 0x716   : > { %4342 = vmatpush.msrb.mxu2 %v3791_v3  ;;  %4362 = vmatpush.msra.mxu0 %v3823_v9  ;;  %v3929_v8 = vld [vmem:[%s10246_s7 + $0x1080] sm:$0xff] }
 0x717   : > { %4382 = vmatpush.msra.mxu3 %v3855_v6  ;;  %4402 = vmatpush.msrb.mxu1 %v3887_v10  ;;  %v3961_v3 = vld [vmem:[%s10246_s7 + $0x1180] sm:$0xff]  ;;  %v3927_v10 = vld [vmem:[%s10246_s7 + $0x1070] sm:$0xff] }
 0x718   : > { %4343 = vmatpush.msrb.mxu2 %v3789_v51  ;;  %4363 = vmatpush.msra.mxu0 %v3821_v34  ;;  %v3993_v9 = vld [vmem:[%s10246_s7 + $0x1280] sm:$0xff]  ;;  %v3959_v51 = vld [vmem:[%s10246_s7 + $0x1170] sm:$0xff] }
 0x719   : > { %4383 = vmatpush.msra.mxu3 %v3853_v37  ;;  %4403 = vmatpush.msrb.mxu1 %v3885_v13  ;;  %v4025_v6 = vld [vmem:[%s10246_s7 + $0x1380] sm:$0xff]  ;;  %v3991_v34 = vld [vmem:[%s10246_s7 + $0x1270] sm:$0xff] }
 0x71a   : > { %4344 = vmatpush.msrb.mxu2 %v3787_v5  ;;  %4364 = vmatpush.msra.mxu0 %v3819_v44  ;;  %v4023_v37 = vld [vmem:[%s10246_s7 + $0x1370] sm:$0xff]  ;;  %v3925_v13 = vld [vmem:[%s10246_s7 + $0x1060] sm:$0xff] }
 0x71b   : > { %4384 = vmatpush.msra.mxu3 %v3851_v12  ;;  %4404 = vmatpush.msrb.mxu1 %v3883_v19  ;;  %v3957_v5 = vld [vmem:[%s10246_s7 + $0x1160] sm:$0xff]  ;;  %v3923_v19 = vld [vmem:[%s10246_s7 + $0x1050] sm:$0xff] }
 0x71c   : > { %4345 = vmatpush.msrb.mxu2 %v3785_v33  ;;  %4365 = vmatpush.msra.mxu0 %v3817_v31  ;;  %v3989_v44 = vld [vmem:[%s10246_s7 + $0x1260] sm:$0xff]  ;;  %v3955_v33 = vld [vmem:[%s10246_s7 + $0x1150] sm:$0xff]  ;;  %v3341_v31 = vpop.f32.mrf.mxu3 }
 0x71d   : > { %4385 = vmatpush.msra.mxu3 %v3849_v48  ;;  %4405 = vmatpush.msrb.mxu1 %v3881_v26  ;;  %v4021_v12 = vld [vmem:[%s10246_s7 + $0x1360] sm:$0xff]  ;;  %v3987_v48 = vld [vmem:[%s10246_s7 + $0x1250] sm:$0xff] }
 0x71e   : > { %4346 = vmatmul.f32.vlgmr.msrb.gmra.mxu2 %v4057_v56  ;;  %4366 = vmatmul.f32.vlgmr.msra.gmra.mxu0 %v4058_v21  ;;  %v4019_v26 = vld [vmem:[%s10246_s7 + $0x1350] sm:$0xff] }
 0x71f   : > { %4386 = vmatmul.f32.vlgmr.msra.gmra.mxu3 %v4059_v22  ;;  %4406 = vmatmul.f32.vlgmr.msrb.gmra.mxu1 %v4060_v58 }
 0x720   : > { %4410 = vmatpush.msra.mxu2 %v3943_v4  ;;  %4430 = vmatpush.msrb.mxu0 %v3975_v18  ;;  %v3921_v18 = vld [vmem:[%s10246_s7 + $0x1040] sm:$0xff] }
 0x721   : > { %4450 = vmatpush.msrb.mxu3 %v4007_v1  ;;  %4470 = vmatpush.msra.mxu1 %v4039_v35  ;;  %v3953_v1 = vld [vmem:[%s10246_s7 + $0x1140] sm:$0xff] }
 0x722   : > { %4411 = vmatpush.msra.mxu2 %v3941_v42  ;;  %4431 = vmatpush.msrb.mxu0 %v3973_v63  ;;  %v3985_v42 = vld [vmem:[%s10246_s7 + $0x1240] sm:$0xff] }
 0x723   : > { %4451 = vmatpush.msrb.mxu3 %v4005_v45  ;;  %4471 = vmatpush.msra.mxu1 %v4037_v17  ;;  %v4017_v63 = vld [vmem:[%s10246_s7 + $0x1340] sm:$0xff]  ;;  %v3919_v45 = vld [vmem:[%s10246_s7 + $0x1030] sm:$0xff] }
 0x724   : > { %4412 = vmatpush.msra.mxu2 %v3939_v61  ;;  %4432 = vmatpush.msrb.mxu0 %v3971_v28  ;;  %v3951_v17 = vld [vmem:[%s10246_s7 + $0x1130] sm:$0xff] }
 0x725   : > { %4452 = vmatpush.msrb.mxu3 %v4003_v59  ;;  %4472 = vmatpush.msra.mxu1 %v4035_v40  ;;  %v3983_v61 = vld [vmem:[%s10246_s7 + $0x1230] sm:$0xff]  ;;  %v3917_v59 = vld [vmem:[%s10246_s7 + $0x1020] sm:$0xff] }
 0x726   : > { %4413 = vmatpush.msra.mxu2 %v3937_v39  ;;  %4433 = vmatpush.msrb.mxu0 %v3969_v2  ;;  %v4015_v28 = vld [vmem:[%s10246_s7 + $0x1330] sm:$0xff]  ;;  %v3949_v40 = vld [vmem:[%s10246_s7 + $0x1120] sm:$0xff] }
 0x727   : > { %4453 = vmatpush.msrb.mxu3 %v4001_v30  ;;  %4473 = vmatpush.msra.mxu1 %v4033_v25  ;;  %v3981_v39 = vld [vmem:[%s10246_s7 + $0x1220] sm:$0xff]  ;;  %v3915_v30 = vld [vmem:[%s10246_s7 + $0x1010] sm:$0xff] }
 0x728   : > { %4414 = vmatpush.msra.mxu2 %v3935_v24  ;;  %4434 = vmatpush.msrb.mxu0 %v3967_v60  ;;  %v4013_v2 = vld [vmem:[%s10246_s7 + $0x1320] sm:$0xff]  ;;  %v3947_v25 = vld [vmem:[%s10246_s7 + $0x1110] sm:$0xff] }
 0x729   : > { %4454 = vmatpush.msrb.mxu3 %v3999_v43  ;;  %4474 = vmatpush.msra.mxu1 %v4031_v47  ;;  %v3979_v24 = vld [vmem:[%s10246_s7 + $0x1210] sm:$0xff]  ;;  %v3913_v43 = vld [vmem:[%s10246_s7 + $0x1000] sm:$0xff] }
 0x72a   : > { %4415 = vmatpush.msra.mxu2 %v3933_v36  ;;  %4435 = vmatpush.msrb.mxu0 %v3965_v7  ;;  %v4011_v60 = vld [vmem:[%s10246_s7 + $0x1310] sm:$0xff]  ;;  %v3945_v47 = vld [vmem:[%s10246_s7 + $0x1100] sm:$0xff] }
 0x72b   : > { %4455 = vmatpush.msrb.mxu3 %v3997_v38  ;;  %4475 = vmatpush.msra.mxu1 %v4029_v53  ;;  %v3977_v36 = vld [vmem:[%s10246_s7 + $0x1200] sm:$0xff] }
 0x72c   : > { %4416 = vmatpush.msra.mxu2 %v3931_v55  ;;  %4436 = vmatpush.msrb.mxu0 %v3963_v15  ;;  %v4009_v7 = vld [vmem:[%s10246_s7 + $0x1300] sm:$0xff]  ;;  %v3432_v15 = vld [vmem:[%s10246_s7 + $0xf8] sm:$0xff] }
 0x72d   : > { %4456 = vmatpush.msrb.mxu3 %v3995_v27  ;;  %4476 = vmatpush.msra.mxu1 %v4027_v50  ;;  %v3464_v27 = vld [vmem:[%s10246_s7 + $0x1f8] sm:$0xff] }
 0x72e   : > { %4417 = vmatpush.msra.mxu2 %v3929_v8  ;;  %4437 = vmatpush.msrb.mxu0 %v3961_v3  ;;  %v3496_v8 = vld [vmem:[%s10246_s7 + $0x2f8] sm:$0xff] }
 0x72f   : > { %4457 = vmatpush.msrb.mxu3 %v3993_v9  ;;  %4477 = vmatpush.msra.mxu1 %v4025_v6  ;;  %v3528_v3 = vld [vmem:[%s10246_s7 + $0x3f8] sm:$0xff]  ;;  %v3430_v9 = vld [vmem:[%s10246_s7 + $0xe8] sm:$0xff] }
 0x730   : > { %4418 = vmatpush.msra.mxu2 %v3927_v10  ;;  %4438 = vmatpush.msrb.mxu0 %v3959_v51  ;;  %v3462_v6 = vld [vmem:[%s10246_s7 + $0x1e8] sm:$0xff] }
 0x731   : > { %4458 = vmatpush.msrb.mxu3 %v3991_v34  ;;  %4478 = vmatpush.msra.mxu1 %v4023_v37  ;;  %v3494_v10 = vld [vmem:[%s10246_s7 + $0x2e8] sm:$0xff]  ;;  %v3428_v34 = vld [vmem:[%s10246_s7 + $0xd8] sm:$0xff] }
 0x732   : > { %4419 = vmatpush.msra.mxu2 %v3925_v13  ;;  %4439 = vmatpush.msrb.mxu0 %v3957_v5  ;;  %v3526_v51 = vld [vmem:[%s10246_s7 + $0x3e8] sm:$0xff]  ;;  %v3460_v37 = vld [vmem:[%s10246_s7 + $0x1d8] sm:$0xff] }
 0x733   : > { %v3315_v4 = vpop.f32.mrf.mxu1  ;;  %4459 = vmatpush.msrb.mxu3 %v3989_v44  ;;  %4479 = vmatpush.msra.mxu1 %v4021_v12  ;;  %v3492_v13 = vld [vmem:[%s10246_s7 + $0x2d8] sm:$0xff]  ;;  %v3426_v5 = vld [vmem:[%s10246_s7 + $0xc8] sm:$0xff] }
 0x734   : > { %v3342_v35 = vadd.f32 %v3341_v31, %v3315_v4  ;;  %4420 = vmatpush.msra.mxu2 %v3923_v19  ;;  %4440 = vmatpush.msrb.mxu0 %v3955_v33  ;;  %v3458_v44 = vld [vmem:[%s10246_s7 + $0x1c8] sm:$0xff]  ;;  %v3424_v33 = vld [vmem:[%s10246_s7 + $0xb8] sm:$0xff] }
 0x735   : > { %4460 = vmatpush.msrb.mxu3 %v3987_v48  ;;  %4480 = vmatpush.msra.mxu1 %v4019_v26  ;;  %v3490_v12 = vld [vmem:[%s10246_s7 + $0x2c8] sm:$0xff]  ;;  %v3456_v31 = vld [vmem:[%s10246_s7 + $0x1b8] sm:$0xff] }
 0x736   : > { %3348 = vst.msk [vmem:[#allocation5 + $0x10] sm:$0xf] %vm3347_vm10, %v3342_v35  ;;  %4421 = vmatpush.msra.mxu2 %v3921_v18  ;;  %4441 = vmatpush.msrb.mxu0 %v3953_v1  ;;  %v3522_v19 = vld [vmem:[%s10246_s7 + $0x3c8] sm:$0xff]  ;;  %v3488_v48 = vld [vmem:[%s10246_s7 + $0x2b8] sm:$0xff] }
 0x737   : > { %4461 = vmatpush.msrb.mxu3 %v3985_v42  ;;  %4481 = vmatpush.msra.mxu1 %v4017_v63  ;;  %v3520_v26 = vld [vmem:[%s10246_s7 + $0x3b8] sm:$0xff]  ;;  %v3422_v4 = vld [vmem:[%s10246_s7 + $0xa8] sm:$0xff] }
 0x738   : > { %4422 = vmatpush.msra.mxu2 %v3919_v45  ;;  %4442 = vmatpush.msrb.mxu0 %v3951_v17  ;;  %v3454_v18 = vld [vmem:[%s10246_s7 + $0x1a8] sm:$0xff]  ;;  %v3420_v42 = vld [vmem:[%s10246_s7 + $0x98] sm:$0xff] }
 0x739   : > { %4462 = vmatpush.msrb.mxu3 %v3983_v61  ;;  %4482 = vmatpush.msra.mxu1 %v4015_v28  ;;  %v3486_v1 = vld [vmem:[%s10246_s7 + $0x2a8] sm:$0xff]  ;;  %v3452_v63 = vld [vmem:[%s10246_s7 + $0x198] sm:$0xff] }
 0x73a   : > { %4423 = vmatpush.msra.mxu2 %v3917_v59  ;;  %4443 = vmatpush.msrb.mxu0 %v3949_v40  ;;  %v3518_v35 = vld [vmem:[%s10246_s7 + $0x3a8] sm:$0xff]  ;;  %v3484_v45 = vld [vmem:[%s10246_s7 + $0x298] sm:$0xff] }
 0x73b   : > { %4463 = vmatpush.msrb.mxu3 %v3981_v39  ;;  %4483 = vmatpush.msra.mxu1 %v4013_v2  ;;  %v3516_v17 = vld [vmem:[%s10246_s7 + $0x398] sm:$0xff]  ;;  %v3418_v61 = vld [vmem:[%s10246_s7 + $0x88] sm:$0xff] }
 0x73c   : > { %4424 = vmatpush.msra.mxu2 %v3915_v30  ;;  %4444 = vmatpush.msrb.mxu0 %v3947_v25  ;;  %v3450_v28 = vld [vmem:[%s10246_s7 + $0x188] sm:$0xff]  ;;  %v3416_v39 = vld [vmem:[%s10246_s7 + $0x78] sm:$0xff] }
 0x73d   : > { %v3390_v38 = vld [vmem:[#allocation5 + $0x10] sm:$0x1]  ;;  %v3392_v53 = vld [vmem:[#allocation5 + $0x11] sm:$0x1]  ;;  %v3394_v55 = vld [vmem:[#allocation5 + $0x12] sm:$0x1]  ;;  %4464 = vmatpush.msrb.mxu3 %v3979_v24  ;;  %4484 = vmatpush.msra.mxu1 %v4011_v60 }
 0x73e   : > { %3391 = vst.msk [vmem:[#allocation6 + $0x10] sm:$0x1] %vm8442_vm8, %v3390_v38  ;;  %v3396_v50 = vld [vmem:[#allocation5 + $0x13] sm:$0x1]  ;;  %4425 = vmatpush.msra.mxu2 %v3913_v43  ;;  %4445 = vmatpush.msrb.mxu0 %v3945_v47  ;;  %v3482_v59 = vld [vmem:[%s10246_s7 + $0x288] sm:$0xff]  ;;  %v3448_v2 = vld [vmem:[%s10246_s7 + $0x178] sm:$0xff] }
 0x73f   : > { %3393 = vst.msk [vmem:[#allocation6 + $0x11] sm:$0x1] %vm8442_vm8, %v3392_v53  ;;  %4465 = vmatpush.msrb.mxu3 %v3977_v36  ;;  %4485 = vmatpush.msra.mxu1 %v4009_v7  ;;  %v3514_v40 = vld [vmem:[%s10246_s7 + $0x388] sm:$0xff]  ;;  %v3480_v30 = vld [vmem:[%s10246_s7 + $0x278] sm:$0xff] }
 0x740   : > { %3395 = vst.msk [vmem:[#allocation6 + $0x12] sm:$0x1] %vm8442_vm8, %v3394_v55  ;;  %4490 = vmatpush.msrb.mxu2 %v3432_v15  ;;  %4510 = vmatpush.msra.mxu0 %v3464_v27  ;;  %v3512_v25 = vld [vmem:[%s10246_s7 + $0x378] sm:$0xff]  ;;  %v3414_v24 = vld [vmem:[%s10246_s7 + $0x68] sm:$0xff] }
 0x741   : > { %3397 = vst.msk [vmem:[#allocation6 + $0x13] sm:$0x1] %vm8442_vm8, %v3396_v50  ;;  %4530 = vmatpush.msra.mxu3 %v3496_v8  ;;  %4550 = vmatpush.msrb.mxu1 %v3528_v3  ;;  %v3446_v60 = vld [vmem:[%s10246_s7 + $0x168] sm:$0xff]  ;;  %v3412_v36 = vld [vmem:[%s10246_s7 + $0x58] sm:$0xff] }
 0x742   : > { %4491 = vmatpush.msrb.mxu2 %v3430_v9  ;;  %4511 = vmatpush.msra.mxu0 %v3462_v6  ;;  %v3478_v43 = vld [vmem:[%s10246_s7 + $0x268] sm:$0xff]  ;;  %v3444_v7 = vld [vmem:[%s10246_s7 + $0x158] sm:$0xff] }
 0x743   : > { %4531 = vmatpush.msra.mxu3 %v3494_v10  ;;  %4551 = vmatpush.msrb.mxu1 %v3526_v51  ;;  %v3510_v47 = vld [vmem:[%s10246_s7 + $0x368] sm:$0xff]  ;;  %v3476_v38 = vld [vmem:[%s10246_s7 + $0x258] sm:$0xff] }
 0x744   : > { %4492 = vmatpush.msrb.mxu2 %v3428_v34  ;;  %4512 = vmatpush.msra.mxu0 %v3460_v37  ;;  %v3508_v53 = vld [vmem:[%s10246_s7 + $0x358] sm:$0xff]  ;;  %v3410_v55 = vld [vmem:[%s10246_s7 + $0x48] sm:$0xff] }
 0x745   : > { %4532 = vmatpush.msra.mxu3 %v3492_v13  ;;  %4552 = vmatpush.msrb.mxu1 %v3524_v57  ;;  %v3442_v15 = vld [vmem:[%s10246_s7 + $0x148] sm:$0xff]  ;;  %v3408_v8 = vld [vmem:[%s10246_s7 + $0x38] sm:$0xff] }
 0x746   : > { %4493 = vmatpush.msrb.mxu2 %v3426_v5  ;;  %4513 = vmatpush.msra.mxu0 %v3458_v44  ;;  %v3474_v27 = vld [vmem:[%s10246_s7 + $0x248] sm:$0xff]  ;;  %v3440_v3 = vld [vmem:[%s10246_s7 + $0x138] sm:$0xff] }
 0x747   : > { %4533 = vmatpush.msra.mxu3 %v3490_v12  ;;  %4553 = vmatpush.msrb.mxu1 %v3522_v19  ;;  %v3506_v50 = vld [vmem:[%s10246_s7 + $0x348] sm:$0xff]  ;;  %v3472_v6 = vld [vmem:[%s10246_s7 + $0x238] sm:$0xff] }
 0x748   : > { %4494 = vmatpush.msrb.mxu2 %v3424_v33  ;;  %4514 = vmatpush.msra.mxu0 %v3456_v31  ;;  %v9267_v9 = vld [vmem:[#allocation6 + $0x10] sm:$0xf]  ;;  %v3406_v51 = vld [vmem:[%s10246_s7 + $0x28] sm:$0xff] }
 0x749   : > { %4534 = vmatpush.msra.mxu3 %v3488_v48  ;;  %4554 = vmatpush.msrb.mxu1 %v3520_v26  ;;  %v3504_v10 = vld [vmem:[%s10246_s7 + $0x338] sm:$0xff]  ;;  %v3438_v34 = vld [vmem:[%s10246_s7 + $0x128] sm:$0xff]  ;;  %v4061_v57 = vperm.slane %v9267_v9, 0  ;;  %v4062_v5 = vperm.slane %v9267_v9, 1  ;;  %v4063_v44 = vperm.slane %v9267_v9, 2  ;;  %v4064_v12 = vperm.slane %v9267_v9, 3 }
 0x74a   : > { %4495 = vmatpush.msrb.mxu2 %v3422_v4  ;;  %4515 = vmatpush.msra.mxu0 %v3454_v18  ;;  %v3470_v37 = vld [vmem:[%s10246_s7 + $0x228] sm:$0xff]  ;;  %v3404_v19 = vld [vmem:[%s10246_s7 + $0x18] sm:$0xff] }
 0x74b   : > { %4535 = vmatpush.msra.mxu3 %v3486_v1  ;;  %4555 = vmatpush.msrb.mxu1 %v3518_v35  ;;  %v3502_v13 = vld [vmem:[%s10246_s7 + $0x328] sm:$0xff]  ;;  %v3436_v33 = vld [vmem:[%s10246_s7 + $0x118] sm:$0xff] }
 0x74c   : > { %4496 = vmatpush.msrb.mxu2 %v3420_v42  ;;  %4516 = vmatpush.msra.mxu0 %v3452_v63  ;;  %v3468_v31 = vld [vmem:[%s10246_s7 + $0x218] sm:$0xff]  ;;  %v3402_v26 = vld [vmem:[%s10246_s7 + $0x8] sm:$0xff] }
 0x74d   : > { %4536 = vmatpush.msra.mxu3 %v3484_v45  ;;  %4556 = vmatpush.msrb.mxu1 %v3516_v17  ;;  %v3500_v48 = vld [vmem:[%s10246_s7 + $0x318] sm:$0xff]  ;;  %v3434_v4 = vld [vmem:[%s10246_s7 + $0x108] sm:$0xff] }
 0x74e   : > { %4497 = vmatpush.msrb.mxu2 %v3418_v61  ;;  %4517 = vmatpush.msra.mxu0 %v3450_v28  ;;  %v3466_v18 = vld [vmem:[%s10246_s7 + $0x208] sm:$0xff]  ;;  %v3560_v35 = vld [vmem:[%s10246_s7 + $0x4f8] sm:$0xff] }
 0x74f   : > { %4537 = vmatpush.msra.mxu3 %v3482_v59  ;;  %4557 = vmatpush.msrb.mxu1 %v3514_v40  ;;  %v3498_v1 = vld [vmem:[%s10246_s7 + $0x308] sm:$0xff]  ;;  %v3592_v42 = vld [vmem:[%s10246_s7 + $0x5f8] sm:$0xff] }
 0x750   : > { %4498 = vmatpush.msrb.mxu2 %v3416_v39  ;;  %4518 = vmatpush.msra.mxu0 %v3448_v2  ;;  %v3624_v63 = vld [vmem:[%s10246_s7 + $0x6f8] sm:$0xff]  ;;  %v3558_v17 = vld [vmem:[%s10246_s7 + $0x4e8] sm:$0xff] }
 0x751   : > { %4538 = vmatpush.msra.mxu3 %v3480_v30  ;;  %4558 = vmatpush.msrb.mxu1 %v3512_v25  ;;  %v3656_v45 = vld [vmem:[%s10246_s7 + $0x7f8] sm:$0xff]  ;;  %v3590_v61 = vld [vmem:[%s10246_s7 + $0x5e8] sm:$0xff] }
 0x752   : > { %4499 = vmatpush.msrb.mxu2 %v3414_v24  ;;  %4519 = vmatpush.msra.mxu0 %v3446_v60  ;;  %v3622_v28 = vld [vmem:[%s10246_s7 + $0x6e8] sm:$0xff]  ;;  %v3556_v40 = vld [vmem:[%s10246_s7 + $0x4d8] sm:$0xff] }
 0x753   : > { %4539 = vmatpush.msra.mxu3 %v3478_v43  ;;  %4559 = vmatpush.msrb.mxu1 %v3510_v47  ;;  %v3654_v59 = vld [vmem:[%s10246_s7 + $0x7e8] sm:$0xff]  ;;  %v3588_v39 = vld [vmem:[%s10246_s7 + $0x5d8] sm:$0xff] }
 0x754   : > { %4500 = vmatpush.msrb.mxu2 %v3412_v36  ;;  %4520 = vmatpush.msra.mxu0 %v3444_v7  ;;  %v3620_v2 = vld [vmem:[%s10246_s7 + $0x6d8] sm:$0xff]  ;;  %v3554_v25 = vld [vmem:[%s10246_s7 + $0x4c8] sm:$0xff] }
 0x755   : > { %4540 = vmatpush.msra.mxu3 %v3476_v38  ;;  %4560 = vmatpush.msrb.mxu1 %v3508_v53  ;;  %v3652_v30 = vld [vmem:[%s10246_s7 + $0x7d8] sm:$0xff]  ;;  %v3586_v24 = vld [vmem:[%s10246_s7 + $0x5c8] sm:$0xff] }
 0x756   : > { %4501 = vmatpush.msrb.mxu2 %v3410_v55  ;;  %4521 = vmatpush.msra.mxu0 %v3442_v15  ;;  %v3618_v60 = vld [vmem:[%s10246_s7 + $0x6c8] sm:$0xff]  ;;  %v3616_v47 = vld [vmem:[%s10246_s7 + $0x6b8] sm:$0xff] }
 0x757   : > { %4541 = vmatpush.msra.mxu3 %v3474_v27  ;;  %4561 = vmatpush.msrb.mxu1 %v3506_v50  ;;  %v3650_v43 = vld [vmem:[%s10246_s7 + $0x7c8] sm:$0xff]  ;;  %v3548_v53 = vld [vmem:[%s10246_s7 + $0x498] sm:$0xff] }
 0x758   : > { %4502 = vmatpush.msrb.mxu2 %v3408_v8  ;;  %4522 = vmatpush.msra.mxu0 %v3440_v3  ;;  %v3582_v36 = vld [vmem:[%s10246_s7 + $0x5a8] sm:$0xff]  ;;  %v3580_v55 = vld [vmem:[%s10246_s7 + $0x598] sm:$0xff] }
 0x759   : > { %4542 = vmatpush.msra.mxu3 %v3472_v6  ;;  %4562 = vmatpush.msrb.mxu1 %v3504_v10  ;;  %v3614_v7 = vld [vmem:[%s10246_s7 + $0x6a8] sm:$0xff]  ;;  %v3612_v15 = vld [vmem:[%s10246_s7 + $0x698] sm:$0xff] }
 0x75a   : > { %4503 = vmatpush.msrb.mxu2 %v3406_v51  ;;  %4523 = vmatpush.msra.mxu0 %v3438_v34  ;;  %v3646_v38 = vld [vmem:[%s10246_s7 + $0x7a8] sm:$0xff]  ;;  %v3644_v27 = vld [vmem:[%s10246_s7 + $0x798] sm:$0xff] }
 0x75b   : > { %4543 = vmatpush.msra.mxu3 %v3470_v37  ;;  %4563 = vmatpush.msrb.mxu1 %v3502_v13  ;;  %v3546_v50 = vld [vmem:[%s10246_s7 + $0x488] sm:$0xff]  ;;  %v3544_v10 = vld [vmem:[%s10246_s7 + $0x478] sm:$0xff] }
 0x75c   : > { %4426 = vmatmul.f32.vlgmr.msra.gmra.mxu2 %v4061_v57  ;;  %4446 = vmatmul.f32.vlgmr.msrb.gmra.mxu0 %v4062_v5  ;;  %v3578_v8 = vld [vmem:[%s10246_s7 + $0x588] sm:$0xff]  ;;  %v3576_v51 = vld [vmem:[%s10246_s7 + $0x578] sm:$0xff] }
 0x75d   : > { %4466 = vmatmul.f32.vlgmr.msrb.gmra.mxu3 %v4063_v44  ;;  %4486 = vmatmul.f32.vlgmr.msra.gmra.mxu1 %v4064_v12  ;;  %v3610_v3 = vld [vmem:[%s10246_s7 + $0x688] sm:$0xff]  ;;  %v3608_v34 = vld [vmem:[%s10246_s7 + $0x678] sm:$0xff] }
 0x75e   : > { %4504 = vmatpush.msrb.mxu2 %v3404_v19  ;;  %4524 = vmatpush.msra.mxu0 %v3436_v33  ;;  %v3642_v6 = vld [vmem:[%s10246_s7 + $0x788] sm:$0xff]  ;;  %v3640_v37 = vld [vmem:[%s10246_s7 + $0x778] sm:$0xff] }
 0x75f   : > { %4544 = vmatpush.msra.mxu3 %v3468_v31  ;;  %4564 = vmatpush.msrb.mxu1 %v3500_v48  ;;  %v3542_v13 = vld [vmem:[%s10246_s7 + $0x468] sm:$0xff]  ;;  %v3540_v48 = vld [vmem:[%s10246_s7 + $0x458] sm:$0xff] }
 0x760   : > { %4505 = vmatpush.msrb.mxu2 %v3402_v26  ;;  %4525 = vmatpush.msra.mxu0 %v3434_v4  ;;  %v3574_v19 = vld [vmem:[%s10246_s7 + $0x568] sm:$0xff]  ;;  %v3572_v26 = vld [vmem:[%s10246_s7 + $0x558] sm:$0xff] }
 0x761   : > { %4545 = vmatpush.msra.mxu3 %v3466_v18  ;;  %4565 = vmatpush.msrb.mxu1 %v3498_v1  ;;  %v3606_v33 = vld [vmem:[%s10246_s7 + $0x668] sm:$0xff]  ;;  %v3604_v4 = vld [vmem:[%s10246_s7 + $0x658] sm:$0xff] }
 0x762   : > { %4570 = vmatpush.msra.mxu2 %v3560_v35  ;;  %4590 = vmatpush.msrb.mxu0 %v3592_v42  ;;  %v3638_v31 = vld [vmem:[%s10246_s7 + $0x768] sm:$0xff]  ;;  %v3636_v18 = vld [vmem:[%s10246_s7 + $0x758] sm:$0xff] }
 0x763   : > { %4610 = vmatpush.msrb.mxu3 %v3624_v63  ;;  %4630 = vmatpush.msra.mxu1 %v3656_v45  ;;  %v3538_v1 = vld [vmem:[%s10246_s7 + $0x448] sm:$0xff]  ;;  %v3536_v45 = vld [vmem:[%s10246_s7 + $0x438] sm:$0xff] }
 0x764   : > { %4571 = vmatpush.msra.mxu2 %v3558_v17  ;;  %4591 = vmatpush.msrb.mxu0 %v3590_v61  ;;  %v3570_v35 = vld [vmem:[%s10246_s7 + $0x548] sm:$0xff]  ;;  %v3568_v17 = vld [vmem:[%s10246_s7 + $0x538] sm:$0xff] }
 0x765   : > { %4611 = vmatpush.msrb.mxu3 %v3622_v28  ;;  %4631 = vmatpush.msra.mxu1 %v3654_v59  ;;  %v3602_v42 = vld [vmem:[%s10246_s7 + $0x648] sm:$0xff]  ;;  %v3600_v61 = vld [vmem:[%s10246_s7 + $0x638] sm:$0xff] }
 0x766   : > { %4572 = vmatpush.msra.mxu2 %v3556_v40  ;;  %4592 = vmatpush.msrb.mxu0 %v3588_v39  ;;  %v3634_v63 = vld [vmem:[%s10246_s7 + $0x748] sm:$0xff]  ;;  %v3632_v28 = vld [vmem:[%s10246_s7 + $0x738] sm:$0xff] }
 0x767   : > { %4612 = vmatpush.msrb.mxu3 %v3620_v2  ;;  %4632 = vmatpush.msra.mxu1 %v3652_v30  ;;  %v3534_v59 = vld [vmem:[%s10246_s7 + $0x428] sm:$0xff]  ;;  %v3532_v30 = vld [vmem:[%s10246_s7 + $0x418] sm:$0xff] }
 0x768   : > { %4506 = vmatmul.f32.vlgmr.msrb.gmra.mxu2 %v4045_v41  ;;  %4526 = vmatmul.f32.vlgmr.msra.gmra.mxu0 %v4046_v0  ;;  %v3552_v41 = vld [vmem:[%s10246_s7 + $0x4b8] sm:$0xff]  ;;  %v3566_v40 = vld [vmem:[%s10246_s7 + $0x528] sm:$0xff] }
 0x769   : > { %4546 = vmatmul.f32.vlgmr.msra.gmra.mxu3 %v4047_v49  ;;  %4566 = vmatmul.f32.vlgmr.msrb.gmra.mxu1 %v4048_v16  ;;  %v3584_v0 = vld [vmem:[%s10246_s7 + $0x5b8] sm:$0xff]  ;;  %v3550_v16 = vld [vmem:[%s10246_s7 + $0x4a8] sm:$0xff] }
 0x76a   : > { %4573 = vmatpush.msra.mxu2 %v3554_v25  ;;  %4593 = vmatpush.msrb.mxu0 %v3586_v24  ;;  %v3648_v49 = vld [vmem:[%s10246_s7 + $0x7b8] sm:$0xff]  ;;  %v3598_v39 = vld [vmem:[%s10246_s7 + $0x628] sm:$0xff] }
 0x76b   : > { %4613 = vmatpush.msrb.mxu3 %v3618_v60  ;;  %4633 = vmatpush.msra.mxu1 %v3650_v43  ;;  %v3630_v2 = vld [vmem:[%s10246_s7 + $0x728] sm:$0xff]  ;;  %v3564_v25 = vld [vmem:[%s10246_s7 + $0x518] sm:$0xff] }
 0x76c   : > { %4574 = vmatpush.msra.mxu2 %v3552_v41  ;;  %4594 = vmatpush.msrb.mxu0 %v3584_v0  ;;  %v3596_v24 = vld [vmem:[%s10246_s7 + $0x618] sm:$0xff]  ;;  %v3530_v43 = vld [vmem:[%s10246_s7 + $0x408] sm:$0xff] }
 0x76d   : > { %4614 = vmatpush.msrb.mxu3 %v3616_v47  ;;  %4634 = vmatpush.msra.mxu1 %v3648_v49  ;;  %v3628_v60 = vld [vmem:[%s10246_s7 + $0x718] sm:$0xff]  ;;  %v3562_v41 = vld [vmem:[%s10246_s7 + $0x508] sm:$0xff] }
 0x76e   : > { %4575 = vmatpush.msra.mxu2 %v3550_v16  ;;  %4595 = vmatpush.msrb.mxu0 %v3582_v36  ;;  %v3594_v0 = vld [vmem:[%s10246_s7 + $0x608] sm:$0xff]  ;;  %v3688_v49 = vld [vmem:[%s10246_s7 + $0x8f8] sm:$0xff] }
 0x76f   : > { %4615 = vmatpush.msrb.mxu3 %v3614_v7  ;;  %4635 = vmatpush.msra.mxu1 %v3646_v38  ;;  %v3626_v47 = vld [vmem:[%s10246_s7 + $0x708] sm:$0xff]  ;;  %v3720_v16 = vld [vmem:[%s10246_s7 + $0x9f8] sm:$0xff] }
 0x770   : > { %4576 = vmatpush.msra.mxu2 %v3548_v53  ;;  %4596 = vmatpush.msrb.mxu0 %v3580_v55  ;;  %v3752_v36 = vld [vmem:[%s10246_s7 + $0xaf8] sm:$0xff]  ;;  %v3750_v38 = vld [vmem:[%s10246_s7 + $0xae8] sm:$0xff] }
 0x771   : > { %4616 = vmatpush.msrb.mxu3 %v3612_v15  ;;  %4636 = vmatpush.msra.mxu1 %v3644_v27  ;;  %v3784_v7 = vld [vmem:[%s10246_s7 + $0xbf8] sm:$0xff]  ;;  %v3682_v15 = vld [vmem:[%s10246_s7 + $0x8c8] sm:$0xff] }
 0x772   : > { %4577 = vmatpush.msra.mxu2 %v3546_v50  ;;  %4597 = vmatpush.msrb.mxu0 %v3578_v8  ;;  %v3748_v53 = vld [vmem:[%s10246_s7 + $0xad8] sm:$0xff]  ;;  %v3714_v27 = vld [vmem:[%s10246_s7 + $0x9c8] sm:$0xff] }
 0x773   : > { %4617 = vmatpush.msrb.mxu3 %v3610_v3  ;;  %4637 = vmatpush.msra.mxu1 %v3642_v6  ;;  %v3780_v55 = vld [vmem:[%s10246_s7 + $0xbd8] sm:$0xff]  ;;  %v3746_v50 = vld [vmem:[%s10246_s7 + $0xac8] sm:$0xff] }
 0x774   : > { %4578 = vmatpush.msra.mxu2 %v3544_v10  ;;  %4598 = vmatpush.msrb.mxu0 %v3576_v51  ;;  %v3778_v8 = vld [vmem:[%s10246_s7 + $0xbc8] sm:$0xff]  ;;  %v3680_v3 = vld [vmem:[%s10246_s7 + $0x8b8] sm:$0xff] }
 0x775   : > { %4618 = vmatpush.msrb.mxu3 %v3608_v34  ;;  %4638 = vmatpush.msra.mxu1 %v3640_v37  ;;  %v3712_v6 = vld [vmem:[%s10246_s7 + $0x9b8] sm:$0xff]  ;;  %v3678_v34 = vld [vmem:[%s10246_s7 + $0x8a8] sm:$0xff] }
 0x776   : > { %4579 = vmatpush.msra.mxu2 %v3542_v13  ;;  %4599 = vmatpush.msrb.mxu0 %v3574_v19  ;;  %v3744_v10 = vld [vmem:[%s10246_s7 + $0xab8] sm:$0xff]  ;;  %v3710_v37 = vld [vmem:[%s10246_s7 + $0x9a8] sm:$0xff] }
 0x777   : > { %4619 = vmatpush.msrb.mxu3 %v3606_v33  ;;  %4639 = vmatpush.msra.mxu1 %v3638_v31  ;;  %v3776_v51 = vld [vmem:[%s10246_s7 + $0xbb8] sm:$0xff]  ;;  %v3742_v13 = vld [vmem:[%s10246_s7 + $0xaa8] sm:$0xff] }
 0x778   : > { %4580 = vmatpush.msra.mxu2 %v3540_v48  ;;  %4600 = vmatpush.msrb.mxu0 %v3572_v26  ;;  %v3774_v19 = vld [vmem:[%s10246_s7 + $0xba8] sm:$0xff]  ;;  %v3676_v33 = vld [vmem:[%s10246_s7 + $0x898] sm:$0xff] }
 0x779   : > { %4620 = vmatpush.msrb.mxu3 %v3604_v4  ;;  %4640 = vmatpush.msra.mxu1 %v3636_v18  ;;  %v3708_v31 = vld [vmem:[%s10246_s7 + $0x998] sm:$0xff]  ;;  %v3674_v4 = vld [vmem:[%s10246_s7 + $0x888] sm:$0xff] }
 0x77a   : > { %4581 = vmatpush.msra.mxu2 %v3538_v1  ;;  %4601 = vmatpush.msrb.mxu0 %v3570_v35  ;;  %v3740_v48 = vld [vmem:[%s10246_s7 + $0xa98] sm:$0xff]  ;;  %v3706_v18 = vld [vmem:[%s10246_s7 + $0x988] sm:$0xff] }
 0x77b   : > { %4621 = vmatpush.msrb.mxu3 %v3602_v42  ;;  %4641 = vmatpush.msra.mxu1 %v3634_v63  ;;  %v3772_v26 = vld [vmem:[%s10246_s7 + $0xb98] sm:$0xff]  ;;  %v3738_v1 = vld [vmem:[%s10246_s7 + $0xa88] sm:$0xff] }
 0x77c   : > { %4582 = vmatpush.msra.mxu2 %v3536_v45  ;;  %4602 = vmatpush.msrb.mxu0 %v3568_v17  ;;  %v3770_v35 = vld [vmem:[%s10246_s7 + $0xb88] sm:$0xff]  ;;  %v3672_v42 = vld [vmem:[%s10246_s7 + $0x878] sm:$0xff] }
 0x77d   : > { %4622 = vmatpush.msrb.mxu3 %v3600_v61  ;;  %4642 = vmatpush.msra.mxu1 %v3632_v28  ;;  %v3704_v63 = vld [vmem:[%s10246_s7 + $0x978] sm:$0xff]  ;;  %v3670_v61 = vld [vmem:[%s10246_s7 + $0x868] sm:$0xff] }
 0x77e   : > { %4583 = vmatpush.msra.mxu2 %v3534_v59  ;;  %4603 = vmatpush.msrb.mxu0 %v3566_v40  ;;  %v3736_v45 = vld [vmem:[%s10246_s7 + $0xa78] sm:$0xff]  ;;  %v3702_v28 = vld [vmem:[%s10246_s7 + $0x968] sm:$0xff] }
 0x77f   : > { %4623 = vmatpush.msrb.mxu3 %v3598_v39  ;;  %4643 = vmatpush.msra.mxu1 %v3630_v2  ;;  %v3768_v17 = vld [vmem:[%s10246_s7 + $0xb78] sm:$0xff]  ;;  %v3734_v59 = vld [vmem:[%s10246_s7 + $0xa68] sm:$0xff] }
 0x780   : > { %4584 = vmatpush.msra.mxu2 %v3532_v30  ;;  %4604 = vmatpush.msrb.mxu0 %v3564_v25  ;;  %v3766_v40 = vld [vmem:[%s10246_s7 + $0xb68] sm:$0xff]  ;;  %v3668_v39 = vld [vmem:[%s10246_s7 + $0x858] sm:$0xff] }
 0x781   : > { %4624 = vmatpush.msrb.mxu3 %v3596_v24  ;;  %4644 = vmatpush.msra.mxu1 %v3628_v60  ;;  %v3700_v2 = vld [vmem:[%s10246_s7 + $0x958] sm:$0xff]  ;;  %v3666_v24 = vld [vmem:[%s10246_s7 + $0x848] sm:$0xff] }
 0x782   : > { %4585 = vmatpush.msra.mxu2 %v3530_v43  ;;  %4605 = vmatpush.msrb.mxu0 %v3562_v41  ;;  %v3732_v30 = vld [vmem:[%s10246_s7 + $0xa58] sm:$0xff]  ;;  %v3698_v60 = vld [vmem:[%s10246_s7 + $0x948] sm:$0xff] }
 0x783   : > { %4625 = vmatpush.msrb.mxu3 %v3594_v0  ;;  %4645 = vmatpush.msra.mxu1 %v3626_v47  ;;  %v3764_v25 = vld [vmem:[%s10246_s7 + $0xb58] sm:$0xff]  ;;  %v3730_v43 = vld [vmem:[%s10246_s7 + $0xa48] sm:$0xff] }
 0x784   : > { %4586 = vmatmul.f32.vlgmr.msra.gmra.mxu2 %v4049_v54  ;;  %4606 = vmatmul.f32.vlgmr.msrb.gmra.mxu0 %v4050_v23  ;;  %v3686_v54 = vld [vmem:[%s10246_s7 + $0x8e8] sm:$0xff]  ;;  %v3664_v0 = vld [vmem:[%s10246_s7 + $0x838] sm:$0xff] }
 0x785   : > { %4626 = vmatmul.f32.vlgmr.msrb.gmra.mxu3 %v4051_v46  ;;  %4646 = vmatmul.f32.vlgmr.msra.gmra.mxu1 %v4052_v20  ;;  %v3718_v23 = vld [vmem:[%s10246_s7 + $0x9e8] sm:$0xff]  ;;  %v3716_v20 = vld [vmem:[%s10246_s7 + $0x9d8] sm:$0xff] }
 0x786   : > { %4650 = vmatpush.msrb.mxu2 %v3688_v49  ;;  %4670 = vmatpush.msra.mxu0 %v3720_v16  ;;  %v3782_v46 = vld [vmem:[%s10246_s7 + $0xbe8] sm:$0xff]  ;;  %v3696_v47 = vld [vmem:[%s10246_s7 + $0x938] sm:$0xff] }
 0x787   : > { %4690 = vmatpush.msra.mxu3 %v3752_v36  ;;  %4710 = vmatpush.msrb.mxu1 %v3784_v7  ;;  %v3762_v41 = vld [vmem:[%s10246_s7 + $0xb48] sm:$0xff]  ;;  %v3728_v49 = vld [vmem:[%s10246_s7 + $0xa38] sm:$0xff] }
 0x788   : > { %4651 = vmatpush.msrb.mxu2 %v3686_v54  ;;  %4671 = vmatpush.msra.mxu0 %v3718_v23  ;;  %v3760_v16 = vld [vmem:[%s10246_s7 + $0xb38] sm:$0xff]  ;;  %v3662_v36 = vld [vmem:[%s10246_s7 + $0x828] sm:$0xff] }
 0x789   : > { %4691 = vmatpush.msra.mxu3 %v3750_v38  ;;  %4711 = vmatpush.msrb.mxu1 %v3782_v46  ;;  %v3694_v7 = vld [vmem:[%s10246_s7 + $0x928] sm:$0xff]  ;;  %v3660_v38 = vld [vmem:[%s10246_s7 + $0x818] sm:$0xff] }
 0x78a   : > { %4652 = vmatpush.msrb.mxu2 %v3684_v62  ;;  %4672 = vmatpush.msra.mxu0 %v3716_v20  ;;  %v3726_v54 = vld [vmem:[%s10246_s7 + $0xa28] sm:$0xff]  ;;  %v3692_v46 = vld [vmem:[%s10246_s7 + $0x918] sm:$0xff] }
 0x78b   : > { %4692 = vmatpush.msra.mxu3 %v3748_v53  ;;  %4712 = vmatpush.msrb.mxu1 %v3780_v55  ;;  %v3758_v23 = vld [vmem:[%s10246_s7 + $0xb28] sm:$0xff]  ;;  %v3724_v62 = vld [vmem:[%s10246_s7 + $0xa18] sm:$0xff] }
 0x78c   : > { %4653 = vmatpush.msrb.mxu2 %v3682_v15  ;;  %4673 = vmatpush.msra.mxu0 %v3714_v27  ;;  %v3756_v20 = vld [vmem:[%s10246_s7 + $0xb18] sm:$0xff]  ;;  %v3658_v53 = vld [vmem:[%s10246_s7 + $0x808] sm:$0xff] }
 0x78d   : > { %4693 = vmatpush.msra.mxu3 %v3746_v50  ;;  %4713 = vmatpush.msrb.mxu1 %v3778_v8  ;;  %v3690_v55 = vld [vmem:[%s10246_s7 + $0x908] sm:$0xff]  ;;  %v3816_v50 = vld [vmem:[%s10246_s7 + $0xcf8] sm:$0xff] }
 0x78e   : > { %4654 = vmatpush.msrb.mxu2 %v3680_v3  ;;  %4674 = vmatpush.msra.mxu0 %v3712_v6  ;;  %v3722_v15 = vld [vmem:[%s10246_s7 + $0xa08] sm:$0xff]  ;;  %v3848_v8 = vld [vmem:[%s10246_s7 + $0xdf8] sm:$0xff] }
 0x78f   : > { %4694 = vmatpush.msra.mxu3 %v3744_v10  ;;  %4714 = vmatpush.msrb.mxu1 %v3776_v51  ;;  %v3754_v27 = vld [vmem:[%s10246_s7 + $0xb08] sm:$0xff]  ;;  %v3880_v3 = vld [vmem:[%s10246_s7 + $0xef8] sm:$0xff] }
 0x790   : > { %4655 = vmatpush.msrb.mxu2 %v3678_v34  ;;  %4675 = vmatpush.msra.mxu0 %v3710_v37  ;;  %v3912_v6 = vld [vmem:[%s10246_s7 + $0xff8] sm:$0xff]  ;;  %v3878_v10 = vld [vmem:[%s10246_s7 + $0xee8] sm:$0xff] }
 0x791   : > { %4695 = vmatpush.msra.mxu3 %v3742_v13  ;;  %4715 = vmatpush.msrb.mxu1 %v3774_v19  ;;  %v3844_v51 = vld [vmem:[%s10246_s7 + $0xdd8] sm:$0xff]  ;;  %v3810_v13 = vld [vmem:[%s10246_s7 + $0xcc8] sm:$0xff] }
 0x792   : > { %4656 = vmatpush.msrb.mxu2 %v3676_v33  ;;  %4676 = vmatpush.msra.mxu0 %v3708_v31  ;;  %v3876_v34 = vld [vmem:[%s10246_s7 + $0xed8] sm:$0xff]  ;;  %v3842_v19 = vld [vmem:[%s10246_s7 + $0xdc8] sm:$0xff] }
 0x793   : > { %4696 = vmatpush.msra.mxu3 %v3740_v48  ;;  %4716 = vmatpush.msrb.mxu1 %v3772_v26  ;;  %v3908_v37 = vld [vmem:[%s10246_s7 + $0xfd8] sm:$0xff]  ;;  %v3874_v33 = vld [vmem:[%s10246_s7 + $0xec8] sm:$0xff] }
 0x794   : > { %4657 = vmatpush.msrb.mxu2 %v3674_v4  ;;  %4677 = vmatpush.msra.mxu0 %v3706_v18  ;;  %v3906_v31 = vld [vmem:[%s10246_s7 + $0xfc8] sm:$0xff]  ;;  %v3808_v48 = vld [vmem:[%s10246_s7 + $0xcb8] sm:$0xff] }
 0x795   : > { %4697 = vmatpush.msra.mxu3 %v3738_v1  ;;  %4717 = vmatpush.msrb.mxu1 %v3770_v35  ;;  %v3840_v26 = vld [vmem:[%s10246_s7 + $0xdb8] sm:$0xff]  ;;  %v3806_v1 = vld [vmem:[%s10246_s7 + $0xca8] sm:$0xff] }
 0x796   : > { %4658 = vmatpush.msrb.mxu2 %v3672_v42  ;;  %4678 = vmatpush.msra.mxu0 %v3704_v63  ;;  %v3872_v4 = vld [vmem:[%s10246_s7 + $0xeb8] sm:$0xff]  ;;  %v3838_v35 = vld [vmem:[%s10246_s7 + $0xda8] sm:$0xff] }
 0x797   : > { %4698 = vmatpush.msra.mxu3 %v3736_v45  ;;  %4718 = vmatpush.msrb.mxu1 %v3768_v17  ;;  %v3904_v18 = vld [vmem:[%s10246_s7 + $0xfb8] sm:$0xff]  ;;  %v3870_v42 = vld [vmem:[%s10246_s7 + $0xea8] sm:$0xff] }
 0x798   : > { %4659 = vmatpush.msrb.mxu2 %v3670_v61  ;;  %4679 = vmatpush.msra.mxu0 %v3702_v28  ;;  %v3902_v63 = vld [vmem:[%s10246_s7 + $0xfa8] sm:$0xff]  ;;  %v3804_v45 = vld [vmem:[%s10246_s7 + $0xc98] sm:$0xff] }
 0x799   : > { %4699 = vmatpush.msra.mxu3 %v3734_v59  ;;  %4719 = vmatpush.msrb.mxu1 %v3766_v40  ;;  %v3836_v17 = vld [vmem:[%s10246_s7 + $0xd98] sm:$0xff]  ;;  %v3802_v59 = vld [vmem:[%s10246_s7 + $0xc88] sm:$0xff] }
 0x79a   : > { %4660 = vmatpush.msrb.mxu2 %v3668_v39  ;;  %4680 = vmatpush.msra.mxu0 %v3700_v2  ;;  %v3868_v61 = vld [vmem:[%s10246_s7 + $0xe98] sm:$0xff]  ;;  %v3834_v40 = vld [vmem:[%s10246_s7 + $0xd88] sm:$0xff] }
 0x79b   : > { %4700 = vmatpush.msra.mxu3 %v3732_v30  ;;  %4720 = vmatpush.msrb.mxu1 %v3764_v25  ;;  %v3900_v28 = vld [vmem:[%s10246_s7 + $0xf98] sm:$0xff]  ;;  %v3866_v39 = vld [vmem:[%s10246_s7 + $0xe88] sm:$0xff] }
 0x79c   : > { %4661 = vmatpush.msrb.mxu2 %v3666_v24  ;;  %4681 = vmatpush.msra.mxu0 %v3698_v60  ;;  %v3898_v2 = vld [vmem:[%s10246_s7 + $0xf88] sm:$0xff]  ;;  %v3800_v30 = vld [vmem:[%s10246_s7 + $0xc78] sm:$0xff] }
 0x79d   : > { %4701 = vmatpush.msra.mxu3 %v3730_v43  ;;  %4721 = vmatpush.msrb.mxu1 %v3762_v41  ;;  %v3832_v25 = vld [vmem:[%s10246_s7 + $0xd78] sm:$0xff]  ;;  %v3798_v43 = vld [vmem:[%s10246_s7 + $0xc68] sm:$0xff] }
 0x79e   : > { %4662 = vmatpush.msrb.mxu2 %v3664_v0  ;;  %4682 = vmatpush.msra.mxu0 %v3696_v47  ;;  %v3864_v24 = vld [vmem:[%s10246_s7 + $0xe78] sm:$0xff]  ;;  %v3830_v41 = vld [vmem:[%s10246_s7 + $0xd68] sm:$0xff]  ;;  %v9848_v0 = vld [vmem:[%s10247_s8] sm:$0x3] }
 0x79f   : > { %4702 = vmatpush.msra.mxu3 %v3728_v49  ;;  %4722 = vmatpush.msrb.mxu1 %v3760_v16  ;;  %v3896_v60 = vld [vmem:[%s10246_s7 + $0xf78] sm:$0xff]  ;;  %v3862_v47 = vld [vmem:[%s10246_s7 + $0xe68] sm:$0xff] }
 0x7a0   : > { %4663 = vmatpush.msrb.mxu2 %v3662_v36  ;;  %4683 = vmatpush.msra.mxu0 %v3694_v7  ;;  %v3894_v49 = vld [vmem:[%s10246_s7 + $0xf68] sm:$0xff]  ;;  %v3796_v16 = vld [vmem:[%s10246_s7 + $0xc58] sm:$0xff] }
 0x7a1   : > { %4703 = vmatpush.msra.mxu3 %v3726_v54  ;;  %4723 = vmatpush.msrb.mxu1 %v3758_v23  ;;  %v3828_v36 = vld [vmem:[%s10246_s7 + $0xd58] sm:$0xff]  ;;  %v4086_v23 = vperm.slane %v9848_v0, 0 }
 0x7a2   : > { %4664 = vmatpush.msrb.mxu2 %v3660_v38  ;;  %4684 = vmatpush.msra.mxu0 %v3692_v46  ;;  %v3860_v7 = vld [vmem:[%s10246_s7 + $0xe58] sm:$0xff]  ;;  %v3794_v38 = vld [vmem:[%s10246_s7 + $0xc48] sm:$0xff] }
 0x7a3   : > { %4704 = vmatpush.msra.mxu3 %v3724_v62  ;;  %4724 = vmatpush.msrb.mxu1 %v3756_v20  ;;  %v3892_v54 = vld [vmem:[%s10246_s7 + $0xf58] sm:$0xff]  ;;  %v3826_v46 = vld [vmem:[%s10246_s7 + $0xd48] sm:$0xff]  ;;  %v4107_v62 = vpop.f32.mrf.mxu2 }
 0x7a4   : > { %4665 = vmatpush.msrb.mxu2 %v3658_v53  ;;  %4685 = vmatpush.msra.mxu0 %v3690_v55  ;;  %v3858_v20 = vld [vmem:[%s10246_s7 + $0xe48] sm:$0xff]  ;;  %v3792_v55 = vld [vmem:[%s10246_s7 + $0xc38] sm:$0xff] }
 0x7a5   : > { %4705 = vmatpush.msra.mxu3 %v3722_v15  ;;  %4725 = vmatpush.msrb.mxu1 %v3754_v27  ;;  %v3890_v53 = vld [vmem:[%s10246_s7 + $0xf48] sm:$0xff]  ;;  %v3824_v15 = vld [vmem:[%s10246_s7 + $0xd38] sm:$0xff] }
 0x7a6   : > { %4666 = vmatmul.f32.vlgmr.msrb.gmra.mxu2 %v4053_v11  ;;  %4686 = vmatmul.f32.vlgmr.msra.gmra.mxu0 %v4054_v14  ;;  %v3814_v11 = vld [vmem:[%s10246_s7 + $0xce8] sm:$0xff]  ;;  %v3856_v27 = vld [vmem:[%s10246_s7 + $0xe38] sm:$0xff] }
 0x7a7   : > { %4706 = vmatmul.f32.vlgmr.msra.gmra.mxu3 %v4055_v32  ;;  %4726 = vmatmul.f32.vlgmr.msrb.gmra.mxu1 %v4056_v29  ;;  %v3846_v14 = vld [vmem:[%s10246_s7 + $0xde8] sm:$0xff]  ;;  %v3812_v29 = vld [vmem:[%s10246_s7 + $0xcd8] sm:$0xff] }
 0x7a8   : > { %4730 = vmatpush.msra.mxu2 %v3816_v50  ;;  %4750 = vmatpush.msrb.mxu0 %v3848_v8  ;;  %v3910_v32 = vld [vmem:[%s10246_s7 + $0xfe8] sm:$0xff]  ;;  %v3888_v50 = vld [vmem:[%s10246_s7 + $0xf38] sm:$0xff]  ;;  %v4108_v8 = vadd.f32 %v4107_v62, %v4086_v23 }
 0x7a9   : > { %4770 = vmatpush.msrb.mxu3 %v3880_v3  ;;  %4790 = vmatpush.msra.mxu1 %v3912_v6  ;;  %v3790_v3 = vld [vmem:[%s10246_s7 + $0xc28] sm:$0xff]  ;;  %v3964_v23 = vld [vmem:[%s10246_s7 + $0x1198] sm:$0xff] }
 0x7aa   : > { %4731 = vmatpush.msra.mxu2 %v3814_v11  ;;  %4751 = vmatpush.msrb.mxu0 %v3846_v14  ;;  %v3822_v6 = vld [vmem:[%s10246_s7 + $0xd28] sm:$0xff]  ;;  %v4903_v9 = vld [vmem:[%s10248_s9 + $0x58] sm:$0xff] }
 0x7ab   : > { %4771 = vmatpush.msrb.mxu3 %v3878_v10  ;;  %4791 = vmatpush.msra.mxu1 %v3910_v32  ;;  %v3854_v11 = vld [vmem:[%s10246_s7 + $0xe28] sm:$0xff]  ;;  %v3788_v10 = vld [vmem:[%s10246_s7 + $0xc18] sm:$0xff] }
 0x7ac   : > { %4732 = vmatpush.msra.mxu2 %v3812_v29  ;;  %4752 = vmatpush.msrb.mxu0 %v3844_v51  ;;  %v3886_v14 = vld [vmem:[%s10246_s7 + $0xf28] sm:$0xff]  ;;  %v3820_v32 = vld [vmem:[%s10246_s7 + $0xd18] sm:$0xff]  ;;  %v4127_v29 = vpop.f32.mrf.mxu0 }
 0x7ad   : > { %4772 = vmatpush.msrb.mxu3 %v3876_v34  ;;  %4792 = vmatpush.msra.mxu1 %v3908_v37  ;;  %v3852_v51 = vld [vmem:[%s10246_s7 + $0xe18] sm:$0xff]  ;;  %v4128_v37 = vadd.f32 %v4127_v29, %v4108_v8  ;;  %v3930_v62 = vld [vmem:[%s10246_s7 + $0x1088] sm:$0xff] }
 0x7ae   : > { %4733 = vmatpush.msra.mxu2 %v3810_v13  ;;  %4753 = vmatpush.msrb.mxu0 %v3842_v19  ;;  %v3884_v34 = vld [vmem:[%s10246_s7 + $0xf18] sm:$0xff]  ;;  %v3786_v13 = vld [vmem:[%s10246_s7 + $0xc08] sm:$0xff] }
 0x7af   : > { %4773 = vmatpush.msrb.mxu3 %v3874_v33  ;;  %4793 = vmatpush.msra.mxu1 %v3906_v31  ;;  %v3818_v19 = vld [vmem:[%s10246_s7 + $0xd08] sm:$0xff]  ;;  %v3960_v8 = vld [vmem:[%s10246_s7 + $0x1178] sm:$0xff] }
 0x7b0   : > { %4734 = vmatpush.msra.mxu2 %v3808_v48  ;;  %4754 = vmatpush.msrb.mxu0 %v3840_v26  ;;  %v3850_v33 = vld [vmem:[%s10246_s7 + $0xe08] sm:$0xff]  ;;  %v4147_v48 = vpop.f32.mrf.mxu3 }
 0x7b1   : > { %4774 = vmatpush.msrb.mxu3 %v3872_v4  ;;  %4794 = vmatpush.msra.mxu1 %v3904_v18  ;;  %v3882_v31 = vld [vmem:[%s10246_s7 + $0xf08] sm:$0xff]  ;;  %v4148_v26 = vadd.f32 %v4147_v48, %v4128_v37  ;;  %v3944_v4 = vld [vmem:[%s10246_s7 + $0x10f8] sm:$0xff] }
 0x7b2   : > { %4735 = vmatpush.msra.mxu2 %v3806_v1  ;;  %4755 = vmatpush.msrb.mxu0 %v3838_v35  ;;  %v3976_v18 = vld [vmem:[%s10246_s7 + $0x11f8] sm:$0xff]  ;;  %v3990_v29 = vld [vmem:[%s10246_s7 + $0x1268] sm:$0xff] }
 0x7b3   : > { %4775 = vmatpush.msrb.mxu3 %v3870_v42  ;;  %4795 = vmatpush.msra.mxu1 %v3902_v63  ;;  %v4008_v1 = vld [vmem:[%s10246_s7 + $0x12f8] sm:$0xff]  ;;  %v4167_v42 = vpop.f32.mrf.mxu1  ;;  %v4006_v63 = vld [vmem:[%s10246_s7 + $0x12e8] sm:$0xff] }
 0x7b4   : > { %4736 = vmatpush.msra.mxu2 %v3804_v45  ;;  %4756 = vmatpush.msrb.mxu0 %v3836_v17  ;;  %v4040_v35 = vld [vmem:[%s10246_s7 + $0x13f8] sm:$0xff]  ;;  %v4187_v17 = vpop.f32.mrf.mxu2  ;;  %v3922_v48 = vld [vmem:[%s10246_s7 + $0x1048] sm:$0xff] }
 0x7b5   : > { %4776 = vmatpush.msrb.mxu3 %v3868_v61  ;;  %4796 = vmatpush.msra.mxu1 %v3900_v28  ;;  %v3972_v45 = vld [vmem:[%s10246_s7 + $0x11d8] sm:$0xff] }
 0x7b6   : > { %4737 = vmatpush.msra.mxu2 %v3802_v59  ;;  %4757 = vmatpush.msrb.mxu0 %v3834_v40  ;;  %v4004_v61 = vld [vmem:[%s10246_s7 + $0x12d8] sm:$0xff]  ;;  %v3938_v59 = vld [vmem:[%s10246_s7 + $0x10c8] sm:$0xff] }
 0x7b7   : > { %4777 = vmatpush.msrb.mxu3 %v3866_v39  ;;  %4797 = vmatpush.msra.mxu1 %v3898_v2  ;;  %v4036_v28 = vld [vmem:[%s10246_s7 + $0x13d8] sm:$0xff]  ;;  %v3970_v40 = vld [vmem:[%s10246_s7 + $0x11c8] sm:$0xff] }
 0x7b8   : > { %4738 = vmatpush.msra.mxu2 %v3800_v30  ;;  %4758 = vmatpush.msrb.mxu0 %v3832_v25  ;;  %v4002_v39 = vld [vmem:[%s10246_s7 + $0x12c8] sm:$0xff]  ;;  %v3936_v25 = vld [vmem:[%s10246_s7 + $0x10b8] sm:$0xff] }
 0x7b9   : > { %4778 = vmatpush.msrb.mxu3 %v3864_v24  ;;  %4798 = vmatpush.msra.mxu1 %v3896_v60  ;;  %v4034_v2 = vld [vmem:[%s10246_s7 + $0x13c8] sm:$0xff]  ;;  %v3968_v24 = vld [vmem:[%s10246_s7 + $0x11b8] sm:$0xff] }
 0x7ba   : > { %4739 = vmatpush.msra.mxu2 %v3798_v43  ;;  %4759 = vmatpush.msrb.mxu0 %v3830_v41  ;;  %v4000_v60 = vld [vmem:[%s10246_s7 + $0x12b8] sm:$0xff]  ;;  %v3934_v41 = vld [vmem:[%s10246_s7 + $0x10a8] sm:$0xff] }
 0x7bb   : > { %4779 = vmatpush.msrb.mxu3 %v3862_v47  ;;  %4799 = vmatpush.msra.mxu1 %v3894_v49  ;;  %v4032_v43 = vld [vmem:[%s10246_s7 + $0x13b8] sm:$0xff]  ;;  %v3966_v47 = vld [vmem:[%s10246_s7 + $0x11a8] sm:$0xff]  ;;  %v4207_v49 = vpop.f32.mrf.mxu0 }
 0x7bc   : > { %4740 = vmatpush.msra.mxu2 %v3796_v16  ;;  %4760 = vmatpush.msrb.mxu0 %v3828_v36  ;;  %v3998_v16 = vld [vmem:[%s10246_s7 + $0x12a8] sm:$0xff]  ;;  %v3924_v37 = vld [vmem:[%s10246_s7 + $0x1058] sm:$0xff] }
 0x7bd   : > { %4780 = vmatpush.msrb.mxu3 %v3860_v7  ;;  %4800 = vmatpush.msra.mxu1 %v3892_v54  ;;  %v4030_v36 = vld [vmem:[%s10246_s7 + $0x13a8] sm:$0xff]  ;;  %v3932_v54 = vld [vmem:[%s10246_s7 + $0x1098] sm:$0xff] }
 0x7be   : > { %4741 = vmatpush.msra.mxu2 %v3794_v38  ;;  %4761 = vmatpush.msrb.mxu0 %v3826_v46  ;;  %v3996_v38 = vld [vmem:[%s10246_s7 + $0x1298] sm:$0xff] }
 0x7bf   : > { %4781 = vmatpush.msrb.mxu3 %v3858_v20  ;;  %4801 = vmatpush.msra.mxu1 %v3890_v53  ;;  %v4028_v46 = vld [vmem:[%s10246_s7 + $0x1398] sm:$0xff]  ;;  %v3962_v20 = vld [vmem:[%s10246_s7 + $0x1188] sm:$0xff]  ;;  %v4227_v53 = vpop.f32.mrf.mxu3 }
 0x7c0   : > { %4742 = vmatpush.msra.mxu2 %v3792_v55  ;;  %4762 = vmatpush.msrb.mxu0 %v3824_v15  ;;  %v3994_v55 = vld [vmem:[%s10246_s7 + $0x1288] sm:$0xff] }
 0x7c1   : > { %4782 = vmatpush.msrb.mxu3 %v3856_v27  ;;  %4802 = vmatpush.msra.mxu1 %v3888_v50  ;;  %v4026_v15 = vld [vmem:[%s10246_s7 + $0x1388] sm:$0xff]  ;;  %v3928_v50 = vld [vmem:[%s10246_s7 + $0x1078] sm:$0xff] }
 0x7c2   : > { %4743 = vmatpush.msra.mxu2 %v3790_v3  ;;  %4763 = vmatpush.msrb.mxu0 %v3822_v6  ;;  %v3992_v3 = vld [vmem:[%s10246_s7 + $0x1278] sm:$0xff] }
 0x7c3   : > { %4783 = vmatpush.msrb.mxu3 %v3854_v11  ;;  %4803 = vmatpush.msra.mxu1 %v3886_v14  ;;  %v4024_v6 = vld [vmem:[%s10246_s7 + $0x1378] sm:$0xff]  ;;  %v3926_v11 = vld [vmem:[%s10246_s7 + $0x1068] sm:$0xff] }
 0x7c4   : > { %4744 = vmatpush.msra.mxu2 %v3788_v10  ;;  %4764 = vmatpush.msrb.mxu0 %v3820_v32  ;;  %v3958_v14 = vld [vmem:[%s10246_s7 + $0x1168] sm:$0xff]  ;;  %v4247_v10 = vpop.f32.mrf.mxu1  ;;  %v4267_v32 = vpop.f32.mrf.mxu2 }
 0x7c5   : > { %4784 = vmatpush.msrb.mxu3 %v3852_v51  ;;  %4804 = vmatpush.msra.mxu1 %v3884_v34  ;;  %v4022_v51 = vld [vmem:[%s10246_s7 + $0x1368] sm:$0xff] }
 0x7c6   : > { %4745 = vmatpush.msra.mxu2 %v3786_v13  ;;  %4765 = vmatpush.msrb.mxu0 %v3818_v19  ;;  %v3956_v13 = vld [vmem:[%s10246_s7 + $0x1158] sm:$0xff] }
 0x7c7   : > { %4785 = vmatpush.msrb.mxu3 %v3850_v33  ;;  %4805 = vmatpush.msra.mxu1 %v3882_v31  ;;  %v3988_v19 = vld [vmem:[%s10246_s7 + $0x1258] sm:$0xff] }
 0x7c8   : > { %4746 = vmatmul.f32.vlgmr.msra.gmra.mxu2 %v4057_v56  ;;  %4766 = vmatmul.f32.vlgmr.msrb.gmra.mxu0 %v4058_v21  ;;  %v3942_v56 = vld [vmem:[%s10246_s7 + $0x10e8] sm:$0xff]  ;;  %v4020_v33 = vld [vmem:[%s10246_s7 + $0x1358] sm:$0xff] }
 0x7c9   : > { %4786 = vmatmul.f32.vlgmr.msrb.gmra.mxu3 %v4059_v22  ;;  %4806 = vmatmul.f32.vlgmr.msra.gmra.mxu1 %v4060_v58  ;;  %v3974_v21 = vld [vmem:[%s10246_s7 + $0x11e8] sm:$0xff]  ;;  %v4168_v22 = vadd.f32 %v4167_v42, %v4148_v26  ;;  %v3940_v58 = vld [vmem:[%s10246_s7 + $0x10d8] sm:$0xff] }
 0x7ca   : > { %4810 = vmatpush.msrb.mxu2 %v3944_v4  ;;  %4830 = vmatpush.msra.mxu0 %v3976_v18  ;;  %v3954_v26 = vld [vmem:[%s10246_s7 + $0x1148] sm:$0xff]  ;;  %v4016_v42 = vld [vmem:[%s10246_s7 + $0x1338] sm:$0xff] }
 0x7cb   : > { %4850 = vmatpush.msra.mxu3 %v4008_v1  ;;  %4870 = vmatpush.msrb.mxu1 %v4040_v35  ;;  %v4188_v30 = vadd.f32 %v4187_v17, %v4168_v22  ;;  %v3986_v4 = vld [vmem:[%s10246_s7 + $0x1248] sm:$0xff]  ;;  %v3920_v1 = vld [vmem:[%s10246_s7 + $0x1038] sm:$0xff] }
 0x7cc   : > { %4811 = vmatpush.msrb.mxu2 %v3942_v56  ;;  %4831 = vmatpush.msra.mxu0 %v3974_v21  ;;  %v4018_v18 = vld [vmem:[%s10246_s7 + $0x1348] sm:$0xff]  ;;  %v3952_v35 = vld [vmem:[%s10246_s7 + $0x1138] sm:$0xff]  ;;  %v4287_v56 = vpop.f32.mrf.mxu0 }
 0x7cd   : > { %4851 = vmatpush.msra.mxu3 %v4006_v63  ;;  %4871 = vmatpush.msrb.mxu1 %v4038_v52  ;;  %v4208_v7 = vadd.f32 %v4207_v49, %v4188_v30  ;;  %v3984_v21 = vld [vmem:[%s10246_s7 + $0x1238] sm:$0xff]  ;;  %v3918_v52 = vld [vmem:[%s10246_s7 + $0x1028] sm:$0xff] }
 0x7ce   : > { %4812 = vmatpush.msrb.mxu2 %v3940_v58  ;;  %4832 = vmatpush.msra.mxu0 %v3972_v45  ;;  %v3950_v22 = vld [vmem:[%s10246_s7 + $0x1128] sm:$0xff]  ;;  %v3916_v17 = vld [vmem:[%s10246_s7 + $0x1018] sm:$0xff] }
 0x7cf   : > { %4852 = vmatpush.msra.mxu3 %v4004_v61  ;;  %4872 = vmatpush.msrb.mxu1 %v4036_v28  ;;  %v4228_v27 = vadd.f32 %v4227_v53, %v4208_v7  ;;  %v3982_v58 = vld [vmem:[%s10246_s7 + $0x1228] sm:$0xff]  ;;  %v3948_v61 = vld [vmem:[%s10246_s7 + $0x1118] sm:$0xff]  ;;  %v4307_v28 = vpop.f32.mrf.mxu3 }
 0x7d0   : > { %4813 = vmatpush.msrb.mxu2 %v3938_v59  ;;  %4833 = vmatpush.msra.mxu0 %v3970_v40  ;;  %v4014_v45 = vld [vmem:[%s10246_s7 + $0x1328] sm:$0xff]  ;;  %v3980_v59 = vld [vmem:[%s10246_s7 + $0x1218] sm:$0xff] }
 0x7d1   : > { %4853 = vmatpush.msra.mxu3 %v4002_v39  ;;  %4873 = vmatpush.msrb.mxu1 %v4034_v2  ;;  %v4248_v34 = vadd.f32 %v4247_v10, %v4228_v27  ;;  %v4012_v40 = vld [vmem:[%s10246_s7 + $0x1318] sm:$0xff]  ;;  %v3914_v2 = vld [vmem:[%s10246_s7 + $0x1008] sm:$0xff]  ;;  %v4894_v10 = vld [vmem:[%s10248_s9 + $0x10] sm:$0xff] }
 0x7d2   : > { %4814 = vmatpush.msrb.mxu2 %v3936_v25  ;;  %4834 = vmatpush.msra.mxu0 %v3968_v24  ;;  %v3946_v30 = vld [vmem:[%s10246_s7 + $0x1108] sm:$0xff] }
 0x7d3   : > { %4854 = vmatpush.msra.mxu3 %v4000_v60  ;;  %4874 = vmatpush.msrb.mxu1 %v4032_v43  ;;  %v4268_v31 = vadd.f32 %v4267_v32, %v4248_v34  ;;  %v3978_v25 = vld [vmem:[%s10246_s7 + $0x1208] sm:$0xff]  ;;  %v4327_v60 = vpop.f32.mrf.mxu1  ;;  %v4347_v43 = vpop.f32.mrf.mxu2  ;;  %v4892_v34 = vld [vmem:[%s10248_s9] sm:$0xff] }
 0x7d4   : > { %4815 = vmatpush.msrb.mxu2 %v3934_v41  ;;  %4835 = vmatpush.msra.mxu0 %v3966_v47  ;;  %v4010_v24 = vld [vmem:[%s10246_s7 + $0x1308] sm:$0xff]  ;;  %v4907_v47 = vld [vmem:[%s10248_s9 + $0x78] sm:$0xff] }
 0x7d5   : > { %4855 = vmatpush.msra.mxu3 %v3998_v16  ;;  %4875 = vmatpush.msrb.mxu1 %v4030_v36  ;;  %v4288_v63 = vadd.f32 %v4287_v56, %v4268_v31  ;;  %v4906_v16 = vld [vmem:[%s10248_s9 + $0x70] sm:$0xff]  ;;  %v4905_v36 = vld [vmem:[%s10248_s9 + $0x68] sm:$0xff] }
 0x7d6   : > { %4816 = vmatpush.msrb.mxu2 %v3932_v54  ;;  %4836 = vmatpush.msra.mxu0 %v3964_v23  ;;  %v4902_v54 = vld [vmem:[%s10248_s9 + $0x50] sm:$0xff]  ;;  %v4901_v23 = vld [vmem:[%s10248_s9 + $0x48] sm:$0xff] }
 0x7d7   : > { %4856 = vmatpush.msra.mxu3 %v3996_v38  ;;  %4876 = vmatpush.msrb.mxu1 %v4028_v46  ;;  %v4308_v39 = vadd.f32 %v4307_v28, %v4288_v63  ;;  %v4910_v28 = vld [vmem:[%s10248_s9 + $0x90] sm:$0xff] }
 0x7d8   : > { %4817 = vmatpush.msrb.mxu2 %v3930_v62  ;;  %4837 = vmatpush.msra.mxu0 %v3962_v20  ;;  %v4900_v20 = vld [vmem:[%s10248_s9 + $0x40] sm:$0xff] }
 0x7d9   : > { %4857 = vmatpush.msra.mxu3 %v3994_v55  ;;  %4877 = vmatpush.msrb.mxu1 %v4026_v15  ;;  %v4328_v41 = vadd.f32 %v4327_v60, %v4308_v39  ;;  %v4899_v55 = vld [vmem:[%s10248_s9 + $0x38] sm:$0xff]  ;;  %v4898_v15 = vld [vmem:[%s10248_s9 + $0x30] sm:$0xff]  ;;  %v4909_v39 = vld [vmem:[%s10248_s9 + $0x88] sm:$0xff] }
 0x7da   : > { %4818 = vmatpush.msrb.mxu2 %v3928_v50  ;;  %4838 = vmatpush.msra.mxu0 %v3960_v8  ;;  %v4897_v8 = vld [vmem:[%s10248_s9 + $0x28] sm:$0xff] }
 0x7db   : > { %4858 = vmatpush.msra.mxu3 %v3992_v3  ;;  %4878 = vmatpush.msrb.mxu1 %v4024_v6  ;;  %v4348_v49 = vadd.f32 %v4347_v43, %v4328_v41  ;;  %v4407_v38 = vpop.f32.mrf.mxu1  ;;  %v4896_v3 = vld [vmem:[%s10248_s9 + $0x20] sm:$0xff] }
 0x7dc   : > { %4819 = vmatpush.msrb.mxu2 %v3926_v11  ;;  %4839 = vmatpush.msra.mxu0 %v3958_v14  ;;  %v4895_v14 = vld [vmem:[%s10248_s9 + $0x18] sm:$0xff] }
 0x7dd   : > { %4859 = vmatpush.msra.mxu3 %v3990_v29  ;;  %4879 = vmatpush.msrb.mxu1 %v4022_v51  ;;  %v4893_v51 = vld [vmem:[%s10248_s9 + $0x8] sm:$0xff] }
 0x7de   : > { %4820 = vmatpush.msrb.mxu2 %v3924_v37  ;;  %4840 = vmatpush.msra.mxu0 %v3956_v13  ;;  %v4087_v13 = vperm.slane %v9848_v0, 1  ;;  %v4912_v0 = vld [vmem:[%s10248_s9 + $0xa0] sm:$0x7] }
 0x7df   : > { %4860 = vmatpush.msra.mxu3 %v3988_v19  ;;  %4880 = vmatpush.msrb.mxu1 %v4020_v33  ;;  %v4427_v46 = vpop.f32.mrf.mxu2 }
 0x7e0   : > { %4821 = vmatpush.msrb.mxu2 %v3922_v48  ;;  %4841 = vmatpush.msra.mxu0 %v3954_v26 }
 0x7e1   : > { %4861 = vmatpush.msra.mxu3 %v3986_v4  ;;  %4881 = vmatpush.msrb.mxu1 %v4018_v18 }
 0x7e2   : > { %4822 = vmatpush.msrb.mxu2 %v3920_v1  ;;  %4842 = vmatpush.msra.mxu0 %v3952_v35 }
 0x7e3   : > { %4862 = vmatpush.msra.mxu3 %v3984_v21  ;;  %4882 = vmatpush.msrb.mxu1 %v4016_v42  ;;  %v4487_v32 = vpop.f32.mrf.mxu1 }
 0x7e4   : > { %4823 = vmatpush.msrb.mxu2 %v3918_v52  ;;  %4843 = vmatpush.msra.mxu0 %v3950_v22 }
 0x7e5   : > { %4863 = vmatpush.msra.mxu3 %v3982_v58  ;;  %4883 = vmatpush.msrb.mxu1 %v4014_v45 }
 0x7e6   : > { %4824 = vmatpush.msrb.mxu2 %v3916_v17  ;;  %4844 = vmatpush.msra.mxu0 %v3948_v61  ;;  %v4911_v61 = vld [vmem:[%s10248_s9 + $0x98] sm:$0xff] }
 0x7e7   : > { %4864 = vmatpush.msra.mxu3 %v3980_v59  ;;  %4884 = vmatpush.msrb.mxu1 %v4012_v40 }
 0x7e8   : > { %4825 = vmatpush.msrb.mxu2 %v3914_v2  ;;  %4845 = vmatpush.msra.mxu0 %v3946_v30  ;;  %v4908_v2 = vld [vmem:[%s10248_s9 + $0x80] sm:$0xff] }
 0x7e9   : > { %4865 = vmatpush.msra.mxu3 %v3978_v25  ;;  %4885 = vmatpush.msrb.mxu1 %v4010_v24 }
 0x7ea   : > { %4826 = vmatmul.f32.vlgmr.msrb.gmra.mxu2 %v4061_v57  ;;  %4846 = vmatmul.f32.vlgmr.msra.gmra.mxu0 %v4062_v5  ;;  %v4367_v57 = vpop.f32.mrf.mxu0  ;;  %v4904_v5 = vld [vmem:[%s10248_s9 + $0x60] sm:$0xff] }
 0x7eb   : > { %4866 = vmatmul.f32.vlgmr.msra.gmra.mxu3 %v4063_v44  ;;  %4886 = vmatmul.f32.vlgmr.msrb.gmra.mxu1 %v4064_v12  ;;  %v4368_v7 = vadd.f32 %v4367_v57, %v4348_v49  ;;  %v4387_v44 = vpop.f32.mrf.mxu3  ;;  %v4507_v19 = vpop.f32.mrf.mxu2 }
 0x7ec   : > { %4922 = vmatpush.msra.mxu2 %v4907_v47  ;;  %v4508_v33 = vadd.f32 %v4507_v19, %v4087_v13  ;;  %v4567_v18 = vpop.f32.mrf.mxu1  ;;  %5155 = vmatpush.msk.msrb.mxu0 %vm4918_vm11, %v4912_v0 }
 0x7ed   : > { %v4388_v12 = vadd.f32 %v4387_v44, %v4368_v7 }
 0x7ee   : > { %4923 = vmatpush.msra.mxu2 %v4906_v16  ;;  %4954 = vmatpush.msrb.mxu0 %v4911_v61 }
 0x7ef   : > { %v4408_v62 = vadd.f32 %v4407_v38, %v4388_v12 }
 0x7f0   : > { %4924 = vmatpush.msra.mxu2 %v4905_v36  ;;  %4955 = vmatpush.msrb.mxu0 %v4910_v28 }
 0x7f1   : > { %v4428_v53 = vadd.f32 %v4427_v46, %v4408_v62 }
 0x7f2   : > { %4925 = vmatpush.msra.mxu2 %v4904_v5  ;;  %v4447_v27 = vpop.f32.mrf.mxu0  ;;  %4956 = vmatpush.msrb.mxu0 %v4909_v39 }
 0x7f3   : > { %v4448_v50 = vadd.f32 %v4447_v27, %v4428_v53  ;;  %v4467_v6 = vpop.f32.mrf.mxu3 }
 0x7f4   : > { %4926 = vmatpush.msra.mxu2 %v4903_v9  ;;  %4957 = vmatpush.msrb.mxu0 %v4908_v2 }
 0x7f5   : > { %v4468_v11 = vadd.f32 %v4467_v6, %v4448_v50 }
 0x7f6   : > { %4927 = vmatpush.msra.mxu2 %v4902_v54 }
 0x7f7   : > { %v4488_v29 = vadd.f32 %v4487_v32, %v4468_v11 }
 0x7f8   : > { %4928 = vmatpush.msra.mxu2 %v4901_v23 }
 0x7f9   : > { %v4890_v37 = vmax.f32 %v4488_v29, 0.0 }
 0x7fa   : > { %4929 = vmatpush.msra.mxu2 %v4900_v20  ;;  %v4527_v31 = vpop.f32.mrf.mxu0  ;;  %v4913_v20 = vld [vmem:[%s10249_s10] sm:$0x1] }
 0x7fb   : > { %v4528_v48 = vadd.f32 %v4527_v31, %v4508_v33  ;;  %v4547_v26 = vpop.f32.mrf.mxu3 }
 0x7fc   : > { %4930 = vmatpush.msra.mxu2 %v4899_v55 }
 0x7fd   : > { %v4548_v4 = vadd.f32 %v4547_v26, %v4528_v48 }
 0x7fe   : > { %4931 = vmatpush.msra.mxu2 %v4898_v15 }
 0x7ff   : > { %v4568_v35 = vadd.f32 %v4567_v18, %v4548_v4 }
 0x800   : > { %4932 = vmatpush.msra.mxu2 %v4897_v8 }
 0x802   : > { %4933 = vmatpush.msra.mxu2 %v4896_v3  ;;  %v4607_v21 = vpop.f32.mrf.mxu0  ;;  %v4647_v22 = vpop.f32.mrf.mxu1 }
 0x804   : > { %4934 = vmatpush.msra.mxu2 %v4895_v14 }
 0x806   : > { %4935 = vmatpush.msra.mxu2 %v4894_v10 }
 0x807   : > { %v4587_v1 = vpop.f32.mrf.mxu2 }
 0x808   : > { %4936 = vmatpush.msra.mxu2 %v4893_v51  ;;  %v4588_v56 = vadd.f32 %v4587_v1, %v4568_v35  ;;  %v4627_v63 = vpop.f32.mrf.mxu3 }
 0x80a   : > { %4937 = vmatpush.msra.mxu2 %v4892_v34  ;;  %v4608_v42 = vadd.f32 %v4607_v21, %v4588_v56 }
 0x80b   : > { %4938 = vmatmul.f32.vlgmr.msra.gmra.mxu2 %v4890_v37 }
 0x80c   : > { %v4628_v52 = vadd.f32 %v4627_v63, %v4608_v42 }
 0x80e   : > { %v4648_v45 = vadd.f32 %v4647_v22, %v4628_v52 }
 0x823   : > { %v4687_v59 = vpop.f32.mrf.mxu0 }
 0x824   : > { %v4727_v24 = vpop.f32.mrf.mxu1 }
 0x829   : > { %v4667_v58 = vpop.f32.mrf.mxu2 }
 0x82a   : > { %v4668_v17 = vadd.f32 %v4667_v58, %v4648_v45  ;;  %v4707_v30 = vpop.f32.mrf.mxu3 }
 0x82c   : > { %v4688_v40 = vadd.f32 %v4687_v59, %v4668_v17 }
 0x82e   : > { %v4708_v25 = vadd.f32 %v4707_v30, %v4688_v40 }
 0x830   : > { %v4728_v43 = vadd.f32 %v4727_v24, %v4708_v25 }
 0x845   : > { %v4767_v47 = vpop.f32.mrf.mxu0 }
 0x846   : > { %v4807_v57 = vpop.f32.mrf.mxu1 }
 0x84b   : > { %v4747_v60 = vpop.f32.mrf.mxu2 }
 0x84c   : > { %v4748_v41 = vadd.f32 %v4747_v60, %v4728_v43  ;;  %v4787_v16 = vpop.f32.mrf.mxu3 }
 0x84e   : > { %v4768_v49 = vadd.f32 %v4767_v47, %v4748_v41 }
 0x850   : > { %v4788_v36 = vadd.f32 %v4787_v16, %v4768_v49 }
 0x852   : > { %v4808_v7 = vadd.f32 %v4807_v57, %v4788_v36 }
 0x867   : > { %v4847_v44 = vpop.f32.mrf.mxu0 }
 0x868   : > { %v4887_v38 = vpop.f32.mrf.mxu1 }
 0x86d   : > { %v4827_v5 = vpop.f32.mrf.mxu2 }
 0x86e   : > { %v4828_v9 = vadd.f32 %v4827_v5, %v4808_v7  ;;  %v4867_v54 = vpop.f32.mrf.mxu3 }
 0x870   : > { %v4848_v12 = vadd.f32 %v4847_v44, %v4828_v9 }
 0x872   : > { %v4868_v23 = vadd.f32 %v4867_v54, %v4848_v12 }
 0x874   : > { %v4888_v46 = vadd.f32 %v4887_v38, %v4868_v23 }
 0x876   : > { %v4891_v62 = vmax.f32 %v4888_v46, 0.0 }
 0x878   : > { %5156 = vmatmul.msk.f32.vlgmr.msrb.gmra.mxu0 %vm4914_vm12, %v4891_v62 }
 0x88e   : > { %v4939_v53 = vpop.f32.mrf.mxu2 }
 0x88f   : > { %v4940_v55 = vadd.f32 %v4939_v53, %v4913_v20 }
 0x8f5   : > { %v4959_v15 = vpop.f32.mrf.mxu0 }
 0x8f6   : > { %v4960_v27 = vadd.f32 %v4959_v15, %v4940_v55 }
 0x8f8   : > { %v4963_v50 = vsel %vm4962_vm13, %v4960_v27, -inf }
 0x8f9   : > { %4964 = vmax.xlane.f32.xlu2 %v4963_v50 }
 0x96c   : > { %v4965_v8 = vpop.xlane.xlu2 %4964 }
 0x96d   : > { %v4966_v3 = vsub.f32 %v4960_v27, %v4965_v8 }
 0x96f   : > { %v4967_v6 = vmul.f32 1.442695, %v4966_v3 }
 0x971   : > { %5332 = vpow2.f32 %v4967_v6 }
 0x977   : > { %v5333_v11 = vpop.eup %5332 }
 0x978   : > { %v4969_v14 = vsel %vm4962_vm13, %v5333_v11, 0.0 }
 0x979   : > { %4970 = vadd.xlane.f32.xlu0 %v4969_v14 }
 0x9ec   : > { %v4971_v10 = vpop.xlane.xlu0 %4970 }
 0x9ed   : > { %5334 = vlog2.f32 %v4971_v10 }
 0x9f3   : > { %v5335_v32 = vpop.eup %5334 }
 0x9f4   : > { %v4973_v29 = vmul.f32 0.6931472, %v5335_v32 }
 0x9f6   : > { %v4974_v51 = vsub.f32 %v4966_v3, %v4973_v29 }
 0x9f8   : > { %4975 = vst.msk [vmem:[%s376_s29] sm:$0x1] %vm4962_vm13, %v4974_v51 }
 0x9f9   : > { %5363 = shalt.err (!%p5360_p3)
}
 0x9fa   : > { %5161 = dma.vmem_to_hbm [thread:$0]  (%p5521_p5), %s4988_s25, 16, %s4990_s0, %s4977_s15  }
 0x9fb PF: > { %p5167_p4 = scmp.ge.s32.totalorder %s5398_s20, 2  ;;  %s5001_s22 = sand.u32 1, %s5386_s17  }
 0x9fc   : > { %s5002_s29 = scalar_lea.sflag [#allocation8], %s5001_s22 }
 0x9fd   : > { %p5164_p7 = pnand %p5167_p4, %p5525_p6 }
 0x9ff   : > { %p5165_p8 = pneg %p5164_p7 }
 0xa01   : > { %5381 = dma.done.wait (%p5165_p8), %s5002_s29, 16  }
 0xa02   : > { %5383 = vsyncadd (%p5165_p8), %s5002_s29, 4294967280  ;;  %p21_p9 = scmp.ge.s32.totalorder %s5508_s23, 4   ;;  %s10352_s17 = smov %s5390_s18 }
 0xa03   : > { %s10353_s18 = smov %s5394_s19  ;;  %s10354_s19 = smov %s5519_s26 }
 0xa04   : > { %s10355_s20 = smov %s5508_s23  ;;  %23 = sbr.rel (!%p21_p9) target bundleno = 5 (0x5), region = 107 }
 0xa09   :  { %5007 = vsyncpa [#allocation8], 1 }
 0xa0a   :  { %5009 = vsyncpa [#allocation8 + $0x1], 1 }

</bundles_post_ra>
